<compile_context>
chip_gen: v6e
topology: v6e:2x2x1
jax: 0.10.0
libtpu: 0.0.40
codegen_flags: <defaults>
</compile_context>

<pallas_src>
import functools

import jax
import jax.numpy as jnp
from jax import lax
from jax.experimental import pallas as pl
from jax.experimental.pallas import tpu as pltpu


def _round_up(x, m):
    return ((x + m - 1) // m) * m


def _pick_vmem_limit_bytes():
    """Generation-dependent VMEM limit: ~48 MiB on v7x, up to 96 MiB on v5e/v6e."""
    try:
        cap = int(pltpu.get_tpu_info().vmem_capacity_bytes)
    except Exception:  # pragma: no cover - conservative fallback
        cap = 64 * 1024 * 1024
    return int(min(max(cap - 16 * 1024 * 1024, 32 * 1024 * 1024), 96 * 1024 * 1024))


def _vq_body(x_ref, w_ref, wdist_ref, w2_ref, q_ref, idx_ref, sse_ref, *,
             tile_k, n_chunks, n_valid_rows, use_bf16, has_row_pad):
    # x_ref:     (TN, D)  f32      input rows for this tile (zero-padded tail)
    # w_ref:     (Kp, D)  f32      padded codebook (exact rows for lookup)
    # wdist_ref: (Kp, D)  f32/bf16 codebook used for the distance matmul
    #                              (same ref as w_ref on the exact f32 path)
    # w2_ref:    (1, Kp)  f32      ||w_k||^2, padded entries = +inf
    # q_ref:     (TN, D)  f32      quantized rows
    # idx_ref:   (1, TN)  i32      nearest-codebook indices (lane-dense)
    # sse_ref:   (1, 1)   f32      per-tile partial sum of squared errors
    x = x_ref[...]
    tn, d = x.shape

    # Fold -2 into x once per tile: score = ||w||^2 + (-2x)·w has the same
    # argmin as the full squared distance (per-row ||x||^2 is constant).
    if use_bf16:
        x_m2 = (-2.0 * x).astype(jnp.bfloat16)
    else:
        x_m2 = -2.0 * x

    # Hoisted once per tile (JAX does not CSE broadcast_in_dim).
    col_local = lax.broadcasted_iota(jnp.int32, (tn, tile_k), 1)   # (TN, TK)

    def chunk_body(c, carry):
        best_score, best_idx, q = carry
        base = c * tile_k
        if not isinstance(base, int):
            base = pl.multiple_of(base, tile_k)

        w_c = w_ref[pl.ds(base, tile_k), :]            # (TK, D) f32 exact rows
        wd_c = wdist_ref[pl.ds(base, tile_k), :]       # (TK, D) distance dtype
        w2_c = w2_ref[:, pl.ds(base, tile_k)]          # (1, TK)

        # (-2x)·w on the MXU, contracting D with D (no materialized transpose).
        xw = lax.dot_general(x_m2, wd_c,
                             dimension_numbers=(((1,), (1,)), ((), ())),
                             preferred_element_type=jnp.float32)   # (TN, TK)
        score = w2_c + xw

        local_min = jnp.min(score, axis=1, keepdims=True)          # (TN, 1)
        # first-min tie-break within the chunk (matches torch.argmin).
        cand = jnp.where(score == local_min, col_local, jnp.int32(tile_k))
        local_col = jnp.min(cand, axis=1, keepdims=True)           # (TN, 1)

        # Fused one-hot reconstruction for this chunk (exactly one 1 per row;
        # f32 codebook -> exact codebook rows).
        onehot = (col_local == local_col).astype(jnp.float32)      # (TN, TK)
        q_cand = lax.dot_general(onehot, w_c,
                                 dimension_numbers=(((1,), (0,)), ((), ())),
                                 preferred_element_type=jnp.float32)  # (TN, D)

        # strict '<' keeps earlier chunks on ties -> global first-min semantics.
        take = local_min < best_score                               # (TN, 1)
        best_score = jnp.where(take, local_min, best_score)
        best_idx = jnp.where(take, base + local_col, best_idx)
        q = jnp.where(take, q_cand, q)
        return best_score, best_idx, q

    carry0 = (jnp.full((tn, 1), jnp.inf, dtype=jnp.float32),
              jnp.zeros((tn, 1), dtype=jnp.int32),
              jnp.zeros((tn, d), dtype=jnp.float32))
    if n_chunks == 1:
        best_score, best_idx, q = chunk_body(0, carry0)
    else:
        best_score, best_idx, q = lax.fori_loop(
            0, n_chunks, chunk_body, carry0, unroll=(n_chunks <= 8))

    q_ref[...] = q
    idx_ref[...] = best_idx.reshape(1, tn)              # lane-dense index row

    # Per-tile SSE.  Padded tail rows of x are zero, so only best_score / the
    # bf16-path row_sse needs explicit row masking.
    if has_row_pad:
        row_id = lax.broadcasted_iota(jnp.int32, (tn, 1), 0)
        rows_valid = n_valid_rows - pl.program_id(0) * tn
        row_mask = row_id < rows_valid
    else:
        row_mask = None

    if use_bf16:
        # bf16 distances are approximate -> compute SSE from q - x directly.
        diff = q - x
        row_sse = jnp.sum(diff * diff, axis=1, keepdims=True)       # (TN, 1)
        if row_mask is not None:
            row_sse = jnp.where(row_mask, row_sse, 0.0)
        sse_ref[...] = jnp.sum(row_sse, axis=0, keepdims=True)
    else:
        # Exact on the f32 path: ||q - x||^2 = best_score + ||x||^2 per row.
        bs = best_score
        if row_mask is not None:
            bs = jnp.where(row_mask, bs, 0.0)
        sse_ref[...] = jnp.sum(bs, axis=0, keepdims=True) + jnp.sum(x * x)


@functools.partial(
    jax.jit,
    static_argnames=("commitment_cost", "tile_n", "max_tile_k", "use_bf16_distances"),
)
def vq_embedding_forward(x_nchw, codebook, commitment_cost=0.25,
                         tile_n=1024, max_tile_k=512, use_bf16_distances=False):
    """Forward pass of VQEmbedding.

    Args:
      x_nchw:   (B, C, H, W) float32 input (PyTorch NCHW convention).
      codebook: (K, C) float32 embedding weight.
    Returns:
      quantized (B, C, H, W), loss (scalar), encoding_indices (B*H*W, 1) int32.
    """
    b, c, h, w = x_nchw.shape
    k, d = codebook.shape
    assert d == c

    # Glue: NCHW -> NHWC -> (N, D)
    x_nhwc = jnp.transpose(x_nchw, (0, 2, 3, 1))
    flat_x = x_nhwc.reshape(-1, d).astype(jnp.float32)
    n = flat_x.shape[0]

    # Row tiling: pad N up to a multiple of tile_n (zero rows, masked out of
    # the SSE and sliced off below) so tile size, double buffering and megacore
    # sharding are preserved for any N.
    tile_n = int(min(int(tile_n), _round_up(n, 8)))
    tile_n = _round_up(tile_n, 8)
    n_pad = _round_up(n, tile_n)
    num_tiles = n_pad // tile_n
    if n_pad != n:
        flat_x = jnp.pad(flat_x, ((0, n_pad - n), (0, 0)))

    # Codebook chunking: largest chunk <= max_tile_k; pad K so every chunk is
    # full.  Padded entries get ||w||^2 = +inf so they are never selected.
    codebook_f32 = codebook.astype(jnp.float32)
    if k > max_tile_k:
        tile_k = int(max_tile_k)
    else:
        tile_k = _round_up(k, 8)
    k_pad = _round_up(k, tile_k)
    n_chunks = k_pad // tile_k
    codebook_p = codebook_f32
    if k_pad != k:
        codebook_p = jnp.pad(codebook_f32, ((0, k_pad - k), (0, 0)))

    # Grid-invariant ||w_k||^2, hoisted out of the kernel.
    w2 = jnp.sum(codebook_p * codebook_p, axis=1)[None, :]          # (1, Kp)
    if k_pad != k:
        lane = jnp.arange(k_pad)[None, :]
        w2 = jnp.where(lane < k, w2, jnp.inf)

    body = functools.partial(
        _vq_body, tile_k=tile_k, n_chunks=n_chunks, n_valid_rows=n,
        use_bf16=use_bf16_distances, has_row_pad=(n_pad != n))

    x_spec = pl.BlockSpec((tile_n, d), lambda i: (i, 0))
    w_spec = pl.BlockSpec((k_pad, d), lambda i: (0, 0))
    w2_spec = pl.BlockSpec((1, k_pad), lambda i: (0, 0))

    if use_bf16_distances:
        # Pre-cast bf16 codebook for the distance matmul; exact f32 codebook is
        # still used for the one-hot reconstruction.
        def kernel(x_ref, w_ref, wd_ref, w2_ref, q_ref, idx_ref, sse_ref):
            body(x_ref, w_ref, wd_ref, w2_ref, q_ref, idx_ref, sse_ref)
        wd_spec = pl.BlockSpec((k_pad, d), lambda i: (0, 0))
        in_specs = [x_spec, w_spec, wd_spec, w2_spec]
        operands = (flat_x, codebook_p, codebook_p.astype(jnp.bfloat16), w2)
    else:
        def kernel(x_ref, w_ref, w2_ref, q_ref, idx_ref, sse_ref):
            body(x_ref, w_ref, w_ref, w2_ref, q_ref, idx_ref, sse_ref)
        in_specs = [x_spec, w_spec, w2_spec]
        operands = (flat_x, codebook_p, w2)

    quantized_flat, idx_tiles, sse_tiles = pl.pallas_call(
        kernel,
        out_shape=(
            jax.ShapeDtypeStruct((n_pad, d), jnp.float32),
            jax.ShapeDtypeStruct((num_tiles, tile_n), jnp.int32),
            jax.ShapeDtypeStruct((num_tiles, 1), jnp.float32),
        ),
        grid_spec=pltpu.PrefetchScalarGridSpec(
            num_scalar_prefetch=0,
            grid=(num_tiles,),
            in_specs=in_specs,
            out_specs=(
                pl.BlockSpec((tile_n, d), lambda i: (i, 0)),
                pl.BlockSpec((1, tile_n), lambda i: (i, 0)),
                pl.BlockSpec((1, 1), lambda i: (i, 0)),
            ),
        ),
        compiler_params=pltpu.CompilerParams(
            dimension_semantics=("parallel",),       # per-tile partial SSE -> no serialization
            vmem_limit_bytes=_pick_vmem_limit_bytes(),
        ),
    )(*operands)

    mse = jnp.maximum(jnp.sum(sse_tiles), 0.0) / jnp.float32(n * d)
    # q_latent_loss + commitment_cost * e_latent_loss (forward value).
    loss = (1.0 + commitment_cost) * mse

    indices = idx_tiles.reshape(-1)[:n].reshape(n, 1)

    # Straight-through output: forward value == quantized.
    q_nhwc = quantized_flat[:n].reshape(b, h, w, c)
    q_nchw = jnp.transpose(q_nhwc, (0, 3, 1, 2))
    return q_nchw, loss, indices


def _reference_forward(x_nchw, codebook, commitment_cost=0.25):
    """Pure-JAX reference matching the PyTorch module's forward values."""
    b, c, h, w = x_nchw.shape
    x_nhwc = jnp.transpose(x_nchw, (0, 2, 3, 1))
    flat_x = x_nhwc.reshape(-1, c)
    dist = (jnp.sum(flat_x ** 2, axis=1, keepdims=True)
            + jnp.sum(codebook ** 2, axis=1)
            - 2.0 * flat_x @ codebook.T)
    idx = jnp.argmin(dist, axis=1)
    q = codebook[idx].reshape(b, h, w, c)
    mse = jnp.mean((q - x_nhwc) ** 2)
    loss = (1.0 + commitment_cost) * mse
    return jnp.transpose(q, (0, 3, 1, 2)), loss, idx[:, None].astype(jnp.int32)


if __name__ == "__main__":
    # Small shapes consistent with the module: NCHW input, C == embedding_dim.
    batch, channels, spatial = 2, 8, 16
    num_embeddings, embedding_dim = 32, channels
    commitment_cost = 0.25

    key = jax.random.PRNGKey(0)
    kx, kw = jax.random.split(key)
    x = jax.random.normal(kx, (batch, channels, spatial, spatial), dtype=jnp.float32)
    # nn.Embedding weight init: uniform_(-1/K, 1/K), deterministic here.
    codebook = jax.random.uniform(
        kw, (num_embeddings, embedding_dim), dtype=jnp.float32,
        minval=-1.0 / num_embeddings, maxval=1.0 / num_embeddings)

    q, loss, idx = vq_embedding_forward(x, codebook, commitment_cost=commitment_cost)
    jax.block_until_ready((q, loss, idx))

    q_ref, loss_ref, idx_ref = _reference_forward(x, codebook, commitment_cost)
    assert q.shape == (batch, channels, spatial, spatial)
    assert idx.shape == (batch * spatial * spatial, 1)
    assert jnp.allclose(q, q_ref, atol=1e-5, rtol=1e-5)
    assert jnp.allclose(loss, loss_ref, atol=1e-5, rtol=1e-5)
    assert jnp.array_equal(idx, idx_ref)

    print("KERNEL_OK")
</pallas_src>

<mosaic_0001>
module attributes {stable_mosaic.version = 11 : i64} {
  func.func @kernel(%arg0: i32, %arg1: memref<512x8xf32, #tpu.memory_space<vmem>>, %arg2: memref<32x8xf32, #tpu.memory_space<vmem>>, %arg3: memref<1x32xf32, #tpu.memory_space<vmem>>, %arg4: memref<512x8xf32, #tpu.memory_space<vmem>>, %arg5: memref<1x512xi32, #tpu.memory_space<vmem>>, %arg6: memref<1x1xf32, #tpu.memory_space<vmem>>) attributes {dimension_semantics = [#tpu.dimension_semantics<parallel>], iteration_bounds = array<i64: 1>, scalar_prefetch = 0 : i64, scratch_operands = 0 : i64, tpu.core_type = #tpu.core_type<tc>, window_params = [{transform_indices = @transform_0, window_bounds = array<i64: 512, 8>}, {pipeline_mode = #tpu.pipeline_mode<synchronous>, transform_indices = @transform_1, window_bounds = array<i64: 32, 8>}, {pipeline_mode = #tpu.pipeline_mode<synchronous>, transform_indices = @transform_2, window_bounds = array<i64: 1, 32>}, {transform_indices = @transform_3, window_bounds = array<i64: 512, 8>}, {transform_indices = @transform_4, window_bounds = array<i64: 1, 512>}, {transform_indices = @transform_5, window_bounds = array<i64: 1, 1>}]} {
    %c0 = arith.constant 0 : index
    %c0_0 = arith.constant 0 : index
    %0 = vector.load %arg1[%c0, %c0_0] : memref<512x8xf32, #tpu.memory_space<vmem>>, vector<512x8xf32>
    %cst = arith.constant -2.000000e+00 : f32
    %1 = vector.broadcast %cst : f32 to vector<512x8xf32>
    %2 = arith.mulf %1, %0 : vector<512x8xf32>
    %3 = tpu.iota {dimensions = array<i32: 1>} : vector<512x32xi32>
    %cst_1 = arith.constant 0x7F800000 : f32
    %4 = vector.broadcast %cst_1 : f32 to vector<512x1xf32>
    %c0_i32 = arith.constant 0 : i32
    %5 = vector.broadcast %c0_i32 : i32 to vector<512x1xi32>
    %cst_2 = arith.constant 0.000000e+00 : f32
    %6 = vector.broadcast %cst_2 : f32 to vector<512x8xf32>
    %c0_3 = arith.constant 0 : index
    %c0_4 = arith.constant 0 : index
    %7 = vector.load %arg2[%c0_3, %c0_4] : memref<32x8xf32, #tpu.memory_space<vmem>>, vector<32x8xf32>
    %c0_5 = arith.constant 0 : index
    %c0_6 = arith.constant 0 : index
    %8 = vector.load %arg2[%c0_5, %c0_6] : memref<32x8xf32, #tpu.memory_space<vmem>>, vector<32x8xf32>
    %c0_7 = arith.constant 0 : index
    %c0_8 = arith.constant 0 : index
    %9 = vector.load %arg3[%c0_7, %c0_8] : memref<1x32xf32, #tpu.memory_space<vmem>>, vector<1x32xf32>
    %cst_9 = arith.constant dense<0.000000e+00> : vector<512x32xf32>
    %10 = tpu.matmul %2, %8, %cst_9 {dimension_numbers = #tpu.dot_dimension_numbers<[1], [1], [0], [0], [0, 0, 1, 0], [], []>} : vector<512x8xf32>, vector<32x8xf32>, vector<512x32xf32> -> vector<512x32xf32>
    %11 = vector.broadcast %9 : vector<1x32xf32> to vector<512x32xf32>
    %12 = arith.addf %11, %10 : vector<512x32xf32>
    %cst_10 = arith.constant dense<0x7F800000> : vector<512xf32>
    %13 = vector.multi_reduction <minimumf>, %12, %cst_10 [1] : vector<512x32xf32> to vector<512xf32>
    %14 = vector.shape_cast %13 : vector<512xf32> to vector<512x1xf32>
    %15 = vector.broadcast %14 : vector<512x1xf32> to vector<512x32xf32>
    %16 = arith.cmpf oeq, %12, %15 : vector<512x32xf32>
    %c32_i32 = arith.constant 32 : i32
    %17 = vector.broadcast %c32_i32 : i32 to vector<512x32xi32>
    %18 = arith.select %16, %3, %17 : vector<512x32xi1>, vector<512x32xi32>
    %cst_11 = arith.constant dense<2147483647> : vector<512xi32>
    %19 = vector.multi_reduction <minsi>, %18, %cst_11 [1] : vector<512x32xi32> to vector<512xi32>
    %20 = vector.shape_cast %19 : vector<512xi32> to vector<512x1xi32>
    %21 = vector.broadcast %20 : vector<512x1xi32> to vector<512x32xi32>
    %22 = arith.cmpi eq, %3, %21 : vector<512x32xi32>
    %23 = arith.extui %22 : vector<512x32xi1> to vector<512x32xi32>
    %24 = arith.sitofp %23 : vector<512x32xi32> to vector<512x32xf32>
    %cst_12 = arith.constant dense<0.000000e+00> : vector<512x8xf32>
    %25 = tpu.matmul %24, %7, %cst_12 {dimension_numbers = #tpu.dot_dimension_numbers<[1], [0], [0], [1], [0, 0, 1, 1], [], []>} : vector<512x32xf32>, vector<32x8xf32>, vector<512x8xf32> -> vector<512x8xf32>
    %26 = arith.cmpf olt, %14, %4 : vector<512x1xf32>
    %27 = arith.select %26, %14, %4 : vector<512x1xi1>, vector<512x1xf32>
    %c0_i32_13 = arith.constant 0 : i32
    %28 = vector.broadcast %c0_i32_13 : i32 to vector<512x1xi32>
    %29 = arith.addi %28, %20 : vector<512x1xi32>
    %30 = arith.select %26, %29, %5 : vector<512x1xi1>, vector<512x1xi32>
    %31 = vector.shape_cast %26 : vector<512x1xi1> to vector<512x1xi1>
    %32 = vector.broadcast %31 : vector<512x1xi1> to vector<512x8xi1>
    %33 = arith.select %32, %25, %6 : vector<512x8xi1>, vector<512x8xf32>
    %c0_14 = arith.constant 0 : index
    %c0_15 = arith.constant 0 : index
    %34 = vector.load %arg4[%c0_14, %c0_15] : memref<512x8xf32, #tpu.memory_space<vmem>>, vector<512x8xf32>
    tpu.vector_store %arg4[%c0_14, %c0_15], %33 {strides = array<i32>} : memref<512x8xf32, #tpu.memory_space<vmem>>, vector<512x8xf32>,
    %35 = vector.shape_cast %30 : vector<512x1xi32> to vector<1x512xi32>
    %c0_16 = arith.constant 0 : index
    %c0_17 = arith.constant 0 : index
    %36 = vector.load %arg5[%c0_16, %c0_17] : memref<1x512xi32, #tpu.memory_space<vmem>>, vector<1x512xi32>
    tpu.vector_store %arg5[%c0_16, %c0_17], %35 {strides = array<i32>} : memref<1x512xi32, #tpu.memory_space<vmem>>, vector<1x512xi32>,
    %cst_18 = arith.constant dense<0.000000e+00> : vector<1xf32>
    %37 = vector.multi_reduction <add>, %27, %cst_18 [0] : vector<512x1xf32> to vector<1xf32>
    %38 = vector.shape_cast %37 : vector<1xf32> to vector<1x1xf32>
    %39 = arith.mulf %0, %0 : vector<512x8xf32>
    %40 = vector.shape_cast %39 : vector<512x8xf32> to vector<1x512x8xf32>
    %cst_19 = arith.constant dense<0.000000e+00> : vector<1xf32>
    %41 = vector.multi_reduction <add>, %40, %cst_19 [1, 2] : vector<1x512x8xf32> to vector<1xf32>
    %42 = vector.shape_cast %41 : vector<1xf32> to vector<1x1x1xf32>
    %43 = vector.extract %42[0, 0, 0] : f32 from vector<1x1x1xf32>
    %44 = vector.broadcast %43 : f32 to vector<1x1xf32>
    %45 = arith.addf %38, %44 : vector<1x1xf32>
    %c0_20 = arith.constant 0 : index
    %c0_21 = arith.constant 0 : index
    %46 = vector.load %arg6[%c0_20, %c0_21] : memref<1x1xf32, #tpu.memory_space<vmem>>, vector<1x1xf32>
    tpu.vector_store %arg6[%c0_20, %c0_21], %45 {strides = array<i32>} : memref<1x1xf32, #tpu.memory_space<vmem>>, vector<1x1xf32>,
    return
  }
  func.func @transform_0(%arg0: i32) -> (i32, i32) {
    %c0_i32 = arith.constant 0 : i32
    %c0_i32_0 = arith.constant 0 : i32
    return %arg0, %c0_i32 : i32, i32
  }
  func.func @transform_1(%arg0: i32) -> (i32, i32) {
    %c0_i32 = arith.constant 0 : i32
    %c0_i32_0 = arith.constant 0 : i32
    %c0_i32_1 = arith.constant 0 : i32
    return %c0_i32, %c0_i32_0 : i32, i32
  }
  func.func @transform_2(%arg0: i32) -> (i32, i32) {
    %c0_i32 = arith.constant 0 : i32
    %c0_i32_0 = arith.constant 0 : i32
    %c0_i32_1 = arith.constant 0 : i32
    return %c0_i32, %c0_i32_0 : i32, i32
  }
  func.func @transform_3(%arg0: i32) -> (i32, i32) {
    %c0_i32 = arith.constant 0 : i32
    %c0_i32_0 = arith.constant 0 : i32
    return %arg0, %c0_i32 : i32, i32
  }
  func.func @transform_4(%arg0: i32) -> (i32, i32) {
    %c0_i32 = arith.constant 0 : i32
    %c0_i32_0 = arith.constant 0 : i32
    return %arg0, %c0_i32 : i32, i32
  }
  func.func @transform_5(%arg0: i32) -> (i32, i32) {
    %c0_i32 = arith.constant 0 : i32
    %c0_i32_0 = arith.constant 0 : i32
    return %arg0, %c0_i32 : i32, i32
  }
}

</mosaic_0001>

<bundles_post_ra>
// kernel: vq_embedding_forward.1
= control target key start
LH: loop header
LB: loop body
LE: loop exit
PB: predicated region body
PF: predicated region fallthrough
CT: control target
= control target key end

     0   :  { %11 = vsyncpa [#allocation3], 0  ;;  %vm15670_vm0 = vcmask 64512   ;;  %s15351_s0 = inlined_call_operand.vmem [shape: f32[512,8], index: 0, kind: input, shape index: {}]   ;;  %s15352_s1 = inlined_call_operand.vmem [shape: f32[32,8], index: 1, kind: input, shape index: {}]   ;;  %s15353_s2 = inlined_call_operand.vmem [shape: f32[1,32], index: 2, kind: input, shape index: {}]   ;;  %s15354_s3 = inlined_call_operand.vmem [shape: f32[512,8], index: 3, kind: output, shape index: {0}]   ;;  %s15355_s4 = inlined_call_operand.hbm [shape: s32[1,512], index: 4, kind: output, shape index: {1}]   ;;  %s15356_s5 = inlined_call_operand.hbm [shape: f32[1,1], index: 5, kind: output, shape index: {2}]  }
   0x1   :  { %v152_v0 = vld [vmem:[%s15352_s1 + $0x18] sm:$0xff]  ;;  %v151_v1 = vld [vmem:[%s15352_s1 + $0x10] sm:$0xff]  ;;  %v19_v2 = vld [vmem:[%s15351_s0] sm:$0xff] }
   0x2   :  { %9701 = vmatprep.subr.msk.mxu0 %vm15670_vm0, %v152_v0  ;;  %v20_v3 = vld [vmem:[%s15351_s0 + $0x8] sm:$0xff]  ;;  %9805 = vmatprep.subr.mxu1 %v152_v0  ;;  %v21_v4 = vld [vmem:[%s15351_s0 + $0x10] sm:$0xff]  ;;  %v83_v5 = vmul.f32 -2.0, %v19_v2  ;;  %v9132_v6 = vmul.f32 %v19_v2, %v19_v2  ;;  %v22_v8 = vld [vmem:[%s15351_s0 + $0x18] sm:$0xff] }
   0x3   :  { %9702 = vmatpush3.xpose.msk.msra.mxu0 %vm15670_vm0, %v152_v0  ;;  %v9133_v7 = vmul.f32 %v20_v3, %v20_v3  ;;  %9806 = vmatpush3.msra.mxu1 %v152_v0  ;;  %v9134_v9 = vmul.f32 %v21_v4, %v21_v4  ;;  %v9135_v10 = vmul.f32 %v22_v8, %v22_v8  ;;  %v23_v11 = vld [vmem:[%s15351_s0 + $0x20] sm:$0xff]  ;;  %v150_v12 = vld [vmem:[%s15352_s1 + $0x8] sm:$0xff]  ;;  %v25_v23 = vld [vmem:[%s15351_s0 + $0x30] sm:$0xff]  ;;  %v84_v34 = vmul.f32 -2.0, %v20_v3 }
   0x4   :  { %9703 = vmatprep.subr.msk.mxu0 %vm15670_vm0, %v151_v1  ;;  %9807 = vmatprep.subr.mxu1 %v151_v1  ;;  %v9196_v13 = vsel %vm15670_vm0, %v9132_v6, 0.0  ;;  %v9136_v15 = vmul.f32 %v23_v11, %v23_v11  ;;  %v24_v18 = vld [vmem:[%s15351_s0 + $0x28] sm:$0xff]  ;;  %v149_v19 = vld [vmem:[%s15352_s1] sm:$0xff]  ;;  %v9138_v25 = vmul.f32 %v25_v23, %v25_v23  ;;  %v26_v27 = vld [vmem:[%s15351_s0 + $0x38] sm:$0xff]  ;;  %v85_v37 = vmul.f32 -2.0, %v21_v4 }
   0x5   :  { %9709 = vmatprep.mubr.msk.f32.mxu0 %vm15670_vm0, %v83_v5  ;;  %v9197_v14 = vsel %vm15670_vm0, %v9133_v7, 0.0  ;;  %9808 = vmatpush3.msra.mxu1 %v151_v1  ;;  %v9199_v17 = vsel %vm15670_vm0, %v9134_v9, 0.0  ;;  %v9201_v20 = vsel %vm15670_vm0, %v9135_v10, 0.0  ;;  %v9137_v21 = vmul.f32 %v24_v18, %v24_v18  ;;  %v27_v31 = vld [vmem:[%s15351_s0 + $0x40] sm:$0xff]  ;;  %v28_v36 = vld [vmem:[%s15351_s0 + $0x48] sm:$0xff]  ;;  %v29_v41 = vld [vmem:[%s15351_s0 + $0x50] sm:$0xff] }
   0x6   :  { %v9198_v16 = vadd.f32 %v9197_v14, %v9196_v13  ;;  %9809 = vmatprep.subr.mxu1 %v150_v12  ;;  %v9203_v24 = vsel %vm15670_vm0, %v9136_v15, 0.0  ;;  %v9139_v29 = vmul.f32 %v26_v27, %v26_v27  ;;  %v9207_v32 = vsel %vm15670_vm0, %v9138_v25, 0.0  ;;  %v30_v46 = vld [vmem:[%s15351_s0 + $0x58] sm:$0xff]  ;;  %v31_v51 = vld [vmem:[%s15351_s0 + $0x60] sm:$0xff]  ;;  %v32_v56 = vld [vmem:[%s15351_s0 + $0x68] sm:$0xff] }
   0x7   :  { %9704 = vmatpush3.xpose.msk.msra.mxu0 %vm15670_vm0, %v151_v1  ;;  %9810 = vmatpush3.msra.mxu1 %v150_v12  ;;  %v9205_v28 = vsel %vm15670_vm0, %v9137_v21, 0.0  ;;  %v9140_v33 = vmul.f32 %v27_v31, %v27_v31  ;;  %v9141_v39 = vmul.f32 %v28_v36, %v28_v36  ;;  %v9142_v43 = vmul.f32 %v29_v41, %v29_v41  ;;  %v33_v61 = vld [vmem:[%s15351_s0 + $0x70] sm:$0xff] }
   0x8   :  { %9705 = vmatprep.subr.msk.mxu0 %vm15670_vm0, %v150_v12  ;;  %v9200_v22 = vadd.f32 %v9199_v17, %v9198_v16  ;;  %9811 = vmatprep.subr.mxu1 %v149_v19  ;;  %v9209_v38 = vsel %vm15670_vm0, %v9139_v29, 0.0  ;;  %v86_v44 = vmul.f32 -2.0, %v22_v8  ;;  %v87_v47 = vmul.f32 -2.0, %v23_v11 }
   0x9   :  { %9812 = vmatpush3.msra.mxu1 %v149_v19  ;;  %v9211_v42 = vsel %vm15670_vm0, %v9140_v33, 0.0  ;;  %v9213_v48 = vsel %vm15670_vm0, %v9141_v39, 0.0  ;;  %v9143_v49 = vmul.f32 %v30_v46, %v30_v46  ;;  %v9215_v52 = vsel %vm15670_vm0, %v9142_v43, 0.0 }
   0xa   :  { %v9202_v26 = vadd.f32 %v9201_v20, %v9200_v22  ;;  %v9144_v53 = vmul.f32 %v31_v51, %v31_v51  ;;  %v88_v54 = vmul.f32 -2.0, %v24_v18  ;;  %v89_v57 = vmul.f32 -2.0, %v25_v23 }
   0xb   :  { %9706 = vmatpush3.xpose.msk.msra.mxu0 %vm15670_vm0, %v150_v12  ;;  %v9217_v58 = vsel %vm15670_vm0, %v9143_v49, 0.0  ;;  %v9145_v59 = vmul.f32 %v32_v56, %v32_v56 }
   0xc   :  { %9707 = vmatprep.subr.msk.mxu0 %vm15670_vm0, %v149_v19  ;;  %v9204_v30 = vadd.f32 %v9203_v24, %v9202_v26 }
   0xe   :  { %v9206_v35 = vadd.f32 %v9205_v28, %v9204_v30 }
   0xf   :  { %9708 = vmatpush3.xpose.msk.msra.mxu0 %vm15670_vm0, %v149_v19 }
  0x10   :  { %v9208_v40 = vadd.f32 %v9207_v32, %v9206_v35 }
  0x12   :  { %9710 = vmatmul.mubr.msk.f32.vlgmr.msra.gmra.mxu0 %vm15670_vm0, %v84_v34  ;;  %v9210_v45 = vadd.f32 %v9209_v38, %v9208_v40 }
  0x13   :  { %9712 = vmatprep.mubr.msk.f32.mxu0 %vm15670_vm0, %v85_v37 }
  0x14   :  { %v9212_v50 = vadd.f32 %v9211_v42, %v9210_v45 }
  0x16   :  { %9713 = vmatmul.mubr.msk.f32.gmra.mxu0 %vm15670_vm0, %v86_v44  ;;  %v9214_v55 = vadd.f32 %v9213_v48, %v9212_v50 }
  0x17   :  { %9715 = vmatprep.mubr.msk.f32.mxu0 %vm15670_vm0, %v87_v47 }
  0x18   :  { %v9216_v60 = vadd.f32 %v9215_v52, %v9214_v55 }
  0x19   :  { %12 = vsyncpa [#allocation5], 0  ;;  %v9219_v62 = vsel %vm15670_vm0, %v9144_v53, 0.0  ;;  %v9146_v63 = vmul.f32 %v33_v61, %v33_v61  ;;  %v90_v0 = vmul.f32 -2.0, %v26_v27  ;;  %v34_v2 = vld [vmem:[%s15351_s0 + $0x78] sm:$0xff]  ;;  %v91_v3 = vmul.f32 -2.0, %v27_v31 }
  0x1a   :  { %9716 = vmatmul.mubr.msk.f32.gmra.mxu0 %vm15670_vm0, %v88_v54  ;;  %v9218_v1 = vadd.f32 %v9217_v58, %v9216_v60  ;;  %v9221_v4 = vsel %vm15670_vm0, %v9145_v59, 0.0  ;;  %v9147_v5 = vmul.f32 %v34_v2, %v34_v2  ;;  %v35_v7 = vld [vmem:[%s15351_s0 + $0x80] sm:$0xff]  ;;  %v92_v10 = vmul.f32 -2.0, %v28_v36  ;;  %v36_v12 = vld [vmem:[%s15351_s0 + $0x88] sm:$0xff]  ;;  %v37_v17 = vld [vmem:[%s15351_s0 + $0x90] sm:$0xff]  ;;  %s9970_s22 = smov [#allocation4]  }
  0x1b   :  { %9718 = vmatprep.mubr.msk.f32.mxu0 %vm15670_vm0, %v89_v57  ;;  %v9223_v8 = vsel %vm15670_vm0, %v9146_v63, 0.0  ;;  %v9148_v9 = vmul.f32 %v35_v7, %v35_v7  ;;  %v93_v13 = vmul.f32 -2.0, %v29_v41  ;;  %v9149_v15 = vmul.f32 %v36_v12, %v36_v12  ;;  %v38_v22 = vld [vmem:[%s15351_s0 + $0x98] sm:$0xff]  ;;  %v39_v27 = vld [vmem:[%s15351_s0 + $0xa0] sm:$0xff]  ;;  %v40_v32 = vld [vmem:[%s15351_s0 + $0xa8] sm:$0xff]  ;;  %s9354_s23 = sshll.u32 %s9970_s22, 4  ;;  %s9355_s23 = int_to_ptr.vmem [resolvable:$true] %s9354_s23 }
  0x1c   :  { %v9220_v6 = vadd.f32 %v9219_v62, %v9218_v1  ;;  %v9225_v14 = vsel %vm15670_vm0, %v9147_v5, 0.0  ;;  %v9150_v19 = vmul.f32 %v37_v17, %v37_v17  ;;  %v94_v20 = vmul.f32 -2.0, %v30_v46  ;;  %v41_v37 = vld [vmem:[%s15351_s0 + $0xb0] sm:$0xff]  ;;  %v42_v42 = vld [vmem:[%s15351_s0 + $0xb8] sm:$0xff]  ;;  %v43_v47 = vld [vmem:[%s15351_s0 + $0xc0] sm:$0xff]  ;;  %s9923_s24 = scalar_lea.vmem %s9355_s23, 16  ;;  %p9928_p1 = scmp.lt.s32.totalorder %s9355_s23, %s9355_s23 }
  0x1d   :  { %v9227_v18 = vsel %vm15670_vm0, %v9148_v9, 0.0  ;;  %v95_v23 = vmul.f32 -2.0, %v31_v51  ;;  %v9229_v24 = vsel %vm15670_vm0, %v9149_v15, 0.0  ;;  %v9151_v25 = vmul.f32 %v38_v22, %v38_v22  ;;  %v44_v52 = vld [vmem:[%s15351_s0 + $0xc8] sm:$0xff]  ;;  %v45_v57 = vld [vmem:[%s15351_s0 + $0xd0] sm:$0xff]  ;;  %v46_v62 = vld [vmem:[%s15351_s0 + $0xd8] sm:$0xff]  ;;  %p9924_p0 = scmp.ne.s32.totalorder %s9355_s23, %s9923_s24 }
  0x1e   :  { %9719 = vmatmul.mubr.msk.f32.gmra.mxu0 %vm15670_vm0, %v90_v0  ;;  %v9222_v11 = vadd.f32 %v9221_v4, %v9220_v6  ;;  %v9231_v28 = vsel %vm15670_vm0, %v9150_v19, 0.0  ;;  %v9152_v29 = vmul.f32 %v39_v27, %v39_v27  ;;  %v96_v30 = vmul.f32 -2.0, %v32_v56  ;;  %s9927_s25 = scalar_lea.vmem %s9355_s23, 32 }
  0x1f   :  { %9721 = vmatprep.mubr.msk.f32.mxu0 %vm15670_vm0, %v91_v3  ;;  %v97_v33 = vmul.f32 -2.0, %v33_v61  ;;  %v9233_v34 = vsel %vm15670_vm0, %v9151_v25, 0.0  ;;  %v9153_v35 = vmul.f32 %v40_v32, %v40_v32  ;;  %v9154_v39 = vmul.f32 %v41_v37, %v41_v37  ;;  %v47_v3 = vld [vmem:[%s15351_s0 + $0xe0] sm:$0xff]  ;;  %p9929_p2 = scmp.lt.s32.totalorder %s9927_s25, %s9923_s24 }
  0x20   :  { %v9224_v16 = vadd.f32 %v9223_v8, %v9222_v11  ;;  %v9235_v38 = vsel %vm15670_vm0, %v9152_v29, 0.0  ;;  %v98_v40 = vmul.f32 -2.0, %v34_v2  ;;  %v99_v43 = vmul.f32 -2.0, %v35_v7  ;;  %v48_v8 = vld [vmem:[%s15351_s0 + $0xe8] sm:$0xff] }
  0x21   :  { %v9237_v44 = vsel %vm15670_vm0, %v9153_v35, 0.0  ;;  %v9155_v45 = vmul.f32 %v42_v42, %v42_v42  ;;  %v9239_v48 = vsel %vm15670_vm0, %v9154_v39, 0.0  ;;  %v9156_v49 = vmul.f32 %v43_v47, %v43_v47  ;;  %p9930_p3 = por %p9929_p2, %p9928_p1 }
  0x22   :  { %9722 = vmatmul.mubr.msk.f32.gmra.mxu0 %vm15670_vm0, %v92_v10  ;;  %v9226_v21 = vadd.f32 %v9225_v14, %v9224_v16  ;;  %v100_v50 = vmul.f32 -2.0, %v36_v12  ;;  %v101_v53 = vmul.f32 -2.0, %v37_v17  ;;  %v9157_v55 = vmul.f32 %v44_v52, %v44_v52 }
  0x23   :  { %9724 = vmatprep.mubr.msk.f32.mxu0 %vm15670_vm0, %v93_v13  ;;  %v9241_v54 = vsel %vm15670_vm0, %v9155_v45, 0.0  ;;  %v9243_v58 = vsel %vm15670_vm0, %v9156_v49, 0.0  ;;  %v9158_v59 = vmul.f32 %v45_v57, %v45_v57  ;;  %v102_v60 = vmul.f32 -2.0, %v38_v22  ;;  %v49_v13 = vld [vmem:[%s15351_s0 + $0xf0] sm:$0xff]  ;;  %p9931_p4 = pnand %p9930_p3, %p9924_p0 }
  0x24   :  { %v9228_v26 = vadd.f32 %v9227_v18, %v9226_v21  ;;  %v103_v63 = vmul.f32 -2.0, %v39_v27  ;;  %v9245_v0 = vsel %vm15670_vm0, %v9157_v55, 0.0  ;;  %v9159_v1 = vmul.f32 %v46_v62, %v46_v62  ;;  %v50_v18 = vld [vmem:[%s15351_s0 + $0xf8] sm:$0xff] }
  0x25   :  { %v9247_v4 = vsel %vm15670_vm0, %v9158_v59, 0.0  ;;  %v9160_v5 = vmul.f32 %v47_v3, %v47_v3  ;;  %v104_v6 = vmul.f32 -2.0, %v40_v32  ;;  %v105_v9 = vmul.f32 -2.0, %v41_v37 }
  0x26   :  { %9725 = vmatmul.mubr.msk.f32.gmra.mxu0 %vm15670_vm0, %v94_v20  ;;  %v9230_v31 = vadd.f32 %v9229_v24, %v9228_v26  ;;  %v9249_v10 = vsel %vm15670_vm0, %v9159_v1, 0.0  ;;  %v9161_v11 = vmul.f32 %v48_v8, %v48_v8  ;;  %v9162_v15 = vmul.f32 %v49_v13, %v49_v13 }
  0x27   :  { %9727 = vmatprep.mubr.msk.f32.mxu0 %vm15670_vm0, %v95_v23  ;;  %v9251_v14 = vsel %vm15670_vm0, %v9160_v5, 0.0  ;;  %v106_v16 = vmul.f32 -2.0, %v42_v42  ;;  %v107_v19 = vmul.f32 -2.0, %v43_v47  ;;  %v9163_v21 = vmul.f32 %v50_v18, %v50_v18  ;;  %v51_v23 = vld [vmem:[%s15351_s0 + $0x100] sm:$0xff] }
  0x28   :  { %v9232_v36 = vadd.f32 %v9231_v28, %v9230_v31  ;;  %v9253_v20 = vsel %vm15670_vm0, %v9161_v11, 0.0  ;;  %v9255_v24 = vsel %vm15670_vm0, %v9162_v15, 0.0  ;;  %v9164_v25 = vmul.f32 %v51_v23, %v51_v23  ;;  %v52_v28 = vld [vmem:[%s15351_s0 + $0x108] sm:$0xff] }
  0x29   :  { %v108_v26 = vmul.f32 -2.0, %v44_v52  ;;  %v109_v29 = vmul.f32 -2.0, %v45_v57  ;;  %v9165_v31 = vmul.f32 %v52_v28, %v52_v28  ;;  %v111_v39 = vmul.f32 -2.0, %v47_v3 }
  0x2a   :  { %9728 = vmatmul.mubr.msk.f32.gmra.mxu0 %vm15670_vm0, %v96_v30  ;;  %v9234_v41 = vadd.f32 %v9233_v34, %v9232_v36  ;;  %v9257_v30 = vsel %vm15670_vm0, %v9163_v21, 0.0  ;;  %v9259_v34 = vsel %vm15670_vm0, %v9164_v25, 0.0  ;;  %v110_v36 = vmul.f32 -2.0, %v46_v62 }
  0x2b   :  { %9730 = vmatprep.mubr.msk.f32.mxu0 %vm15670_vm0, %v97_v33  ;;  %v53_v33 = vld [vmem:[%s15351_s0 + $0x110] sm:$0xff]  ;;  %v113_v49 = vmul.f32 -2.0, %v49_v13  ;;  %v115_v59 = vmul.f32 -2.0, %v51_v23  ;;  %vm814_vm1 = vcmask 261120  }
  0x2c   :  { %v9236_v46 = vadd.f32 %v9235_v38, %v9234_v41  ;;  %v9166_v35 = vmul.f32 %v53_v33, %v53_v33  ;;  %v54_v38 = vld [vmem:[%s15351_s0 + $0x118] sm:$0xff]  ;;  %v117_v5 = vmul.f32 -2.0, %v53_v33 }
  0x2d   :  { %v9167_v41 = vmul.f32 %v54_v38, %v54_v38 }
  0x2e   :  { %9731 = vmatmul.mubr.msk.f32.gmra.mxu0 %vm15670_vm0, %v98_v40  ;;  %v9238_v51 = vadd.f32 %v9237_v44, %v9236_v46  ;;  %v9261_v40 = vsel %vm15670_vm0, %v9165_v31, 0.0  ;;  %v9263_v44 = vsel %vm15670_vm0, %v9166_v35, 0.0  ;;  %v112_v46 = vmul.f32 -2.0, %v48_v8 }
  0x2f   :  { %9733 = vmatprep.mubr.msk.f32.mxu0 %vm15670_vm0, %v99_v43  ;;  %v55_v43 = vld [vmem:[%s15351_s0 + $0x120] sm:$0xff] }
  0x30   :  { %v9240_v56 = vadd.f32 %v9239_v48, %v9238_v51  ;;  %v9168_v45 = vmul.f32 %v55_v43, %v55_v43  ;;  %v56_v48 = vld [vmem:[%s15351_s0 + $0x128] sm:$0xff]  ;;  %v119_v15 = vmul.f32 -2.0, %v55_v43 }
  0x31   :  { %v9169_v51 = vmul.f32 %v56_v48, %v56_v48 }
  0x32   :  { %9734 = vmatmul.mubr.msk.f32.gmra.mxu0 %vm15670_vm0, %v100_v50  ;;  %v9242_v61 = vadd.f32 %v9241_v54, %v9240_v56  ;;  %v9265_v50 = vsel %vm15670_vm0, %v9167_v41, 0.0  ;;  %v9267_v54 = vsel %vm15670_vm0, %v9168_v45, 0.0  ;;  %v114_v56 = vmul.f32 -2.0, %v50_v18 }
  0x33   :  { %9736 = vmatprep.mubr.msk.f32.mxu0 %vm15670_vm0, %v101_v53  ;;  %v57_v53 = vld [vmem:[%s15351_s0 + $0x130] sm:$0xff] }
  0x34   :  { %v9244_v2 = vadd.f32 %v9243_v58, %v9242_v61  ;;  %v9170_v55 = vmul.f32 %v57_v53, %v57_v53  ;;  %v58_v58 = vld [vmem:[%s15351_s0 + $0x138] sm:$0xff]  ;;  %v121_v25 = vmul.f32 -2.0, %v57_v53 }
  0x35   :  { %v9171_v61 = vmul.f32 %v58_v58, %v58_v58 }
  0x36   :  { %9737 = vmatmul.mubr.msk.f32.gmra.mxu0 %vm15670_vm0, %v102_v60  ;;  %v9246_v7 = vadd.f32 %v9245_v0, %v9244_v2  ;;  %v9269_v60 = vsel %vm15670_vm0, %v9169_v51, 0.0  ;;  %v9271_v0 = vsel %vm15670_vm0, %v9170_v55, 0.0  ;;  %v116_v2 = vmul.f32 -2.0, %v52_v28 }
  0x37   :  { %9739 = vmatprep.mubr.msk.f32.mxu0 %vm15670_vm0, %v103_v63  ;;  %v59_v63 = vld [vmem:[%s15351_s0 + $0x140] sm:$0xff] }
  0x38   :  { %v9248_v12 = vadd.f32 %v9247_v4, %v9246_v7  ;;  %v9172_v1 = vmul.f32 %v59_v63, %v59_v63  ;;  %v60_v4 = vld [vmem:[%s15351_s0 + $0x148] sm:$0xff]  ;;  %v123_v35 = vmul.f32 -2.0, %v59_v63 }
  0x39   :  { %v9173_v7 = vmul.f32 %v60_v4, %v60_v4 }
  0x3a   :  { %9740 = vmatmul.mubr.msk.f32.gmra.mxu0 %vm15670_vm0, %v104_v6  ;;  %v9250_v17 = vadd.f32 %v9249_v10, %v9248_v12  ;;  %v9273_v6 = vsel %vm15670_vm0, %v9171_v61, 0.0  ;;  %v9275_v10 = vsel %vm15670_vm0, %v9172_v1, 0.0  ;;  %v118_v12 = vmul.f32 -2.0, %v54_v38 }
  0x3b   :  { %9742 = vmatprep.mubr.msk.f32.mxu0 %vm15670_vm0, %v105_v9  ;;  %v61_v9 = vld [vmem:[%s15351_s0 + $0x150] sm:$0xff] }
  0x3c   :  { %v9252_v22 = vadd.f32 %v9251_v14, %v9250_v17  ;;  %v9174_v11 = vmul.f32 %v61_v9, %v61_v9  ;;  %v62_v14 = vld [vmem:[%s15351_s0 + $0x158] sm:$0xff]  ;;  %v125_v45 = vmul.f32 -2.0, %v61_v9 }
  0x3d   :  { %v9175_v17 = vmul.f32 %v62_v14, %v62_v14 }
  0x3e   :  { %9743 = vmatmul.mubr.msk.f32.gmra.mxu0 %vm15670_vm0, %v106_v16  ;;  %v9254_v27 = vadd.f32 %v9253_v20, %v9252_v22  ;;  %v9277_v16 = vsel %vm15670_vm0, %v9173_v7, 0.0  ;;  %v9279_v20 = vsel %vm15670_vm0, %v9174_v11, 0.0  ;;  %v120_v22 = vmul.f32 -2.0, %v56_v48 }
  0x3f   :  { %9745 = vmatprep.mubr.msk.f32.mxu0 %vm15670_vm0, %v107_v19  ;;  %v63_v19 = vld [vmem:[%s15351_s0 + $0x160] sm:$0xff] }
  0x40   :  { %v9256_v32 = vadd.f32 %v9255_v24, %v9254_v27  ;;  %v9176_v21 = vmul.f32 %v63_v19, %v63_v19  ;;  %v64_v24 = vld [vmem:[%s15351_s0 + $0x168] sm:$0xff]  ;;  %v127_v55 = vmul.f32 -2.0, %v63_v19 }
  0x41   :  { %v9177_v27 = vmul.f32 %v64_v24, %v64_v24 }
  0x42   :  { %9746 = vmatmul.mubr.msk.f32.gmra.mxu0 %vm15670_vm0, %v108_v26  ;;  %v9258_v37 = vadd.f32 %v9257_v30, %v9256_v32  ;;  %v9281_v26 = vsel %vm15670_vm0, %v9175_v17, 0.0  ;;  %v9283_v30 = vsel %vm15670_vm0, %v9176_v21, 0.0  ;;  %v122_v32 = vmul.f32 -2.0, %v58_v58 }
  0x43   :  { %9748 = vmatprep.mubr.msk.f32.mxu0 %vm15670_vm0, %v109_v29  ;;  %v65_v29 = vld [vmem:[%s15351_s0 + $0x170] sm:$0xff] }
  0x44   :  { %v9260_v42 = vadd.f32 %v9259_v34, %v9258_v37  ;;  %v9178_v31 = vmul.f32 %v65_v29, %v65_v29  ;;  %v66_v34 = vld [vmem:[%s15351_s0 + $0x178] sm:$0xff]  ;;  %v129_v1 = vmul.f32 -2.0, %v65_v29 }
  0x45   :  { %v9179_v37 = vmul.f32 %v66_v34, %v66_v34 }
  0x46   :  { %9749 = vmatmul.mubr.msk.f32.gmra.mxu0 %vm15670_vm0, %v110_v36  ;;  %v9262_v47 = vadd.f32 %v9261_v40, %v9260_v42  ;;  %v9285_v36 = vsel %vm15670_vm0, %v9177_v27, 0.0  ;;  %v9287_v40 = vsel %vm15670_vm0, %v9178_v31, 0.0  ;;  %v124_v42 = vmul.f32 -2.0, %v60_v4 }
  0x47   :  { %9751 = vmatprep.mubr.msk.f32.mxu0 %vm15670_vm0, %v111_v39  ;;  %v67_v39 = vld [vmem:[%s15351_s0 + $0x180] sm:$0xff] }
  0x48   :  { %v9264_v52 = vadd.f32 %v9263_v44, %v9262_v47  ;;  %v9180_v41 = vmul.f32 %v67_v39, %v67_v39  ;;  %v68_v44 = vld [vmem:[%s15351_s0 + $0x188] sm:$0xff]  ;;  %v131_v11 = vmul.f32 -2.0, %v67_v39 }
  0x49   :  { %v9181_v47 = vmul.f32 %v68_v44, %v68_v44 }
  0x4a   :  { %9752 = vmatmul.mubr.msk.f32.gmra.mxu0 %vm15670_vm0, %v112_v46  ;;  %v9266_v57 = vadd.f32 %v9265_v50, %v9264_v52  ;;  %v9289_v46 = vsel %vm15670_vm0, %v9179_v37, 0.0  ;;  %v9291_v50 = vsel %vm15670_vm0, %v9180_v41, 0.0  ;;  %v126_v52 = vmul.f32 -2.0, %v62_v14 }
  0x4b   :  { %9754 = vmatprep.mubr.msk.f32.mxu0 %vm15670_vm0, %v113_v49  ;;  %v69_v49 = vld [vmem:[%s15351_s0 + $0x190] sm:$0xff] }
  0x4c   :  { %v9268_v62 = vadd.f32 %v9267_v54, %v9266_v57  ;;  %v9182_v51 = vmul.f32 %v69_v49, %v69_v49  ;;  %v70_v54 = vld [vmem:[%s15351_s0 + $0x198] sm:$0xff]  ;;  %v133_v21 = vmul.f32 -2.0, %v69_v49 }
  0x4d   :  { %v9183_v57 = vmul.f32 %v70_v54, %v70_v54 }
  0x4e   :  { %9755 = vmatmul.mubr.msk.f32.gmra.mxu0 %vm15670_vm0, %v114_v56  ;;  %v9270_v3 = vadd.f32 %v9269_v60, %v9268_v62  ;;  %v9293_v56 = vsel %vm15670_vm0, %v9181_v47, 0.0  ;;  %v9295_v60 = vsel %vm15670_vm0, %v9182_v51, 0.0  ;;  %v128_v62 = vmul.f32 -2.0, %v64_v24  ;;  %v81_v47 = vld [vmem:[%s15351_s0 + $0x1f0] sm:$0xff] }
  0x4f   :  { %9757 = vmatprep.mubr.msk.f32.mxu0 %vm15670_vm0, %v115_v59  ;;  %v71_v59 = vld [vmem:[%s15351_s0 + $0x1a0] sm:$0xff]  ;;  %v145_v49 = vmul.f32 -2.0, %v81_v47 }
  0x50   :  { %v9272_v8 = vadd.f32 %v9271_v0, %v9270_v3  ;;  %v9184_v61 = vmul.f32 %v71_v59, %v71_v59  ;;  %v72_v0 = vld [vmem:[%s15351_s0 + $0x1a8] sm:$0xff] }
  0x51   :  { %v9185_v3 = vmul.f32 %v72_v0, %v72_v0 }
  0x52   :  { %9758 = vmatmul.mubr.msk.f32.gmra.mxu0 %vm15670_vm0, %v116_v2  ;;  %v9274_v13 = vadd.f32 %v9273_v6, %v9272_v8  ;;  %v9297_v2 = vsel %vm15670_vm0, %v9183_v57, 0.0  ;;  %v9299_v6 = vsel %vm15670_vm0, %v9184_v61, 0.0  ;;  %v130_v8 = vmul.f32 -2.0, %v66_v34 }
  0x53   :  { %9760 = vmatprep.mubr.msk.f32.mxu0 %vm15670_vm0, %v117_v5  ;;  %v73_v5 = vld [vmem:[%s15351_s0 + $0x1b0] sm:$0xff]  ;;  %v136_v34 = vmul.f32 -2.0, %v72_v0 }
  0x54   :  { %v9276_v18 = vadd.f32 %v9275_v10, %v9274_v13  ;;  %v9186_v7 = vmul.f32 %v73_v5, %v73_v5  ;;  %v74_v10 = vld [vmem:[%s15351_s0 + $0x1b8] sm:$0xff] }
  0x55   :  { %v9187_v13 = vmul.f32 %v74_v10, %v74_v10 }
  0x56   :  { %9761 = vmatmul.mubr.msk.f32.gmra.mxu0 %vm15670_vm0, %v118_v12  ;;  %v9278_v23 = vadd.f32 %v9277_v16, %v9276_v18  ;;  %v9301_v12 = vsel %vm15670_vm0, %v9185_v3, 0.0  ;;  %v9303_v16 = vsel %vm15670_vm0, %v9186_v7, 0.0  ;;  %v132_v18 = vmul.f32 -2.0, %v68_v44 }
  0x57   :  { %9763 = vmatprep.mubr.msk.f32.mxu0 %vm15670_vm0, %v119_v15  ;;  %v75_v15 = vld [vmem:[%s15351_s0 + $0x1c0] sm:$0xff] }
  0x58   :  { %v9280_v28 = vadd.f32 %v9279_v20, %v9278_v23  ;;  %v9188_v17 = vmul.f32 %v75_v15, %v75_v15  ;;  %v76_v20 = vld [vmem:[%s15351_s0 + $0x1c8] sm:$0xff]  ;;  %v139_v39 = vmul.f32 -2.0, %v75_v15 }
  0x59   :  { %v9189_v23 = vmul.f32 %v76_v20, %v76_v20 }
  0x5a   :  { %9764 = vmatmul.mubr.msk.f32.gmra.mxu0 %vm15670_vm0, %v120_v22  ;;  %v9282_v33 = vadd.f32 %v9281_v26, %v9280_v28  ;;  %v9305_v22 = vsel %vm15670_vm0, %v9187_v13, 0.0  ;;  %v9307_v26 = vsel %vm15670_vm0, %v9188_v17, 0.0  ;;  %v134_v28 = vmul.f32 -2.0, %v70_v54 }
  0x5b   :  { %9766 = vmatprep.mubr.msk.f32.mxu0 %vm15670_vm0, %v121_v25  ;;  %v77_v25 = vld [vmem:[%s15351_s0 + $0x1d0] sm:$0xff]  ;;  %v9309_v31 = vsel %vm15670_vm0, %v9189_v23, 0.0 }
  0x5c   :  { %v9284_v38 = vadd.f32 %v9283_v30, %v9282_v33  ;;  %v9190_v27 = vmul.f32 %v77_v25, %v77_v25  ;;  %v135_v30 = vmul.f32 -2.0, %v71_v59  ;;  %v141_v41 = vmul.f32 -2.0, %v77_v25 }
  0x5e   :  { %9767 = vmatmul.mubr.msk.f32.gmra.mxu0 %vm15670_vm0, %v122_v32  ;;  %v9286_v43 = vadd.f32 %v9285_v36, %v9284_v38  ;;  %v9311_v33 = vsel %vm15670_vm0, %v9190_v27, 0.0  ;;  %v137_v36 = vmul.f32 -2.0, %v73_v5  ;;  %v138_v38 = vmul.f32 -2.0, %v74_v10 }
  0x5f   :  { %9769 = vmatprep.mubr.msk.f32.mxu0 %vm15670_vm0, %v123_v35 }
  0x60   :  { %v9288_v48 = vadd.f32 %v9287_v40, %v9286_v43  ;;  %v140_v40 = vmul.f32 -2.0, %v76_v20  ;;  %v79_v43 = vld [vmem:[%s15351_s0 + $0x1e0] sm:$0xff] }
  0x62   :  { %9770 = vmatmul.mubr.msk.f32.gmra.mxu0 %vm15670_vm0, %v124_v42  ;;  %v9290_v53 = vadd.f32 %v9289_v46, %v9288_v48  ;;  %v78_v42 = vld [vmem:[%s15351_s0 + $0x1d8] sm:$0xff]  ;;  %v80_v46 = vld [vmem:[%s15351_s0 + $0x1e8] sm:$0xff] }
  0x63   :  { %9772 = vmatprep.mubr.msk.f32.mxu0 %vm15670_vm0, %v125_v45  ;;  %v142_v44 = vmul.f32 -2.0, %v78_v42  ;;  %v143_v45 = vmul.f32 -2.0, %v79_v43  ;;  %v144_v48 = vmul.f32 -2.0, %v80_v46 }
  0x64   :  { %v9292_v58 = vadd.f32 %v9291_v50, %v9290_v53  ;;  %v82_v50 = vld [vmem:[%s15351_s0 + $0x1f8] sm:$0xff] }
  0x65   :  { %v146_v51 = vmul.f32 -2.0, %v82_v50 }
  0x66   :  { %9773 = vmatmul.mubr.msk.f32.gmra.mxu0 %vm15670_vm0, %v126_v52  ;;  %v9294_v63 = vadd.f32 %v9293_v56, %v9292_v58  ;;  %v10342_v52 = vld [vmem:[%s15353_s2] ss:$0 sm:$0xff] }
  0x67   :  { %9775 = vmatprep.mubr.msk.f32.mxu0 %vm15670_vm0, %v127_v55 }
  0x68   :  { %v9296_v4 = vadd.f32 %v9295_v60, %v9294_v63 }
  0x6a   :  { %9776 = vmatmul.mubr.msk.f32.gmra.mxu0 %vm15670_vm0, %v128_v62  ;;  %v9298_v9 = vadd.f32 %v9297_v2, %v9296_v4 }
  0x6b   :  { %9778 = vmatprep.mubr.msk.f32.mxu0 %vm15670_vm0, %v129_v1 }
  0x6c   :  { %v9300_v14 = vadd.f32 %v9299_v6, %v9298_v9 }
  0x6e   :  { %9779 = vmatmul.mubr.msk.f32.gmra.mxu0 %vm15670_vm0, %v130_v8  ;;  %v9302_v19 = vadd.f32 %v9301_v12, %v9300_v14 }
  0x6f   :  { %9781 = vmatprep.mubr.msk.f32.mxu0 %vm15670_vm0, %v131_v11 }
  0x70   :  { %v9304_v24 = vadd.f32 %v9303_v16, %v9302_v19 }
  0x72   :  { %9782 = vmatmul.mubr.msk.f32.gmra.mxu0 %vm15670_vm0, %v132_v18  ;;  %v9306_v29 = vadd.f32 %v9305_v22, %v9304_v24 }
  0x73   :  { %9784 = vmatprep.mubr.msk.f32.mxu0 %vm15670_vm0, %v133_v21 }
  0x74   :  { %v9308_v32 = vadd.f32 %v9307_v26, %v9306_v29 }
  0x76   :  { %9785 = vmatmul.mubr.msk.f32.gmra.mxu0 %vm15670_vm0, %v134_v28  ;;  %v9310_v35 = vadd.f32 %v9309_v31, %v9308_v32 }
  0x77   :  { %9787 = vmatprep.mubr.msk.f32.mxu0 %vm15670_vm0, %v135_v30 }
  0x78   :  { %v10311_v37 = vadd.f32 %v9311_v33, %v9310_v35 }
  0x7a   :  { %15705 = vst [vmem:[#allocation8_spill] sm:$0xff] %v10311_v37  ;;  %9788 = vmatmul.mubr.msk.f32.gmra.mxu0 %vm15670_vm0, %v136_v34 }
  0x7b   :  { %9790 = vmatprep.mubr.msk.f32.mxu0 %vm15670_vm0, %v137_v36 }
  0x7e   :  { %9791 = vmatmul.mubr.msk.f32.gmra.mxu0 %vm15670_vm0, %v138_v38 }
  0x7f   :  { %9793 = vmatprep.mubr.msk.f32.mxu0 %vm15670_vm0, %v139_v39 }
  0x82   :  { %9794 = vmatmul.mubr.msk.f32.gmra.mxu0 %vm15670_vm0, %v140_v40 }
  0x83   :  { %9796 = vmatprep.mubr.msk.f32.mxu0 %vm15670_vm0, %v141_v41 }
  0x86   :  { %9797 = vmatmul.mubr.msk.f32.gmra.mxu0 %vm15670_vm0, %v142_v44 }
  0x87   :  { %9799 = vmatprep.mubr.msk.f32.mxu0 %vm15670_vm0, %v143_v45 }
  0x8a   :  { %9800 = vmatmul.mubr.msk.f32.gmra.mxu0 %vm15670_vm0, %v144_v48 }
  0x8b   :  { %9802 = vmatprep.mubr.msk.f32.mxu0 %vm15670_vm0, %v145_v49 }
  0x8e   :  { %9803 = vmatmul.mubr.msk.f32.gmra.mxu0 %vm15670_vm0, %v146_v51 }
  0xd2   :  { %v9711_v53 = vpop.f32.mrf.mxu0 }
  0xd3   :  { %v10345_v54 = vadd.f32 %v9711_v53, %v10342_v52 }
  0xd4   :  { %v425_v55 = vpop.f32.mrf.mxu0 }
  0xd5   :  { %v10348_v56 = vadd.f32 %v10342_v52, %v425_v55  ;;  %v818_v57 = vsel %vm814_vm1, %v10345_v54, inf }
  0xd6   :  { %819 = vmin.xlane.f32.xlu0 %v818_v57  ;;  %v9714_v58 = vpop.f32.mrf.mxu0 }
  0xd7   :  { %v10353_v59 = vadd.f32 %v9714_v58, %v10342_v52  ;;  %v815_v62 = vsel %vm814_vm1, %v10348_v56, inf }
  0xd8   :  { %v435_v60 = vpop.f32.mrf.mxu0 }
  0xd9   :  { %v10356_v61 = vadd.f32 %v10342_v52, %v435_v60  ;;  %v824_v63 = vsel %vm814_vm1, %v10353_v59, inf }
  0xda   :  { %816 = vmin.xlane.f32.xlu0 %v815_v62  ;;  %825 = vmin.xlane.f32.xlu1 %v824_v63  ;;  %v9717_v0 = vpop.f32.mrf.mxu0 }
  0xdb   :  { %v10363_v1 = vadd.f32 %v9717_v0, %v10342_v52  ;;  %v821_v2 = vsel %vm814_vm1, %v10356_v61, inf }
  0xdc   :  { %v445_v3 = vpop.f32.mrf.mxu0 }
  0xdd   :  { %v10368_v4 = vadd.f32 %v10342_v52, %v445_v3  ;;  %v830_v8 = vsel %vm814_vm1, %v10363_v1, inf }
  0xde   :  { %822 = vmin.xlane.f32.xlu1 %v821_v2  ;;  %v9720_v5 = vpop.f32.mrf.mxu0 }
  0xdf   :  { %v10371_v6 = vadd.f32 %v9720_v5, %v10342_v52  ;;  %v827_v7 = vsel %vm814_vm1, %v10368_v4, inf }
  0xe0   :  { %828 = vmin.xlane.f32.xlu0 %v827_v7  ;;  %v455_v9 = vpop.f32.mrf.mxu0 }
  0xe1   :  { %v10378_v10 = vadd.f32 %v10342_v52, %v455_v9  ;;  %v836_v14 = vsel %vm814_vm1, %v10371_v6, inf }
  0xe2   :  { %831 = vmin.xlane.f32.xlu1 %v830_v8  ;;  %v9723_v11 = vpop.f32.mrf.mxu0 }
  0xe3   :  { %v10381_v12 = vadd.f32 %v9723_v11, %v10342_v52  ;;  %v833_v13 = vsel %vm814_vm1, %v10378_v10, inf }
  0xe4   :  { %834 = vmin.xlane.f32.xlu0 %v833_v13  ;;  %v465_v15 = vpop.f32.mrf.mxu0 }
  0xe5   :  { %v10388_v16 = vadd.f32 %v10342_v52, %v465_v15  ;;  %v842_v20 = vsel %vm814_vm1, %v10381_v12, inf }
  0xe6   :  { %837 = vmin.xlane.f32.xlu1 %v836_v14  ;;  %v9726_v17 = vpop.f32.mrf.mxu0 }
  0xe7   :  { %v10391_v18 = vadd.f32 %v9726_v17, %v10342_v52  ;;  %v839_v19 = vsel %vm814_vm1, %v10388_v16, inf }
  0xe8   :  { %840 = vmin.xlane.f32.xlu0 %v839_v19  ;;  %v475_v21 = vpop.f32.mrf.mxu0 }
  0xe9   :  { %v10398_v22 = vadd.f32 %v10342_v52, %v475_v21  ;;  %v848_v26 = vsel %vm814_vm1, %v10391_v18, inf }
  0xea   :  { %843 = vmin.xlane.f32.xlu1 %v842_v20  ;;  %v9729_v23 = vpop.f32.mrf.mxu0 }
  0xeb   :  { %v10401_v24 = vadd.f32 %v9729_v23, %v10342_v52  ;;  %v845_v25 = vsel %vm814_vm1, %v10398_v22, inf }
  0xec   :  { %846 = vmin.xlane.f32.xlu0 %v845_v25  ;;  %v485_v27 = vpop.f32.mrf.mxu0 }
  0xed   :  { %v10408_v28 = vadd.f32 %v10342_v52, %v485_v27  ;;  %v854_v32 = vsel %vm814_vm1, %v10401_v24, inf }
  0xee   :  { %849 = vmin.xlane.f32.xlu1 %v848_v26  ;;  %v9732_v29 = vpop.f32.mrf.mxu0 }
  0xef   :  { %v10411_v30 = vadd.f32 %v9732_v29, %v10342_v52  ;;  %v851_v31 = vsel %vm814_vm1, %v10408_v28, inf }
  0xf0   :  { %852 = vmin.xlane.f32.xlu0 %v851_v31  ;;  %v495_v33 = vpop.f32.mrf.mxu0 }
  0xf1   :  { %v10418_v34 = vadd.f32 %v10342_v52, %v495_v33  ;;  %v860_v39 = vsel %vm814_vm1, %v10411_v30, inf }
  0xf2   :  { %855 = vmin.xlane.f32.xlu1 %v854_v32  ;;  %v9735_v35 = vpop.f32.mrf.mxu0 }
  0xf3   :  { %v10421_v36 = vadd.f32 %v9735_v35, %v10342_v52  ;;  %v857_v38 = vsel %vm814_vm1, %v10418_v34, inf }
  0xf4   :  { %858 = vmin.xlane.f32.xlu0 %v857_v38  ;;  %v505_v40 = vpop.f32.mrf.mxu0 }
  0xf5   :  { %v10428_v41 = vadd.f32 %v10342_v52, %v505_v40  ;;  %v866_v45 = vsel %vm814_vm1, %v10421_v36, inf }
  0xf6   :  { %861 = vmin.xlane.f32.xlu1 %v860_v39  ;;  %v9738_v42 = vpop.f32.mrf.mxu0 }
  0xf7   :  { %v10431_v43 = vadd.f32 %v9738_v42, %v10342_v52  ;;  %v863_v44 = vsel %vm814_vm1, %v10428_v41, inf }
  0xf8   :  { %864 = vmin.xlane.f32.xlu0 %v863_v44  ;;  %v515_v46 = vpop.f32.mrf.mxu0 }
  0xf9   :  { %v10438_v47 = vadd.f32 %v10342_v52, %v515_v46  ;;  %v872_v51 = vsel %vm814_vm1, %v10431_v43, inf }
  0xfa   :  { %867 = vmin.xlane.f32.xlu1 %v866_v45  ;;  %v9741_v48 = vpop.f32.mrf.mxu0 }
  0xfb   :  { %v10441_v49 = vadd.f32 %v9741_v48, %v10342_v52  ;;  %v869_v50 = vsel %vm814_vm1, %v10438_v47, inf }
  0xfc   :  { %870 = vmin.xlane.f32.xlu0 %v869_v50  ;;  %v525_v53 = vpop.f32.mrf.mxu0 }
  0xfd   :  { %v10448_v55 = vadd.f32 %v10342_v52, %v525_v53  ;;  %v878_v62 = vsel %vm814_vm1, %v10441_v49, inf }
  0xfe   :  { %873 = vmin.xlane.f32.xlu1 %v872_v51  ;;  %v9744_v57 = vpop.f32.mrf.mxu0 }
  0xff   :  { %v10451_v58 = vadd.f32 %v9744_v57, %v10342_v52  ;;  %v875_v60 = vsel %vm814_vm1, %v10448_v55, inf }
 0x100   :  { %876 = vmin.xlane.f32.xlu0 %v875_v60  ;;  %v535_v63 = vpop.f32.mrf.mxu0 }
 0x101   :  { %v10458_v0 = vadd.f32 %v10342_v52, %v535_v63  ;;  %v884_v7 = vsel %vm814_vm1, %v10451_v58, inf }
 0x102   :  { %879 = vmin.xlane.f32.xlu1 %v878_v62  ;;  %v9747_v2 = vpop.f32.mrf.mxu0 }
 0x103   :  { %v10461_v3 = vadd.f32 %v9747_v2, %v10342_v52  ;;  %v881_v5 = vsel %vm814_vm1, %v10458_v0, inf }
 0x104   :  { %882 = vmin.xlane.f32.xlu0 %v881_v5  ;;  %v545_v8 = vpop.f32.mrf.mxu0 }
 0x105   :  { %v10468_v9 = vadd.f32 %v10342_v52, %v545_v8  ;;  %v890_v15 = vsel %vm814_vm1, %v10461_v3, inf }
 0x106   :  { %885 = vmin.xlane.f32.xlu1 %v884_v7  ;;  %v9750_v11 = vpop.f32.mrf.mxu0 }
 0x107   :  { %v10471_v13 = vadd.f32 %v9750_v11, %v10342_v52  ;;  %v887_v14 = vsel %vm814_vm1, %v10468_v9, inf }
 0x108   :  { %888 = vmin.xlane.f32.xlu0 %v887_v14  ;;  %v555_v17 = vpop.f32.mrf.mxu0 }
 0x109   :  { %v10478_v19 = vadd.f32 %v10342_v52, %v555_v17  ;;  %v896_v25 = vsel %vm814_vm1, %v10471_v13, inf }
 0x10a   :  { %891 = vmin.xlane.f32.xlu1 %v890_v15  ;;  %v9753_v20 = vpop.f32.mrf.mxu0 }
 0x10b   :  { %v10481_v21 = vadd.f32 %v9753_v20, %v10342_v52  ;;  %v893_v23 = vsel %vm814_vm1, %v10478_v19, inf }
 0x10c   :  { %894 = vmin.xlane.f32.xlu0 %v893_v23  ;;  %v565_v26 = vpop.f32.mrf.mxu0 }
 0x10d   :  { %v10488_v27 = vadd.f32 %v10342_v52, %v565_v26  ;;  %v902_v33 = vsel %vm814_vm1, %v10481_v21, inf }
 0x10e   :  { %897 = vmin.xlane.f32.xlu1 %v896_v25  ;;  %v9756_v29 = vpop.f32.mrf.mxu0 }
 0x10f   :  { %v10491_v31 = vadd.f32 %v9756_v29, %v10342_v52  ;;  %v899_v32 = vsel %vm814_vm1, %v10488_v27, inf }
 0x110   :  { %900 = vmin.xlane.f32.xlu0 %v899_v32  ;;  %v575_v35 = vpop.f32.mrf.mxu0 }
 0x111   :  { %v10498_v38 = vadd.f32 %v10342_v52, %v575_v35  ;;  %v908_v44 = vsel %vm814_vm1, %v10491_v31, inf }
 0x112   :  { %903 = vmin.xlane.f32.xlu1 %v902_v33  ;;  %v9759_v39 = vpop.f32.mrf.mxu0 }
 0x113   :  { %v10501_v40 = vadd.f32 %v9759_v39, %v10342_v52  ;;  %v905_v42 = vsel %vm814_vm1, %v10498_v38, inf }
 0x114   :  { %906 = vmin.xlane.f32.xlu0 %v905_v42  ;;  %v585_v45 = vpop.f32.mrf.mxu0 }
 0x115   :  { %v10508_v46 = vadd.f32 %v10342_v52, %v585_v45  ;;  %v914_v53 = vsel %vm814_vm1, %v10501_v40, inf }
 0x116   :  { %909 = vmin.xlane.f32.xlu1 %v908_v44  ;;  %v9762_v48 = vpop.f32.mrf.mxu0 }
 0x117   :  { %v10511_v50 = vadd.f32 %v9762_v48, %v10342_v52  ;;  %v911_v51 = vsel %vm814_vm1, %v10508_v46, inf }
 0x118   :  { %912 = vmin.xlane.f32.xlu0 %v911_v51  ;;  %v595_v57 = vpop.f32.mrf.mxu0 }
 0x119   :  { %v10518_v60 = vadd.f32 %v10342_v52, %v595_v57  ;;  %v920_v5 = vsel %vm814_vm1, %v10511_v50, inf }
 0x11a   :  { %915 = vmin.xlane.f32.xlu1 %v914_v53  ;;  %v9765_v62 = vpop.f32.mrf.mxu0 }
 0x11b   :  { %v10521_v63 = vadd.f32 %v9765_v62, %v10342_v52  ;;  %v917_v2 = vsel %vm814_vm1, %v10518_v60, inf }
 0x11c   :  { %918 = vmin.xlane.f32.xlu0 %v917_v2  ;;  %v605_v7 = vpop.f32.mrf.mxu0 }
 0x11d   :  { %v10528_v8 = vadd.f32 %v10342_v52, %v605_v7  ;;  %v926_v17 = vsel %vm814_vm1, %v10521_v63, inf }
 0x11e   :  { %921 = vmin.xlane.f32.xlu1 %v920_v5  ;;  %v9768_v11 = vpop.f32.mrf.mxu0 }
 0x11f   :  { %v10531_v14 = vadd.f32 %v9768_v11, %v10342_v52  ;;  %v923_v15 = vsel %vm814_vm1, %v10528_v8, inf }
 0x120   :  { %924 = vmin.xlane.f32.xlu0 %v923_v15  ;;  %v615_v20 = vpop.f32.mrf.mxu0 }
 0x121   :  { %v10538_v23 = vadd.f32 %v10342_v52, %v615_v20  ;;  %v932_v32 = vsel %vm814_vm1, %v10531_v14, inf }
 0x122   :  { %927 = vmin.xlane.f32.xlu1 %v926_v17  ;;  %v9771_v25 = vpop.f32.mrf.mxu0 }
 0x123   :  { %v10541_v26 = vadd.f32 %v9771_v25, %v10342_v52  ;;  %v929_v29 = vsel %vm814_vm1, %v10538_v23, inf }
 0x124   :  { %930 = vmin.xlane.f32.xlu0 %v929_v29  ;;  %v625_v33 = vpop.f32.mrf.mxu0 }
 0x125   :  { %15706 = vst [vmem:[#allocation9_spill] sm:$0xff] %v10541_v26  ;;  %v10548_v35 = vadd.f32 %v10342_v52, %v625_v33  ;;  %v938_v45 = vsel %vm814_vm1, %v10541_v26, inf }
 0x126   :  { %933 = vmin.xlane.f32.xlu1 %v932_v32  ;;  %v9774_v39 = vpop.f32.mrf.mxu0 }
 0x127   :  { %v10551_v42 = vadd.f32 %v9774_v39, %v10342_v52  ;;  %v935_v44 = vsel %vm814_vm1, %v10548_v35, inf }
 0x128   :  { %936 = vmin.xlane.f32.xlu0 %v935_v44  ;;  %v635_v48 = vpop.f32.mrf.mxu0 }
 0x129   :  { %15707 = vst [vmem:[#allocation10_spill] sm:$0xff] %v10551_v42  ;;  %v10558_v51 = vadd.f32 %v10342_v52, %v635_v48  ;;  %v944_v2 = vsel %vm814_vm1, %v10551_v42, inf }
 0x12a   :  { %939 = vmin.xlane.f32.xlu1 %v938_v45  ;;  %v9777_v53 = vpop.f32.mrf.mxu0 }
 0x12b   :  { %v10561_v57 = vadd.f32 %v9777_v53, %v10342_v52  ;;  %v941_v62 = vsel %vm814_vm1, %v10558_v51, inf }
 0x12c   :  { %942 = vmin.xlane.f32.xlu0 %v941_v62  ;;  %v645_v5 = vpop.f32.mrf.mxu0 }
 0x12d   :  { %15708 = vst [vmem:[#allocation11_spill] sm:$0xff] %v10561_v57  ;;  %v10568_v7 = vadd.f32 %v10342_v52, %v645_v5  ;;  %v950_v20 = vsel %vm814_vm1, %v10561_v57, inf }
 0x12e   :  { %945 = vmin.xlane.f32.xlu1 %v944_v2  ;;  %v9780_v11 = vpop.f32.mrf.mxu0 }
 0x12f   :  { %v10571_v15 = vadd.f32 %v9780_v11, %v10342_v52  ;;  %v947_v17 = vsel %vm814_vm1, %v10568_v7, inf }
 0x130   :  { %948 = vmin.xlane.f32.xlu0 %v947_v17  ;;  %v655_v25 = vpop.f32.mrf.mxu0 }
 0x131   :  { %15709 = vst [vmem:[#allocation12_spill] sm:$0xff] %v10571_v15  ;;  %v10578_v29 = vadd.f32 %v10342_v52, %v655_v25  ;;  %v956_v44 = vsel %vm814_vm1, %v10571_v15, inf }
 0x132   :  { %951 = vmin.xlane.f32.xlu1 %v950_v20  ;;  %v9783_v32 = vpop.f32.mrf.mxu0 }
 0x133   :  { %v10581_v33 = vadd.f32 %v9783_v32, %v10342_v52  ;;  %v953_v39 = vsel %vm814_vm1, %v10578_v29, inf }
 0x134   :  { %954 = vmin.xlane.f32.xlu0 %v953_v39  ;;  %v665_v45 = vpop.f32.mrf.mxu0 }
 0x135   :  { %15710 = vst [vmem:[#allocation13_spill] sm:$0xff] %v10581_v33  ;;  %v10588_v48 = vadd.f32 %v10342_v52, %v665_v45  ;;  %v962_v5 = vsel %vm814_vm1, %v10581_v33, inf }
 0x136   :  { %957 = vmin.xlane.f32.xlu1 %v956_v44  ;;  %v9786_v53 = vpop.f32.mrf.mxu0 }
 0x137   :  { %v10591_v62 = vadd.f32 %v9786_v53, %v10342_v52  ;;  %v959_v2 = vsel %vm814_vm1, %v10588_v48, inf }
 0x138   :  { %960 = vmin.xlane.f32.xlu0 %v959_v2  ;;  %v675_v11 = vpop.f32.mrf.mxu0 }
 0x139   :  { %15711 = vst [vmem:[#allocation14_spill] sm:$0xff] %v10591_v62  ;;  %v10598_v17 = vadd.f32 %v10342_v52, %v675_v11  ;;  %v968_v39 = vsel %vm814_vm1, %v10591_v62, inf }
 0x13a   :  { %963 = vmin.xlane.f32.xlu1 %v962_v5  ;;  %v9789_v20 = vpop.f32.mrf.mxu0 }
 0x13b   :  { %v10601_v25 = vadd.f32 %v9789_v20, %v10342_v52  ;;  %v965_v32 = vsel %vm814_vm1, %v10598_v17, inf }
 0x13c   :  { %966 = vmin.xlane.f32.xlu0 %v965_v32  ;;  %v685_v44 = vpop.f32.mrf.mxu0 }
 0x13d   :  { %15712 = vst [vmem:[#allocation15_spill] sm:$0xff] %v10601_v25  ;;  %v10608_v45 = vadd.f32 %v10342_v52, %v685_v44  ;;  %v974_v11 = vsel %vm814_vm1, %v10601_v25, inf }
 0x13e   :  { %969 = vmin.xlane.f32.xlu1 %v968_v39  ;;  %v9792_v53 = vpop.f32.mrf.mxu0 }
 0x13f   :  { %v10611_v2 = vadd.f32 %v9792_v53, %v10342_v52  ;;  %v971_v5 = vsel %vm814_vm1, %v10608_v45, inf }
 0x140   :  { %972 = vmin.xlane.f32.xlu0 %v971_v5  ;;  %v695_v20 = vpop.f32.mrf.mxu0 }
 0x141   :  { %15713 = vst [vmem:[#allocation16_spill] sm:$0xff] %v10611_v2  ;;  %v10618_v37 = vadd.f32 %v10342_v52, %v695_v20  ;;  %v980_v53 = vsel %vm814_vm1, %v10611_v2, inf }
 0x142   :  { %975 = vmin.xlane.f32.xlu1 %v974_v11  ;;  %v9795_v32 = vpop.f32.mrf.mxu0 }
 0x143   :  { %v10621_v44 = vadd.f32 %v9795_v32, %v10342_v52  ;;  %v977_v39 = vsel %vm814_vm1, %v10618_v37, inf }
 0x144   :  { %978 = vmin.xlane.f32.xlu0 %v977_v39  ;;  %v705_v62 = vpop.f32.mrf.mxu0 }
 0x145   :  { %15714 = vst [vmem:[#allocation17_spill] sm:$0xff] %v10621_v44  ;;  %v10628_v25 = vadd.f32 %v10342_v52, %v705_v62  ;;  %v986_v32 = vsel %vm814_vm1, %v10621_v44, inf }
 0x146   :  { %981 = vmin.xlane.f32.xlu1 %v980_v53  ;;  %v9798_v5 = vpop.f32.mrf.mxu0 }
 0x147   :  { %v10631_v20 = vadd.f32 %v9798_v5, %v10342_v52  ;;  %v983_v11 = vsel %vm814_vm1, %v10628_v25, inf }
 0x148   :  { %984 = vmin.xlane.f32.xlu0 %v983_v11  ;;  %v715_v33 = vpop.f32.mrf.mxu0 }
 0x149   :  { %15715 = vst [vmem:[#allocation18_spill] sm:$0xff] %v10631_v20  ;;  %v10638_v2 = vadd.f32 %v10342_v52, %v715_v33  ;;  %v992_v5 = vsel %vm814_vm1, %v10631_v20, inf }
 0x14a   :  { %987 = vmin.xlane.f32.xlu1 %v986_v32  ;;  %v9801_v39 = vpop.f32.mrf.mxu0 }
 0x14b   :  { %v10641_v62 = vadd.f32 %v9801_v39, %v10342_v52  ;;  %v989_v53 = vsel %vm814_vm1, %v10638_v2, inf }
 0x14c   :  { %990 = vmin.xlane.f32.xlu0 %v989_v53  ;;  %v725_v15 = vpop.f32.mrf.mxu0 }
 0x14d   :  { %15716 = vst [vmem:[#allocation19_spill] sm:$0xff] %v10641_v62  ;;  %v10648_v44 = vadd.f32 %v10342_v52, %v725_v15  ;;  %v998_v39 = vsel %vm814_vm1, %v10641_v62, inf }
 0x14e   :  { %993 = vmin.xlane.f32.xlu1 %v992_v5  ;;  %v9804_v11 = vpop.f32.mrf.mxu0  ;;  %v15366_v5 = vlaneseq }
 0x14f   :  { %v10651_v33 = vadd.f32 %v9804_v11, %v10342_v52  ;;  %v995_v32 = vsel %vm814_vm1, %v10648_v44, inf }
 0x150   :  { %996 = vmin.xlane.f32.xlu0 %v995_v32  ;;  %v735_v57 = vpop.f32.mrf.mxu0  ;;  %v10665_v11 = vand.u32 127, %v15366_v5 }
 0x151   :  { %15717 = vst [vmem:[#allocation20_spill] sm:$0xff] %v10651_v33  ;;  %v10658_v20 = vadd.f32 %v10342_v52, %v735_v57  ;;  %v1004_v53 = vsel %vm814_vm1, %v10651_v33, inf }
 0x152   :  { %999 = vmin.xlane.f32.xlu1 %v998_v39  ;;  %15719 = vst [vmem:[#allocation22_spill] sm:$0xff] %v10665_v11 }
 0x153   :  { %15718 = vst [vmem:[#allocation21_spill] sm:$0xff] %v10658_v20  ;;  %v1001_v15 = vsel %vm814_vm1, %v10658_v20, inf }
 0x154   :  { %1002 = vmin.xlane.f32.xlu0 %v1001_v15 }
 0x156   :  { %1005 = vmin.xlane.f32.xlu1 %v1004_v53 }
 0x15f   :  { %v10667_v42 = vpop.xlane.xlu0 %819 }
 0x160   :  { %15720 = vst [vmem:[#allocation23_spill] sm:$0xff] %v10667_v42  ;;  %vm1008_vm2 = vcmp.eq.f32.partialorder %v10345_v54, %v10667_v42  ;;  %vm2865_vm3 = vcmp.lt.f32.partialorder %v10667_v42, inf }
 0x161   :  { %v1072_v52 = vsel %vm1008_vm2, %v10665_v11, 32 }
 0x162   :  { %v10673_v57 = vsel %vm814_vm1, %v1072_v52, 2147483647 }
 0x163   :  { %v10675_v32 = vpop.xlane.xlu0 %816  ;;  %v10677_v39 = vpop.xlane.xlu1 %825  ;;  %v1152_v15 = vshra.s32 %v10673_v57, 16 }
 0x164   :  { %15721 = vst [vmem:[#allocation24_spill] sm:$0xff] %v10675_v32  ;;  %15722 = vst [vmem:[#allocation25_spill] sm:$0xff] %v10677_v39  ;;  %vm2864_vm4 = vcmp.lt.f32.partialorder %v10675_v32, inf  ;;  %vm1007_vm5 = vcmp.eq.f32.partialorder %v10348_v56, %v10675_v32  ;;  %vm1010_vm6 = vcmp.eq.f32.partialorder %v10353_v59, %v10677_v39  ;;  %v2929_v56 = vsel %vm2865_vm3, %v10667_v42, inf }
 0x165   :  { %v2928_v54 = vsel %vm2864_vm4, %v10675_v32, inf  ;;  %v10689_v53 = vcvt.s32.f32 %v1152_v15  ;;  %v1071_v52 = vsel %vm1007_vm5, %v10665_v11, 32  ;;  %v1074_v20 = vsel %vm1010_vm6, %v10665_v11, 32 }
 0x166   :  { %v10693_v5 = vsel %vm814_vm1, %v1071_v52, 2147483647  ;;  %v10704_v15 = vsel %vm814_vm1, %v1074_v20, 2147483647  ;;  %v9063_v32 = vadd.f32 %v2929_v56, %v2928_v54  ;;  %vm2867_vm7 = vcmp.lt.f32.partialorder %v10677_v39, inf }
 0x167   :  { %v10699_v33 = vpop.xlane.xlu1 %822  ;;  %1155 = vmin.xlane.f32.xlu0 %v10689_v53  ;;  %v1137_v59 = vshra.s32 %v10693_v5, 16  ;;  %15724 = vst [vmem:[#allocation27_spill] sm:$0xff] %v10704_v15  ;;  %v1182_v26 = vshra.s32 %v10704_v15, 16 }
 0x168   :  { %15723 = vst [vmem:[#allocation26_spill] sm:$0xff] %v10699_v33  ;;  %vm2866_vm8 = vcmp.lt.f32.partialorder %v10699_v33, inf  ;;  %vm1009_vm9 = vcmp.eq.f32.partialorder %v10356_v61, %v10699_v33  ;;  %v2931_v61 = vsel %vm2867_vm7, %v10677_v39, inf }
 0x169   :  { %v2930_v52 = vsel %vm2866_vm8, %v10699_v33, inf  ;;  %v10713_v42 = vpop.xlane.xlu0 %828  ;;  %v10715_v62 = vcvt.s32.f32 %v1137_v59  ;;  %v1073_v20 = vsel %vm1009_vm9, %v10665_v11, 32 }
 0x16a   :  { %15725 = vst [vmem:[#allocation28_spill] sm:$0xff] %v10713_v42  ;;  %v9064_v54 = vadd.f32 %v9063_v32, %v2930_v52  ;;  %vm2868_vm10 = vcmp.lt.f32.partialorder %v10713_v42, inf  ;;  %v10721_v56 = vsel %vm814_vm1, %v1073_v20, 2147483647  ;;  %vm1011_vm13 = vcmp.eq.f32.partialorder %v10368_v4, %v10713_v42 }
 0x16b   :  { %15726 = vst [vmem:[#allocation29_spill] sm:$0xff] %v10715_v62  ;;  %15727 = vst [vmem:[#allocation30_spill] sm:$0xff] %v10721_v56  ;;  %v2932_v33 = vsel %vm2868_vm10, %v10713_v42, inf  ;;  %v10729_v59 = vpop.xlane.xlu1 %831  ;;  %1140 = vmin.xlane.f32.xlu0 %v10715_v62  ;;  %v10742_v20 = vcvt.s32.f32 %v1182_v26  ;;  %v1167_v39 = vshra.s32 %v10721_v56, 16  ;;  %v1075_v4 = vsel %vm1011_vm13, %v10665_v11, 32 }
 0x16c   :  { %15728 = vst [vmem:[#allocation31_spill] sm:$0xff] %v10729_v59  ;;  %v9065_v15 = vadd.f32 %v9064_v54, %v2931_v61  ;;  %vm2869_vm11 = vcmp.lt.f32.partialorder %v10729_v59, inf  ;;  %vm1012_vm12 = vcmp.eq.f32.partialorder %v10363_v1, %v10729_v59 }
 0x16d   :  { %v2933_v32 = vsel %vm2869_vm11, %v10729_v59, inf  ;;  %v10740_v52 = vpop.xlane.xlu0 %834  ;;  %15730 = vst [vmem:[#allocation33_spill] sm:$0xff] %v10742_v20  ;;  %v1076_v54 = vsel %vm1012_vm12, %v10665_v11, 32  ;;  %v10766_v59 = vsel %vm814_vm1, %v1075_v4, 2147483647 }
 0x16e   :  { %15729 = vst [vmem:[#allocation32_spill] sm:$0xff] %v10740_v52  ;;  %v9066_v61 = vadd.f32 %v9065_v15, %v2932_v33  ;;  %vm2870_vm14 = vcmp.lt.f32.partialorder %v10740_v52, inf  ;;  %v10748_v1 = vsel %vm814_vm1, %v1076_v54, 2147483647  ;;  %v10761_v15 = vcvt.s32.f32 %v1167_v39  ;;  %15735 = vst [vmem:[#allocation38_spill] sm:$0xff] %v10766_v59 }
 0x16f   :  { %15731 = vst [vmem:[#allocation34_spill] sm:$0xff] %v10748_v1  ;;  %v10750_v62 = vpop.xlane.xlu1 %837  ;;  %1185 = vmin.xlane.f32.xlu0 %v10742_v20  ;;  %v2934_v26 = vsel %vm2870_vm14, %v10740_v52, inf  ;;  %v1212_v54 = vshra.s32 %v10748_v1, 16  ;;  %vm1013_vm5 = vcmp.eq.f32.partialorder %v10378_v10, %v10740_v52  ;;  %v1197_v4 = vshra.s32 %v10766_v59, 16 }
 0x170   :  { %15732 = vst [vmem:[#allocation35_spill] sm:$0xff] %v10750_v62  ;;  %v9067_v42 = vadd.f32 %v9066_v61, %v2933_v32  ;;  %vm1014_vm15 = vcmp.eq.f32.partialorder %v10371_v6, %v10750_v62  ;;  %15734 = vst [vmem:[#allocation37_spill] sm:$0xff] %v10761_v15  ;;  %vm2871_vm2 = vcmp.lt.f32.partialorder %v10750_v62, inf  ;;  %v1077_v10 = vsel %vm1013_vm5, %v10665_v11, 32 }
 0x171   :  { %v10759_v33 = vpop.xlane.xlu0 %840  ;;  %v1078_v6 = vsel %vm1014_vm15, %v10665_v11, 32  ;;  %v2935_v39 = vsel %vm2871_vm2, %v10750_v62, inf  ;;  %v10779_v1 = vcvt.s32.f32 %v1212_v54  ;;  %v10797_v52 = vcvt.s32.f32 %v1197_v4 }
 0x172   :  { %15733 = vst [vmem:[#allocation36_spill] sm:$0xff] %v10759_v33  ;;  %v9068_v32 = vadd.f32 %v9067_v42, %v2934_v26  ;;  %vm2872_vm6 = vcmp.lt.f32.partialorder %v10759_v33, inf  ;;  %v10802_v62 = vsel %vm814_vm1, %v1077_v10, 2147483647  ;;  %vm1015_vm13 = vcmp.eq.f32.partialorder %v10388_v16, %v10759_v33 }
 0x173   :  { %v10768_v20 = vpop.xlane.xlu1 %843  ;;  %1170 = vmin.xlane.f32.xlu0 %v10761_v15  ;;  %15738 = vst [vmem:[#allocation41_spill] sm:$0xff] %v10779_v1  ;;  %v10784_v15 = vsel %vm814_vm1, %v1078_v6, 2147483647  ;;  %v2936_v26 = vsel %vm2872_vm6, %v10759_v33, inf  ;;  %15742 = vst [vmem:[#allocation45_spill] sm:$0xff] %v10797_v52  ;;  %v1227_v10 = vshra.s32 %v10802_v62, 16 }
 0x174   :  { %15736 = vst [vmem:[#allocation39_spill] sm:$0xff] %v10768_v20  ;;  %15739 = vst [vmem:[#allocation42_spill] sm:$0xff] %v10784_v15  ;;  %v9069_v42 = vadd.f32 %v9068_v32, %v2935_v39  ;;  %vm1016_vm9 = vcmp.eq.f32.partialorder %v10381_v12, %v10768_v20  ;;  %v1242_v6 = vshra.s32 %v10784_v15, 16  ;;  %vm15405_vm12 = vcmp.lt.f32.partialorder %v10768_v20, inf }
 0x175   :  { %v10777_v61 = vpop.xlane.xlu0 %846  ;;  %15743 = vst [vmem:[#allocation46_spill] sm:$0xff] %v10802_v62  ;;  %v1080_v12 = vsel %vm1016_vm9, %v10665_v11, 32  ;;  %v2937_v39 = vsel %vm15405_vm12, %v10768_v20, inf  ;;  %v1079_v16 = vsel %vm1015_vm13, %v10665_v11, 32  ;;  %v10833_v20 = vcvt.s32.f32 %v1227_v10 }
 0x176   :  { %15737 = vst [vmem:[#allocation40_spill] sm:$0xff] %v10777_v61  ;;  %v9070_v32 = vadd.f32 %v9069_v42, %v2936_v26  ;;  %v10815_v15 = vcvt.s32.f32 %v1242_v6  ;;  %vm15459_vm15 = vcmp.lt.f32.partialorder %v10777_v61, inf  ;;  %v10838_v33 = vsel %vm814_vm1, %v1079_v16, 2147483647 }
 0x177   :  { %v10786_v56 = vpop.xlane.xlu1 %849  ;;  %1215 = vmin.xlane.f32.xlu0 %v10779_v1  ;;  %v2938_v26 = vsel %vm15459_vm15, %v10777_v61, inf  ;;  %15750 = vst [vmem:[#allocation53_spill] sm:$0xff] %v10833_v20  ;;  %15751 = vst [vmem:[#allocation54_spill] sm:$0xff] %v10838_v33  ;;  %vm1017_vm13 = vcmp.eq.f32.partialorder %v10398_v22, %v10777_v61  ;;  %v1257_v16 = vshra.s32 %v10838_v33, 16 }
 0x178   :  { %15740 = vst [vmem:[#allocation43_spill] sm:$0xff] %v10786_v56  ;;  %15746 = vst [vmem:[#allocation49_spill] sm:$0xff] %v10815_v15  ;;  %v9071_v42 = vadd.f32 %v9070_v32, %v2937_v39  ;;  %vm1018_vm5 = vcmp.eq.f32.partialorder %v10391_v18, %v10786_v56  ;;  %vm15410_vm9 = vcmp.lt.f32.partialorder %v10786_v56, inf  ;;  %v1081_v22 = vsel %vm1017_vm13, %v10665_v11, 32 }
 0x179   :  { %v10795_v54 = vpop.xlane.xlu0 %852  ;;  %v1082_v18 = vsel %vm1018_vm5, %v10665_v11, 32  ;;  %v2939_v39 = vsel %vm15410_vm9, %v10786_v56, inf  ;;  %v10869_v56 = vcvt.s32.f32 %v1257_v16  ;;  %v10874_v61 = vsel %vm814_vm1, %v1081_v22, 2147483647 }
 0x17a   :  { %15741 = vst [vmem:[#allocation44_spill] sm:$0xff] %v10795_v54  ;;  %v9072_v32 = vadd.f32 %v9071_v42, %v2938_v26  ;;  %vm15415_vm12 = vcmp.lt.f32.partialorder %v10795_v54, inf  ;;  %15759 = vst [vmem:[#allocation62_spill] sm:$0xff] %v10874_v61  ;;  %vm1019_vm13 = vcmp.eq.f32.partialorder %v10408_v28, %v10795_v54  ;;  %v1287_v22 = vshra.s32 %v10874_v61, 16 }
 0x17b   :  { %v10804_v1 = vpop.xlane.xlu1 %855  ;;  %1200 = vmin.xlane.f32.xlu0 %v10797_v52  ;;  %v10820_v52 = vsel %vm814_vm1, %v1080_v12, 2147483647  ;;  %v2940_v26 = vsel %vm15415_vm12, %v10795_v54, inf  ;;  %15758 = vst [vmem:[#allocation61_spill] sm:$0xff] %v10869_v56  ;;  %v1083_v28 = vsel %vm1019_vm13, %v10665_v11, 32 }
 0x17c   :  { %15744 = vst [vmem:[#allocation47_spill] sm:$0xff] %v10804_v1  ;;  %15747 = vst [vmem:[#allocation50_spill] sm:$0xff] %v10820_v52  ;;  %v1272_v12 = vshra.s32 %v10820_v52, 16  ;;  %v9073_v42 = vadd.f32 %v9072_v32, %v2939_v39  ;;  %vm1020_vm5 = vcmp.eq.f32.partialorder %v10401_v24, %v10804_v1  ;;  %vm15420_vm9 = vcmp.lt.f32.partialorder %v10804_v1, inf }
 0x17d   :  { %v10813_v4 = vpop.xlane.xlu0 %858  ;;  %v1084_v24 = vsel %vm1020_vm5, %v10665_v11, 32  ;;  %v2941_v39 = vsel %vm15420_vm9, %v10804_v1, inf  ;;  %v10905_v1 = vcvt.s32.f32 %v1287_v22  ;;  %v10910_v54 = vsel %vm814_vm1, %v1083_v28, 2147483647 }
 0x17e   :  { %15745 = vst [vmem:[#allocation48_spill] sm:$0xff] %v10813_v4  ;;  %v10851_v52 = vcvt.s32.f32 %v1272_v12  ;;  %v9074_v32 = vadd.f32 %v9073_v42, %v2940_v26  ;;  %vm15425_vm12 = vcmp.lt.f32.partialorder %v10813_v4, inf  ;;  %15767 = vst [vmem:[#allocation70_spill] sm:$0xff] %v10910_v54  ;;  %vm1021_vm13 = vcmp.eq.f32.partialorder %v10418_v34, %v10813_v4 }
 0x17f   :  { %v10822_v59 = vpop.xlane.xlu1 %861  ;;  %1245 = vmin.xlane.f32.xlu0 %v10815_v15  ;;  %v2942_v26 = vsel %vm15425_vm12, %v10813_v4, inf  ;;  %15766 = vst [vmem:[#allocation69_spill] sm:$0xff] %v10905_v1  ;;  %v1317_v28 = vshra.s32 %v10910_v54, 16  ;;  %v1085_v34 = vsel %vm1021_vm13, %v10665_v11, 32 }
 0x180   :  { %15748 = vst [vmem:[#allocation51_spill] sm:$0xff] %v10822_v59  ;;  %15754 = vst [vmem:[#allocation57_spill] sm:$0xff] %v10851_v52  ;;  %v9075_v42 = vadd.f32 %v9074_v32, %v2941_v39  ;;  %vm1022_vm5 = vcmp.eq.f32.partialorder %v10411_v30, %v10822_v59  ;;  %vm15430_vm9 = vcmp.lt.f32.partialorder %v10822_v59, inf  ;;  %v10946_v4 = vsel %vm814_vm1, %v1085_v34, 2147483647 }
 0x181   :  { %v10831_v6 = vpop.xlane.xlu0 %864  ;;  %v1086_v30 = vsel %vm1022_vm5, %v10665_v11, 32  ;;  %v2943_v39 = vsel %vm15430_vm9, %v10822_v59, inf  ;;  %v10941_v59 = vcvt.s32.f32 %v1317_v28  ;;  %15775 = vst [vmem:[#allocation78_spill] sm:$0xff] %v10946_v4  ;;  %v1347_v34 = vshra.s32 %v10946_v4, 16 }
 0x182   :  { %15749 = vst [vmem:[#allocation52_spill] sm:$0xff] %v10831_v6  ;;  %v9076_v32 = vadd.f32 %v9075_v42, %v2942_v26  ;;  %vm15435_vm12 = vcmp.lt.f32.partialorder %v10831_v6, inf  ;;  %vm1023_vm13 = vcmp.eq.f32.partialorder %v10428_v41, %v10831_v6 }
 0x183   :  { %v10840_v15 = vpop.xlane.xlu1 %867  ;;  %1230 = vmin.xlane.f32.xlu0 %v10833_v20  ;;  %v10856_v20 = vsel %vm814_vm1, %v1082_v18, 2147483647  ;;  %v2944_v26 = vsel %vm15435_vm12, %v10831_v6, inf  ;;  %15774 = vst [vmem:[#allocation77_spill] sm:$0xff] %v10941_v59  ;;  %v1087_v41 = vsel %vm1023_vm13, %v10665_v11, 32 }
 0x184   :  { %15752 = vst [vmem:[#allocation55_spill] sm:$0xff] %v10840_v15  ;;  %15755 = vst [vmem:[#allocation58_spill] sm:$0xff] %v10856_v20  ;;  %v1302_v18 = vshra.s32 %v10856_v20, 16  ;;  %v9077_v42 = vadd.f32 %v9076_v32, %v2943_v39  ;;  %vm1024_vm5 = vcmp.eq.f32.partialorder %v10421_v36, %v10840_v15  ;;  %vm15440_vm9 = vcmp.lt.f32.partialorder %v10840_v15, inf }
 0x185   :  { %v10849_v10 = vpop.xlane.xlu0 %870  ;;  %v1088_v36 = vsel %vm1024_vm5, %v10665_v11, 32  ;;  %v2945_v39 = vsel %vm15440_vm9, %v10840_v15, inf  ;;  %v10977_v15 = vcvt.s32.f32 %v1347_v34  ;;  %v10982_v6 = vsel %vm814_vm1, %v1087_v41, 2147483647 }
 0x186   :  { %15753 = vst [vmem:[#allocation56_spill] sm:$0xff] %v10849_v10  ;;  %v10887_v20 = vcvt.s32.f32 %v1302_v18  ;;  %v9078_v32 = vadd.f32 %v9077_v42, %v2944_v26  ;;  %vm15445_vm12 = vcmp.lt.f32.partialorder %v10849_v10, inf  ;;  %15783 = vst [vmem:[#allocation86_spill] sm:$0xff] %v10982_v6  ;;  %vm1025_vm13 = vcmp.eq.f32.partialorder %v10438_v47, %v10849_v10 }
 0x187   :  { %v10858_v62 = vpop.xlane.xlu1 %873  ;;  %1275 = vmin.xlane.f32.xlu0 %v10851_v52  ;;  %v2946_v26 = vsel %vm15445_vm12, %v10849_v10, inf  ;;  %15782 = vst [vmem:[#allocation85_spill] sm:$0xff] %v10977_v15  ;;  %v1377_v41 = vshra.s32 %v10982_v6, 16  ;;  %v1089_v47 = vsel %vm1025_vm13, %v10665_v11, 32 }
 0x188   :  { %15756 = vst [vmem:[#allocation59_spill] sm:$0xff] %v10858_v62  ;;  %15762 = vst [vmem:[#allocation65_spill] sm:$0xff] %v10887_v20  ;;  %v9079_v42 = vadd.f32 %v9078_v32, %v2945_v39  ;;  %vm1026_vm5 = vcmp.eq.f32.partialorder %v10431_v43, %v10858_v62  ;;  %vm15450_vm9 = vcmp.lt.f32.partialorder %v10858_v62, inf  ;;  %v11018_v10 = vsel %vm814_vm1, %v1089_v47, 2147483647 }
 0x189   :  { %v10867_v12 = vpop.xlane.xlu0 %876  ;;  %v1090_v43 = vsel %vm1026_vm5, %v10665_v11, 32  ;;  %v2947_v39 = vsel %vm15450_vm9, %v10858_v62, inf  ;;  %v11013_v62 = vcvt.s32.f32 %v1377_v41  ;;  %15791 = vst [vmem:[#allocation94_spill] sm:$0xff] %v11018_v10 }
 0x18a   :  { %15757 = vst [vmem:[#allocation60_spill] sm:$0xff] %v10867_v12  ;;  %v9080_v32 = vadd.f32 %v9079_v42, %v2946_v26  ;;  %vm15454_vm12 = vcmp.lt.f32.partialorder %v10867_v12, inf  ;;  %vm1027_vm13 = vcmp.eq.f32.partialorder %v10448_v55, %v10867_v12 }
 0x18b   :  { %v10876_v52 = vpop.xlane.xlu1 %879  ;;  %1260 = vmin.xlane.f32.xlu0 %v10869_v56  ;;  %v10892_v56 = vsel %vm814_vm1, %v1084_v24, 2147483647  ;;  %v2948_v26 = vsel %vm15454_vm12, %v10867_v12, inf  ;;  %15790 = vst [vmem:[#allocation93_spill] sm:$0xff] %v11013_v62  ;;  %v1091_v55 = vsel %vm1027_vm13, %v10665_v11, 32 }
 0x18c   :  { %15760 = vst [vmem:[#allocation63_spill] sm:$0xff] %v10876_v52  ;;  %15763 = vst [vmem:[#allocation66_spill] sm:$0xff] %v10892_v56  ;;  %v1332_v24 = vshra.s32 %v10892_v56, 16  ;;  %v9081_v42 = vadd.f32 %v9080_v32, %v2947_v39  ;;  %vm1028_vm5 = vcmp.eq.f32.partialorder %v10441_v49, %v10876_v52  ;;  %vm15458_vm9 = vcmp.lt.f32.partialorder %v10876_v52, inf }
 0x18d   :  { %v10885_v16 = vpop.xlane.xlu0 %882  ;;  %v1092_v49 = vsel %vm1028_vm5, %v10665_v11, 32  ;;  %v2949_v39 = vsel %vm15458_vm9, %v10876_v52, inf }
 0x18e   :  { %15761 = vst [vmem:[#allocation64_spill] sm:$0xff] %v10885_v16  ;;  %v10923_v56 = vcvt.s32.f32 %v1332_v24  ;;  %v9082_v32 = vadd.f32 %v9081_v42, %v2948_v26  ;;  %vm15462_vm12 = vcmp.lt.f32.partialorder %v10885_v16, inf }
 0x18f   :  { %v10894_v33 = vpop.xlane.xlu1 %885  ;;  %1305 = vmin.xlane.f32.xlu0 %v10887_v20  ;;  %v2950_v26 = vsel %vm15462_vm12, %v10885_v16, inf  ;;  %vm1029_vm12 = vcmp.eq.f32.partialorder %v10458_v0, %v10885_v16 }
 0x190   :  { %15764 = vst [vmem:[#allocation67_spill] sm:$0xff] %v10894_v33  ;;  %15770 = vst [vmem:[#allocation73_spill] sm:$0xff] %v10923_v56  ;;  %v9083_v42 = vadd.f32 %v9082_v32, %v2949_v39  ;;  %vm1030_vm5 = vcmp.eq.f32.partialorder %v10451_v58, %v10894_v33  ;;  %vm15471_vm15 = vcmp.lt.f32.partialorder %v10894_v33, inf  ;;  %v11062_v58 = vsel %vm814_vm1, %v1091_v55, 2147483647 }
 0x191   :  { %v10903_v18 = vpop.xlane.xlu0 %888  ;;  %v1094_v12 = vsel %vm1030_vm5, %v10665_v11, 32 }
 0x192   :  { %15765 = vst [vmem:[#allocation68_spill] sm:$0xff] %v10903_v18 }
 0x193   :  { %v10912_v20 = vpop.xlane.xlu1 %891  ;;  %1290 = vmin.xlane.f32.xlu0 %v10905_v1  ;;  %v10928_v1 = vsel %vm814_vm1, %v1086_v30, 2147483647 }
 0x194   :  { %15768 = vst [vmem:[#allocation71_spill] sm:$0xff] %v10912_v20  ;;  %15771 = vst [vmem:[#allocation74_spill] sm:$0xff] %v10928_v1  ;;  %v1362_v30 = vshra.s32 %v10928_v1, 16 }
 0x195   :  { %v10921_v22 = vpop.xlane.xlu0 %894 }
 0x196   :  { %15769 = vst [vmem:[#allocation72_spill] sm:$0xff] %v10921_v22  ;;  %v10959_v1 = vcvt.s32.f32 %v1362_v30 }
 0x197   :  { %v10930_v61 = vpop.xlane.xlu1 %897  ;;  %1335 = vmin.xlane.f32.xlu0 %v10923_v56 }
 0x198   :  { %15772 = vst [vmem:[#allocation75_spill] sm:$0xff] %v10930_v61  ;;  %15778 = vst [vmem:[#allocation81_spill] sm:$0xff] %v10959_v1 }
 0x199   :  { %v10939_v24 = vpop.xlane.xlu0 %900 }
 0x19a   :  { %15773 = vst [vmem:[#allocation76_spill] sm:$0xff] %v10939_v24 }
 0x19b   :  { %v10948_v56 = vpop.xlane.xlu1 %903  ;;  %1320 = vmin.xlane.f32.xlu0 %v10941_v59  ;;  %v10964_v59 = vsel %vm814_vm1, %v1088_v36, 2147483647 }
 0x19c   :  { %15776 = vst [vmem:[#allocation79_spill] sm:$0xff] %v10948_v56  ;;  %15779 = vst [vmem:[#allocation82_spill] sm:$0xff] %v10964_v59  ;;  %v1392_v36 = vshra.s32 %v10964_v59, 16 }
 0x19d   :  { %v10957_v28 = vpop.xlane.xlu0 %906 }
 0x19e   :  { %15777 = vst [vmem:[#allocation80_spill] sm:$0xff] %v10957_v28  ;;  %v10995_v59 = vcvt.s32.f32 %v1392_v36 }
 0x19f   :  { %v10966_v54 = vpop.xlane.xlu1 %909  ;;  %1365 = vmin.xlane.f32.xlu0 %v10959_v1 }
 0x1a0   :  { %15780 = vst [vmem:[#allocation83_spill] sm:$0xff] %v10966_v54  ;;  %15786 = vst [vmem:[#allocation89_spill] sm:$0xff] %v10995_v59 }
 0x1a1   :  { %v10975_v30 = vpop.xlane.xlu0 %912 }
 0x1a2   :  { %15781 = vst [vmem:[#allocation84_spill] sm:$0xff] %v10975_v30 }
 0x1a3   :  { %v10984_v1 = vpop.xlane.xlu1 %915  ;;  %1350 = vmin.xlane.f32.xlu0 %v10977_v15  ;;  %v11000_v15 = vsel %vm814_vm1, %v1090_v43, 2147483647 }
 0x1a4   :  { %15784 = vst [vmem:[#allocation87_spill] sm:$0xff] %v10984_v1  ;;  %15787 = vst [vmem:[#allocation90_spill] sm:$0xff] %v11000_v15  ;;  %v1422_v43 = vshra.s32 %v11000_v15, 16  ;;  %v1407_v15 = vshra.s32 %v11018_v10, 16  ;;  %v1437_v10 = vshra.s32 %v11062_v58, 16 }
 0x1a5   :  { %v10993_v34 = vpop.xlane.xlu0 %918 }
 0x1a6   :  { %15785 = vst [vmem:[#allocation88_spill] sm:$0xff] %v10993_v34  ;;  %v11032_v47 = vcvt.s32.f32 %v1422_v43 }
 0x1a7   :  { %v11002_v4 = vpop.xlane.xlu1 %921  ;;  %1395 = vmin.xlane.f32.xlu0 %v10995_v59 }
 0x1a8   :  { %15788 = vst [vmem:[#allocation91_spill] sm:$0xff] %v11002_v4  ;;  %15794 = vst [vmem:[#allocation97_spill] sm:$0xff] %v11032_v47 }
 0x1a9   :  { %v11011_v36 = vpop.xlane.xlu0 %924 }
 0x1aa   :  { %15789 = vst [vmem:[#allocation92_spill] sm:$0xff] %v11011_v36 }
 0x1ab   :  { %v11020_v59 = vpop.xlane.xlu1 %927  ;;  %1380 = vmin.xlane.f32.xlu0 %v11013_v62  ;;  %v11036_v62 = vsel %vm814_vm1, %v1092_v49, 2147483647  ;;  %v11052_v49 = vcvt.s32.f32 %v1407_v15 }
 0x1ac   :  { %15792 = vst [vmem:[#allocation95_spill] sm:$0xff] %v11020_v59  ;;  %15795 = vst [vmem:[#allocation98_spill] sm:$0xff] %v11036_v62  ;;  %v1452_v32 = vshra.s32 %v11036_v62, 16  ;;  %v9084_v62 = vadd.f32 %v9083_v42, %v2950_v26  ;;  %v11088_v42 = vsel %vm814_vm1, %v1094_v12, 2147483647 }
 0x1ad   :  { %v11030_v41 = vpop.xlane.xlu0 %930  ;;  %15798 = vst [vmem:[#allocation101_spill] sm:$0xff] %v11052_v49  ;;  %v1482_v0 = vshra.s32 %v11088_v42, 16 }
 0x1ae   :  { %15793 = vst [vmem:[#allocation96_spill] sm:$0xff] %v11030_v41 }
 0x1af   :  { %v11038_v6 = vpop.xlane.xlu1 %933  ;;  %1425 = vmin.xlane.f32.xlu0 %v11032_v47  ;;  %v11136_v16 = vcvt.s32.f32 %v1482_v0 }
 0x1b0   :  { %15796 = vst [vmem:[#allocation99_spill] sm:$0xff] %v11038_v6  ;;  %vm1046_vm9 = vcmp.eq.f32.partialorder %v10531_v14, %v11038_v6 }
 0x1b1   :  { %v11050_v43 = vpop.xlane.xlu0 %936  ;;  %v1110_v52 = vsel %vm1046_vm9, %v10665_v11, 32  ;;  %vm15477_vm9 = vcmp.lt.f32.partialorder %v10903_v18, inf }
 0x1b2   :  { %15797 = vst [vmem:[#allocation100_spill] sm:$0xff] %v11050_v43  ;;  %v11057_v39 = vsel %vm814_vm1, %v1110_v52, 2147483647  ;;  %vm1047_vm13 = vcmp.eq.f32.partialorder %v10548_v35, %v11050_v43  ;;  %v2951_v52 = vsel %vm15471_vm15, %v10894_v33, inf  ;;  %v2952_v26 = vsel %vm15477_vm9, %v10903_v18, inf }
 0x1b3   :  { %15799 = vst [vmem:[#allocation102_spill] sm:$0xff] %v11057_v39  ;;  %1410 = vmin.xlane.f32.xlu0 %v11052_v49  ;;  %v1722_v14 = vshra.s32 %v11057_v39, 16  ;;  %v1111_v15 = vsel %vm1047_vm13, %v10665_v11, 32  ;;  %v11081_v49 = vcvt.s32.f32 %v1452_v32  ;;  %vm1032_vm13 = vcmp.eq.f32.partialorder %v10461_v3, %v10912_v20 }
 0x1b4   :  { %v11075_v35 = vsel %vm814_vm1, %v1111_v15, 2147483647  ;;  %v9085_v15 = vadd.f32 %v9084_v62, %v2951_v52  ;;  %vm15483_vm15 = vcmp.lt.f32.partialorder %v10912_v20, inf  ;;  %vm15489_vm9 = vcmp.lt.f32.partialorder %v10921_v22, inf }
 0x1b5   :  { %15800 = vst [vmem:[#allocation103_spill] sm:$0xff] %v11075_v35  ;;  %v11077_v55 = vpop.xlane.xlu0 %942  ;;  %v11079_v47 = vcvt.s32.f32 %v1722_v14  ;;  %v1737_v39 = vshra.s32 %v11075_v35, 16  ;;  %v1093_v14 = vsel %vm1029_vm12, %v10665_v11, 32  ;;  %v2953_v52 = vsel %vm15483_vm15, %v10912_v20, inf }
 0x1b6   :  { %15801 = vst [vmem:[#allocation104_spill] sm:$0xff] %v11077_v55  ;;  %vm1049_vm5 = vcmp.eq.f32.partialorder %v10558_v51, %v11077_v55  ;;  %v11117_v3 = vsel %vm814_vm1, %v1093_v14, 2147483647  ;;  %vm15494_vm15 = vcmp.lt.f32.partialorder %v10930_v61, inf }
 0x1b7   :  { %15802 = vst [vmem:[#allocation105_spill] sm:$0xff] %v11079_v47  ;;  %1725 = vmin.xlane.f32.xlu1 %v11079_v47  ;;  %1455 = vmin.xlane.f32.xlu0 %v11081_v49  ;;  %v1113_v32 = vsel %vm1049_vm5, %v10665_v11, 32  ;;  %v11108_v33 = vcvt.s32.f32 %v1737_v39  ;;  %v11110_v47 = vcvt.s32.f32 %v1437_v10  ;;  %vm1031_vm5 = vcmp.eq.f32.partialorder %v10468_v9, %v10903_v18 }
 0x1b8   :  { %v11104_v51 = vsel %vm814_vm1, %v1113_v32, 2147483647  ;;  %v1096_v10 = vsel %vm1032_vm13, %v10665_v11, 32  ;;  %v9086_v39 = vadd.f32 %v9085_v15, %v2952_v26  ;;  %v2954_v15 = vsel %vm15489_vm9, %v10921_v22, inf }
 0x1b9   :  { %15803 = vst [vmem:[#allocation106_spill] sm:$0xff] %v11104_v51  ;;  %v11106_v12 = vpop.xlane.xlu0 %948  ;;  %15805 = vst [vmem:[#allocation108_spill] sm:$0xff] %v11108_v33  ;;  %v1767_v35 = vshra.s32 %v11104_v51, 16  ;;  %v1467_v51 = vshra.s32 %v11117_v3, 16  ;;  %v11143_v26 = vsel %vm814_vm1, %v1096_v10, 2147483647 }
 0x1ba   :  { %15804 = vst [vmem:[#allocation107_spill] sm:$0xff] %v11106_v12  ;;  %vm1051_vm12 = vcmp.eq.f32.partialorder %v10568_v7, %v11106_v12  ;;  %v1095_v0 = vsel %vm1031_vm5, %v10665_v11, 32  ;;  %v1512_v9 = vshra.s32 %v11143_v26, 16  ;;  %vm15499_vm9 = vcmp.lt.f32.partialorder %v10939_v24, inf }
 0x1bb   :  { %1740 = vmin.xlane.f32.xlu1 %v11108_v33  ;;  %1440 = vmin.xlane.f32.xlu0 %v11110_v47  ;;  %v1115_v62 = vsel %vm1051_vm12, %v10665_v11, 32  ;;  %v11134_v14 = vcvt.s32.f32 %v1767_v35  ;;  %vm1034_vm12 = vcmp.eq.f32.partialorder %v10471_v13, %v10930_v61  ;;  %v11172_v13 = vsel %vm814_vm1, %v1095_v0, 2147483647 }
 0x1bc   :  { %v11130_v7 = vsel %vm814_vm1, %v1115_v62, 2147483647  ;;  %v9087_v62 = vadd.f32 %v9086_v39, %v2953_v52  ;;  %v2955_v52 = vsel %vm15494_vm15, %v10930_v61, inf  ;;  %v11191_v18 = vcvt.s32.f32 %v1512_v9 }
 0x1bd   :  { %15806 = vst [vmem:[#allocation109_spill] sm:$0xff] %v11130_v7  ;;  %v11132_v32 = vpop.xlane.xlu0 %954  ;;  %15808 = vst [vmem:[#allocation111_spill] sm:$0xff] %v11134_v14  ;;  %v1797_v33 = vshra.s32 %v11130_v7, 16  ;;  %vm15504_vm15 = vcmp.lt.f32.partialorder %v10948_v56, inf }
 0x1be   :  { %15807 = vst [vmem:[#allocation110_spill] sm:$0xff] %v11132_v32  ;;  %vm1053_vm13 = vcmp.eq.f32.partialorder %v10578_v29, %v11132_v32  ;;  %v9088_v39 = vadd.f32 %v9087_v62, %v2954_v15  ;;  %15814 = vst [vmem:[#allocation117_spill] sm:$0xff] %v11191_v18  ;;  %v2956_v62 = vsel %vm15499_vm9, %v10939_v24, inf  ;;  %vm15509_vm9 = vcmp.lt.f32.partialorder %v10957_v28, inf }
 0x1bf   :  { %1770 = vmin.xlane.f32.xlu1 %v11134_v14  ;;  %1485 = vmin.xlane.f32.xlu0 %v11136_v16  ;;  %v1117_v35 = vsel %vm1053_vm13, %v10665_v11, 32  ;;  %v11163_v20 = vcvt.s32.f32 %v1797_v33  ;;  %v11165_v14 = vcvt.s32.f32 %v1467_v51  ;;  %vm1033_vm13 = vcmp.eq.f32.partialorder %v10478_v19, %v10921_v22 }
 0x1c0   :  { %v11159_v29 = vsel %vm814_vm1, %v1117_v35, 2147483647  ;;  %v1098_v51 = vsel %vm1034_vm12, %v10665_v11, 32  ;;  %v1097_v9 = vsel %vm1033_vm13, %v10665_v11, 32 }
 0x1c1   :  { %v11161_v10 = vpop.xlane.xlu0 %960  ;;  %15810 = vst [vmem:[#allocation113_spill] sm:$0xff] %v11163_v20  ;;  %15811 = vst [vmem:[#allocation114_spill] sm:$0xff] %v11165_v14  ;;  %v1827_v7 = vshra.s32 %v11159_v29, 16  ;;  %v11198_v15 = vsel %vm814_vm1, %v1098_v51, 2147483647 }
 0x1c2   :  { %15809 = vst [vmem:[#allocation112_spill] sm:$0xff] %v11161_v10  ;;  %vm1055_vm5 = vcmp.eq.f32.partialorder %v10588_v48, %v11161_v10  ;;  %v1542_v19 = vshra.s32 %v11198_v15, 16 }
 0x1c3   :  { %1800 = vmin.xlane.f32.xlu1 %v11163_v20  ;;  %1470 = vmin.xlane.f32.xlu0 %v11165_v14  ;;  %v1119_v33 = vsel %vm1055_vm5, %v10665_v11, 32  ;;  %v11189_v0 = vcvt.s32.f32 %v1827_v7  ;;  %v1497_v14 = vshra.s32 %v11172_v13, 16  ;;  %vm1036_vm5 = vcmp.eq.f32.partialorder %v10481_v21, %v10948_v56 }
 0x1c4   :  { %v11185_v48 = vsel %vm814_vm1, %v1119_v33, 2147483647  ;;  %v9089_v33 = vadd.f32 %v9088_v39, %v2955_v52  ;;  %v11227_v21 = vsel %vm814_vm1, %v1097_v9, 2147483647  ;;  %v2957_v52 = vsel %vm15504_vm15, %v10948_v56, inf }
 0x1c5   :  { %v11187_v35 = vpop.xlane.xlu0 %966  ;;  %15813 = vst [vmem:[#allocation116_spill] sm:$0xff] %v11189_v0  ;;  %v1857_v20 = vshra.s32 %v11185_v48, 16  ;;  %v11246_v22 = vcvt.s32.f32 %v1542_v19  ;;  %vm15514_vm15 = vcmp.lt.f32.partialorder %v10966_v54, inf }
 0x1c6   :  { %15812 = vst [vmem:[#allocation115_spill] sm:$0xff] %v11187_v35  ;;  %vm1057_vm12 = vcmp.eq.f32.partialorder %v10598_v17, %v11187_v35  ;;  %v9090_v39 = vadd.f32 %v9089_v33, %v2956_v62  ;;  %v2958_v33 = vsel %vm15509_vm9, %v10957_v28, inf  ;;  %vm2896_vm9 = vcmp.lt.f32.partialorder %v10975_v30, inf }
 0x1c7   :  { %1830 = vmin.xlane.f32.xlu1 %v11189_v0  ;;  %1515 = vmin.xlane.f32.xlu0 %v11191_v18  ;;  %v1121_v7 = vsel %vm1057_vm12, %v10665_v11, 32  ;;  %v11218_v61 = vcvt.s32.f32 %v1857_v20  ;;  %v11220_v0 = vcvt.s32.f32 %v1497_v14  ;;  %vm1035_vm12 = vcmp.eq.f32.partialorder %v10488_v27, %v10939_v24  ;;  %15820 = vst [vmem:[#allocation123_spill] sm:$0xff] %v11246_v22 }
 0x1c8   :  { %v11214_v17 = vsel %vm814_vm1, %v1121_v7, 2147483647  ;;  %v1100_v14 = vsel %vm1036_vm5, %v10665_v11, 32  ;;  %v1099_v19 = vsel %vm1035_vm12, %v10665_v11, 32 }
 0x1c9   :  { %v11216_v51 = vpop.xlane.xlu0 %972  ;;  %15816 = vst [vmem:[#allocation119_spill] sm:$0xff] %v11218_v61  ;;  %15817 = vst [vmem:[#allocation120_spill] sm:$0xff] %v11220_v0  ;;  %v1887_v18 = vshra.s32 %v11214_v17, 16  ;;  %v11253_v62 = vsel %vm814_vm1, %v1100_v14, 2147483647 }
 0x1ca   :  { %15815 = vst [vmem:[#allocation118_spill] sm:$0xff] %v11216_v51  ;;  %vm1059_vm13 = vcmp.eq.f32.partialorder %v10608_v45, %v11216_v51  ;;  %v1572_v27 = vshra.s32 %v11253_v62, 16 }
 0x1cb   :  { %1860 = vmin.xlane.f32.xlu1 %v11218_v61  ;;  %1500 = vmin.xlane.f32.xlu0 %v11220_v0  ;;  %v1123_v20 = vsel %vm1059_vm13, %v10665_v11, 32  ;;  %v11244_v9 = vcvt.s32.f32 %v1887_v18  ;;  %v1527_v0 = vshra.s32 %v11227_v21, 16  ;;  %vm1038_vm13 = vcmp.eq.f32.partialorder %v10491_v31, %v10966_v54 }
 0x1cc   :  { %v11240_v45 = vsel %vm814_vm1, %v1123_v20, 2147483647  ;;  %v9091_v20 = vadd.f32 %v9090_v39, %v2957_v52  ;;  %v11282_v31 = vsel %vm814_vm1, %v1099_v19, 2147483647  ;;  %v2959_v52 = vsel %vm15514_vm15, %v10966_v54, inf }
 0x1cd   :  { %v11242_v7 = vpop.xlane.xlu0 %978  ;;  %15819 = vst [vmem:[#allocation122_spill] sm:$0xff] %v11244_v9  ;;  %v1917_v61 = vshra.s32 %v11240_v45, 16  ;;  %v11301_v24 = vcvt.s32.f32 %v1572_v27  ;;  %vm15526_vm15 = vcmp.lt.f32.partialorder %v10984_v1, inf }
 0x1ce   :  { %15818 = vst [vmem:[#allocation121_spill] sm:$0xff] %v11242_v7  ;;  %vm1061_vm5 = vcmp.eq.f32.partialorder %v10618_v37, %v11242_v7  ;;  %v9092_v39 = vadd.f32 %v9091_v20, %v2958_v33  ;;  %v2960_v20 = vsel %vm2896_vm9, %v10975_v30, inf }
 0x1cf   :  { %1890 = vmin.xlane.f32.xlu1 %v11244_v9  ;;  %1545 = vmin.xlane.f32.xlu0 %v11246_v22  ;;  %v1125_v18 = vsel %vm1061_vm5, %v10665_v11, 32  ;;  %v11273_v56 = vcvt.s32.f32 %v1917_v61  ;;  %v11275_v9 = vcvt.s32.f32 %v1527_v0  ;;  %vm1037_vm5 = vcmp.eq.f32.partialorder %v10498_v38, %v10957_v28  ;;  %15826 = vst [vmem:[#allocation129_spill] sm:$0xff] %v11301_v24 }
 0x1d0   :  { %v11269_v37 = vsel %vm814_vm1, %v1125_v18, 2147483647  ;;  %v1102_v0 = vsel %vm1038_vm13, %v10665_v11, 32  ;;  %v1101_v27 = vsel %vm1037_vm5, %v10665_v11, 32 }
 0x1d1   :  { %v11271_v14 = vpop.xlane.xlu0 %984  ;;  %15822 = vst [vmem:[#allocation125_spill] sm:$0xff] %v11273_v56  ;;  %15823 = vst [vmem:[#allocation126_spill] sm:$0xff] %v11275_v9  ;;  %v1947_v22 = vshra.s32 %v11269_v37, 16  ;;  %v11308_v33 = vsel %vm814_vm1, %v1102_v0, 2147483647 }
 0x1d2   :  { %15821 = vst [vmem:[#allocation124_spill] sm:$0xff] %v11271_v14  ;;  %vm1063_vm12 = vcmp.eq.f32.partialorder %v10628_v25, %v11271_v14  ;;  %v1602_v38 = vshra.s32 %v11308_v33, 16 }
 0x1d3   :  { %1920 = vmin.xlane.f32.xlu1 %v11273_v56  ;;  %1530 = vmin.xlane.f32.xlu0 %v11275_v9  ;;  %v1127_v61 = vsel %vm1063_vm12, %v10665_v11, 32  ;;  %v11299_v19 = vcvt.s32.f32 %v1947_v22  ;;  %v1557_v9 = vshra.s32 %v11282_v31, 16  ;;  %vm1040_vm12 = vcmp.eq.f32.partialorder %v10501_v40, %v10984_v1 }
 0x1d4   :  { %v11295_v25 = vsel %vm814_vm1, %v1127_v61, 2147483647  ;;  %v9093_v61 = vadd.f32 %v9092_v39, %v2959_v52  ;;  %v11337_v40 = vsel %vm814_vm1, %v1101_v27, 2147483647  ;;  %v11339_v39 = vpop.xlane.xlu1 %939  ;;  %v11355_v28 = vcvt.s32.f32 %v1602_v38 }
 0x1d5   :  { %v11297_v18 = vpop.xlane.xlu0 %990  ;;  %15825 = vst [vmem:[#allocation128_spill] sm:$0xff] %v11299_v19  ;;  %v1977_v56 = vshra.s32 %v11295_v25, 16  ;;  %15830 = vst [vmem:[#allocation133_spill] sm:$0xff] %v11339_v39 }
 0x1d6   :  { %15824 = vst [vmem:[#allocation127_spill] sm:$0xff] %v11297_v18  ;;  %vm1065_vm13 = vcmp.eq.f32.partialorder %v10638_v2, %v11297_v18  ;;  %v9094_v52 = vadd.f32 %v9093_v61, %v2960_v20  ;;  %15832 = vst [vmem:[#allocation135_spill] sm:$0xff] %v11355_v28 }
 0x1d7   :  { %1950 = vmin.xlane.f32.xlu1 %v11299_v19  ;;  %1575 = vmin.xlane.f32.xlu0 %v11301_v24  ;;  %v1129_v22 = vsel %vm1065_vm13, %v10665_v11, 32  ;;  %v11328_v54 = vcvt.s32.f32 %v1977_v56  ;;  %v11330_v19 = vcvt.s32.f32 %v1557_v9  ;;  %v1104_v9 = vsel %vm1040_vm12, %v10665_v11, 32 }
 0x1d8   :  { %v11324_v2 = vsel %vm814_vm1, %v1129_v22, 2147483647  ;;  %vm1039_vm13 = vcmp.eq.f32.partialorder %v10508_v46, %v10975_v30  ;;  %vm15529_vm12 = vcmp.lt.f32.partialorder %v10993_v34, inf  ;;  %v11361_v46 = vsel %vm814_vm1, %v1104_v9, 2147483647  ;;  %v11371_v38 = vpop.xlane.xlu1 %945 }
 0x1d9   :  { %v11326_v0 = vpop.xlane.xlu0 %996  ;;  %15828 = vst [vmem:[#allocation131_spill] sm:$0xff] %v11328_v54  ;;  %15829 = vst [vmem:[#allocation132_spill] sm:$0xff] %v11330_v19  ;;  %v2007_v24 = vshra.s32 %v11324_v2, 16  ;;  %v1103_v20 = vsel %vm1039_vm13, %v10665_v11, 32  ;;  %vm1041_vm13 = vcmp.eq.f32.partialorder %v10518_v60, %v10993_v34 }
 0x1da   :  { %15827 = vst [vmem:[#allocation130_spill] sm:$0xff] %v11326_v0  ;;  %vm1067_vm5 = vcmp.eq.f32.partialorder %v10648_v44, %v11326_v0  ;;  %v2961_v44 = vsel %vm15526_vm15, %v10984_v1, inf  ;;  %15833 = vst [vmem:[#allocation136_spill] sm:$0xff] %v11371_v38  ;;  %v1632_v1 = vshra.s32 %v11361_v46, 16  ;;  %vm15533_vm15 = vcmp.lt.f32.partialorder %v11002_v4, inf }
 0x1db   :  { %1980 = vmin.xlane.f32.xlu1 %v11328_v54  ;;  %1560 = vmin.xlane.f32.xlu0 %v11330_v19  ;;  %v1131_v56 = vsel %vm1067_vm5, %v10665_v11, 32  ;;  %v11353_v27 = vcvt.s32.f32 %v2007_v24  ;;  %v1587_v19 = vshra.s32 %v11337_v40, 16  ;;  %v9095_v61 = vadd.f32 %v9094_v52, %v2961_v44 }
 0x1dc   :  { %v11351_v22 = vsel %vm814_vm1, %v1131_v56, 2147483647  ;;  %vm1042_vm5 = vcmp.eq.f32.partialorder %v10511_v50, %v11002_v4  ;;  %v2962_v24 = vsel %vm15529_vm12, %v10993_v34, inf  ;;  %v11380_v30 = vsel %vm814_vm1, %v1103_v20, 2147483647 }
 0x1dd   :  { %15831 = vst [vmem:[#allocation134_spill] sm:$0xff] %v11353_v27  ;;  %v2037_v54 = vshra.s32 %v11351_v22, 16  ;;  %v11375_v9 = vcvt.s32.f32 %v1587_v19  ;;  %v1106_v50 = vsel %vm1042_vm5, %v10665_v11, 32  ;;  %v2963_v19 = vsel %vm15533_vm15, %v11002_v4, inf }
 0x1de   :  { %v11390_v52 = vcvt.s32.f32 %v1632_v1  ;;  %v1617_v44 = vshra.s32 %v11380_v30, 16  ;;  %vm15540_vm12 = vcmp.lt.f32.partialorder %v11011_v36, inf  ;;  %v11395_v20 = vsel %vm814_vm1, %v1106_v50, 2147483647 }
 0x1df   :  { %2010 = vmin.xlane.f32.xlu1 %v11353_v27  ;;  %1605 = vmin.xlane.f32.xlu0 %v11355_v28  ;;  %v11373_v56 = vcvt.s32.f32 %v2037_v54  ;;  %15835 = vst [vmem:[#allocation138_spill] sm:$0xff] %v11375_v9  ;;  %v9096_v54 = vadd.f32 %v9095_v61, %v2962_v24  ;;  %v1105_v60 = vsel %vm1041_vm13, %v10665_v11, 32  ;;  %vm1044_vm5 = vcmp.eq.f32.partialorder %v10521_v63, %v11020_v59 }
 0x1e0   :  { %15836 = vst [vmem:[#allocation139_spill] sm:$0xff] %v11390_v52  ;;  %v2964_v1 = vsel %vm15540_vm12, %v11011_v36, inf  ;;  %v11406_v24 = vcvt.s32.f32 %v1617_v44  ;;  %v1662_v34 = vshra.s32 %v11395_v20, 16  ;;  %vm15545_vm15 = vcmp.lt.f32.partialorder %v11020_v59, inf }
 0x1e1   :  { %15834 = vst [vmem:[#allocation137_spill] sm:$0xff] %v11373_v56  ;;  %v9097_v61 = vadd.f32 %v9096_v54, %v2963_v19  ;;  %v11411_v50 = vsel %vm814_vm1, %v1105_v60, 2147483647  ;;  %v1108_v54 = vsel %vm1044_vm5, %v10665_v11, 32  ;;  %vm1043_vm13 = vcmp.eq.f32.partialorder %v10528_v8, %v11011_v36  ;;  %v11417_v19 = vpop.xlane.xlu0 %1002 }
 0x1e2   :  { %15838 = vst [vmem:[#allocation141_spill] sm:$0xff] %v11406_v24  ;;  %15839 = vst [vmem:[#allocation142_spill] sm:$0xff] %v11417_v19  ;;  %v1151_v44 = vand.u32 65535, %v10673_v57  ;;  %v2965_v4 = vsel %vm15545_vm15, %v11020_v59, inf  ;;  %v11425_v60 = vcvt.s32.f32 %v1662_v34  ;;  %vm15546_vm5 = vcmp.lt.f32.partialorder %v11030_v41, inf }
 0x1e3   :  { %2040 = vmin.xlane.f32.xlu1 %v11373_v56  ;;  %1590 = vmin.xlane.f32.xlu0 %v11375_v9  ;;  %v11397_v56 = vpop.xlane.xlu1 %951  ;;  %v9098_v63 = vadd.f32 %v9097_v61, %v2964_v1  ;;  %v1107_v8 = vsel %vm1043_vm13, %v10665_v11, 32  ;;  %vm1045_vm12 = vcmp.eq.f32.partialorder %v10538_v23, %v11030_v41  ;;  %v1136_v34 = vand.u32 65535, %v10693_v5 }
 0x1e4   :  { %15837 = vst [vmem:[#allocation140_spill] sm:$0xff] %v11397_v56  ;;  %15841 = vst [vmem:[#allocation144_spill] sm:$0xff] %v11425_v60  ;;  %v1153_v1 = vcvt.s32.f32 %v1151_v44  ;;  %v2966_v36 = vsel %vm15546_vm5, %v11030_v41, inf  ;;  %vm15552_vm13 = vcmp.lt.f32.partialorder %v11038_v6, inf  ;;  %v11449_v23 = vsel %vm814_vm1, %v1107_v8, 2147483647 }
 0x1e5   :  { %v9099_v57 = vadd.f32 %v9098_v63, %v2965_v4  ;;  %15843 = vst [vmem:[#allocation146_spill] sm:$0xff] %v11449_v23  ;;  %v1109_v5 = vsel %vm1045_vm12, %v10665_v11, 32  ;;  %v15845_v44 = vld [vmem:[#allocation9_spill] sm:$0xff]  ;;  %v1138_v41 = vcvt.s32.f32 %v1136_v34  ;;  %v2967_v8 = vsel %vm15552_vm13, %v11038_v6, inf  ;;  %v15851_v6 = vld [vmem:[#allocation30_spill] sm:$0xff] }
 0x1e6   :  { %vm1048_vm5 = vcmp.eq.f32.partialorder %v15845_v44, %v11339_v39  ;;  %vm15557_vm12 = vcmp.lt.f32.partialorder %v11050_v43, inf  ;;  %v1166_v28 = vand.u32 65535, %v15851_v6 }
 0x1e7   :  { %1635 = vmin.xlane.f32.xlu0 %v11390_v52  ;;  %v11423_v27 = vpop.xlane.xlu1 %957  ;;  %v11430_v52 = vsel %vm814_vm1, %v1108_v54, 2147483647 }
 0x1e8   :  { %15840 = vst [vmem:[#allocation143_spill] sm:$0xff] %v11423_v27  ;;  %v1692_v54 = vshra.s32 %v11430_v52, 16 }
 0x1eb   :  { %1620 = vmin.xlane.f32.xlu0 %v11406_v24  ;;  %v1647_v24 = vshra.s32 %v11411_v50, 16  ;;  %v11451_v63 = vpop.xlane.xlu1 %963 }
 0x1ec   :  { %15844 = vst [vmem:[#allocation147_spill] sm:$0xff] %v11451_v63 }
 0x1ed   :  { %v11442_v59 = vcvt.s32.f32 %v1647_v24  ;;  %v9100_v24 = vadd.f32 %v9099_v57, %v2966_v36  ;;  %v11470_v57 = vsel %vm814_vm1, %v1109_v5, 2147483647 }
 0x1ef   :  { %1665 = vmin.xlane.f32.xlu0 %v11425_v60  ;;  %15842 = vst [vmem:[#allocation145_spill] sm:$0xff] %v11442_v59  ;;  %v15846_v60 = vld [vmem:[#allocation27_spill] sm:$0xff]  ;;  %v9101_v34 = vadd.f32 %v9100_v24, %v2967_v8  ;;  %v11482_v5 = vpop.xlane.xlu1 %969  ;;  %v1707_v24 = vshra.s32 %v11470_v57, 16 }
 0x1f0   :  { %v11436_v61 = vpop.xlane.xlu0 %1155  ;;  %v1181_v9 = vand.u32 65535, %v15846_v60  ;;  %15849 = vst [vmem:[#allocation27_spill] sm:$0xff] %v11470_v57  ;;  %v1112_v60 = vsel %vm1048_vm5, %v10665_v11, 32 }
 0x1f1   :  { %vm1157_vm15 = vcmp.eq.f32.partialorder %v10689_v53, %v11436_v61 }
 0x1f2   :  { %v1158_v4 = vsel %vm1157_vm15, %v1153_v1, inf  ;;  %v11463_v1 = vcvt.s32.f32 %v1692_v54  ;;  %v15850_v54 = vld [vmem:[#allocation10_spill] sm:$0xff] }
 0x1f3   :  { %1650 = vmin.xlane.f32.xlu0 %v11442_v59  ;;  %1159 = vmin.xlane.f32.xlu1 %v1158_v4  ;;  %v15848_v59 = vld [vmem:[#allocation29_spill] sm:$0xff]  ;;  %v1677_v4 = vshra.s32 %v11449_v23, 16  ;;  %vm1050_vm13 = vcmp.eq.f32.partialorder %v15850_v54, %v11371_v38 }
 0x1f4   :  { %v11457_v53 = vpop.xlane.xlu0 %1140  ;;  %15847 = vst [vmem:[#allocation9_spill] sm:$0xff] %v11463_v1  ;;  %15852 = vst [vmem:[#allocation29_spill] sm:$0xff] %v11482_v5  ;;  %v1114_v6 = vsel %vm1050_vm13, %v10665_v11, 32  ;;  %vm15571_vm13 = vcmp.lt.f32.partialorder %v11077_v55, inf }
 0x1f5   :  { %vm1142_vm15 = vcmp.eq.f32.partialorder %v15848_v59, %v11457_v53  ;;  %v1183_v59 = vcvt.s32.f32 %v1181_v9  ;;  %v11484_v23 = vcvt.s32.f32 %v1677_v4  ;;  %v11491_v9 = vsel %vm814_vm1, %v1112_v60, 2147483647  ;;  %v15856_v4 = vld [vmem:[#allocation11_spill] sm:$0xff] }
 0x1f6   :  { %v1143_v36 = vsel %vm1142_vm15, %v1138_v41, inf  ;;  %v2968_v41 = vsel %vm15557_vm12, %v11050_v43, inf  ;;  %vm15565_vm15 = vcmp.lt.f32.partialorder %v11339_v39, inf  ;;  %15855 = vst [vmem:[#allocation30_spill] sm:$0xff] %v11491_v9  ;;  %vm1052_vm12 = vcmp.eq.f32.partialorder %v15856_v4, %v11397_v56 }
 0x1f7   :  { %1695 = vmin.xlane.f32.xlu0 %v11463_v1  ;;  %1144 = vmin.xlane.f32.xlu1 %v1143_v36  ;;  %15853 = vst [vmem:[#allocation10_spill] sm:$0xff] %v11484_v23  ;;  %v15854_v36 = vld [vmem:[#allocation33_spill] sm:$0xff]  ;;  %v9102_v54 = vadd.f32 %v9101_v34, %v2968_v41  ;;  %v15858_v1 = vld [vmem:[#allocation34_spill] sm:$0xff]  ;;  %v11503_v60 = vcvt.s32.f32 %v1707_v24  ;;  %v11510_v41 = vsel %vm814_vm1, %v1114_v6, 2147483647  ;;  %v2970_v6 = vsel %vm15571_vm13, %v11077_v55, inf }
 0x1f8   :  { %v11476_v44 = vpop.xlane.xlu0 %1185  ;;  %v1211_v57 = vand.u32 65535, %v15858_v1  ;;  %15861 = vst [vmem:[#allocation34_spill] sm:$0xff] %v11510_v41  ;;  %v1116_v1 = vsel %vm1052_vm12, %v10665_v11, 32  ;;  %v15863_v24 = vld [vmem:[#allocation38_spill] sm:$0xff]  ;;  %vm15577_vm12 = vcmp.lt.f32.partialorder %v11371_v38, inf  ;;  %v15869_v55 = vld [vmem:[#allocation13_spill] sm:$0xff] }
 0x1f9   :  { %vm1187_vm5 = vcmp.eq.f32.partialorder %v15854_v36, %v11476_v44  ;;  %v1168_v36 = vcvt.s32.f32 %v1166_v28  ;;  %15859 = vst [vmem:[#allocation11_spill] sm:$0xff] %v11503_v60  ;;  %v11512_v28 = vpop.xlane.xlu1 %975  ;;  %v1196_v4 = vand.u32 65535, %v15863_v24  ;;  %v15868_v24 = vld [vmem:[#allocation42_spill] sm:$0xff]  ;;  %vm1056_vm13 = vcmp.eq.f32.partialorder %v15869_v55, %v11451_v63 }
 0x1fa   :  { %v1188_v8 = vsel %vm1187_vm5, %v1183_v59, inf  ;;  %v2969_v59 = vsel %vm15565_vm15, %v11339_v39, inf }
 0x1fb   :  { %1680 = vmin.xlane.f32.xlu0 %v11484_v23  ;;  %1189 = vmin.xlane.f32.xlu1 %v1188_v8  ;;  %v15860_v23 = vld [vmem:[#allocation37_spill] sm:$0xff]  ;;  %v1752_v8 = vshra.s32 %v11491_v9, 16  ;;  %v9103_v39 = vadd.f32 %v9102_v54, %v2969_v59  ;;  %v1213_v9 = vcvt.s32.f32 %v1211_v57  ;;  %v11531_v59 = vsel %vm814_vm1, %v1116_v1, 2147483647 }
 0x1fc   :  { %v11497_v43 = vpop.xlane.xlu0 %1170  ;;  %15862 = vst [vmem:[#allocation37_spill] sm:$0xff] %v11512_v28 }
 0x1fd   :  { %15857 = vst [vmem:[#allocation33_spill] sm:$0xff] %v11497_v43  ;;  %vm1172_vm5 = vcmp.eq.f32.partialorder %v15860_v23, %v11497_v43  ;;  %v15864_v23 = vld [vmem:[#allocation12_spill] sm:$0xff]  ;;  %v11543_v1 = vpop.xlane.xlu1 %981 }
 0x1fe   :  { %v1173_v34 = vsel %vm1172_vm5, %v1168_v36, inf  ;;  %vm1054_vm15 = vcmp.eq.f32.partialorder %v15864_v23, %v11423_v27  ;;  %v11524_v36 = vcvt.s32.f32 %v1752_v8  ;;  %v1241_v23 = vand.u32 65535, %v15868_v24  ;;  %15871 = vst [vmem:[#allocation42_spill] sm:$0xff] %v11543_v1 }
 0x1ff   :  { %1710 = vmin.xlane.f32.xlu0 %v11503_v60  ;;  %1174 = vmin.xlane.f32.xlu1 %v1173_v34  ;;  %v15867_v60 = vld [vmem:[#allocation41_spill] sm:$0xff]  ;;  %v1782_v34 = vshra.s32 %v11510_v41, 16  ;;  %v1118_v57 = vsel %vm1054_vm15, %v10665_v11, 32  ;;  %v9104_v8 = vadd.f32 %v9103_v39, %v2970_v6  ;;  %v1812_v24 = vshra.s32 %v11531_v59, 16  ;;  %v15875_v6 = vld [vmem:[#allocation46_spill] sm:$0xff] }
 0x200   :  { %v11519_v43 = vpop.xlane.xlu0 %1215  ;;  %15866 = vst [vmem:[#allocation12_spill] sm:$0xff] %v11524_v36  ;;  %v11552_v55 = vsel %vm814_vm1, %v1118_v57, 2147483647 }
 0x201   :  { %15865 = vst [vmem:[#allocation38_spill] sm:$0xff] %v11519_v43  ;;  %vm1217_vm5 = vcmp.eq.f32.partialorder %v15867_v60, %v11519_v43  ;;  %v1198_v43 = vcvt.s32.f32 %v1196_v4  ;;  %v11545_v41 = vcvt.s32.f32 %v1782_v34  ;;  %v1120_v4 = vsel %vm1056_vm13, %v10665_v11, 32 }
 0x202   :  { %v1218_v54 = vsel %vm1217_vm5, %v1213_v9, inf  ;;  %v2971_v9 = vsel %vm15577_vm12, %v11371_v38, inf  ;;  %vm15582_vm5 = vcmp.lt.f32.partialorder %v11106_v12, inf  ;;  %v1226_v38 = vand.u32 65535, %v15875_v6 }
 0x203   :  { %1755 = vmin.xlane.f32.xlu0 %v11524_v36  ;;  %1219 = vmin.xlane.f32.xlu1 %v1218_v54  ;;  %15872 = vst [vmem:[#allocation13_spill] sm:$0xff] %v11545_v41  ;;  %v15873_v54 = vld [vmem:[#allocation45_spill] sm:$0xff]  ;;  %v9105_v34 = vadd.f32 %v9104_v8, %v2971_v9  ;;  %v15876_v36 = vld [vmem:[#allocation14_spill] sm:$0xff]  ;;  %v11564_v57 = vcvt.s32.f32 %v1812_v24  ;;  %vm15588_vm13 = vcmp.lt.f32.partialorder %v11397_v56, inf  ;;  %v11571_v9 = vsel %vm814_vm1, %v1120_v4, 2147483647 }
 0x204   :  { %v11538_v60 = vpop.xlane.xlu0 %1200  ;;  %15874 = vst [vmem:[#allocation45_spill] sm:$0xff] %v11552_v55  ;;  %vm1058_vm12 = vcmp.eq.f32.partialorder %v15876_v36, %v11482_v5  ;;  %v11573_v36 = vpop.xlane.xlu1 %987  ;;  %v15882_v24 = vld [vmem:[#allocation50_spill] sm:$0xff] }
 0x205   :  { %15870 = vst [vmem:[#allocation41_spill] sm:$0xff] %v11538_v60  ;;  %vm1202_vm15 = vcmp.eq.f32.partialorder %v15873_v54, %v11538_v60  ;;  %v1243_v60 = vcvt.s32.f32 %v1241_v23  ;;  %15878 = vst [vmem:[#allocation14_spill] sm:$0xff] %v11564_v57  ;;  %v1122_v23 = vsel %vm1058_vm12, %v10665_v11, 32  ;;  %v1271_v6 = vand.u32 65535, %v15882_v24  ;;  %v15887_v24 = vld [vmem:[#allocation54_spill] sm:$0xff] }
 0x206   :  { %v1203_v39 = vsel %vm1202_vm15, %v1198_v43, inf  ;;  %v2972_v43 = vsel %vm15582_vm5, %v11106_v12, inf  ;;  %15881 = vst [vmem:[#allocation148_spill] sm:$0xff] %v11573_v36  ;;  %vm15594_vm12 = vcmp.lt.f32.partialorder %v11132_v32, inf }
 0x207   :  { %1785 = vmin.xlane.f32.xlu0 %v11545_v41  ;;  %1204 = vmin.xlane.f32.xlu1 %v1203_v39  ;;  %v15879_v41 = vld [vmem:[#allocation49_spill] sm:$0xff]  ;;  %v1842_v39 = vshra.s32 %v11552_v55, 16  ;;  %v9106_v12 = vadd.f32 %v9105_v34, %v2972_v43  ;;  %v1228_v55 = vcvt.s32.f32 %v1226_v38  ;;  %v11592_v43 = vsel %vm814_vm1, %v1122_v23, 2147483647 }
 0x208   :  { %v11559_v54 = vpop.xlane.xlu0 %1245  ;;  %15880 = vst [vmem:[#allocation49_spill] sm:$0xff] %v11571_v9  ;;  %v11604_v23 = vpop.xlane.xlu1 %993 }
 0x209   :  { %15877 = vst [vmem:[#allocation46_spill] sm:$0xff] %v11559_v54  ;;  %vm1247_vm15 = vcmp.eq.f32.partialorder %v15879_v41, %v11559_v54  ;;  %v15883_v41 = vld [vmem:[#allocation15_spill] sm:$0xff]  ;;  %v11585_v4 = vcvt.s32.f32 %v1842_v39  ;;  %15890 = vst [vmem:[#allocation54_spill] sm:$0xff] %v11604_v23 }
 0x20a   :  { %v1248_v8 = vsel %vm1247_vm15, %v1243_v60, inf  ;;  %vm1060_vm5 = vcmp.eq.f32.partialorder %v15883_v41, %v11512_v28  ;;  %v2973_v60 = vsel %vm15588_vm13, %v11397_v56, inf  ;;  %v1256_v41 = vand.u32 65535, %v15887_v24  ;;  %v15888_v56 = vld [vmem:[#allocation16_spill] sm:$0xff] }
 0x20b   :  { %1815 = vmin.xlane.f32.xlu0 %v11564_v57  ;;  %1249 = vmin.xlane.f32.xlu1 %v1248_v8  ;;  %15885 = vst [vmem:[#allocation15_spill] sm:$0xff] %v11585_v4  ;;  %v15886_v57 = vld [vmem:[#allocation53_spill] sm:$0xff]  ;;  %v1872_v8 = vshra.s32 %v11571_v9, 16  ;;  %v1124_v38 = vsel %vm1060_vm5, %v10665_v11, 32  ;;  %v9107_v39 = vadd.f32 %v9106_v12, %v2973_v60  ;;  %vm1062_vm13 = vcmp.eq.f32.partialorder %v15888_v56, %v11543_v1  ;;  %v15894_v60 = vld [vmem:[#allocation58_spill] sm:$0xff] }
 0x20c   :  { %v11580_v54 = vpop.xlane.xlu0 %1230  ;;  %v1902_v24 = vshra.s32 %v11592_v43, 16  ;;  %v11613_v56 = vsel %vm814_vm1, %v1124_v38, 2147483647 }
 0x20d   :  { %15884 = vst [vmem:[#allocation50_spill] sm:$0xff] %v11580_v54  ;;  %vm1232_vm15 = vcmp.eq.f32.partialorder %v15886_v57, %v11580_v54  ;;  %v1273_v54 = vcvt.s32.f32 %v1271_v6  ;;  %v11606_v9 = vcvt.s32.f32 %v1872_v8  ;;  %v1126_v6 = vsel %vm1062_vm13, %v10665_v11, 32 }
 0x20e   :  { %v1233_v34 = vsel %vm1232_vm15, %v1228_v55, inf  ;;  %v2974_v55 = vsel %vm15594_vm12, %v11132_v32, inf  ;;  %vm15599_vm15 = vcmp.lt.f32.partialorder %v11423_v27, inf  ;;  %v1301_v32 = vand.u32 65535, %v15894_v60 }
 0x20f   :  { %1845 = vmin.xlane.f32.xlu0 %v11585_v4  ;;  %1234 = vmin.xlane.f32.xlu1 %v1233_v34  ;;  %15891 = vst [vmem:[#allocation16_spill] sm:$0xff] %v11606_v9  ;;  %v15892_v34 = vld [vmem:[#allocation57_spill] sm:$0xff]  ;;  %v9108_v8 = vadd.f32 %v9107_v39, %v2974_v55  ;;  %v11625_v38 = vcvt.s32.f32 %v1902_v24  ;;  %vm15605_vm13 = vcmp.lt.f32.partialorder %v11161_v10, inf  ;;  %v11632_v55 = vsel %vm814_vm1, %v1126_v6, 2147483647  ;;  %v15901_v24 = vld [vmem:[#allocation62_spill] sm:$0xff] }
 0x210   :  { %v11599_v57 = vpop.xlane.xlu0 %1275  ;;  %15893 = vst [vmem:[#allocation57_spill] sm:$0xff] %v11613_v56  ;;  %v15895_v4 = vld [vmem:[#allocation17_spill] sm:$0xff]  ;;  %v1286_v60 = vand.u32 65535, %v15901_v24  ;;  %v15906_v24 = vld [vmem:[#allocation66_spill] sm:$0xff] }
 0x211   :  { %15889 = vst [vmem:[#allocation53_spill] sm:$0xff] %v11599_v57  ;;  %vm1277_vm5 = vcmp.eq.f32.partialorder %v15892_v34, %v11599_v57  ;;  %vm1064_vm12 = vcmp.eq.f32.partialorder %v15895_v4, %v11573_v36  ;;  %v1258_v57 = vcvt.s32.f32 %v1256_v41  ;;  %15897 = vst [vmem:[#allocation17_spill] sm:$0xff] %v11625_v38  ;;  %v11634_v4 = vpop.xlane.xlu1 %999 }
 0x212   :  { %v1278_v12 = vsel %vm1277_vm5, %v1273_v54, inf  ;;  %v2975_v54 = vsel %vm15599_vm15, %v11423_v27, inf  ;;  %15900 = vst [vmem:[#allocation149_spill] sm:$0xff] %v11634_v4  ;;  %v1128_v41 = vsel %vm1064_vm12, %v10665_v11, 32  ;;  %vm15611_vm12 = vcmp.lt.f32.partialorder %v11451_v63, inf }
 0x213   :  { %1875 = vmin.xlane.f32.xlu0 %v11606_v9  ;;  %1279 = vmin.xlane.f32.xlu1 %v1278_v12  ;;  %v15898_v9 = vld [vmem:[#allocation61_spill] sm:$0xff]  ;;  %v1932_v12 = vshra.s32 %v11613_v56, 16  ;;  %v9109_v27 = vadd.f32 %v9108_v8, %v2975_v54  ;;  %v1303_v56 = vcvt.s32.f32 %v1301_v32  ;;  %v11653_v54 = vsel %vm814_vm1, %v1128_v41, 2147483647 }
 0x214   :  { %v11620_v34 = vpop.xlane.xlu0 %1260  ;;  %15899 = vst [vmem:[#allocation61_spill] sm:$0xff] %v11632_v55 }
 0x215   :  { %15896 = vst [vmem:[#allocation58_spill] sm:$0xff] %v11620_v34  ;;  %vm1262_vm5 = vcmp.eq.f32.partialorder %v15898_v9, %v11620_v34  ;;  %v15902_v9 = vld [vmem:[#allocation18_spill] sm:$0xff]  ;;  %v11646_v6 = vcvt.s32.f32 %v1932_v12  ;;  %v11665_v41 = vpop.xlane.xlu1 %1005 }
 0x216   :  { %v1263_v39 = vsel %vm1262_vm5, %v1258_v57, inf  ;;  %vm1066_vm15 = vcmp.eq.f32.partialorder %v15902_v9, %v11604_v23  ;;  %v2976_v57 = vsel %vm15605_vm13, %v11161_v10, inf  ;;  %v1331_v9 = vand.u32 65535, %v15906_v24  ;;  %v15907_v10 = vld [vmem:[#allocation19_spill] sm:$0xff]  ;;  %15909 = vst [vmem:[#allocation66_spill] sm:$0xff] %v11665_v41 }
 0x217   :  { %1905 = vmin.xlane.f32.xlu0 %v11625_v38  ;;  %1264 = vmin.xlane.f32.xlu1 %v1263_v39  ;;  %15904 = vst [vmem:[#allocation18_spill] sm:$0xff] %v11646_v6  ;;  %v15905_v38 = vld [vmem:[#allocation65_spill] sm:$0xff]  ;;  %v1962_v39 = vshra.s32 %v11632_v55, 16  ;;  %v1130_v32 = vsel %vm1066_vm15, %v10665_v11, 32  ;;  %v9110_v12 = vadd.f32 %v9109_v27, %v2976_v57  ;;  %vm1068_vm13 = vcmp.eq.f32.partialorder %v15907_v10, %v11634_v4  ;;  %v15912_v57 = vld [vmem:[#allocation70_spill] sm:$0xff] }
 0x218   :  { %v11641_v34 = vpop.xlane.xlu0 %1305  ;;  %v1992_v24 = vshra.s32 %v11653_v54, 16  ;;  %v11674_v10 = vsel %vm814_vm1, %v1130_v32, 2147483647 }
 0x219   :  { %15903 = vst [vmem:[#allocation62_spill] sm:$0xff] %v11641_v34  ;;  %vm1307_vm5 = vcmp.eq.f32.partialorder %v15905_v38, %v11641_v34  ;;  %v1288_v34 = vcvt.s32.f32 %v1286_v60  ;;  %v11667_v55 = vcvt.s32.f32 %v1962_v39  ;;  %v1132_v60 = vsel %vm1068_vm13, %v10665_v11, 32 }
 0x21a   :  { %v1308_v8 = vsel %vm1307_vm5, %v1303_v56, inf  ;;  %v2977_v56 = vsel %vm15611_vm12, %v11451_v63, inf  ;;  %vm15619_vm5 = vcmp.lt.f32.partialorder %v11187_v35, inf  ;;  %v1316_v63 = vand.u32 65535, %v15912_v57 }
 0x21b   :  { %1935 = vmin.xlane.f32.xlu0 %v11646_v6  ;;  %1309 = vmin.xlane.f32.xlu1 %v1308_v8  ;;  %15910 = vst [vmem:[#allocation19_spill] sm:$0xff] %v11667_v55  ;;  %v15911_v8 = vld [vmem:[#allocation69_spill] sm:$0xff]  ;;  %v9111_v39 = vadd.f32 %v9110_v12, %v2977_v56  ;;  %v15913_v6 = vld [vmem:[#allocation20_spill] sm:$0xff]  ;;  %v11686_v32 = vcvt.s32.f32 %v1992_v24  ;;  %vm15630_vm13 = vcmp.lt.f32.partialorder %v11482_v5, inf  ;;  %v11693_v56 = vsel %vm814_vm1, %v1132_v60, 2147483647 }
 0x21c   :  { %v11660_v38 = vpop.xlane.xlu0 %1290  ;;  %vm1070_vm12 = vcmp.eq.f32.partialorder %v15913_v6, %v11665_v41  ;;  %v1318_v41 = vcvt.s32.f32 %v1316_v63  ;;  %v2052_v60 = vshra.s32 %v11693_v56, 16  ;;  %v15920_v63 = vld [vmem:[#allocation78_spill] sm:$0xff] }
 0x21d   :  { %15908 = vst [vmem:[#allocation65_spill] sm:$0xff] %v11660_v38  ;;  %vm1292_vm15 = vcmp.eq.f32.partialorder %v15911_v8, %v11660_v38  ;;  %v1333_v38 = vcvt.s32.f32 %v1331_v9  ;;  %15915 = vst [vmem:[#allocation70_spill] sm:$0xff] %v11686_v32  ;;  %v1134_v6 = vsel %vm1070_vm12, %v10665_v11, 32  ;;  %v15917_v9 = vld [vmem:[#allocation74_spill] sm:$0xff] }
 0x21e   :  { %v1293_v27 = vsel %vm1292_vm15, %v1288_v34, inf  ;;  %v2978_v34 = vsel %vm15619_vm5, %v11187_v35, inf  ;;  %v1361_v57 = vand.u32 65535, %v15917_v9  ;;  %vm15627_vm5 = vcmp.lt.f32.partialorder %v11216_v51, inf }
 0x21f   :  { %1965 = vmin.xlane.f32.xlu0 %v11667_v55  ;;  %1294 = vmin.xlane.f32.xlu1 %v1293_v27  ;;  %v15916_v55 = vld [vmem:[#allocation73_spill] sm:$0xff]  ;;  %v2022_v27 = vshra.s32 %v11674_v10, 16  ;;  %v9112_v24 = vadd.f32 %v9111_v39, %v2978_v34  ;;  %v11710_v9 = vsel %vm814_vm1, %v1134_v6, 2147483647  ;;  %v1346_v39 = vand.u32 65535, %v15920_v63 }
 0x220   :  { %v11681_v8 = vpop.xlane.xlu0 %1335  ;;  %v2082_v6 = vshra.s32 %v11710_v9, 16 }
 0x221   :  { %15914 = vst [vmem:[#allocation69_spill] sm:$0xff] %v11681_v8  ;;  %vm1337_vm15 = vcmp.eq.f32.partialorder %v15916_v55, %v11681_v8  ;;  %v2979_v55 = vsel %vm15630_vm13, %v11482_v5, inf  ;;  %v11703_v8 = vcvt.s32.f32 %v2022_v27  ;;  %v1363_v27 = vcvt.s32.f32 %v1361_v57 }
 0x222   :  { %v1338_v12 = vsel %vm1337_vm15, %v1333_v38, inf  ;;  %v15919_v38 = vld [vmem:[#allocation77_spill] sm:$0xff]  ;;  %v9113_v34 = vadd.f32 %v9112_v24, %v2979_v55  ;;  %v15923_v24 = vld [vmem:[#allocation82_spill] sm:$0xff] }
 0x223   :  { %1995 = vmin.xlane.f32.xlu0 %v11686_v32  ;;  %1339 = vmin.xlane.f32.xlu1 %v1338_v12  ;;  %15918 = vst [vmem:[#allocation20_spill] sm:$0xff] %v11703_v8  ;;  %v11719_v32 = vcvt.s32.f32 %v2052_v60  ;;  %v1391_v55 = vand.u32 65535, %v15923_v24 }
 0x224   :  { %v11698_v35 = vpop.xlane.xlu0 %1320 }
 0x225   :  { %vm1322_vm15 = vcmp.eq.f32.partialorder %v15919_v38, %v11698_v35  ;;  %v2980_v38 = vsel %vm15627_vm5, %v11216_v51, inf  ;;  %15921 = vst [vmem:[#allocation73_spill] sm:$0xff] %v11719_v32  ;;  %v11732_v51 = vcvt.s32.f32 %v2082_v6 }
 0x226   :  { %v1323_v12 = vsel %vm1322_vm15, %v1318_v41, inf  ;;  %v15922_v41 = vld [vmem:[#allocation81_spill] sm:$0xff]  ;;  %vm15631_vm15 = vcmp.lt.f32.partialorder %v11512_v28, inf  ;;  %v9114_v57 = vadd.f32 %v9113_v34, %v2980_v38  ;;  %v1393_v38 = vcvt.s32.f32 %v1391_v55 }
 0x227   :  { %2025 = vmin.xlane.f32.xlu0 %v11703_v8  ;;  %1324 = vmin.xlane.f32.xlu1 %v1323_v12  ;;  %v1348_v8 = vcvt.s32.f32 %v1346_v39  ;;  %v2981_v60 = vsel %vm15631_vm15, %v11512_v28, inf  ;;  %15924 = vst [vmem:[#allocation74_spill] sm:$0xff] %v11732_v51  ;;  %v15926_v39 = vld [vmem:[#allocation86_spill] sm:$0xff]  ;;  %v15927_v28 = vld [vmem:[#allocation89_spill] sm:$0xff]  ;;  %vm15636_vm15 = vcmp.lt.f32.partialorder %v11543_v1, inf }
 0x228   :  { %v11714_v5 = vpop.xlane.xlu0 %1365  ;;  %v1376_v24 = vand.u32 65535, %v15926_v39  ;;  %v2983_v55 = vsel %vm15636_vm15, %v11543_v1, inf  ;;  %v15929_v39 = vld [vmem:[#allocation93_spill] sm:$0xff]  ;;  %vm15658_vm15 = vcmp.lt.f32.partialorder %v11573_v36, inf }
 0x229   :  { %vm1367_vm12 = vcmp.eq.f32.partialorder %v15922_v41, %v11714_v5  ;;  %v15925_v41 = vld [vmem:[#allocation85_spill] sm:$0xff] }
 0x22a   :  { %v1368_v12 = vsel %vm1367_vm12, %v1363_v27, inf  ;;  %vm15633_vm12 = vcmp.lt.f32.partialorder %v11242_v7, inf }
 0x22b   :  { %2055 = vmin.xlane.f32.xlu0 %v11719_v32  ;;  %1369 = vmin.xlane.f32.xlu1 %v1368_v12  ;;  %v9115_v12 = vadd.f32 %v9114_v57, %v2981_v60  ;;  %v2982_v6 = vsel %vm15633_vm12, %v11242_v7, inf  ;;  %v1378_v57 = vcvt.s32.f32 %v1376_v24  ;;  %v15928_v60 = vld [vmem:[#allocation90_spill] sm:$0xff]  ;;  %vm15639_vm12 = vcmp.lt.f32.partialorder %v11271_v14, inf  ;;  %v15941_v32 = vld [vmem:[#allocation103_spill] sm:$0xff] }
 0x22c   :  { %v11727_v63 = vpop.xlane.xlu0 %1350  ;;  %v2984_v24 = vsel %vm15639_vm12, %v11271_v14, inf  ;;  %vm15646_vm12 = vcmp.lt.f32.partialorder %v11297_v18, inf  ;;  %v1481_v14 = vand.u32 65535, %v11088_v42 }
 0x22d   :  { %vm1352_vm5 = vcmp.eq.f32.partialorder %v15925_v41, %v11727_v63 }
 0x22e   :  { %v1353_v27 = vsel %vm1352_vm5, %v1348_v8, inf  ;;  %v9116_v8 = vadd.f32 %v9115_v12, %v2982_v6  ;;  %v15930_v6 = vld [vmem:[#allocation94_spill] sm:$0xff] }
 0x22f   :  { %2085 = vmin.xlane.f32.xlu0 %v11732_v51  ;;  %1354 = vmin.xlane.f32.xlu1 %v1353_v27  ;;  %v1421_v27 = vand.u32 65535, %v15928_v60  ;;  %v15931_v60 = vld [vmem:[#allocation97_spill] sm:$0xff] }
 0x230   :  { %v11738_v34 = vpop.xlane.xlu0 %1395  ;;  %v9117_v7 = vadd.f32 %v9116_v8, %v2983_v55  ;;  %v15933_v55 = vld [vmem:[#allocation98_spill] sm:$0xff] }
 0x231   :  { %vm1397_vm13 = vcmp.eq.f32.partialorder %v15927_v28, %v11738_v34  ;;  %v1423_v12 = vcvt.s32.f32 %v1421_v27  ;;  %v2985_v27 = vsel %vm15658_vm15, %v11573_v36, inf  ;;  %v1436_v36 = vand.u32 65535, %v11062_v58 }
 0x232   :  { %v1398_v41 = vsel %vm1397_vm13, %v1393_v38, inf  ;;  %v9118_v1 = vadd.f32 %v9117_v7, %v2984_v24  ;;  %v9918_v7 = vld [vmem:[%s15351_s0 + $0x1d8] sm:$0xff] }
 0x233   :  { %1399 = vmin.xlane.f32.xlu1 %v1398_v41  ;;  %v1406_v41 = vand.u32 65535, %v15930_v6  ;;  %v15934_v6 = vld [vmem:[#allocation101_spill] sm:$0xff] }
 0x234   :  { %v11747_v51 = vpop.xlane.xlu0 %1380  ;;  %v9119_v24 = vadd.f32 %v9118_v1, %v2985_v27  ;;  %v9919_v1 = vld [vmem:[%s15351_s0 + $0x1e0] sm:$0xff] }
 0x235   :  { %vm1382_vm5 = vcmp.eq.f32.partialorder %v15929_v39, %v11747_v51  ;;  %v1408_v8 = vcvt.s32.f32 %v1406_v41  ;;  %v9192_v27 = vmul.f32 %v9919_v1, %v9919_v1 }
 0x236   :  { %v1383_v28 = vsel %vm1382_vm5, %v1378_v57, inf }
 0x237   :  { %1384 = vmin.xlane.f32.xlu1 %v1383_v28  ;;  %v1451_v28 = vand.u32 65535, %v15933_v55 }
 0x238   :  { %v11756_v38 = vpop.xlane.xlu0 %1425 }
 0x239   :  { %vm1427_vm13 = vcmp.eq.f32.partialorder %v15931_v60, %v11756_v38  ;;  %v1453_v55 = vcvt.s32.f32 %v1451_v28 }
 0x23a   :  { %v1428_v39 = vsel %vm1427_vm13, %v1423_v12, inf  ;;  %v9191_v12 = vmul.f32 %v9918_v7, %v9918_v7 }
 0x23b   :  { %1429 = vmin.xlane.f32.xlu1 %v1428_v39 }
 0x23c   :  { %v11765_v57 = vpop.xlane.xlu0 %1410  ;;  %v9313_v28 = vsel %vm15670_vm0, %v9191_v12, 0.0 }
 0x23d   :  { %15932 = vst [vmem:[#allocation77_spill] sm:$0xff] %v11765_v57  ;;  %vm1412_vm5 = vcmp.eq.f32.partialorder %v15934_v6, %v11765_v57  ;;  %v2986_v6 = vsel %vm15646_vm12, %v11297_v18, inf  ;;  %v1438_v18 = vcvt.s32.f32 %v1436_v36  ;;  %vm15657_vm12 = vcmp.lt.f32.partialorder %v11326_v0, inf  ;;  %v15940_v36 = vld [vmem:[#allocation8_spill] sm:$0xff] }
 0x23e   :  { %v1413_v60 = vsel %vm1412_vm5, %v1408_v8, inf  ;;  %vm15656_vm5 = vcmp.lt.f32.partialorder %v11604_v23, inf  ;;  %v9314_v42 = vadd.f32 %v9313_v28, %v15940_v36  ;;  %v15943_v28 = vld [vmem:[#allocation109_spill] sm:$0xff] }
 0x23f   :  { %1414 = vmin.xlane.f32.xlu1 %v1413_v60  ;;  %v9120_v60 = vadd.f32 %v9119_v24, %v2986_v6  ;;  %v2987_v1 = vsel %vm15656_vm5, %v11604_v23, inf  ;;  %v15939_v24 = vld [vmem:[#allocation102_spill] sm:$0xff]  ;;  %v1483_v23 = vcvt.s32.f32 %v1481_v14  ;;  %vm15669_vm5 = vcmp.lt.f32.partialorder %v11634_v4, inf }
 0x240   :  { %v11777_v41 = vpop.xlane.xlu1 %1725  ;;  %v11779_v39 = vpop.xlane.xlu0 %1455 }
 0x241   :  { %15935 = vst [vmem:[#allocation78_spill] sm:$0xff] %v11777_v41  ;;  %15936 = vst [vmem:[#allocation81_spill] sm:$0xff] %v11779_v39  ;;  %vm1457_vm13 = vcmp.eq.f32.partialorder %v11081_v49, %v11779_v39  ;;  %v9920_v49 = vld [vmem:[%s15351_s0 + $0x1e8] sm:$0xff] }
 0x242   :  { %v1458_v8 = vsel %vm1457_vm13, %v1453_v55, inf  ;;  %v9193_v55 = vmul.f32 %v9920_v49, %v9920_v49  ;;  %v9121_v49 = vadd.f32 %v9120_v60, %v2987_v1  ;;  %v1511_v60 = vand.u32 65535, %v11143_v26 }
 0x243   :  { %1459 = vmin.xlane.f32.xlu1 %v1458_v8  ;;  %v9315_v8 = vsel %vm15670_vm0, %v9192_v27, 0.0  ;;  %v1526_v26 = vand.u32 65535, %v11227_v21 }
 0x244   :  { %v11792_v58 = vpop.xlane.xlu1 %1740  ;;  %v11794_v7 = vpop.xlane.xlu0 %1440  ;;  %v9317_v27 = vsel %vm15670_vm0, %v9193_v55, 0.0  ;;  %v9316_v36 = vadd.f32 %v9315_v8, %v9314_v42  ;;  %v1496_v42 = vand.u32 65535, %v11172_v13  ;;  %v1541_v8 = vand.u32 65535, %v11198_v15 }
 0x245   :  { %15937 = vst [vmem:[#allocation82_spill] sm:$0xff] %v11792_v58  ;;  %15938 = vst [vmem:[#allocation85_spill] sm:$0xff] %v11794_v7  ;;  %vm1442_vm13 = vcmp.eq.f32.partialorder %v11110_v47, %v11794_v7  ;;  %v1466_v47 = vand.u32 65535, %v11117_v3  ;;  %v15942_v7 = vld [vmem:[#allocation106_spill] sm:$0xff]  ;;  %v1571_v13 = vand.u32 65535, %v11253_v62 }
 0x246   :  { %v1443_v12 = vsel %vm1442_vm13, %v1438_v18, inf  ;;  %v2988_v18 = vsel %vm15657_vm12, %v11326_v0, inf  ;;  %v11833_v1 = vadd.f32 %v9317_v27, %v9316_v36  ;;  %v15945_v36 = vld [vmem:[#allocation21_spill] sm:$0xff]  ;;  %v1498_v62 = vcvt.s32.f32 %v1496_v42 }
 0x247   :  { %1444 = vmin.xlane.f32.xlu1 %v1443_v12  ;;  %v9122_v58 = vadd.f32 %v9121_v49, %v2988_v18  ;;  %v1468_v55 = vcvt.s32.f32 %v1466_v47  ;;  %v2989_v49 = vsel %vm15669_vm5, %v11634_v4, inf  ;;  %v1162_v18 = vcvt.f32.s32 %v11436_v61 }
 0x248   :  { %v11810_v39 = vpop.xlane.xlu1 %1770  ;;  %v11812_v41 = vpop.xlane.xlu0 %1485  ;;  %vm1069_vm15 = vcmp.eq.f32.partialorder %v15945_v36, %v11417_v19  ;;  %v1543_v57 = vcvt.s32.f32 %v1541_v8  ;;  %v1528_v0 = vcvt.s32.f32 %v1526_v26  ;;  %v11871_v61 = vcvt.s32.f32 %v1571_v13  ;;  %v15949_v36 = vld [vmem:[#allocation120_spill] sm:$0xff] }
 0x249   :  { %vm1487_vm13 = vcmp.eq.f32.partialorder %v11136_v16, %v11812_v41  ;;  %v11861_v27 = vadd.f32 %v9122_v58, %v2989_v49  ;;  %v11865_v3 = vshll.u32 %v1162_v18, 16  ;;  %v1556_v58 = vand.u32 65535, %v11282_v31 }
 0x24a   :  { %v1488_v12 = vsel %vm1487_vm13, %v1483_v23, inf  ;;  %vm15668_vm13 = vcmp.lt.f32.partialorder %v11417_v19, inf  ;;  %v15944_v23 = vld [vmem:[#allocation114_spill] sm:$0xff]  ;;  %v1586_v49 = vand.u32 65535, %v11337_v40  ;;  %v1147_v42 = vcvt.f32.s32 %v11457_v53 }
 0x24b   :  { %1489 = vmin.xlane.f32.xlu1 %v1488_v12  ;;  %v11853_v15 = vsel %vm15668_vm13, %v11417_v19, inf  ;;  %v1513_v12 = vcvt.s32.f32 %v1511_v60  ;;  %15947 = vst [vmem:[#allocation89_spill] sm:$0xff] %v11861_v27  ;;  %v1601_v60 = vand.u32 65535, %v11308_v33  ;;  %v1631_v26 = vand.u32 65535, %v11361_v46 }
 0x24c   :  { %v11828_v6 = vpop.xlane.xlu1 %1800  ;;  %v11830_v16 = vpop.xlane.xlu0 %1470  ;;  %15946 = vst [vmem:[#allocation86_spill] sm:$0xff] %v11853_v15  ;;  %v1646_v31 = vand.u32 65535, %v11411_v50  ;;  %v1691_v33 = vand.u32 65535, %v11430_v52  ;;  %v1192_v53 = vcvt.f32.s32 %v11476_v44  ;;  %v11893_v46 = vcvt.s32.f32 %v1556_v58  ;;  %v15953_v58 = vld [vmem:[#allocation123_spill] sm:$0xff] }
 0x24d   :  { %vm1472_vm12 = vcmp.eq.f32.partialorder %v15944_v23, %v11830_v16  ;;  %v9967_v50 = vmov 0   ;;  %v11900_v52 = vshll.u32 %v1147_v42, 16  ;;  %v11904_v27 = vcvt.s32.f32 %v1631_v26 }
 0x24e   :  { %v1473_v47 = vsel %vm1472_vm12, %v1468_v55, inf  ;;  %v1133_v55 = vsel %vm1069_vm15, %v10665_v11, 32  ;;  %9917 = vset.pattern.permute.xlu0 %v9967_v50  ;;  %9916 = vset.pattern.permute.xlu1 %v9967_v50  ;;  %v11917_v42 = vshll.u32 %v1192_v53, 16  ;;  %v15958_v11 = vld [vmem:[#allocation33_spill] sm:$0xff] }
 0x24f   :  { %1474 = vmin.xlane.f32.xlu1 %v1473_v47  ;;  %v15948_v47 = vld [vmem:[#allocation117_spill] sm:$0xff]  ;;  %v11889_v40 = vsel %vm814_vm1, %v1133_v55, 2147483647  ;;  %15952 = vst [vmem:[#allocation90_spill] sm:$0xff] %v11900_v52  ;;  %v1177_v50 = vcvt.f32.s32 %v15958_v11 }
 0x250   :  { %v11857_v21 = vpop.xlane.xlu1 %1830  ;;  %v11859_v23 = vpop.xlane.xlu0 %1515  ;;  %15955 = vst [vmem:[#allocation94_spill] sm:$0xff] %v11917_v42  ;;  %v15964_v11 = vld [vmem:[#allocation45_spill] sm:$0xff] }
 0x251   :  { %vm1517_vm12 = vcmp.eq.f32.partialorder %v15948_v47, %v11859_v23  ;;  %v15950_v47 = vld [vmem:[#allocation146_spill] sm:$0xff] }
 0x252   :  { %v1518_v14 = vsel %vm1517_vm12, %v1513_v12, inf  ;;  %v1616_v12 = vand.u32 65535, %v11380_v30  ;;  %v1676_v19 = vand.u32 65535, %v15950_v47  ;;  %v11895_v30 = vcvt.s32.f32 %v1601_v60 }
 0x253   :  { %1519 = vmin.xlane.f32.xlu1 %v1518_v14  ;;  %v1661_v14 = vand.u32 65535, %v11395_v20  ;;  %v11897_v20 = vcvt.s32.f32 %v1586_v49  ;;  %v11913_v49 = vcvt.s32.f32 %v1646_v31 }
 0x254   :  { %v11877_v8 = vpop.xlane.xlu1 %1860  ;;  %v11879_v18 = vpop.xlane.xlu0 %1500  ;;  %v11906_v44 = vcvt.s32.f32 %v1616_v12  ;;  %v15957_v12 = vld [vmem:[#allocation30_spill] sm:$0xff] }
 0x255   :  { %vm1502_vm15 = vcmp.eq.f32.partialorder %v15949_v36, %v11879_v18  ;;  %v15951_v36 = vld [vmem:[#allocation27_spill] sm:$0xff]  ;;  %v11911_v60 = vcvt.s32.f32 %v1661_v14  ;;  %v1751_v15 = vand.u32 65535, %v15957_v12  ;;  %v15960_v14 = vand.u32 65535, %v15939_v24 }
 0x256   :  { %v1503_v13 = vsel %vm1502_vm15, %v1498_v62, inf  ;;  %v1706_v4 = vand.u32 65535, %v15951_v36  ;;  %v2067_v62 = vshra.s32 %v11889_v40, 16  ;;  %v11921_v36 = vcvt.s32.f32 %v1676_v19 }
 0x257   :  { %1504 = vmin.xlane.f32.xlu1 %v1503_v13  ;;  %v11915_v13 = vcvt.s32.f32 %v1691_v33  ;;  %v11929_v31 = vcvt.s32.f32 %v15960_v14  ;;  %v15961_v33 = vld [vmem:[#allocation34_spill] sm:$0xff]  ;;  %v15963_v19 = vand.u32 65535, %v15941_v32  ;;  %v1811_v12 = vand.u32 65535, %v11531_v59 }
 0x258   :  { %v11902_v55 = vpop.xlane.xlu0 %1545  ;;  %v11919_v47 = vpop.xlane.xlu1 %1890  ;;  %15956 = vst [vmem:[#allocation97_spill] sm:$0xff] %v11921_v36  ;;  %v11925_v52 = vcvt.s32.f32 %v1706_v4  ;;  %v11934_v42 = vcvt.s32.f32 %v2067_v62  ;;  %v15965_v4 = vld [vmem:[#allocation126_spill] sm:$0xff]  ;;  %v15966_v24 = vand.u32 65535, %v15942_v7  ;;  %v15968_v62 = vand.u32 65535, %v11159_v29 }
 0x259   :  { %vm1547_vm12 = vcmp.eq.f32.partialorder %v15953_v58, %v11902_v55  ;;  %15954 = vst [vmem:[#allocation93_spill] sm:$0xff] %v11915_v13  ;;  %v1781_v58 = vand.u32 65535, %v15961_v33  ;;  %v15967_v33 = vand.u32 65535, %v15943_v28  ;;  %v15970_v59 = vand.u32 65535, %v11185_v48 }
 0x25a   :  { %v1548_v26 = vsel %vm1547_vm12, %v1543_v57, inf  ;;  %15959 = vst [vmem:[#allocation98_spill] sm:$0xff] %v11925_v52  ;;  %15962 = vst [vmem:[#allocation101_spill] sm:$0xff] %v11934_v42  ;;  %v11938_v57 = vcvt.s32.f32 %v15963_v19  ;;  %v11946_v14 = vcvt.s32.f32 %v15966_v24  ;;  %v11954_v32 = vcvt.s32.f32 %v15968_v62  ;;  %v15972_v24 = vld [vmem:[#allocation38_spill] sm:$0xff] }
 0x25b   :  { %1549 = vmin.xlane.f32.xlu1 %v1548_v26  ;;  %v1841_v26 = vand.u32 65535, %v15964_v11  ;;  %v11950_v52 = vcvt.s32.f32 %v15967_v33  ;;  %v11956_v42 = vcvt.s32.f32 %v1751_v15  ;;  %v11960_v11 = vcvt.s32.f32 %v15970_v59 }
 0x25c   :  { %v11932_v53 = vpop.xlane.xlu0 %1530  ;;  %v11963_v7 = vshll.u32 %v1177_v50, 16  ;;  %v1222_v13 = vcvt.f32.s32 %v15972_v24  ;;  %v11966_v28 = vcvt.s32.f32 %v1781_v58  ;;  %v1901_v29 = vand.u32 65535, %v11592_v43  ;;  %v11969_v33 = vpop.xlane.xlu1 %1920  ;;  %v15978_v58 = vld [vmem:[#allocation129_spill] sm:$0xff] }
 0x25d   :  { %vm1532_vm15 = vcmp.eq.f32.partialorder %v15965_v4, %v11932_v53  ;;  %15969 = vst [vmem:[#allocation102_spill] sm:$0xff] %v11956_v42  ;;  %v15971_v4 = vld [vmem:[#allocation49_spill] sm:$0xff]  ;;  %v11973_v15 = vcvt.s32.f32 %v1811_v12  ;;  %v11975_v48 = vcvt.s32.f32 %v1841_v26  ;;  %v15976_v62 = vand.u32 65535, %v11214_v17 }
 0x25e   :  { %v1533_v19 = vsel %vm1532_vm15, %v1528_v0, inf  ;;  %v1871_v36 = vand.u32 65535, %v15971_v4  ;;  %15973 = vst [vmem:[#allocation8_spill] sm:$0xff] %v11966_v28  ;;  %v15977_v50 = vand.u32 65535, %v11240_v45  ;;  %v15979_v43 = vand.u32 65535, %v11269_v37  ;;  %v15980_v24 = vld [vmem:[#allocation57_spill] sm:$0xff] }
 0x25f   :  { %1534 = vmin.xlane.f32.xlu1 %v1533_v19  ;;  %15974 = vst [vmem:[#allocation103_spill] sm:$0xff] %v11973_v15  ;;  %15975 = vst [vmem:[#allocation106_spill] sm:$0xff] %v11975_v48  ;;  %v11979_v59 = vcvt.s32.f32 %v15976_v62  ;;  %v1931_v12 = vand.u32 65535, %v15980_v24  ;;  %v15981_v15 = vld [vmem:[#allocation61_spill] sm:$0xff]  ;;  %v1991_v62 = vand.u32 65535, %v11653_v54  ;;  %v2021_v45 = vand.u32 65535, %v11674_v10 }
 0x260   :  { %v11971_v0 = vpop.xlane.xlu0 %1575  ;;  %v11983_v4 = vcvt.s32.f32 %v15977_v50  ;;  %v11989_v19 = vcvt.s32.f32 %v15979_v43  ;;  %v1961_v26 = vand.u32 65535, %v15981_v15  ;;  %v11994_v17 = vcvt.s32.f32 %v1871_v36  ;;  %v15983_v28 = vld [vmem:[#allocation41_spill] sm:$0xff] }
 0x261   :  { %vm1577_vm12 = vcmp.eq.f32.partialorder %v15978_v58, %v11971_v0  ;;  %v11998_v50 = vshll.u32 %v1222_v13, 16  ;;  %v1207_v58 = vcvt.f32.s32 %v15983_v28  ;;  %v12001_v37 = vcvt.s32.f32 %v1901_v29  ;;  %v15987_v28 = vld [vmem:[#allocation132_spill] sm:$0xff] }
 0x262   :  { %v1578_v48 = vsel %vm1577_vm12, %v11871_v61, inf  ;;  %15982 = vst [vmem:[#allocation109_spill] sm:$0xff] %v11994_v17  ;;  %v2051_v43 = vand.u32 65535, %v11693_v56  ;;  %v15985_v15 = vand.u32 65535, %v11295_v25  ;;  %v15986_v36 = vand.u32 65535, %v11324_v2  ;;  %v12027_v2 = vpop.xlane.xlu1 %1950 }
 0x263   :  { %1579 = vmin.xlane.f32.xlu1 %v1578_v48  ;;  %15984 = vst [vmem:[#allocation114_spill] sm:$0xff] %v12001_v37  ;;  %v2081_v10 = vand.u32 65535, %v11710_v9  ;;  %v2066_v13 = vand.u32 65535, %v11889_v40  ;;  %v12018_v29 = vcvt.s32.f32 %v1931_v12  ;;  %v12020_v56 = vcvt.s32.f32 %v1961_v26  ;;  %v15995_v12 = vld [vmem:[#allocation50_spill] sm:$0xff]  ;;  %v15996_v26 = vld [vmem:[#allocation53_spill] sm:$0xff] }
 0x264   :  { %v12004_v24 = vpop.xlane.xlu0 %1560  ;;  %v12008_v61 = vcvt.s32.f32 %v15985_v15  ;;  %v12012_v54 = vcvt.s32.f32 %v15986_v36  ;;  %v15990_v48 = vand.u32 65535, %v11351_v22  ;;  %v15991_v15 = vld [vmem:[#allocation46_spill] sm:$0xff]  ;;  %v12030_v9 = vcvt.s32.f32 %v1991_v62 }
 0x265   :  { %vm1562_vm15 = vcmp.eq.f32.partialorder %v15987_v28, %v12004_v24  ;;  %15988 = vst [vmem:[#allocation21_spill] sm:$0xff] %v12018_v29  ;;  %15989 = vst [vmem:[#allocation117_spill] sm:$0xff] %v12020_v56  ;;  %v1252_v37 = vcvt.f32.s32 %v15991_v15  ;;  %v12032_v40 = vcvt.s32.f32 %v2021_v45  ;;  %v12034_v17 = vshll.u32 %v1207_v58, 16  ;;  %v16001_v62 = vld [vmem:[#allocation62_spill] sm:$0xff] }
 0x266   :  { %v12024_v25 = vcvt.s32.f32 %v15990_v48  ;;  %v1563_v36 = vsel %vm1562_vm15, %v11893_v46, inf  ;;  %15992 = vst [vmem:[#allocation120_spill] sm:$0xff] %v12030_v9  ;;  %v1237_v28 = vcvt.f32.s32 %v15995_v12  ;;  %v1282_v56 = vcvt.f32.s32 %v15996_v26  ;;  %v15998_v48 = vld [vmem:[#allocation58_spill] sm:$0xff]  ;;  %v16003_v9 = vld [vmem:[#allocation69_spill] sm:$0xff]  ;;  %v16004_v12 = vld [vmem:[#allocation135_spill] sm:$0xff] }
 0x267   :  { %15993 = vst [vmem:[#allocation146_spill] sm:$0xff] %v12032_v40  ;;  %15994 = vst [vmem:[#allocation27_spill] sm:$0xff] %v12034_v17  ;;  %1564 = vmin.xlane.f32.xlu1 %v1563_v36  ;;  %v12038_v22 = vcvt.s32.f32 %v2051_v43  ;;  %v1267_v29 = vcvt.f32.s32 %v15998_v48  ;;  %v12043_v42 = vcvt.s32.f32 %v2081_v10  ;;  %v12045_v46 = vcvt.s32.f32 %v2066_v13  ;;  %v16002_v40 = vld [vmem:[#allocation65_spill] sm:$0xff] }
 0x268   :  { %v12041_v15 = vpop.xlane.xlu0 %1605  ;;  %v1312_v45 = vcvt.f32.s32 %v16001_v62  ;;  %v1297_v58 = vcvt.f32.s32 %v16002_v40  ;;  %v1342_v17 = vcvt.f32.s32 %v16003_v9  ;;  %v12052_v36 = vshll.u32 %v1252_v37, 16 }
 0x269   :  { %15997 = vst [vmem:[#allocation123_spill] sm:$0xff] %v12038_v22  ;;  %15999 = vst [vmem:[#allocation30_spill] sm:$0xff] %v12043_v42  ;;  %vm1607_vm12 = vcmp.eq.f32.partialorder %v16004_v12, %v12041_v15  ;;  %v1327_v43 = vcvt.f32.s32 %v11698_v35  ;;  %v1372_v26 = vcvt.f32.s32 %v11714_v5  ;;  %v12057_v48 = vshll.u32 %v1237_v28, 16  ;;  %v16005_v35 = vld [vmem:[#allocation77_spill] sm:$0xff]  ;;  %v12068_v5 = vpop.xlane.xlu1 %1980 }
 0x26a   :  { %16000 = vst [vmem:[#allocation33_spill] sm:$0xff] %v12045_v46  ;;  %v1608_v10 = vsel %vm1607_vm12, %v11895_v30, inf  ;;  %v12059_v13 = vshll.u32 %v1282_v56, 16  ;;  %v1357_v62 = vcvt.f32.s32 %v11727_v63  ;;  %v1402_v40 = vcvt.f32.s32 %v11738_v34  ;;  %v16006_v34 = vld [vmem:[#allocation138_spill] sm:$0xff] }
 0x26b   :  { %1609 = vmin.xlane.f32.xlu1 %v1608_v10  ;;  %v12063_v9 = vshll.u32 %v1267_v29, 16  ;;  %v1387_v37 = vcvt.f32.s32 %v11747_v51  ;;  %v1432_v12 = vcvt.f32.s32 %v11756_v38  ;;  %v1417_v46 = vcvt.f32.s32 %v16005_v35  ;;  %v16008_v38 = vld [vmem:[#allocation78_spill] sm:$0xff] }
 0x26c   :  { %v12070_v30 = vpop.xlane.xlu0 %1590  ;;  %v12072_v28 = vshll.u32 %v1312_v45, 16  ;;  %v12074_v56 = vshll.u32 %v1297_v58, 16  ;;  %v12076_v63 = vshll.u32 %v1342_v17, 16  ;;  %v12080_v29 = vshll.u32 %v1327_v43, 16  ;;  %v16011_v45 = vld [vmem:[#allocation105_spill] sm:$0xff] }
 0x26d   :  { %vm1592_vm15 = vcmp.eq.f32.partialorder %v16006_v34, %v12070_v30  ;;  %v12082_v51 = vshll.u32 %v1372_v26, 16  ;;  %v1732_v10 = vcvt.f32.s32 %v16008_v38  ;;  %v12086_v42 = vshll.u32 %v1357_v62, 16  ;;  %v9921_v17 = vld [vmem:[%s15351_s0 + $0x1f0] sm:$0xff] }
 0x26e   :  { %v1593_v35 = vsel %vm1592_vm15, %v11897_v20, inf  ;;  %v12088_v22 = vshll.u32 %v1402_v40, 16  ;;  %vm1727_vm12 = vcmp.eq.f32.partialorder %v16011_v45, %v16008_v38  ;;  %v9194_v58 = vmul.f32 %v9921_v17, %v9921_v17  ;;  %v16015_v20 = vld [vmem:[#allocation81_spill] sm:$0xff]  ;;  %v16016_v40 = vld [vmem:[#allocation82_spill] sm:$0xff]  ;;  %v16018_v38 = vld [vmem:[#allocation139_spill] sm:$0xff] }
 0x26f   :  { %16007 = vst [vmem:[#allocation34_spill] sm:$0xff] %v12082_v51  ;;  %16009 = vst [vmem:[#allocation45_spill] sm:$0xff] %v12086_v42  ;;  %1594 = vmin.xlane.f32.xlu1 %v1593_v35  ;;  %v12095_v43 = vshll.u32 %v1387_v37, 16  ;;  %v12097_v26 = vshll.u32 %v1432_v12, 16  ;;  %v12099_v34 = vshll.u32 %v1417_v46, 16  ;;  %v1462_v62 = vcvt.f32.s32 %v16015_v20  ;;  %v16019_v45 = vld [vmem:[#allocation108_spill] sm:$0xff]  ;;  %v12112_v12 = vpop.xlane.xlu1 %2010 }
 0x270   :  { %16010 = vst [vmem:[#allocation126_spill] sm:$0xff] %v12088_v22  ;;  %v12102_v42 = vpop.xlane.xlu0 %1635  ;;  %v1747_v35 = vcvt.f32.s32 %v16016_v40  ;;  %v16017_v22 = vld [vmem:[#allocation85_spill] sm:$0xff]  ;;  %vm1742_vm13 = vcmp.eq.f32.partialorder %v16019_v45, %v16016_v40  ;;  %v12110_v37 = vshll.u32 %v1732_v10, 16  ;;  %v12116_v17 = vsel %vm1727_vm12, %v11929_v31, inf  ;;  %v9922_v20 = vld [vmem:[%s15351_s0 + $0x1f8] sm:$0xff] }
 0x271   :  { %16012 = vst [vmem:[#allocation49_spill] sm:$0xff] %v12095_v43  ;;  %16013 = vst [vmem:[#allocation38_spill] sm:$0xff] %v12097_v26  ;;  %v1447_v51 = vcvt.f32.s32 %v16017_v22  ;;  %vm1637_vm15 = vcmp.eq.f32.partialorder %v16018_v38, %v12102_v42  ;;  %v9195_v22 = vmul.f32 %v9922_v20, %v9922_v20  ;;  %v1492_v38 = vcvt.f32.s32 %v11812_v41  ;;  %v16021_v10 = vld [vmem:[#allocation111_spill] sm:$0xff]  ;;  %v16023_v20 = vld [vmem:[#allocation113_spill] sm:$0xff] }
 0x272   :  { %16014 = vst [vmem:[#allocation129_spill] sm:$0xff] %v12099_v34  ;;  %16020 = vst [vmem:[#allocation57_spill] sm:$0xff] %v12110_v37  ;;  %v1638_v46 = vsel %vm1637_vm15, %v11904_v27, inf  ;;  %v1777_v34 = vcvt.f32.s32 %v11810_v39  ;;  %vm1772_vm5 = vcmp.eq.f32.partialorder %v16021_v10, %v11810_v39  ;;  %v9319_v40 = vsel %vm15670_vm0, %v9194_v58, 0.0  ;;  %v16026_v58 = vld [vmem:[#allocation141_spill] sm:$0xff] }
 0x273   :  { %1639 = vmin.xlane.f32.xlu1 %v1638_v46  ;;  %v12126_v45 = vshll.u32 %v1462_v62, 16  ;;  %v1807_v27 = vcvt.f32.s32 %v11828_v6  ;;  %v12132_v37 = vsel %vm1742_vm13, %v11938_v57, inf  ;;  %vm1802_vm12 = vcmp.eq.f32.partialorder %v16023_v20, %v11828_v6  ;;  %v12161_v20 = vpop.xlane.xlu1 %2040 }
 0x274   :  { %v12129_v31 = vpop.xlane.xlu0 %1620  ;;  %v12136_v26 = vshll.u32 %v1747_v35, 16  ;;  %v12138_v41 = vshll.u32 %v1447_v51, 16  ;;  %v1477_v39 = vcvt.f32.s32 %v11830_v16  ;;  %v12145_v46 = vsel %vm1772_vm5, %v11946_v14, inf }
 0x275   :  { %16022 = vst [vmem:[#allocation61_spill] sm:$0xff] %v12126_v45  ;;  %vm1622_vm15 = vcmp.eq.f32.partialorder %v16026_v58, %v12129_v31  ;;  %v9320_v57 = vadd.f32 %v9319_v40, %v11833_v1  ;;  %v9321_v10 = vsel %vm15670_vm0, %v9195_v22, 0.0  ;;  %v12149_v45 = vshll.u32 %v1777_v34, 16  ;;  %v16030_v34 = vld [vmem:[#allocation116_spill] sm:$0xff]  ;;  %v16033_v40 = vld [vmem:[#allocation119_spill] sm:$0xff]  ;;  %v16034_v58 = vld [vmem:[#allocation122_spill] sm:$0xff] }
 0x276   :  { %16024 = vst [vmem:[#allocation41_spill] sm:$0xff] %v12136_v26  ;;  %16025 = vst [vmem:[#allocation132_spill] sm:$0xff] %v12138_v41  ;;  %v1623_v62 = vsel %vm1622_vm15, %v11906_v44, inf  ;;  %v12151_v6 = vshll.u32 %v1492_v38, 16  ;;  %v1837_v51 = vcvt.f32.s32 %v11857_v21  ;;  %v12155_v16 = vsel %vm1802_vm12, %v11950_v52, inf  ;;  %v16032_v52 = vld [vmem:[#allocation144_spill] sm:$0xff] }
 0x277   :  { %16027 = vst [vmem:[#allocation46_spill] sm:$0xff] %v12149_v45  ;;  %1624 = vmin.xlane.f32.xlu1 %v1623_v62  ;;  %v12157_v35 = vshll.u32 %v1807_v27, 16  ;;  %v1522_v44 = vcvt.f32.s32 %v11859_v23  ;;  %v1867_v14 = vcvt.f32.s32 %v11877_v8  ;;  %vm1832_vm5 = vcmp.eq.f32.partialorder %v16030_v34, %v11857_v21 }
 0x278   :  { %16028 = vst [vmem:[#allocation50_spill] sm:$0xff] %v12151_v6  ;;  %v12163_v1 = vpop.xlane.xlu0 %1665  ;;  %v12167_v22 = vshll.u32 %v1477_v39, 16  ;;  %v1507_v38 = vcvt.f32.s32 %v11879_v18  ;;  %vm1862_vm12 = vcmp.eq.f32.partialorder %v16033_v40, %v11877_v8  ;;  %v1897_v23 = vcvt.f32.s32 %v11919_v47 }
 0x279   :  { %16029 = vst [vmem:[#allocation53_spill] sm:$0xff] %v12157_v35  ;;  %vm1667_vm13 = vcmp.eq.f32.partialorder %v16032_v52, %v12163_v1  ;;  %vm1892_vm15 = vcmp.eq.f32.partialorder %v16034_v58, %v11919_v47  ;;  %v12178_v62 = vadd.f32 %v9321_v10, %v9320_v57  ;;  %v12180_v21 = vshll.u32 %v1837_v51, 16  ;;  %v16042_v10 = vld [vmem:[#allocation145_spill] sm:$0xff] }
 0x27a   :  { %16031 = vst [vmem:[#allocation58_spill] sm:$0xff] %v12167_v22  ;;  %v1668_v27 = vsel %vm1667_vm13, %v11911_v60, inf  ;;  %v1552_v39 = vcvt.f32.s32 %v11902_v55  ;;  %v12184_v18 = vsel %vm1832_vm5, %v11954_v32, inf  ;;  %v16037_v34 = vlaneseq }
 0x27b   :  { %16035 = vst [vmem:[#allocation62_spill] sm:$0xff] %v12178_v62  ;;  %16036 = vst [vmem:[#allocation65_spill] sm:$0xff] %v12180_v21  ;;  %1669 = vmin.xlane.f32.xlu1 %v1668_v27  ;;  %v12189_v8 = vshll.u32 %v1522_v44, 16  ;;  %v12191_v40 = vshll.u32 %v1867_v14, 16  ;;  %v12196_v47 = vsel %vm1862_vm12, %v11960_v11, inf  ;;  %v12198_v57 = vshll.u32 %v1507_v38, 16 }
 0x27c   :  { %v12187_v52 = vshrl.u32 %v16037_v34, 7  ;;  %v1160_v60 = vpop.xlane.xlu1 %1159  ;;  %v12193_v35 = vpop.xlane.xlu0 %1650  ;;  %v12203_v32 = vsel %vm1892_vm15, %v11979_v59, inf  ;;  %v12205_v51 = vshll.u32 %v1897_v23, 16  ;;  %v1927_v44 = vcvt.f32.s32 %v11969_v33  ;;  %v16044_v27 = vld [vmem:[#allocation125_spill] sm:$0xff]  ;;  %v16057_v62 = vld [vmem:[#allocation94_spill] sm:$0xff] }
 0x27d   :  { %16039 = vst [vmem:[#allocation135_spill] sm:$0xff] %v12189_v8  ;;  %16040 = vst [vmem:[#allocation77_spill] sm:$0xff] %v12191_v40  ;;  %v1161_v55 = vcvt.f32.s32 %v1160_v60  ;;  %vm1652_vm5 = vcmp.eq.f32.partialorder %v16042_v10, %v12193_v35  ;;  %vm1922_vm13 = vcmp.eq.f32.partialorder %v16044_v27, %v11969_v33  ;;  %v12211_v11 = vshll.u32 %v1552_v39, 16  ;;  %v16049_v40 = vld [vmem:[#allocation128_spill] sm:$0xff]  ;;  %v16056_v8 = vld [vmem:[#allocation97_spill] sm:$0xff] }
 0x27e   :  { %16038 = vst [vmem:[#allocation69_spill] sm:$0xff] %v12187_v52  ;;  %16041 = vst [vmem:[#allocation138_spill] sm:$0xff] %v12198_v57  ;;  %v1653_v14 = vsel %vm1652_vm5, %v11913_v49, inf  ;;  %v1537_v38 = vcvt.f32.s32 %v11932_v53  ;;  %v12215_v58 = vsub.s32 0, %v12187_v52  ;;  %v9968_v60 = vmov 1966171168  }
 0x27f   :  { %16043 = vst [vmem:[#allocation78_spill] sm:$0xff] %v12205_v51  ;;  %16045 = vst [vmem:[#allocation105_spill] sm:$0xff] %v12211_v11  ;;  %1654 = vmin.xlane.f32.xlu1 %v1653_v14  ;;  %v5365_v59 = vunpack.c.l.s4 %v9968_v60  ;;  %v1164_v23 = vadd.s32 %v11865_v3, %v1161_v55  ;;  %v12221_v49 = vsub.s32 1, %v12187_v52  ;;  %v12224_v33 = vsub.s32 2, %v12187_v52  ;;  %v16046_v14 = vld [vmem:[#allocation9_spill] sm:$0xff]  ;;  %v16054_v57 = vld [vmem:[#allocation10_spill] sm:$0xff] }
 0x280   :  { %v1145_v10 = vpop.xlane.xlu1 %1144  ;;  %v12218_v34 = vpop.xlane.xlu0 %1695  ;;  %v12227_v39 = vsub.s32 3, %v12187_v52  ;;  %v12232_v27 = vsel %vm1922_vm13, %v11983_v4, inf  ;;  %v12235_v3 = vsub.s32 4, %v12187_v52  ;;  %v12237_v55 = vshll.u32 %v1927_v44, 16  ;;  %v16048_v60 = vld [vmem:[#allocation93_spill] sm:$0xff]  ;;  %v16051_v4 = vld [vmem:[#allocation90_spill] sm:$0xff] }
 0x281   :  { %v1146_v53 = vcvt.f32.s32 %v1145_v10  ;;  %vm1697_vm12 = vcmp.eq.f32.partialorder %v16046_v14, %v12218_v34  ;;  %vm1952_vm15 = vcmp.eq.f32.partialorder %v16049_v40, %v12027_v2  ;;  %v12243_v21 = vsub.s32 5, %v12187_v52 }
 0x282   :  { %16047 = vst [vmem:[#allocation81_spill] sm:$0xff] %v12237_v55  ;;  %v1698_v51 = vsel %vm1697_vm12, %v16048_v60, inf  ;;  %v12245_v10 = vshll.u32 %v1537_v38, 16  ;;  %v1957_v14 = vcvt.f32.s32 %v12027_v2  ;;  %v5366_v26 = vunpack.c.0.s8 %v5365_v59  ;;  %v16052_v60 = vld [vmem:[#allocation22_spill] sm:$0xff] }
 0x283   :  { %1699 = vmin.xlane.f32.xlu1 %v1698_v51  ;;  %v12249_v45 = vadd.s32 %v16051_v4, %v1146_v53  ;;  %v1582_v44 = vcvt.f32.s32 %v11971_v0  ;;  %vm2096_vm5 = vcmp.eq.s32.totalorder %v16052_v60, %v1164_v23  ;;  %v12256_v40 = vsub.s32 6, %v12187_v52  ;;  %v16053_v0 = vld [vmem:[#allocation131_spill] sm:$0xff] }
 0x284   :  { %16050 = vst [vmem:[#allocation82_spill] sm:$0xff] %v12245_v10  ;;  %v1190_v55 = vpop.xlane.xlu1 %1189  ;;  %v12252_v11 = vpop.xlane.xlu0 %1680  ;;  %v12259_v38 = vsub.s32 7, %v12187_v52  ;;  %v12264_v2 = vsel %vm1952_vm15, %v11989_v19, inf  ;;  %vm1982_vm12 = vcmp.eq.f32.partialorder %v16053_v0, %v12068_v5  ;;  %v1987_v51 = vcvt.f32.s32 %v12068_v5  ;;  %v16062_v0 = vld [vmem:[#allocation137_spill] sm:$0xff] }
 0x285   :  { %v1191_v10 = vcvt.f32.s32 %v1190_v55  ;;  %vm2095_vm13 = vcmp.eq.s32.totalorder %v16052_v60, %v12249_v45  ;;  %v1567_v59 = vcvt.f32.s32 %v12004_v24  ;;  %v15671_v53 = vmov 0.0  }
 0x286   :  { %v9437_v4 = vsel %vm2095_vm13, 1.0, %v15671_v53  ;;  %vm1682_vm0 = vcmp.eq.f32.partialorder %v16054_v57, %v12252_v11  ;;  %v12273_v55 = vshll.u32 %v1957_v14, 16  ;;  %v9438_v22 = vsel %vm2096_vm5, 1.0, %v15671_v53  ;;  %v16061_v53 = vld [vmem:[#allocation98_spill] sm:$0xff] }
 0x287   :  { %9813 = vmatprep.mubr.msk.f32.mxu1 %vm814_vm1, %v9437_v4  ;;  %v1683_v19 = vsel %vm1682_vm0, %v16056_v8, inf  ;;  %v12279_v6 = vsub.s32 %v5366_v26, %v12187_v52  ;;  %v12281_v41 = vshll.u32 %v1582_v44, 16  ;;  %v2017_v24 = vcvt.f32.s32 %v12112_v12  ;;  %v16058_v4 = vld [vmem:[#allocation11_spill] sm:$0xff] }
 0x288   :  { %16055 = vst [vmem:[#allocation85_spill] sm:$0xff] %v12273_v55  ;;  %v12285_v43 = vadd.s32 %v16057_v62, %v1191_v10  ;;  %1684 = vmin.xlane.f32.xlu1 %v1683_v19  ;;  %9814 = vmatmul.mubr.msk.f32.vlgmr.msra.gmra.mxu1 %vm814_vm1, %v9438_v22  ;;  %v1175_v57 = vpop.xlane.xlu1 %1174  ;;  %v12288_v14 = vpop.xlane.xlu0 %1710  ;;  %v12294_v8 = vsel %vm1982_vm12, %v12008_v61, inf  ;;  %v1612_v26 = vcvt.f32.s32 %v12041_v15  ;;  %v16059_v62 = vld [vmem:[#allocation134_spill] sm:$0xff]  ;;  %v12301_v10 = vshll.u32 %v1987_v51, 16 }
 0x289   :  { %v1176_v44 = vcvt.f32.s32 %v1175_v57  ;;  %vm1712_vm0 = vcmp.eq.f32.partialorder %v16058_v4, %v12288_v14  ;;  %vm2012_vm15 = vcmp.eq.f32.partialorder %v16059_v62, %v12112_v12  ;;  %v12303_v22 = vshll.u32 %v1567_v59, 16  ;;  %v16064_v4 = vld [vmem:[#allocation101_spill] sm:$0xff]  ;;  %v16070_v57 = vld [vmem:[#allocation27_spill] sm:$0xff] }
 0x28a   :  { %16060 = vst [vmem:[#allocation139_spill] sm:$0xff] %v12301_v10  ;;  %v2047_v19 = vcvt.f32.s32 %v12161_v20  ;;  %v1713_v52 = vsel %vm1712_vm0, %v16061_v53, inf  ;;  %v1597_v61 = vcvt.f32.s32 %v12070_v30  ;;  %v1642_v5 = vcvt.f32.s32 %v12102_v42 }
 0x28b   :  { %v12310_v15 = vadd.s32 %v11963_v7, %v1176_v44  ;;  %1714 = vmin.xlane.f32.xlu0 %v1713_v52  ;;  %vm2042_vm5 = vcmp.eq.f32.partialorder %v16062_v0, %v12161_v20  ;;  %v1627_v51 = vcvt.f32.s32 %v12129_v31  ;;  %v2993_v59 = vsel %vm2865_vm3, %v1164_v23, 0 }
 0x28c   :  { %2070 = vmin.xlane.f32.xlu1 %v16064_v4  ;;  %v1220_v10 = vpop.xlane.xlu1 %1219  ;;  %v12318_v53 = vpop.xlane.xlu0 %1755  ;;  %vm2098_vm13 = vcmp.eq.s32.totalorder %v16052_v60, %v12285_v43  ;;  %v12326_v42 = vsel %vm2012_vm15, %v12012_v54, inf  ;;  %v12328_v7 = vshll.u32 %v2017_v24, 16  ;;  %v12330_v30 = vshll.u32 %v1612_v26, 16  ;;  %v16072_v4 = vld [vmem:[#allocation13_spill] sm:$0xff] }
 0x28d   :  { %v1221_v31 = vcvt.f32.s32 %v1220_v10  ;;  %vm2097_vm12 = vcmp.eq.s32.totalorder %v16052_v60, %v12310_v15  ;;  %v12334_v20 = vshll.u32 %v2047_v19, 16  ;;  %v1672_v52 = vcvt.f32.s32 %v12163_v1  ;;  %v16068_v19 = vld [vmem:[#allocation12_spill] sm:$0xff] }
 0x28e   :  { %16065 = vst [vmem:[#allocation108_spill] sm:$0xff] %v12328_v7  ;;  %v16067_v23 = vmov 0.0   ;;  %v12339_v0 = vsel %vm2042_vm5, %v12024_v25, inf  ;;  %v12341_v12 = vshll.u32 %v1597_v61, 16  ;;  %v12343_v54 = vshll.u32 %v1642_v5, 16 }
 0x28f   :  { %16066 = vst [vmem:[#allocation111_spill] sm:$0xff] %v12334_v20  ;;  %v9439_v44 = vsel %vm2097_vm12, 1.0, %v16067_v23  ;;  %1744 = vmin.xlane.f32.xlu0 %v12132_v37  ;;  %v9440_v24 = vsel %vm2098_vm13, 1.0, %v16067_v23  ;;  %v3347_v26 = vrot.slane %v2993_v59, %v12215_v58  ;;  %v12349_v62 = vshll.u32 %v1627_v51, 16 }
 0x290   :  { %9816 = vmatprep.mubr.msk.f32.mxu1 %vm814_vm1, %v9439_v44  ;;  %v12352_v1 = vadd.s32 %v11998_v50, %v1221_v31  ;;  %1729 = vmin.xlane.f32.xlu1 %v12116_v17  ;;  %v1205_v25 = vpop.xlane.xlu1 %1204  ;;  %v12356_v10 = vpop.xlane.xlu0 %1785  ;;  %vm1757_vm0 = vcmp.eq.f32.partialorder %v16068_v19, %v12318_v53  ;;  %v3351_v37 = vrot.slane %v2993_v59, %v12221_v49  ;;  %v1657_v61 = vcvt.f32.s32 %v12193_v35  ;;  %v16071_v19 = vld [vmem:[#allocation102_spill] sm:$0xff] }
 0x291   :  { %9817 = vmatmul.mubr.msk.f32.gmra.mxu1 %vm814_vm1, %v9440_v24  ;;  %v1206_v5 = vcvt.f32.s32 %v1205_v25  ;;  %v3355_v51 = vrot.slane %v2993_v59, %v12224_v33  ;;  %v3359_v50 = vrot.slane %v2993_v59, %v12227_v39  ;;  %v12364_v31 = vshll.u32 %v1672_v52, 16 }
 0x292   :  { %v1702_v17 = vcvt.f32.s32 %v12218_v34  ;;  %v3363_v44 = vrot.slane %v2993_v59, %v12235_v3  ;;  %v3367_v24 = vrot.slane %v2993_v59, %v12243_v21  ;;  %v1758_v35 = vsel %vm1757_vm0, %v16071_v19, inf }
 0x293   :  { %16069 = vst [vmem:[#allocation113_spill] sm:$0xff] %v12364_v31  ;;  %v12370_v20 = vadd.s32 %v16070_v57, %v1206_v5  ;;  %1774 = vmin.xlane.f32.xlu0 %v12145_v46  ;;  %v3371_v25 = vrot.slane %v2993_v59, %v12256_v40  ;;  %v3375_v7 = vrot.slane %v2993_v59, %v12259_v38  ;;  %v1687_v52 = vcvt.f32.s32 %v12252_v11 }
 0x294   :  { %1759 = vmin.xlane.f32.xlu1 %v1758_v35  ;;  %v1250_v55 = vpop.xlane.xlu1 %1249  ;;  %v12377_v34 = vpop.xlane.xlu0 %1815  ;;  %vm1787_vm15 = vcmp.eq.f32.partialorder %v16072_v4, %v12356_v10  ;;  %vm2100_vm5 = vcmp.eq.s32.totalorder %v16052_v60, %v12352_v1  ;;  %v5409_v57 = vcombine.low %v3347_v26, %v3351_v37  ;;  %v12383_v46 = vshll.u32 %v1657_v61, 16 }
 0x295   :  { %v1251_v5 = vcvt.f32.s32 %v1250_v55  ;;  %vm2099_vm13 = vcmp.eq.s32.totalorder %v16052_v60, %v12370_v20  ;;  %v5410_v59 = vcombine.low %v3355_v51, %v3359_v50  ;;  %v12387_v19 = vshll.u32 %v1702_v17, 16  ;;  %v16078_v55 = vld [vmem:[#allocation8_spill] sm:$0xff] }
 0x296   :  { %16073 = vst [vmem:[#allocation141_spill] sm:$0xff] %v12383_v46  ;;  %v2995_v35 = vsel %vm2867_vm7, %v12285_v43, 0  ;;  %v12395_v4 = vsel %vm2864_vm4, %v12249_v45, 0  ;;  %v9441_v26 = vsel %vm2099_vm13, 1.0, %v16067_v23  ;;  %v1788_v37 = vsel %vm1787_vm15, %v16078_v55, inf }
 0x297   :  { %16074 = vst [vmem:[#allocation116_spill] sm:$0xff] %v12387_v19  ;;  %16077 = vst [vmem:[#allocation144_spill] sm:$0xff] %v12395_v4  ;;  %9819 = vmatprep.mubr.msk.f32.mxu1 %vm814_vm1, %v9441_v26  ;;  %1804 = vmin.xlane.f32.xlu0 %v12155_v16  ;;  %v9442_v61 = vsel %vm2100_vm5, 1.0, %v16067_v23  ;;  %v5411_v51 = vcombine.low %v3363_v44, %v3367_v24  ;;  %v5412_v50 = vcombine.low %v3371_v25, %v3375_v7  ;;  %v16080_v26 = vld [vmem:[#allocation14_spill] sm:$0xff]  ;;  %v16082_v4 = vld [vmem:[#allocation15_spill] sm:$0xff] }
 0x298   :  { %v12402_v17 = vshll.u32 %v1687_v52, 16  ;;  %v12405_v43 = vadd.s32 %v12052_v36, %v1251_v5  ;;  %1789 = vmin.xlane.f32.xlu1 %v1788_v37  ;;  %9820 = vmatmul.mubr.msk.f32.gmra.mxu1 %vm814_vm1, %v9442_v61  ;;  %v1235_v45 = vpop.xlane.xlu1 %1234  ;;  %v12408_v11 = vpop.xlane.xlu0 %1845  ;;  %vm1817_vm12 = vcmp.eq.f32.partialorder %v16080_v26, %v12377_v34  ;;  %v5419_v16 = vrot.slane %v5409_v57, %v12279_v6  ;;  %v16081_v57 = vld [vmem:[#allocation103_spill] sm:$0xff] }
 0x299   :  { %v1236_v55 = vcvt.f32.s32 %v1235_v45  ;;  %v5426_v44 = vrot.slane %v5410_v59, %v12279_v6  ;;  %v3411_v7 = vrot.slane %v2995_v35, %v12215_v58  ;;  %v3415_v24 = vrot.slane %v2995_v35, %v12221_v49 }
 0x29a   :  { %16079 = vst [vmem:[#allocation119_spill] sm:$0xff] %v12402_v17  ;;  %v3419_v36 = vrot.slane %v2995_v35, %v12224_v33  ;;  %v3423_v25 = vrot.slane %v2995_v35, %v12227_v39  ;;  %v3427_v52 = vrot.slane %v2995_v35, %v12235_v3  ;;  %v3431_v5 = vrot.slane %v2995_v35, %v12243_v21 }
 0x29b   :  { %v12421_v37 = vadd.s32 %v12057_v48, %v1236_v55  ;;  %1834 = vmin.xlane.f32.xlu0 %v12184_v18  ;;  %v1818_v61 = vsel %vm1817_vm12, %v16081_v57, inf  ;;  %v3435_v59 = vrot.slane %v2995_v35, %v12256_v40  ;;  %v3439_v45 = vrot.slane %v2995_v35, %v12259_v38 }
 0x29c   :  { %1819 = vmin.xlane.f32.xlu1 %v1818_v61  ;;  %v1280_v26 = vpop.xlane.xlu1 %1279  ;;  %v12427_v31 = vpop.xlane.xlu0 %1875  ;;  %vm1847_vm0 = vcmp.eq.f32.partialorder %v16082_v4, %v12408_v11  ;;  %vm2102_vm15 = vcmp.eq.s32.totalorder %v16052_v60, %v12405_v43  ;;  %v5433_v48 = vrot.slane %v5411_v51, %v12279_v6  ;;  %v5440_v18 = vrot.slane %v5412_v50, %v12279_v6  ;;  %v16084_v51 = vld [vmem:[#allocation106_spill] sm:$0xff] }
 0x29d   :  { %v1281_v55 = vcvt.f32.s32 %v1280_v26  ;;  %vm2101_vm5 = vcmp.eq.s32.totalorder %v16052_v60, %v12421_v37  ;;  %v12437_v57 = vcombine.low %v5419_v16, %v5426_v44  ;;  %v5507_v35 = vcombine.low %v3411_v7, %v3415_v24 }
 0x29e   :  { %v12442_v19 = vsel %vm2866_vm8, %v12310_v15, 0  ;;  %v1717_v4 = vcvt.f32.s32 %v12288_v14  ;;  %v9443_v17 = vsel %vm2101_vm5, 1.0, %v16067_v23  ;;  %v5508_v46 = vcombine.low %v3419_v36, %v3423_v25 }
 0x29f   :  { %9822 = vmatprep.mubr.msk.f32.mxu1 %vm814_vm1, %v9443_v17  ;;  %1864 = vmin.xlane.f32.xlu0 %v12196_v47  ;;  %v1848_v50 = vsel %vm1847_vm0, %v16084_v51, inf  ;;  %v9444_v16 = vsel %vm2102_vm15, 1.0, %v16067_v23  ;;  %v5509_v44 = vcombine.low %v3427_v52, %v3431_v5  ;;  %v5510_v7 = vcombine.low %v3435_v59, %v3439_v45  ;;  %v16087_v17 = vld [vmem:[#allocation16_spill] sm:$0xff] }
 0x2a0   :  { %v1762_v24 = vcvt.f32.s32 %v12318_v53  ;;  %v12452_v15 = vadd.s32 %v12059_v13, %v1281_v55  ;;  %1849 = vmin.xlane.f32.xlu1 %v1848_v50  ;;  %9823 = vmatmul.mubr.msk.f32.gmra.mxu1 %vm814_vm1, %v9444_v16  ;;  %v1265_v14 = vpop.xlane.xlu1 %1264  ;;  %v12455_v36 = vpop.xlane.xlu0 %1905  ;;  %vm1877_vm13 = vcmp.eq.f32.partialorder %v16087_v17, %v12427_v31  ;;  %v5442_v47 = vcombine.low %v5433_v48, %v5440_v18  ;;  %v16088_v18 = vld [vmem:[#allocation109_spill] sm:$0xff] }
 0x2a1   :  { %16086 = vst [vmem:[#allocation145_spill] sm:$0xff] %v12455_v36  ;;  %v1266_v25 = vcvt.f32.s32 %v1265_v14  ;;  %v5449_v52 = vrot.slane %v12437_v57, %v12279_v6  ;;  %v5517_v5 = vrot.slane %v5507_v35, %v12279_v6  ;;  %v3379_v13 = vrot.slane %v12442_v19, %v12215_v58  ;;  %v16089_v50 = vld [vmem:[#allocation17_spill] sm:$0xff] }
 0x2a2   :  { %16085 = vst [vmem:[#allocation122_spill] sm:$0xff] %v12452_v15  ;;  %v5524_v53 = vrot.slane %v5508_v46, %v12279_v6  ;;  %v3383_v59 = vrot.slane %v12442_v19, %v12221_v49  ;;  %v3387_v45 = vrot.slane %v12442_v19, %v12224_v33  ;;  %v3391_v26 = vrot.slane %v12442_v19, %v12227_v39 }
 0x2a3   :  { %v12472_v48 = vadd.s32 %v12063_v9, %v1266_v25  ;;  %1894 = vmin.xlane.f32.xlu0 %v12203_v32  ;;  %v1878_v55 = vsel %vm1877_vm13, %v16088_v18, inf  ;;  %v5531_v57 = vrot.slane %v5509_v44, %v12279_v6  ;;  %v5538_v46 = vrot.slane %v5510_v7, %v12279_v6 }
 0x2a4   :  { %1879 = vmin.xlane.f32.xlu1 %v1878_v55  ;;  %v1310_v35 = vpop.xlane.xlu1 %1309  ;;  %v12478_v51 = vpop.xlane.xlu0 %1935  ;;  %vm1907_vm12 = vcmp.eq.f32.partialorder %v16089_v50, %v12455_v36  ;;  %vm2104_vm0 = vcmp.eq.s32.totalorder %v16052_v60, %v12452_v15  ;;  %v3395_v9 = vrot.slane %v12442_v19, %v12235_v3  ;;  %v3399_v32 = vrot.slane %v12442_v19, %v12243_v21  ;;  %v16090_v55 = vld [vmem:[#allocation114_spill] sm:$0xff] }
 0x2a5   :  { %v1311_v16 = vcvt.f32.s32 %v1310_v35  ;;  %vm2103_vm15 = vcmp.eq.s32.totalorder %v16052_v60, %v12472_v48  ;;  %v3403_v44 = vrot.slane %v12442_v19, %v12256_v40  ;;  %v3407_v7 = vrot.slane %v12442_v19, %v12259_v38 }
 0x2a6   :  { %v9445_v14 = vsel %vm2103_vm15, 1.0, %v16067_v23  ;;  %v5456_v17 = vrot.slane %v5442_v47, %v12279_v6  ;;  %v5458_v25 = vcombine.low %v3379_v13, %v3383_v59  ;;  %v5459_v18 = vcombine.low %v3387_v45, %v3391_v26  ;;  %v16092_v59 = vld [vmem:[#allocation18_spill] sm:$0xff]  ;;  %v16114_v45 = vld [vmem:[#allocation123_spill] sm:$0xff] }
 0x2a7   :  { %9825 = vmatprep.mubr.msk.f32.mxu1 %vm814_vm1, %v9445_v14  ;;  %1924 = vmin.xlane.f32.xlu0 %v12232_v27  ;;  %v1908_v35 = vsel %vm1907_vm12, %v16090_v55, inf  ;;  %v9446_v50 = vsel %vm2104_vm0, 1.0, %v16067_v23  ;;  %v5539_v61 = vcombine.low %v5517_v5, %v5524_v53  ;;  %v5540_v36 = vcombine.low %v5531_v57, %v5538_v46  ;;  %v16097_v55 = vld [vmem:[#allocation117_spill] sm:$0xff] }
 0x2a8   :  { %v12500_v15 = vshll.u32 %v1717_v4, 16  ;;  %v12503_v19 = vadd.s32 %v12072_v28, %v1311_v16  ;;  %1909 = vmin.xlane.f32.xlu1 %v1908_v35  ;;  %9826 = vmatmul.mubr.msk.f32.gmra.mxu1 %vm814_vm1, %v9446_v50  ;;  %v1295_v47 = vpop.xlane.xlu1 %1294  ;;  %v12506_v13 = vpop.xlane.xlu0 %1965  ;;  %vm1937_vm5 = vcmp.eq.f32.partialorder %v16092_v59, %v12478_v51  ;;  %v5460_v27 = vcombine.low %v3395_v9, %v3399_v32 }
 0x2a9   :  { %v12513_v5 = vsel %vm2869_vm11, %v12352_v1, 0  ;;  %v12515_v4 = vshll.u32 %v1762_v24, 16  ;;  %v1296_v53 = vcvt.f32.s32 %v1295_v47  ;;  %v5461_v28 = vcombine.low %v3403_v44, %v3407_v7  ;;  %v16094_v1 = vld [vmem:[#allocation21_spill] sm:$0xff] }
 0x2aa   :  { %16091 = vst [vmem:[#allocation125_spill] sm:$0xff] %v12503_v19  ;;  %v1792_v26 = vcvt.f32.s32 %v12356_v10  ;;  %v12518_v57 = vcombine.low %v5449_v52, %v5456_v17  ;;  %v5468_v46 = vrot.slane %v5458_v25, %v12279_v6  ;;  %v5475_v16 = vrot.slane %v5459_v18, %v12279_v6  ;;  %v16096_v52 = vld [vmem:[#allocation19_spill] sm:$0xff] }
 0x2ab   :  { %v1822_v14 = vcvt.f32.s32 %v12377_v34  ;;  %v12524_v9 = vadd.s32 %v12074_v56, %v1296_v53  ;;  %1954 = vmin.xlane.f32.xlu0 %v12264_v2  ;;  %v1938_v24 = vsel %vm1937_vm5, %v16094_v1, inf  ;;  %v5547_v32 = vrot.slane %v5539_v61, %v12279_v6  ;;  %v16113_v1 = vld [vmem:[#allocation45_spill] sm:$0xff] }
 0x2ac   :  { %1939 = vmin.xlane.f32.xlu1 %v1938_v24  ;;  %v1340_v44 = vpop.xlane.xlu1 %1339  ;;  %v12529_v10 = vpop.xlane.xlu0 %1995  ;;  %vm1967_vm13 = vcmp.eq.f32.partialorder %v16096_v52, %v12506_v13  ;;  %vm2106_vm12 = vcmp.eq.s32.totalorder %v16052_v60, %v12503_v19  ;;  %v5554_v34 = vrot.slane %v5540_v36, %v12279_v6  ;;  %v5482_v56 = vrot.slane %v5460_v27, %v12279_v6 }
 0x2ad   :  { %16095 = vst [vmem:[#allocation9_spill] sm:$0xff] %v12529_v10  ;;  %v1341_v7 = vcvt.f32.s32 %v1340_v44  ;;  %vm2105_vm0 = vcmp.eq.s32.totalorder %v16052_v60, %v12524_v9  ;;  %v5489_v2 = vrot.slane %v5461_v28, %v12279_v6  ;;  %v3475_v61 = vrot.slane %v12513_v5, %v12215_v58 }
 0x2ae   :  { %v9447_v17 = vsel %vm2105_vm0, 1.0, %v16067_v23  ;;  %v12543_v25 = vcombine.low %v5468_v46, %v5475_v16  ;;  %v3479_v18 = vrot.slane %v12513_v5, %v12221_v49  ;;  %v3483_v36 = vrot.slane %v12513_v5, %v12224_v33  ;;  %v16100_v46 = vld [vmem:[#allocation70_spill] sm:$0xff] }
 0x2af   :  { %9828 = vmatprep.mubr.msk.f32.mxu1 %vm814_vm1, %v9447_v17  ;;  %1984 = vmin.xlane.f32.xlu0 %v12294_v8  ;;  %v1968_v35 = vsel %vm1967_vm13, %v16097_v55, inf  ;;  %v9448_v50 = vsel %vm2106_vm12, 1.0, %v16067_v23  ;;  %v3487_v47 = vrot.slane %v12513_v5, %v12227_v39  ;;  %v3491_v59 = vrot.slane %v12513_v5, %v12235_v3  ;;  %v16104_v55 = vld [vmem:[#allocation20_spill] sm:$0xff] }
 0x2b0   :  { %v12557_v27 = vshll.u32 %v1792_v26, 16  ;;  %v12560_v53 = vadd.s32 %v12076_v63, %v1341_v7  ;;  %1969 = vmin.xlane.f32.xlu1 %v1968_v35  ;;  %9829 = vmatmul.mubr.msk.f32.gmra.mxu1 %vm814_vm1, %v9448_v50  ;;  %v1325_v28 = vpop.xlane.xlu1 %1324  ;;  %v12563_v8 = vpop.xlane.xlu0 %2025  ;;  %vm1997_vm15 = vcmp.eq.f32.partialorder %v16100_v46, %v12529_v10  ;;  %v3495_v16 = vrot.slane %v12513_v5, %v12243_v21  ;;  %v16105_v50 = vld [vmem:[#allocation120_spill] sm:$0xff] }
 0x2b1   :  { %16099 = vst [vmem:[#allocation128_spill] sm:$0xff] %v12563_v8  ;;  %v2996_v26 = vsel %vm2868_vm10, %v12370_v20, 0  ;;  %v1326_v24 = vcvt.f32.s32 %v1325_v28  ;;  %v3499_v63 = vrot.slane %v12513_v5, %v12256_v40  ;;  %v3503_v44 = vrot.slane %v12513_v5, %v12259_v38 }
 0x2b2   :  { %16098 = vst [vmem:[#allocation93_spill] sm:$0xff] %v12560_v53  ;;  %v12579_v7 = vsel %vm2871_vm2, %v12405_v43, 0  ;;  %v12581_v17 = vshll.u32 %v1822_v14, 16  ;;  %vm2027_vm5 = vcmp.eq.f32.partialorder %v16104_v55, %v12563_v8  ;;  %v12585_v35 = vcombine.low %v5547_v32, %v5554_v34 }
 0x2b3   :  { %v12588_v20 = vadd.s32 %v12080_v29, %v1326_v24  ;;  %2014 = vmin.xlane.f32.xlu0 %v12326_v42  ;;  %v1998_v28 = vsel %vm1997_vm15, %v16105_v50, inf  ;;  %v12592_v5 = vcombine.low %v5482_v56, %v5489_v2  ;;  %vm2108_vm13 = vcmp.eq.s32.totalorder %v16052_v60, %v12560_v53  ;;  %v16107_v56 = vld [vmem:[#allocation146_spill] sm:$0xff] }
 0x2b4   :  { %16103 = vst [vmem:[#allocation90_spill] sm:$0xff] %v12581_v17  ;;  %1999 = vmin.xlane.f32.xlu1 %v1998_v28  ;;  %v1370_v14 = vpop.xlane.xlu1 %1369  ;;  %v12596_v46 = vpop.xlane.xlu0 %2055  ;;  %v12600_v32 = vcombine.low %v3475_v61, %v3479_v18  ;;  %v12602_v29 = vcombine.low %v3483_v36, %v3487_v47  ;;  %v12604_v34 = vcombine.low %v3491_v59, %v3495_v16  ;;  %v2028_v2 = vsel %vm2027_vm5, %v16107_v56, inf  ;;  %v16108_v47 = vld [vmem:[#allocation34_spill] sm:$0xff] }
 0x2b5   :  { %16106 = vst [vmem:[#allocation22_spill] sm:$0xff] %v12596_v46  ;;  %v1371_v42 = vcvt.f32.s32 %v1370_v14  ;;  %vm2107_vm12 = vcmp.eq.s32.totalorder %v16052_v60, %v12588_v20  ;;  %v12612_v24 = vcombine.low %v3499_v63, %v3503_v44  ;;  %v3443_v61 = vrot.slane %v2996_v26, %v12215_v58  ;;  %v16110_v63 = vld [vmem:[#allocation73_spill] sm:$0xff]  ;;  %v16115_v53 = vld [vmem:[#allocation30_spill] sm:$0xff] }
 0x2b6   :  { %v9449_v50 = vsel %vm2107_vm12, 1.0, %v16067_v23  ;;  %v3447_v18 = vrot.slane %v2996_v26, %v12221_v49  ;;  %v3451_v36 = vrot.slane %v2996_v26, %v12224_v33  ;;  %v9450_v16 = vsel %vm2108_vm13, 1.0, %v16067_v23 }
 0x2b7   :  { %v12619_v59 = vadd.s32 %v16108_v47, %v1371_v42  ;;  %9831 = vmatprep.mubr.msk.f32.mxu1 %vm814_vm1, %v9449_v50  ;;  %2044 = vmin.xlane.f32.xlu0 %v12339_v0  ;;  %vm2057_vm0 = vcmp.eq.f32.partialorder %v16110_v63, %v12596_v46  ;;  %v3455_v44 = vrot.slane %v2996_v26, %v12227_v39  ;;  %v16112_v47 = vld [vmem:[#allocation74_spill] sm:$0xff] }
 0x2b8   :  { %2029 = vmin.xlane.f32.xlu1 %v2028_v2  ;;  %9832 = vmatmul.mubr.msk.f32.gmra.mxu1 %vm814_vm1, %v9450_v16  ;;  %v1355_v28 = vpop.xlane.xlu1 %1354  ;;  %v12629_v14 = vpop.xlane.xlu0 %2085  ;;  %v3459_v42 = vrot.slane %v2996_v26, %v12235_v3  ;;  %v3463_v56 = vrot.slane %v2996_v26, %v12243_v21  ;;  %v3467_v0 = vrot.slane %v2996_v26, %v12256_v40  ;;  %v16116_v63 = vld [vmem:[#allocation126_spill] sm:$0xff] }
 0x2b9   :  { %16109 = vst [vmem:[#allocation131_spill] sm:$0xff] %v12619_v59  ;;  %16111 = vst [vmem:[#allocation10_spill] sm:$0xff] %v12629_v14  ;;  %v1356_v50 = vcvt.f32.s32 %v1355_v28  ;;  %vm2087_vm15 = vcmp.eq.f32.partialorder %v16112_v47, %v12629_v14  ;;  %v5505_v43 = vrot.slane %v12592_v5, %v12279_v6  ;;  %v5615_v2 = vrot.slane %v12600_v32, %v12279_v6 }
 0x2ba   :  { %vm2110_vm5 = vcmp.eq.s32.totalorder %v16052_v60, %v12619_v59  ;;  %v5622_v16 = vrot.slane %v12602_v29, %v12279_v6  ;;  %v3471_v55 = vrot.slane %v2996_v26, %v12259_v38  ;;  %v5556_v52 = vcombine.low %v3443_v61, %v3447_v18 }
 0x2bb   :  { %v12646_v28 = vadd.s32 %v16113_v1, %v1356_v50  ;;  %v2058_v5 = vsel %vm2057_vm0, %v16114_v45, inf  ;;  %v5629_v32 = vrot.slane %v12604_v34, %v12279_v6  ;;  %v5557_v47 = vcombine.low %v3451_v36, %v3455_v44 }
 0x2bc   :  { %2059 = vmin.xlane.f32.xlu1 %v2058_v5  ;;  %v1400_v14 = vpop.xlane.xlu1 %1399  ;;  %v2088_v19 = vsel %vm2087_vm15, %v16115_v53, inf  ;;  %v5636_v26 = vrot.slane %v12612_v24, %v12279_v6  ;;  %v5558_v29 = vcombine.low %v3459_v42, %v3463_v56  ;;  %v5559_v61 = vcombine.low %v3467_v0, %v3471_v55 }
 0x2bd   :  { %v1401_v1 = vcvt.f32.s32 %v1400_v14  ;;  %vm2109_vm13 = vcmp.eq.s32.totalorder %v16052_v60, %v12646_v28  ;;  %v9452_v45 = vsel %vm2110_vm5, 1.0, %v16067_v23  ;;  %v5566_v34 = vrot.slane %v5556_v52, %v12279_v6 }
 0x2be   :  { %v9451_v18 = vsel %vm2109_vm13, 1.0, %v16067_v23  ;;  %v5573_v53 = vrot.slane %v5557_v47, %v12279_v6  ;;  %v5580_v36 = vrot.slane %v5558_v29, %v12279_v6  ;;  %v3539_v24 = vrot.slane %v12579_v7, %v12215_v58 }
 0x2bf   :  { %v12670_v44 = vadd.s32 %v16116_v63, %v1401_v1  ;;  %9834 = vmatprep.mubr.msk.f32.mxu1 %vm814_vm1, %v9451_v18  ;;  %v3543_v55 = vrot.slane %v12579_v7, %v12221_v49  ;;  %v3547_v52 = vrot.slane %v12579_v7, %v12224_v33  ;;  %v3551_v14 = vrot.slane %v12579_v7, %v12227_v39  ;;  %v16120_v18 = vld [vmem:[#allocation40_spill] sm:$0xff] }
 0x2c0   :  { %v2998_v56 = vsel %vm2870_vm14, %v12421_v37, 0  ;;  %2089 = vmin.xlane.f32.xlu1 %v2088_v19  ;;  %9835 = vmatmul.mubr.msk.f32.gmra.mxu1 %vm814_vm1, %v9452_v45  ;;  %v1385_v0 = vpop.xlane.xlu1 %1384  ;;  %v5587_v50 = vrot.slane %v5559_v61, %v12279_v6  ;;  %v3555_v5 = vrot.slane %v12579_v7, %v12235_v3  ;;  %v3559_v47 = vrot.slane %v12579_v7, %v12243_v21 }
 0x2c1   :  { %16117 = vst [vmem:[#allocation97_spill] sm:$0xff] %v12670_v44  ;;  %v12691_v1 = vsel %vm2872_vm6, %v12472_v48, 0  ;;  %vm16121_vm12 = vcmp.lt.f32.partialorder %v16120_v18, inf  ;;  %v1386_v19 = vcvt.f32.s32 %v1385_v0  ;;  %v16122_v61 = vrot.slane %v12543_v25, %v12279_v6  ;;  %v16123_v18 = vld [vmem:[#allocation49_spill] sm:$0xff] }
 0x2c2   :  { %v12696_v37 = vsel %vm16121_vm12, %v12524_v9, 0  ;;  %vm2112_vm0 = vcmp.eq.s32.totalorder %v16052_v60, %v12670_v44  ;;  %v12705_v63 = vcombine.low %v5615_v2, %v5622_v16  ;;  %v3563_v48 = vrot.slane %v12579_v7, %v12256_v40 }
 0x2c3   :  { %v12701_v45 = vcombine.low %v16122_v61, %v5505_v43  ;;  %v3567_v29 = vrot.slane %v12579_v7, %v12259_v38  ;;  %v12712_v9 = vadd.s32 %v16123_v18, %v1386_v19  ;;  %v12714_v0 = vcombine.low %v5629_v32, %v5636_v26  ;;  %v16124_v43 = vld [vmem:[#allocation62_spill] sm:$0xff] }
 0x2c4   :  { %v5703_v42 = vcombine.low %v3539_v24, %v3543_v55  ;;  %v5704_v25 = vcombine.low %v3547_v52, %v3551_v14  ;;  %9323 = vadd.xlane.f32.xlu1 %v16124_v43  ;;  %v1430_v61 = vpop.xlane.xlu1 %1429  ;;  %v12717_v59 = vcombine.low %v5566_v34, %v5573_v53  ;;  %v12719_v2 = vcombine.low %v5580_v36, %v5587_v50  ;;  %v16125_v24 = vld [vmem:[#allocation38_spill] sm:$0xff] }
 0x2c5   :  { %v5705_v16 = vcombine.low %v3555_v5, %v3559_v47  ;;  %v5706_v46 = vcombine.low %v3563_v48, %v3567_v29  ;;  %v1431_v8 = vcvt.f32.s32 %v1430_v61  ;;  %vm2111_vm15 = vcmp.eq.s32.totalorder %v16052_v60, %v12712_v9 }
 0x2c6   :  { %v9454_v7 = vsel %vm2112_vm0, 1.0, %v16067_v23  ;;  %v3507_v32 = vrot.slane %v2998_v56, %v12215_v58  ;;  %v9453_v26 = vsel %vm2111_vm15, 1.0, %v16067_v23  ;;  %v5713_v34 = vrot.slane %v5703_v42, %v12279_v6 }
 0x2c7   :  { %v5720_v53 = vrot.slane %v5704_v25, %v12279_v6  ;;  %v3511_v36 = vrot.slane %v2998_v56, %v12221_v49  ;;  %v12733_v55 = vadd.s32 %v16125_v24, %v1431_v8  ;;  %9837 = vmatprep.mubr.msk.f32.mxu1 %vm814_vm1, %v9453_v26  ;;  %v3515_v52 = vrot.slane %v2998_v56, %v12224_v33 }
 0x2c8   :  { %v3519_v14 = vrot.slane %v2998_v56, %v12227_v39  ;;  %v3523_v50 = vrot.slane %v2998_v56, %v12235_v3  ;;  %9838 = vmatmul.mubr.msk.f32.gmra.mxu1 %vm814_vm1, %v9454_v7  ;;  %v1415_v5 = vpop.xlane.xlu1 %1414  ;;  %v5727_v42 = vrot.slane %v5705_v16, %v12279_v6  ;;  %v5734_v47 = vrot.slane %v5706_v46, %v12279_v6  ;;  %v16127_v16 = vld [vmem:[#allocation129_spill] sm:$0xff] }
 0x2c9   :  { %16126 = vst [vmem:[#allocation94_spill] sm:$0xff] %v12733_v55  ;;  %v3527_v29 = vrot.slane %v2998_v56, %v12243_v21  ;;  %v3531_v8 = vrot.slane %v2998_v56, %v12256_v40  ;;  %v1416_v18 = vcvt.f32.s32 %v1415_v5  ;;  %vm2114_vm5 = vcmp.eq.s32.totalorder %v16052_v60, %v12733_v55 }
 0x2ca   :  { %v5645_v19 = vrot.slane %v12705_v63, %v12279_v6  ;;  %v3535_v48 = vrot.slane %v2998_v56, %v12259_v38  ;;  %v5652_v25 = vrot.slane %v12714_v0, %v12279_v6  ;;  %v5596_v43 = vrot.slane %v12717_v59, %v12279_v6 }
 0x2cb   :  { %v5603_v46 = vrot.slane %v12719_v2, %v12279_v6  ;;  %v5654_v61 = vcombine.low %v3507_v32, %v3511_v36  ;;  %v12756_v7 = vadd.s32 %v16127_v16, %v1416_v18  ;;  %v5655_v26 = vcombine.low %v3515_v52, %v3519_v14  ;;  %v16128_v14 = vld [vmem:[#allocation61_spill] sm:$0xff]  ;;  %v16129_v16 = vld [vmem:[#allocation44_spill] sm:$0xff] }
 0x2cc   :  { %v5656_v24 = vcombine.low %v3523_v50, %v3527_v29  ;;  %v5657_v5 = vcombine.low %v3531_v8, %v3535_v48  ;;  %v1460_v55 = vpop.xlane.xlu1 %1459  ;;  %v9456_v63 = vsel %vm2114_vm5, 1.0, %v16067_v23  ;;  %v12759_v56 = vcombine.low %v5713_v34, %v5720_v53 }
 0x2cd   :  { %v12761_v44 = vcombine.low %v5727_v42, %v5734_v47  ;;  %v5664_v0 = vrot.slane %v5654_v61, %v12279_v6  ;;  %v1461_v59 = vcvt.f32.s32 %v1460_v55  ;;  %vm2113_vm13 = vcmp.eq.s32.totalorder %v16052_v60, %v12756_v7 }
 0x2ce   :  { %v5671_v2 = vrot.slane %v5655_v26, %v12279_v6  ;;  %v3571_v32 = vrot.slane %v12691_v1, %v12215_v58  ;;  %v9455_v36 = vsel %vm2113_vm13, 1.0, %v16067_v23  ;;  %v5678_v52 = vrot.slane %v5656_v24, %v12279_v6 }
 0x2cf   :  { %v5685_v34 = vrot.slane %v5657_v5, %v12279_v6  ;;  %v3575_v53 = vrot.slane %v12691_v1, %v12221_v49  ;;  %v12775_v50 = vadd.s32 %v16128_v14, %v1461_v59  ;;  %9840 = vmatprep.mubr.msk.f32.mxu1 %vm814_vm1, %v9455_v36  ;;  %v3579_v55 = vrot.slane %v12691_v1, %v12224_v33  ;;  %v16133_v36 = vld [vmem:[#allocation132_spill] sm:$0xff] }
 0x2d0   :  { %v3583_v42 = vrot.slane %v12691_v1, %v12227_v39  ;;  %v3587_v47 = vrot.slane %v12691_v1, %v12235_v3  ;;  %9841 = vmatmul.mubr.msk.f32.gmra.mxu1 %vm814_vm1, %v9456_v63  ;;  %v1445_v29 = vpop.xlane.xlu1 %1444  ;;  %v5686_v8 = vcombine.low %v5664_v0, %v5671_v2  ;;  %v3591_v18 = vrot.slane %v12691_v1, %v12243_v21  ;;  %v16131_v63 = vld [vmem:[#allocation48_spill] sm:$0xff] }
 0x2d1   :  { %v3595_v48 = vrot.slane %v12691_v1, %v12256_v40  ;;  %v3599_v61 = vrot.slane %v12691_v1, %v12259_v38  ;;  %vm16130_vm12 = vcmp.lt.f32.partialorder %v16129_v16, inf  ;;  %v1446_v24 = vcvt.f32.s32 %v1445_v29 }
 0x2d2   :  { %v12794_v26 = vsel %vm16130_vm12, %v12588_v20, 0  ;;  %vm2116_vm0 = vcmp.eq.s32.totalorder %v16052_v60, %v12775_v50  ;;  %v12798_v5 = vcombine.low %v5645_v19, %v5652_v25  ;;  %vm16132_vm15 = vcmp.lt.f32.partialorder %v16131_v63, inf }
 0x2d3   :  { %v12803_v0 = vsel %vm16132_vm15, %v12646_v28, 0  ;;  %v12805_v59 = vcombine.low %v5596_v43, %v5603_v46  ;;  %v5687_v2 = vcombine.low %v5678_v52, %v5685_v34  ;;  %v5752_v1 = vcombine.low %v3571_v32, %v3575_v53 }
 0x2d4   :  { %v1449_v14 = vadd.s32 %v16133_v36, %v1446_v24  ;;  %v5753_v16 = vcombine.low %v3579_v55, %v3583_v42  ;;  %v5754_v20 = vcombine.low %v3587_v47, %v3591_v18  ;;  %v5755_v17 = vcombine.low %v3595_v48, %v3599_v61  ;;  %v1490_v29 = vpop.xlane.xlu1 %1489  ;;  %v16134_v47 = vld [vmem:[#allocation52_spill] sm:$0xff]  ;;  %v16136_v18 = vld [vmem:[#allocation50_spill] sm:$0xff] }
 0x2d5   :  { %v9458_v10 = vsel %vm2116_vm0, 1.0, %v16067_v23  ;;  %v5743_v19 = vrot.slane %v12759_v56, %v12279_v6  ;;  %v5750_v25 = vrot.slane %v12761_v44, %v12279_v6  ;;  %v5694_v28 = vrot.slane %v5686_v8, %v12279_v6  ;;  %8500 = vperm.xlu1 %9916, %v12518_v57   ;;  %v16137_v36 = vld [vmem:[#allocation56_spill] sm:$0xff] }
 0x2d6   :  { %v1491_v43 = vcvt.f32.s32 %v1490_v29  ;;  %vm2115_vm5 = vcmp.eq.s32.totalorder %v16052_v60, %v1449_v14  ;;  %v3635_v46 = vrot.slane %v12696_v37, %v12215_v58  ;;  %v3639_v32 = vrot.slane %v12696_v37, %v12221_v49 }
 0x2d7   :  { %v9457_v52 = vsel %vm2115_vm5, 1.0, %v16067_v23  ;;  %v5701_v56 = vrot.slane %v5687_v2, %v12279_v6  ;;  %v5762_v34 = vrot.slane %v5752_v1, %v12279_v6  ;;  %v3643_v44 = vrot.slane %v12696_v37, %v12224_v33 }
 0x2d8   :  { %9843 = vmatprep.mubr.msk.f32.mxu1 %vm814_vm1, %v9457_v52  ;;  %v5769_v57 = vrot.slane %v5753_v16, %v12279_v6  ;;  %v5776_v53 = vrot.slane %v5754_v20, %v12279_v6  ;;  %v5783_v55 = vrot.slane %v5755_v17, %v12279_v6  ;;  %v3647_v42 = vrot.slane %v12696_v37, %v12227_v39  ;;  %v1475_v61 = vpop.xlane.xlu1 %1474  ;;  %v16139_v52 = vld [vmem:[#allocation60_spill] sm:$0xff] }
 0x2d9   :  { %vm16135_vm13 = vcmp.lt.f32.partialorder %v16134_v47, inf  ;;  %v12837_v48 = vadd.s32 %v16136_v18, %v1491_v43  ;;  %9844 = vmatmul.mubr.msk.f32.gmra.mxu1 %vm814_vm1, %v9458_v10  ;;  %v3651_v16 = vrot.slane %v12696_v37, %v12235_v3  ;;  %v3655_v17 = vrot.slane %v12696_v37, %v12243_v21  ;;  %8506 = vperm.xlu1 %9916, %v12585_v35   ;;  %v16141_v18 = vld [vmem:[#allocation58_spill] sm:$0xff] }
 0x2da   :  { %v12834_v8 = vsel %vm16135_vm13, %v12712_v9, 0  ;;  %v1476_v24 = vcvt.f32.s32 %v1475_v61  ;;  %v3659_v2 = vrot.slane %v12696_v37, %v12256_v40  ;;  %v3663_v9 = vrot.slane %v12696_v37, %v12259_v38 }
 0x2db   :  { %v5850_v1 = vcombine.low %v3635_v46, %v3639_v32  ;;  %vm16138_vm12 = vcmp.lt.f32.partialorder %v16137_v36, inf  ;;  %v12854_v20 = vcombine.low %v5743_v19, %v5750_v25  ;;  %v12856_v29 = vcombine.low %v5694_v28, %v5701_v56 }
 0x2dc   :  { %v12852_v10 = vsel %vm16138_vm12, %v12756_v7, 0  ;;  %v5851_v43 = vcombine.low %v3643_v44, %v3647_v42  ;;  %vm16140_vm0 = vcmp.lt.f32.partialorder %v16139_v52, inf  ;;  %v12863_v61 = vadd.s32 %v16141_v18, %v1476_v24  ;;  %v1520_v46 = vpop.xlane.xlu1 %1519  ;;  %v16143_v52 = vld [vmem:[#allocation138_spill] sm:$0xff] }
 0x2dd   :  { %v12860_v35 = vsel %vm16140_vm0, %v1449_v14, 0  ;;  %v12865_v47 = vcombine.low %v5762_v34, %v5769_v57  ;;  %v5785_v37 = vcombine.low %v5776_v53, %v5783_v55  ;;  %vm2118_vm15 = vcmp.eq.s32.totalorder %v16052_v60, %v12837_v48  ;;  %8503 = vperm.xlu1 %9916, %v12701_v45   ;;  %v16142_v53 = vld [vmem:[#allocation135_spill] sm:$0xff] }
 0x2de   :  { %v5852_v7 = vcombine.low %v3651_v16, %v3655_v17  ;;  %v3699_v19 = vrot.slane %v12794_v26, %v12215_v58  ;;  %v3703_v25 = vrot.slane %v12794_v26, %v12221_v49  ;;  %v1521_v28 = vcvt.f32.s32 %v1520_v46 }
 0x2df   :  { %vm2117_vm5 = vcmp.eq.s32.totalorder %v16052_v60, %v12863_v61  ;;  %v5853_v14 = vcombine.low %v3659_v2, %v3663_v9  ;;  %v5860_v32 = vrot.slane %v5850_v1, %v12279_v6  ;;  %v5867_v34 = vrot.slane %v5851_v43, %v12279_v6 }
 0x2e0   :  { %v9459_v56 = vsel %vm2117_vm5, 1.0, %v16067_v23  ;;  %v3707_v44 = vrot.slane %v12794_v26, %v12224_v33  ;;  %v3711_v57 = vrot.slane %v12794_v26, %v12227_v39  ;;  %v12884_v55 = vadd.s32 %v16142_v53, %v1521_v28  ;;  %v1505_v17 = vpop.xlane.xlu1 %1504 }
 0x2e1   :  { %9846 = vmatprep.mubr.msk.f32.mxu1 %vm814_vm1, %v9459_v56  ;;  %v9460_v45 = vsel %vm2118_vm15, 1.0, %v16067_v23  ;;  %v3715_v42 = vrot.slane %v12794_v26, %v12235_v3  ;;  %v3719_v16 = vrot.slane %v12794_v26, %v12243_v21  ;;  %v5792_v24 = vrot.slane %v12865_v47, %v12279_v6  ;;  %8512 = vperm.xlu1 %9916, %v12798_v5  }
 0x2e2   :  { %9847 = vmatmul.mubr.msk.f32.gmra.mxu1 %vm814_vm1, %v9460_v45  ;;  %v3723_v2 = vrot.slane %v12794_v26, %v12256_v40  ;;  %v3727_v9 = vrot.slane %v12794_v26, %v12259_v38  ;;  %v5948_v1 = vcombine.low %v3699_v19, %v3703_v25  ;;  %v1506_v43 = vcvt.f32.s32 %v1505_v17 }
 0x2e3   :  { %v5799_v18 = vrot.slane %v5785_v37, %v12279_v6  ;;  %v5874_v46 = vrot.slane %v5852_v7, %v12279_v6  ;;  %v5881_v28 = vrot.slane %v5853_v14, %v12279_v6  ;;  %v12903_v56 = vcombine.low %v5860_v32, %v5867_v34 }
 0x2e4   :  { %v5949_v53 = vcombine.low %v3707_v44, %v3711_v57  ;;  %v5950_v47 = vcombine.low %v3715_v42, %v3719_v16  ;;  %v5951_v45 = vcombine.low %v3723_v2, %v3727_v9  ;;  %v12906_v36 = vadd.s32 %v16143_v52, %v1506_v43  ;;  %v1550_v37 = vpop.xlane.xlu1 %1549 }
 0x2e5   :  { %vm2120_vm13 = vcmp.eq.s32.totalorder %v16052_v60, %v12884_v55  ;;  %v5958_v26 = vrot.slane %v5948_v1, %v12279_v6  ;;  %v3763_v5 = vrot.slane %v12803_v0, %v12215_v58  ;;  %v3767_v14 = vrot.slane %v12803_v0, %v12221_v49  ;;  %8509 = vperm.xlu1 %9916, %v12805_v59   ;;  %v16144_v1 = vld [vmem:[#allocation105_spill] sm:$0xff] }
 0x2e6   :  { %v5965_v7 = vrot.slane %v5949_v53, %v12279_v6  ;;  %v5972_v19 = vrot.slane %v5950_v47, %v12279_v6  ;;  %v5979_v25 = vrot.slane %v5951_v45, %v12279_v6  ;;  %v1551_v52 = vcvt.f32.s32 %v1550_v37  ;;  %v16145_v45 = vld [vmem:[#allocation64_spill] sm:$0xff] }
 0x2e7   :  { %vm2119_vm12 = vcmp.eq.s32.totalorder %v16052_v60, %v12906_v36  ;;  %v5883_v32 = vcombine.low %v5874_v46, %v5881_v28  ;;  %v3771_v34 = vrot.slane %v12803_v0, %v12224_v33  ;;  %v9462_v57 = vsel %vm2120_vm13, 1.0, %v16067_v23 }
 0x2e8   :  { %v9461_v44 = vsel %vm2119_vm12, 1.0, %v16067_v23  ;;  %v5980_v42 = vcombine.low %v5958_v26, %v5965_v7  ;;  %v3775_v16 = vrot.slane %v12803_v0, %v12227_v39  ;;  %v5981_v17 = vcombine.low %v5972_v19, %v5979_v25  ;;  %v1535_v46 = vpop.xlane.xlu1 %1534 }
 0x2e9   :  { %9849 = vmatprep.mubr.msk.f32.mxu1 %vm814_vm1, %v9461_v44  ;;  %v3779_v59 = vrot.slane %v12803_v0, %v12235_v3  ;;  %v3783_v2 = vrot.slane %v12803_v0, %v12243_v21  ;;  %v3787_v9 = vrot.slane %v12803_v0, %v12256_v40  ;;  %v12935_v43 = vadd.s32 %v16144_v1, %v1551_v52 }
 0x2ea   :  { %9850 = vmatmul.mubr.msk.f32.gmra.mxu1 %vm814_vm1, %v9462_v57  ;;  %v5800_v28 = vcombine.low %v5792_v24, %v5799_v18  ;;  %v3791_v53 = vrot.slane %v12803_v0, %v12259_v38  ;;  %v6046_v47 = vcombine.low %v3763_v5, %v3767_v14  ;;  %vm16146_vm0 = vcmp.lt.f32.partialorder %v16145_v45, inf  ;;  %8518 = vperm.xlu1 %9916, %v12854_v20   ;;  %v16147_v0 = vld [vmem:[#allocation82_spill] sm:$0xff] }
 0x2eb   :  { %v12943_v26 = vsel %vm16146_vm0, %v12863_v61, 0  ;;  %v1536_v37 = vcvt.f32.s32 %v1535_v46  ;;  %v5890_v7 = vrot.slane %v12903_v56, %v12279_v6  ;;  %v6047_v19 = vcombine.low %v3771_v34, %v3775_v16 }
 0x2ec   :  { %v5897_v25 = vrot.slane %v5883_v32, %v12279_v6  ;;  %v5988_v24 = vrot.slane %v5980_v42, %v12279_v6  ;;  %v6048_v18 = vcombine.low %v3779_v59, %v3783_v2  ;;  %v6049_v52 = vcombine.low %v3787_v9, %v3791_v53  ;;  %v1580_v20 = vpop.xlane.xlu1 %1579 }
 0x2ed   :  { %v12951_v5 = vadd.s32 %v16147_v0, %v1536_v37  ;;  %v5995_v14 = vrot.slane %v5981_v17, %v12279_v6  ;;  %v6056_v61 = vrot.slane %v6046_v47, %v12279_v6  ;;  %v6063_v44 = vrot.slane %v6047_v19, %v12279_v6 }
 0x2ee   :  { %vm2122_vm15 = vcmp.eq.s32.totalorder %v16052_v60, %v12935_v43  ;;  %v3827_v56 = vrot.slane %v12834_v8, %v12215_v58  ;;  %v3831_v32 = vrot.slane %v12834_v8, %v12221_v49  ;;  %v3835_v34 = vrot.slane %v12834_v8, %v12224_v33  ;;  %8515 = vperm.xlu1 %9916, %v12856_v29  }
 0x2ef   :  { %v1581_v57 = vcvt.f32.s32 %v1580_v20  ;;  %vm2121_vm5 = vcmp.eq.s32.totalorder %v16052_v60, %v12951_v5  ;;  %v6070_v42 = vrot.slane %v6048_v18, %v12279_v6  ;;  %v6077_v16 = vrot.slane %v6049_v52, %v12279_v6 }
 0x2f0   :  { %v9463_v17 = vsel %vm2121_vm5, 1.0, %v16067_v23  ;;  %v6078_v59 = vcombine.low %v6056_v61, %v6063_v44  ;;  %v3839_v2 = vrot.slane %v12834_v8, %v12227_v39  ;;  %v3843_v9 = vrot.slane %v12834_v8, %v12235_v3  ;;  %v1565_v47 = vpop.xlane.xlu1 %1564 }
 0x2f1   :  { %v12975_v1 = vadd.s32 %v12281_v41, %v1581_v57  ;;  %9852 = vmatprep.mubr.msk.f32.mxu1 %vm814_vm1, %v9463_v17  ;;  %v9464_v29 = vsel %vm2122_vm15, 1.0, %v16067_v23  ;;  %v3847_v46 = vrot.slane %v12834_v8, %v12243_v21  ;;  %v3851_v53 = vrot.slane %v12834_v8, %v12256_v40 }
 0x2f2   :  { %9853 = vmatmul.mubr.msk.f32.gmra.mxu1 %vm814_vm1, %v9464_v29  ;;  %v5898_v37 = vcombine.low %v5890_v7, %v5897_v25  ;;  %v3855_v19 = vrot.slane %v12834_v8, %v12259_v38  ;;  %v6144_v18 = vcombine.low %v3827_v56, %v3831_v32  ;;  %v6145_v41 = vcombine.low %v3835_v34, %v3839_v2 }
 0x2f3   :  { %v1566_v52 = vcvt.f32.s32 %v1565_v47  ;;  %8521 = vperm.xlu1 %9916, %v5800_v28   ;;  %v5996_v0 = vcombine.low %v5988_v24, %v5995_v14  ;;  %v6079_v61 = vcombine.low %v6070_v42, %v6077_v16  ;;  %v6146_v44 = vcombine.low %v3843_v9, %v3847_v46 }
 0x2f4   :  { %vm2124_vm13 = vcmp.eq.s32.totalorder %v16052_v60, %v12975_v1  ;;  %v6086_v20 = vrot.slane %v6078_v59, %v12279_v6  ;;  %v6147_v57 = vcombine.low %v3851_v53, %v3855_v19  ;;  %v6154_v17 = vrot.slane %v6144_v18, %v12279_v6  ;;  %v1610_v24 = vpop.xlane.xlu1 %1609 }
 0x2f5   :  { %v12991_v7 = vadd.s32 %v12303_v22, %v1566_v52  ;;  %v6161_v8 = vrot.slane %v6145_v41, %v12279_v6  ;;  %v6168_v25 = vrot.slane %v6146_v44, %v12279_v6  ;;  %v3891_v28 = vrot.slane %v12852_v10, %v12215_v58 }
 0x2f6   :  { %v6175_v14 = vrot.slane %v6147_v57, %v12279_v6  ;;  %v3895_v56 = vrot.slane %v12852_v10, %v12221_v49  ;;  %v3899_v32 = vrot.slane %v12852_v10, %v12224_v33  ;;  %v3903_v22 = vrot.slane %v12852_v10, %v12227_v39 }
 0x2f7   :  { %v1611_v34 = vcvt.f32.s32 %v1610_v24  ;;  %8527 = vperm.xlu1 %9916, %v5898_v37   ;;  %vm2123_vm12 = vcmp.eq.s32.totalorder %v16052_v60, %v12991_v7  ;;  %v6093_v42 = vrot.slane %v6079_v61, %v12279_v6  ;;  %v6176_v16 = vcombine.low %v6154_v17, %v6161_v8 }
 0x2f8   :  { %v9465_v59 = vsel %vm2123_vm12, 1.0, %v16067_v23  ;;  %v6177_v2 = vcombine.low %v6168_v25, %v6175_v14  ;;  %v3907_v9 = vrot.slane %v12852_v10, %v12235_v3  ;;  %v3911_v29 = vrot.slane %v12852_v10, %v12243_v21  ;;  %v1595_v19 = vpop.xlane.xlu1 %1594 }
 0x2f9   :  { %v13013_v46 = vadd.s32 %v12330_v30, %v1611_v34  ;;  %9855 = vmatprep.mubr.msk.f32.mxu1 %vm814_vm1, %v9465_v59  ;;  %v9466_v53 = vsel %vm2124_vm13, 1.0, %v16067_v23  ;;  %v3915_v47 = vrot.slane %v12852_v10, %v12256_v40  ;;  %v3919_v37 = vrot.slane %v12852_v10, %v12259_v38 }
 0x2fa   :  { %9856 = vmatmul.mubr.msk.f32.gmra.mxu1 %vm814_vm1, %v9466_v53  ;;  %v6184_v18 = vrot.slane %v6176_v16, %v12279_v6  ;;  %v6242_v30 = vcombine.low %v3891_v28, %v3895_v56  ;;  %v6243_v41 = vcombine.low %v3899_v32, %v3903_v22  ;;  %v6244_v52 = vcombine.low %v3907_v9, %v3911_v29 }
 0x2fb   :  { %v1596_v61 = vcvt.f32.s32 %v1595_v19  ;;  %8533 = vperm.xlu1 %9916, %v5996_v0   ;;  %vm2126_vm0 = vcmp.eq.s32.totalorder %v16052_v60, %v13013_v46  ;;  %v6191_v44 = vrot.slane %v6177_v2, %v12279_v6  ;;  %v6245_v57 = vcombine.low %v3915_v47, %v3919_v37 }
 0x2fc   :  { %v6094_v17 = vcombine.low %v6086_v20, %v6093_v42  ;;  %v9468_v8 = vsel %vm2126_vm0, 1.0, %v16067_v23  ;;  %v6252_v10 = vrot.slane %v6242_v30, %v12279_v6  ;;  %v6259_v25 = vrot.slane %v6243_v41, %v12279_v6  ;;  %v1640_v56 = vpop.xlane.xlu1 %1639 }
 0x2fd   :  { %v13033_v24 = vadd.s32 %v12341_v12, %v1596_v61  ;;  %v6266_v28 = vrot.slane %v6244_v52, %v12279_v6  ;;  %v6273_v0 = vrot.slane %v6245_v57, %v12279_v6  ;;  %v3955_v14 = vrot.slane %v12860_v35, %v12215_v58 }
 0x2fe   :  { %v6274_v32 = vcombine.low %v6252_v10, %v6259_v25  ;;  %v3959_v20 = vrot.slane %v12860_v35, %v12221_v49  ;;  %v3963_v22 = vrot.slane %v12860_v35, %v12224_v33  ;;  %v3967_v34 = vrot.slane %v12860_v35, %v12227_v39 }
 0x2ff   :  { %v1641_v12 = vcvt.f32.s32 %v1640_v56  ;;  %8539 = vperm.xlu1 %9916, %v6094_v17   ;;  %vm2125_vm15 = vcmp.eq.s32.totalorder %v16052_v60, %v13033_v24  ;;  %v6192_v42 = vcombine.low %v6184_v18, %v6191_v44  ;;  %v6275_v16 = vcombine.low %v6266_v28, %v6273_v0 }
 0x300   :  { %v9467_v59 = vsel %vm2125_vm15, 1.0, %v16067_v23  ;;  %v6282_v2 = vrot.slane %v6274_v32, %v12279_v6  ;;  %v3971_v9 = vrot.slane %v12860_v35, %v12235_v3  ;;  %v3975_v29 = vrot.slane %v12860_v35, %v12243_v21  ;;  %v1625_v30 = vpop.xlane.xlu1 %1624 }
 0x301   :  { %v13054_v53 = vadd.s32 %v12343_v54, %v1641_v12  ;;  %9858 = vmatprep.mubr.msk.f32.mxu1 %vm814_vm1, %v9467_v59  ;;  %v6289_v47 = vrot.slane %v6275_v16, %v12279_v6  ;;  %v3979_v37 = vrot.slane %v12860_v35, %v12256_v40  ;;  %v3983_v19 = vrot.slane %v12860_v35, %v12259_v38  ;;  %v16148_v54 = vld [vmem:[#allocation68_spill] sm:$0xff] }
 0x302   :  { %v1882_v18 = vcvt.f32.s32 %v12427_v31  ;;  %9859 = vmatmul.mubr.msk.f32.gmra.mxu1 %vm814_vm1, %v9468_v8  ;;  %v6340_v41 = vcombine.low %v3955_v14, %v3959_v20  ;;  %v6341_v52 = vcombine.low %v3963_v22, %v3967_v34  ;;  %v6342_v61 = vcombine.low %v3971_v9, %v3975_v29  ;;  %v16150_v9 = vld [vmem:[#allocation113_spill] sm:$0xff] }
 0x303   :  { %vm16149_vm5 = vcmp.lt.f32.partialorder %v16148_v54, inf  ;;  %v1626_v57 = vcvt.f32.s32 %v1625_v30  ;;  %8545 = vperm.xlu1 %9916, %v6192_v42   ;;  %v6290_v17 = vcombine.low %v6282_v2, %v6289_v47  ;;  %v4019_v10 = vrot.slane %v12943_v26, %v12215_v58 }
 0x304   :  { %v13067_v44 = vsel %vm16149_vm5, %v12906_v36, 0  ;;  %vm2128_vm13 = vcmp.eq.s32.totalorder %v16052_v60, %v13054_v53  ;;  %v6343_v31 = vcombine.low %v3979_v37, %v3983_v19  ;;  %v6350_v35 = vrot.slane %v6340_v41, %v12279_v6  ;;  %v1670_v14 = vpop.xlane.xlu1 %1669 }
 0x305   :  { %v6357_v8 = vrot.slane %v6341_v52, %v12279_v6  ;;  %v13076_v25 = vadd.s32 %v12349_v62, %v1626_v57  ;;  %v6364_v36 = vrot.slane %v6342_v61, %v12279_v6  ;;  %v4023_v28 = vrot.slane %v12943_v26, %v12221_v49 }
 0x306   :  { %v4027_v0 = vrot.slane %v12943_v26, %v12224_v33  ;;  %v6371_v56 = vrot.slane %v6343_v31, %v12279_v6  ;;  %v4031_v20 = vrot.slane %v12943_v26, %v12227_v39  ;;  %v4035_v22 = vrot.slane %v12943_v26, %v12235_v3 }
 0x307   :  { %v6372_v32 = vcombine.low %v6350_v35, %v6357_v8  ;;  %v1671_v62 = vcvt.f32.s32 %v1670_v14  ;;  %8551 = vperm.xlu1 %9916, %v6290_v17   ;;  %vm2127_vm12 = vcmp.eq.s32.totalorder %v16052_v60, %v13076_v25  ;;  %v9470_v34 = vsel %vm2128_vm13, 1.0, %v16067_v23 }
 0x308   :  { %v4039_v12 = vrot.slane %v12943_v26, %v12243_v21  ;;  %v9469_v42 = vsel %vm2127_vm12, 1.0, %v16067_v23  ;;  %v6373_v16 = vcombine.low %v6364_v36, %v6371_v56  ;;  %v4043_v2 = vrot.slane %v12943_v26, %v12256_v40  ;;  %v1655_v61 = vpop.xlane.xlu1 %1654 }
 0x309   :  { %v6380_v59 = vrot.slane %v6372_v32, %v12279_v6  ;;  %v13101_v29 = vadd.s32 %v16150_v9, %v1671_v62  ;;  %9861 = vmatprep.mubr.msk.f32.mxu1 %vm814_vm1, %v9469_v42  ;;  %v4047_v47 = vrot.slane %v12943_v26, %v12259_v38  ;;  %v6438_v37 = vcombine.low %v4019_v10, %v4023_v28  ;;  %v16152_v28 = vld [vmem:[#allocation141_spill] sm:$0xff]  ;;  %v16155_v42 = vld [vmem:[#allocation39_spill] sm:$0xff] }
 0x30a   :  { %v6439_v19 = vcombine.low %v4027_v0, %v4031_v20  ;;  %v16151_v30 = vcvt.f32.s32 %v12408_v11  ;;  %v13110_v52 = vshll.u32 %v1882_v18, 16  ;;  %9862 = vmatmul.mubr.msk.f32.gmra.mxu1 %vm814_vm1, %v9470_v34  ;;  %v6387_v57 = vrot.slane %v6373_v16, %v12279_v6 }
 0x30b   :  { %v6440_v17 = vcombine.low %v4035_v22, %v4039_v12  ;;  %v1656_v31 = vcvt.f32.s32 %v1655_v61  ;;  %v6441_v35 = vcombine.low %v4043_v2, %v4047_v47  ;;  %v6448_v8 = vrot.slane %v6438_v37, %v12279_v6  ;;  %v16154_v12 = vld [vmem:[#allocation122_spill] sm:$0xff] }
 0x30c   :  { %v13108_v41 = vshll.u32 %v16151_v30, 16  ;;  %v4083_v26 = vrot.slane %v13067_v44, %v12215_v58  ;;  %v6388_v10 = vcombine.low %v6380_v59, %v6387_v57  ;;  %v6455_v11 = vrot.slane %v6439_v19, %v12279_v6  ;;  %v1700_v32 = vpop.xlane.xlu1 %1699  ;;  %v16157_v59 = vld [vmem:[#allocation72_spill] sm:$0xff] }
 0x30d   :  { %v6462_v36 = vrot.slane %v6440_v17, %v12279_v6  ;;  %v4087_v18 = vrot.slane %v13067_v44, %v12221_v49  ;;  %v13122_v0 = vadd.s32 %v16152_v28, %v1656_v31  ;;  %v6469_v14 = vrot.slane %v6441_v35, %v12279_v6 }
 0x30e   :  { %vm2130_vm0 = vcmp.eq.s32.totalorder %v16052_v60, %v13101_v29  ;;  %v4091_v56 = vrot.slane %v13067_v44, %v12224_v33  ;;  %8557 = vperm.xlu1 %9916, %v6388_v10   ;;  %v6470_v20 = vcombine.low %v6448_v8, %v6455_v11  ;;  %v4095_v22 = vrot.slane %v13067_v44, %v12227_v39 }
 0x30f   :  { %16153 = vst [vmem:[#allocation11_spill] sm:$0xff] %v13122_v0  ;;  %v4099_v62 = vrot.slane %v13067_v44, %v12235_v3  ;;  %v4103_v34 = vrot.slane %v13067_v44, %v12243_v21  ;;  %vm16156_vm15 = vcmp.lt.f32.partialorder %v16155_v42, inf  ;;  %vm16158_vm5 = vcmp.lt.f32.partialorder %v16157_v59, inf  ;;  %v16194_v42 = vld [vmem:[#allocation131_spill] sm:$0xff] }
 0x310   :  { %v13138_v16 = vsel %vm16156_vm15, %v16154_v12, 0  ;;  %v3018_v2 = vsel %vm16158_vm5, %v12951_v5, 0  ;;  %v6471_v9 = vcombine.low %v6462_v36, %v6469_v14  ;;  %vm2129_vm13 = vcmp.eq.s32.totalorder %v16052_v60, %v13122_v0  ;;  %v16195_v0 = vld [vmem:[#allocation51_spill] sm:$0xff] }
 0x311   :  { %v6478_v47 = vrot.slane %v6470_v20, %v12279_v6  ;;  %v9471_v37 = vsel %vm2129_vm13, 1.0, %v16067_v23  ;;  %v4107_v19 = vrot.slane %v13067_v44, %v12256_v40  ;;  %v4111_v30 = vrot.slane %v13067_v44, %v12259_v38  ;;  %v1685_v44 = vpop.xlane.xlu1 %1684 }
 0x312   :  { %v6485_v61 = vrot.slane %v6471_v9, %v12279_v6  ;;  %9864 = vmatprep.mubr.msk.f32.mxu1 %vm814_vm1, %v9471_v37  ;;  %v9472_v5 = vsel %vm2130_vm0, 1.0, %v16067_v23  ;;  %v6536_v57 = vcombine.low %v4083_v26, %v4087_v18  ;;  %v6537_v17 = vcombine.low %v4091_v56, %v4095_v22 }
 0x313   :  { %v1701_v31 = vcvt.f32.s32 %v1700_v32  ;;  %9865 = vmatmul.mubr.msk.f32.gmra.mxu1 %vm814_vm1, %v9472_v5  ;;  %v6538_v35 = vcombine.low %v4099_v62, %v4103_v34  ;;  %v6539_v8 = vcombine.low %v4107_v19, %v4111_v30  ;;  %v4147_v10 = vrot.slane %v3018_v2, %v12215_v58  ;;  %v16159_v34 = vld [vmem:[#allocation119_spill] sm:$0xff] }
 0x314   :  { %v6486_v11 = vcombine.low %v6478_v47, %v6485_v61  ;;  %v6546_v36 = vrot.slane %v6536_v57, %v12279_v6  ;;  %v6553_v28 = vrot.slane %v6537_v17, %v12279_v6  ;;  %v4151_v14 = vrot.slane %v3018_v2, %v12221_v49 }
 0x315   :  { %v1686_v20 = vcvt.f32.s32 %v1685_v44  ;;  %v6560_v12 = vrot.slane %v6538_v35, %v12279_v6  ;;  %v6567_v26 = vrot.slane %v6539_v8, %v12279_v6  ;;  %v4155_v18 = vrot.slane %v3018_v2, %v12224_v33  ;;  %v13174_v61 = vpop.xlane.xlu1 %2070  ;;  %v1715_v35 = vpop.xlane.xlu0 %1714  ;;  %v16162_v8 = vld [vmem:[#allocation76_spill] sm:$0xff] }
 0x316   :  { %8563 = vperm.xlu1 %9916, %v6486_v11   ;;  %v6568_v56 = vcombine.low %v6546_v36, %v6553_v28  ;;  %v4159_v32 = vrot.slane %v3018_v2, %v12227_v39  ;;  %v4163_v22 = vrot.slane %v3018_v2, %v12235_v3  ;;  %v4167_v62 = vrot.slane %v3018_v2, %v12243_v21  ;;  %v16164_v44 = vld [vmem:[#allocation116_spill] sm:$0xff] }
 0x317   :  { %v13169_v9 = vadd.s32 %v16159_v34, %v1686_v20  ;;  %v6569_v47 = vcombine.low %v6560_v12, %v6567_v26  ;;  %v4171_v37 = vrot.slane %v3018_v2, %v12256_v40  ;;  %v4175_v19 = vrot.slane %v3018_v2, %v12259_v38  ;;  %16161 = vst [vmem:[#allocation98_spill] sm:$0xff] %v13174_v61  ;;  %v16166_v20 = vld [vmem:[#allocation101_spill] sm:$0xff] }
 0x318   :  { %v6576_v30 = vrot.slane %v6568_v56, %v12279_v6  ;;  %v6634_v5 = vcombine.low %v4147_v10, %v4151_v14  ;;  %v6635_v57 = vcombine.low %v4155_v18, %v4159_v32  ;;  %v6636_v17 = vcombine.low %v4163_v22, %v4167_v62  ;;  %v16167_v26 = vld [vmem:[#allocation145_spill] sm:$0xff] }
 0x319   :  { %16160 = vst [vmem:[#allocation134_spill] sm:$0xff] %v13169_v9  ;;  %vm16163_vm12 = vcmp.lt.f32.partialorder %v16162_v8, inf  ;;  %v13180_v36 = vadd.s32 %v16164_v44, %v1701_v31  ;;  %v6583_v28 = vrot.slane %v6569_v47, %v12279_v6  ;;  %vm2072_vm0 = vcmp.eq.f32.partialorder %v16166_v20, %v13174_v61  ;;  %v16168_v62 = vld [vmem:[#allocation33_spill] sm:$0xff]  ;;  %v1730_v47 = vpop.xlane.xlu1 %1729 }
 0x31a   :  { %v3020_v11 = vsel %vm16163_vm12, %v12991_v7, 0  ;;  %v6637_v2 = vcombine.low %v4171_v37, %v4175_v19  ;;  %v6644_v12 = vrot.slane %v6634_v5, %v12279_v6  ;;  %v6651_v10 = vrot.slane %v6635_v57, %v12279_v6 }
 0x31b   :  { %16165 = vst [vmem:[#allocation137_spill] sm:$0xff] %v13180_v36  ;;  %v6658_v14 = vrot.slane %v6636_v17, %v12279_v6  ;;  %v1912_v18 = vcvt.f32.s32 %v16167_v26  ;;  %v6584_v56 = vcombine.low %v6576_v30, %v6583_v28  ;;  %v1716_v32 = vcvt.f32.s32 %v1715_v35  ;;  %v16170_v26 = vld [vmem:[#allocation80_spill] sm:$0xff] }
 0x31c   :  { %vm2131_vm15 = vcmp.eq.s32.totalorder %v16052_v60, %v13169_v9  ;;  %v6665_v7 = vrot.slane %v6637_v2, %v12279_v6  ;;  %v6666_v31 = vcombine.low %v6644_v12, %v6651_v10  ;;  %v2073_v34 = vsel %vm2072_vm0, %v16168_v62, inf }
 0x31d   :  { %v9473_v22 = vsel %vm2131_vm15, 1.0, %v16067_v23  ;;  %v1942_v37 = vcvt.f32.s32 %v12478_v51  ;;  %8569 = vperm.xlu1 %9916, %v6584_v56   ;;  %v13196_v19 = vadd.s32 %v12500_v15, %v1716_v32  ;;  %vm2132_vm5 = vcmp.eq.s32.totalorder %v16052_v60, %v13180_v36  ;;  %2074 = vmin.xlane.f32.xlu0 %v2073_v34  ;;  %v1745_v51 = vpop.xlane.xlu0 %1744  ;;  %v1760_v34 = vpop.xlane.xlu1 %1759 }
 0x31e   :  { %9867 = vmatprep.mubr.msk.f32.mxu1 %vm814_vm1, %v9473_v22  ;;  %v4211_v30 = vrot.slane %v3020_v11, %v12215_v58  ;;  %v6667_v5 = vcombine.low %v6658_v14, %v6665_v7  ;;  %v6674_v57 = vrot.slane %v6666_v31, %v12279_v6  ;;  %v9474_v17 = vsel %vm2132_vm5, 1.0, %v16067_v23 }
 0x31f   :  { %16169 = vst [vmem:[#allocation12_spill] sm:$0xff] %v13196_v19  ;;  %v4215_v35 = vrot.slane %v3020_v11, %v12221_v49  ;;  %v13205_v44 = vshll.u32 %v1912_v18, 16  ;;  %9868 = vmatmul.mubr.msk.f32.gmra.mxu1 %vm814_vm1, %v9474_v17  ;;  %v1731_v15 = vcvt.f32.s32 %v1730_v47  ;;  %v4219_v28 = vrot.slane %v3020_v11, %v12224_v33 }
 0x320   :  { %v4223_v20 = vrot.slane %v3020_v11, %v12227_v39  ;;  %v6681_v2 = vrot.slane %v6667_v5, %v12279_v6  ;;  %v4227_v12 = vrot.slane %v3020_v11, %v12235_v3  ;;  %v4231_v10 = vrot.slane %v3020_v11, %v12243_v21 }
 0x321   :  { %v4235_v14 = vrot.slane %v3020_v11, %v12256_v40  ;;  %vm16171_vm13 = vcmp.lt.f32.partialorder %v16170_v26, inf  ;;  %v4239_v56 = vrot.slane %v3020_v11, %v12259_v38  ;;  %v6732_v32 = vcombine.low %v4211_v30, %v4215_v35  ;;  %v16172_v11 = vld [vmem:[#allocation57_spill] sm:$0xff]  ;;  %v1775_v35 = vpop.xlane.xlu0 %1774 }
 0x322   :  { %v3022_v18 = vsel %vm16171_vm13, %v13033_v24, 0  ;;  %v6733_v7 = vcombine.low %v4219_v28, %v4223_v20  ;;  %v13218_v31 = vshll.u32 %v1942_v37, 16  ;;  %v6682_v22 = vcombine.low %v6674_v57, %v6681_v2  ;;  %v1790_v24 = vpop.xlane.xlu1 %1789 }
 0x323   :  { %v6734_v62 = vcombine.low %v4227_v12, %v4231_v10  ;;  %vm2133_vm12 = vcmp.eq.s32.totalorder %v16052_v60, %v13196_v19  ;;  %v6735_v47 = vcombine.low %v4235_v14, %v4239_v56  ;;  %v6742_v5 = vrot.slane %v6732_v32, %v12279_v6 }
 0x324   :  { %v6749_v17 = vrot.slane %v6733_v7, %v12279_v6  ;;  %v9475_v26 = vsel %vm2133_vm12, 1.0, %v16067_v23  ;;  %8575 = vperm.xlu1 %9916, %v6682_v22   ;;  %v13227_v30 = vadd.s32 %v16172_v11, %v1731_v15  ;;  %v4275_v57 = vrot.slane %v3022_v18, %v12215_v58 }
 0x325   :  { %v6756_v37 = vrot.slane %v6734_v62, %v12279_v6  ;;  %9870 = vmatprep.mubr.msk.f32.mxu1 %vm814_vm1, %v9475_v26  ;;  %v6763_v28 = vrot.slane %v6735_v47, %v12279_v6  ;;  %v4279_v2 = vrot.slane %v3022_v18, %v12221_v49  ;;  %v4283_v12 = vrot.slane %v3022_v18, %v12224_v33 }
 0x326   :  { %16173 = vst [vmem:[#allocation27_spill] sm:$0xff] %v13227_v30  ;;  %v6764_v20 = vcombine.low %v6742_v5, %v6749_v17  ;;  %v3024_v14 = vsel %vm2896_vm9, %v13076_v25, 0  ;;  %v1746_v15 = vcvt.f32.s32 %v1745_v51  ;;  %v4287_v56 = vrot.slane %v3022_v18, %v12227_v39 }
 0x327   :  { %v4291_v32 = vrot.slane %v3022_v18, %v12235_v3  ;;  %v6765_v26 = vcombine.low %v6756_v37, %v6763_v28  ;;  %v4295_v22 = vrot.slane %v3022_v18, %v12243_v21  ;;  %v4299_v62 = vrot.slane %v3022_v18, %v12256_v40 }
 0x328   :  { %v6772_v7 = vrot.slane %v6764_v20, %v12279_v6  ;;  %v1761_v47 = vcvt.f32.s32 %v1760_v34  ;;  %v4303_v5 = vrot.slane %v3022_v18, %v12259_v38  ;;  %v6830_v17 = vcombine.low %v4275_v57, %v4279_v2  ;;  %v1805_v34 = vpop.xlane.xlu0 %1804  ;;  %v16175_v18 = vld [vmem:[#allocation41_spill] sm:$0xff] }
 0x329   :  { %v6831_v11 = vcombine.low %v4283_v12, %v4287_v56  ;;  %v6779_v25 = vrot.slane %v6765_v26, %v12279_v6  ;;  %v6832_v51 = vcombine.low %v4291_v32, %v4295_v22  ;;  %v1776_v10 = vcvt.f32.s32 %v1775_v35 }
 0x32a   :  { %vm2134_vm0 = vcmp.eq.s32.totalorder %v16052_v60, %v13227_v30  ;;  %v6833_v37 = vcombine.low %v4299_v62, %v4303_v5  ;;  %v6840_v28 = vrot.slane %v6830_v17, %v12279_v6  ;;  %v13251_v57 = vadd.s32 %v16175_v18, %v1746_v15 }
 0x32b   :  { %v6847_v20 = vrot.slane %v6831_v11, %v12279_v6  ;;  %v9476_v8 = vsel %vm2134_vm0, 1.0, %v16067_v23  ;;  %v6780_v59 = vcombine.low %v6772_v7, %v6779_v25  ;;  %v6854_v2 = vrot.slane %v6832_v51, %v12279_v6  ;;  %v16176_v7 = vld [vmem:[#allocation46_spill] sm:$0xff] }
 0x32c   :  { %9871 = vmatmul.mubr.msk.f32.gmra.mxu1 %vm814_vm1, %v9476_v8  ;;  %v1791_v35 = vcvt.f32.s32 %v1790_v24  ;;  %v6861_v12 = vrot.slane %v6833_v37, %v12279_v6  ;;  %v4339_v32 = vrot.slane %v3024_v14, %v12215_v58  ;;  %v4343_v26 = vrot.slane %v3024_v14, %v12221_v49 }
 0x32d   :  { %v6862_v56 = vcombine.low %v6840_v28, %v6847_v20  ;;  %8581 = vperm.xlu1 %9916, %v6780_v59   ;;  %v13259_v22 = vadd.s32 %v12515_v4, %v1761_v47  ;;  %v13262_v62 = vadd.s32 %v16176_v7, %v1776_v10  ;;  %v4347_v15 = vrot.slane %v3024_v14, %v12224_v33  ;;  %v1820_v47 = vpop.xlane.xlu1 %1819  ;;  %v1835_v20 = vpop.xlane.xlu0 %1834 }
 0x32e   :  { %v4351_v5 = vrot.slane %v3024_v14, %v12227_v39  ;;  %v6863_v8 = vcombine.low %v6854_v2, %v6861_v12  ;;  %v4355_v17 = vrot.slane %v3024_v14, %v12235_v3  ;;  %v4359_v11 = vrot.slane %v3024_v14, %v12243_v21 }
 0x32f   :  { %v6870_v24 = vrot.slane %v6862_v56, %v12279_v6  ;;  %v13270_v25 = vadd.s32 %v12557_v27, %v1791_v35  ;;  %v4363_v4 = vrot.slane %v3024_v14, %v12256_v40  ;;  %v4367_v59 = vrot.slane %v3024_v14, %v12259_v38 }
 0x330   :  { %v6928_v10 = vcombine.low %v4339_v32, %v4343_v26  ;;  %v6877_v51 = vrot.slane %v6863_v8, %v12279_v6  ;;  %v6929_v37 = vcombine.low %v4347_v15, %v4351_v5  ;;  %v6930_v28 = vcombine.low %v4355_v17, %v4359_v11  ;;  %v16177_v26 = vld [vmem:[#allocation53_spill] sm:$0xff] }
 0x331   :  { %vm2135_vm15 = vcmp.eq.s32.totalorder %v16052_v60, %v13251_v57  ;;  %v6931_v18 = vcombine.low %v4363_v4, %v4367_v59  ;;  %v1806_v35 = vcvt.f32.s32 %v1805_v34  ;;  %vm2136_vm5 = vcmp.eq.s32.totalorder %v16052_v60, %v13259_v22  ;;  %v16179_v4 = vld [vmem:[#allocation90_spill] sm:$0xff] }
 0x332   :  { %v6938_v2 = vrot.slane %v6928_v10, %v12279_v6  ;;  %v9477_v27 = vsel %vm2135_vm15, 1.0, %v16067_v23  ;;  %v6878_v12 = vcombine.low %v6870_v24, %v6877_v51  ;;  %v6945_v56 = vrot.slane %v6929_v37, %v12279_v6  ;;  %v16178_v24 = vld [vmem:[#allocation9_spill] sm:$0xff]  ;;  %v16180_v51 = vld [vmem:[#allocation128_spill] sm:$0xff] }
 0x333   :  { %v6952_v14 = vrot.slane %v6930_v28, %v12279_v6  ;;  %9873 = vmatprep.mubr.msk.f32.mxu1 %vm814_vm1, %v9477_v27  ;;  %v6959_v32 = vrot.slane %v6931_v18, %v12279_v6  ;;  %v13286_v7 = vadd.s32 %v16177_v26, %v1806_v35  ;;  %v9478_v15 = vsel %vm2136_vm5, 1.0, %v16067_v23  ;;  %v16181_v18 = vld [vmem:[#allocation65_spill] sm:$0xff]  ;;  %v1865_v27 = vpop.xlane.xlu0 %1864 }
 0x334   :  { %v1821_v5 = vcvt.f32.s32 %v1820_v47  ;;  %8587 = vperm.xlu1 %9916, %v6878_v12   ;;  %v6960_v34 = vcombine.low %v6938_v2, %v6945_v56  ;;  %9874 = vmatmul.mubr.msk.f32.gmra.mxu1 %vm814_vm1, %v9478_v15  ;;  %vm2137_vm13 = vcmp.eq.s32.totalorder %v16052_v60, %v13262_v62  ;;  %v1836_v8 = vcvt.f32.s32 %v1835_v20  ;;  %v1850_v47 = vpop.xlane.xlu1 %1849  ;;  %v16182_v35 = vld [vmem:[#allocation125_spill] sm:$0xff]  ;;  %v16183_v12 = vld [vmem:[#allocation43_spill] sm:$0xff] }
 0x335   :  { %vm2138_vm12 = vcmp.eq.s32.totalorder %v16052_v60, %v13270_v25  ;;  %v2002_v17 = vcvt.f32.s32 %v16178_v24  ;;  %v6961_v11 = vcombine.low %v6952_v14, %v6959_v32  ;;  %v9479_v10 = vsel %vm2137_vm13, 1.0, %v16067_v23  ;;  %v16185_v14 = vld [vmem:[#allocation22_spill] sm:$0xff] }
 0x336   :  { %v13296_v59 = vadd.s32 %v16179_v4, %v1821_v5  ;;  %v2032_v37 = vcvt.f32.s32 %v16180_v51  ;;  %v6968_v28 = vrot.slane %v6960_v34, %v12279_v6  ;;  %9876 = vmatprep.mubr.msk.f32.mxu1 %vm814_vm1, %v9479_v10  ;;  %v13303_v20 = vadd.s32 %v16181_v18, %v1836_v8  ;;  %v16187_v51 = vld [vmem:[#allocation93_spill] sm:$0xff] }
 0x337   :  { %v9480_v2 = vsel %vm2138_vm12, 1.0, %v16067_v23  ;;  %vm16184_vm0 = vcmp.lt.f32.partialorder %v16183_v12, inf  ;;  %v2062_v32 = vcvt.f32.s32 %v16185_v14  ;;  %v6975_v26 = vrot.slane %v6961_v11, %v12279_v6 }
 0x338   :  { %v13309_v56 = vsel %vm16184_vm0, %v16182_v35, 0  ;;  %vm2139_vm15 = vcmp.eq.s32.totalorder %v16052_v60, %v13286_v7  ;;  %v16186_v15 = vcvt.f32.s32 %v12506_v13  ;;  %9877 = vmatmul.mubr.msk.f32.gmra.mxu1 %vm814_vm1, %v9480_v2  ;;  %v1851_v34 = vcvt.f32.s32 %v1850_v47  ;;  %v16188_v13 = vld [vmem:[#allocation47_spill] sm:$0xff]  ;;  %v16190_v47 = vld [vmem:[#allocation144_spill] sm:$0xff]  ;;  %v1880_v14 = vpop.xlane.xlu1 %1879 }
 0x339   :  { %v9481_v8 = vsel %vm2139_vm15, 1.0, %v16067_v23  ;;  %vm2140_vm5 = vcmp.eq.s32.totalorder %v16052_v60, %v13296_v59  ;;  %v13323_v24 = vshll.u32 %v2002_v17, 16  ;;  %v6976_v4 = vcombine.low %v6968_v28, %v6975_v26  ;;  %v16191_v28 = vld [vmem:[#allocation133_spill] sm:$0xff] }
 0x33a   :  { %v13317_v5 = vshll.u32 %v16186_v15, 16  ;;  %9879 = vmatprep.mubr.msk.f32.mxu1 %vm814_vm1, %v9481_v8  ;;  %v1866_v11 = vcvt.f32.s32 %v1865_v27  ;;  %v9482_v10 = vsel %vm2140_vm5, 1.0, %v16067_v23  ;;  %vm16189_vm13 = vcmp.lt.f32.partialorder %v16188_v13, inf }
 0x33b   :  { %v13330_v18 = vsel %vm16189_vm13, %v16187_v51, 0  ;;  %v13332_v2 = vshll.u32 %v2032_v37, 16  ;;  %vm2141_vm12 = vcmp.eq.s32.totalorder %v16052_v60, %v13303_v20  ;;  %v3315_v17 = vrot.slane %v16190_v47, %v12215_v58  ;;  %8593 = vperm.xlu1 %9916, %v6976_v4   ;;  %v16193_v4 = vld [vmem:[#allocation77_spill] sm:$0xff] }
 0x33c   :  { %v13338_v35 = vshll.u32 %v2062_v32, 16  ;;  %vm16192_vm0 = vcmp.lt.f32.partialorder %v16191_v28, inf  ;;  %v9483_v26 = vsel %vm2141_vm12, 1.0, %v16067_v23  ;;  %v3319_v37 = vrot.slane %v16190_v47, %v12221_v49  ;;  %9880 = vmatmul.mubr.msk.f32.gmra.mxu1 %vm814_vm1, %v9482_v10 }
 0x33d   :  { %v3033_v27 = vsel %vm16192_vm0, %v13259_v22, 0  ;;  %v13347_v15 = vadd.s32 %v13108_v41, %v1851_v34  ;;  %v3323_v32 = vrot.slane %v16190_v47, %v12224_v33  ;;  %v3327_v8 = vrot.slane %v16190_v47, %v12227_v39  ;;  %9882 = vmatprep.mubr.msk.f32.mxu1 %vm814_vm1, %v9483_v26 }
 0x33e   :  { %v3331_v22 = vrot.slane %v16190_v47, %v12235_v3  ;;  %v13357_v51 = vadd.s32 %v16193_v4, %v1866_v11  ;;  %v3335_v41 = vrot.slane %v16190_v47, %v12243_v21  ;;  %v3339_v34 = vrot.slane %v16190_v47, %v12256_v40  ;;  %v1895_v4 = vpop.xlane.xlu0 %1894 }
 0x33f   :  { %v3343_v10 = vrot.slane %v16190_v47, %v12259_v38  ;;  %v1881_v28 = vcvt.f32.s32 %v1880_v14  ;;  %v5360_v54 = vcombine.low %v3315_v17, %v3319_v37  ;;  %v5361_v45 = vcombine.low %v3323_v32, %v3327_v8 }
 0x340   :  { %v4627_v63 = vrot.slane %v3033_v27, %v12215_v58  ;;  %v5362_v13 = vcombine.low %v3331_v22, %v3335_v41  ;;  %v4631_v11 = vrot.slane %v3033_v27, %v12221_v49  ;;  %v4635_v26 = vrot.slane %v3033_v27, %v12224_v33 }
 0x341   :  { %v5363_v19 = vcombine.low %v3339_v34, %v3343_v10  ;;  %v5370_v61 = vrot.slane %v5360_v54, %v12279_v6  ;;  %v5377_v30 = vrot.slane %v5361_v45, %v12279_v6  ;;  %v4639_v12 = vrot.slane %v3033_v27, %v12227_v39 }
 0x342   :  { %v4643_v47 = vrot.slane %v3033_v27, %v12235_v3  ;;  %v5384_v17 = vrot.slane %v5362_v13, %v12279_v6  ;;  %v4647_v37 = vrot.slane %v3033_v27, %v12243_v21  ;;  %v4651_v32 = vrot.slane %v3033_v27, %v12256_v40 }
 0x343   :  { %v5391_v14 = vrot.slane %v5363_v19, %v12279_v6  ;;  %v5392_v8 = vcombine.low %v5370_v61, %v5377_v30  ;;  %v4655_v22 = vrot.slane %v3033_v27, %v12259_v38  ;;  %v7369_v41 = vcombine.low %v4627_v63, %v4631_v11  ;;  %v16197_v27 = vld [vmem:[#allocation100_spill] sm:$0xff] }
 0x344   :  { %v7370_v34 = vcombine.low %v4635_v26, %v4639_v12  ;;  %v1896_v54 = vcvt.f32.s32 %v1895_v4  ;;  %v7371_v45 = vcombine.low %v4643_v47, %v4647_v37  ;;  %vm2142_vm15 = vcmp.eq.s32.totalorder %v16052_v60, %v13347_v15 }
 0x345   :  { %v5393_v10 = vcombine.low %v5384_v17, %v5391_v14  ;;  %v5400_v9 = vrot.slane %v5392_v8, %v12279_v6  ;;  %v7372_v13 = vcombine.low %v4651_v32, %v4655_v22  ;;  %v7379_v19 = vrot.slane %v7369_v41, %v12279_v6  ;;  %v1910_v17 = vpop.xlane.xlu1 %1909  ;;  %v16199_v32 = vld [vmem:[#allocation78_spill] sm:$0xff] }
 0x346   :  { %v7386_v36 = vrot.slane %v7370_v34, %v12279_v6  ;;  %vm16196_vm5 = vcmp.lt.f32.partialorder %v16195_v0, inf  ;;  %v7393_v30 = vrot.slane %v7371_v45, %v12279_v6  ;;  %v9484_v12 = vsel %vm2142_vm15, 1.0, %v16067_v23  ;;  %v16201_v0 = vld [vmem:[#allocation55_spill] sm:$0xff] }
 0x347   :  { %v13386_v61 = vsel %vm16196_vm5, %v16194_v42, 0  ;;  %v5407_v63 = vrot.slane %v5393_v10, %v12279_v6  ;;  %vm16198_vm13 = vcmp.lt.f32.partialorder %v16197_v27, inf  ;;  %v7400_v26 = vrot.slane %v7372_v13, %v12279_v6  ;;  %9883 = vmatmul.mubr.msk.f32.gmra.mxu1 %vm814_vm1, %v9484_v12  ;;  %v16200_v27 = vld [vmem:[#allocation97_spill] sm:$0xff] }
 0x348   :  { %v3032_v11 = vsel %vm16198_vm13, %v13251_v57, 0  ;;  %v7401_v4 = vcombine.low %v7379_v19, %v7386_v36  ;;  %vm2143_vm12 = vcmp.eq.s32.totalorder %v16052_v60, %v13357_v51  ;;  %v13399_v42 = vadd.s32 %v13110_v52, %v1881_v28 }
 0x349   :  { %v5408_v47 = vcombine.low %v5400_v9, %v5407_v63  ;;  %v9485_v14 = vsel %vm2143_vm12, 1.0, %v16067_v23  ;;  %v3603_v37 = vrot.slane %v13138_v16, %v12215_v58  ;;  %v13405_v57 = vadd.s32 %v16199_v32, %v1896_v54 }
 0x34a   :  { %v7402_v8 = vcombine.low %v7393_v30, %v7400_v26  ;;  %v7409_v36 = vrot.slane %v7401_v4, %v12279_v6  ;;  %9885 = vmatprep.mubr.msk.f32.mxu1 %vm814_vm1, %v9485_v14  ;;  %v3607_v22 = vrot.slane %v13138_v16, %v12221_v49  ;;  %v3611_v52 = vrot.slane %v13138_v16, %v12224_v33  ;;  %v1925_v14 = vpop.xlane.xlu0 %1924 }
 0x34b   :  { %8497 = vperm.xlu0 %9917, %v5408_v47   ;;  %v3615_v9 = vrot.slane %v13138_v16, %v12227_v39  ;;  %v3619_v28 = vrot.slane %v13138_v16, %v12235_v3  ;;  %v3623_v41 = vrot.slane %v13138_v16, %v12243_v21  ;;  %v1911_v54 = vcvt.f32.s32 %v1910_v17 }
 0x34c   :  { %v7416_v34 = vrot.slane %v7402_v8, %v12279_v6  ;;  %v3627_v10 = vrot.slane %v13138_v16, %v12256_v40  ;;  %v3631_v45 = vrot.slane %v13138_v16, %v12259_v38  ;;  %v5801_v13 = vcombine.low %v3603_v37, %v3607_v22 }
 0x34d   :  { %v5802_v19 = vcombine.low %v3611_v52, %v3615_v9  ;;  %v5803_v63 = vcombine.low %v3619_v28, %v3623_v41  ;;  %v4595_v30 = vrot.slane %v3032_v11, %v12215_v58  ;;  %v4599_v4 = vrot.slane %v3032_v11, %v12221_v49 }
 0x34e   :  { %v7417_v12 = vcombine.low %v7409_v36, %v7416_v34  ;;  %v5804_v26 = vcombine.low %v3627_v10, %v3631_v45  ;;  %v4603_v47 = vrot.slane %v3032_v11, %v12224_v33  ;;  %v5811_v17 = vrot.slane %v5801_v13, %v12279_v6 }
 0x34f   :  { %v5818_v32 = vrot.slane %v5802_v19, %v12279_v6  ;;  %v5825_v8 = vrot.slane %v5803_v63, %v12279_v6  ;;  %v4607_v16 = vrot.slane %v3032_v11, %v12227_v39  ;;  %v4611_v22 = vrot.slane %v3032_v11, %v12235_v3 }
 0x350   :  { %8620 = vperm.xlu1 %9916, %v7417_v12   ;;  %v5832_v37 = vrot.slane %v5804_v26, %v12279_v6  ;;  %v4615_v36 = vrot.slane %v3032_v11, %v12243_v21  ;;  %v4619_v52 = vrot.slane %v3032_v11, %v12256_v40  ;;  %v4623_v28 = vrot.slane %v3032_v11, %v12259_v38 }
 0x351   :  { %v5833_v9 = vcombine.low %v5811_v17, %v5818_v32  ;;  %v7320_v41 = vcombine.low %v4595_v30, %v4599_v4  ;;  %v7321_v34 = vcombine.low %v4603_v47, %v4607_v16  ;;  %v1926_v10 = vcvt.f32.s32 %v1925_v14  ;;  %v16203_v47 = vld [vmem:[#allocation136_spill] sm:$0xff] }
 0x352   :  { %v5834_v45 = vcombine.low %v5825_v8, %v5832_v37  ;;  %v7322_v13 = vcombine.low %v4611_v22, %v4615_v36  ;;  %vm2144_vm0 = vcmp.eq.s32.totalorder %v16052_v60, %v13399_v42  ;;  %v7323_v63 = vcombine.low %v4619_v52, %v4623_v28  ;;  %v1940_v37 = vpop.xlane.xlu1 %1939  ;;  %v16205_v52 = vld [vmem:[#allocation81_spill] sm:$0xff] }
 0x353   :  { %v5841_v19 = vrot.slane %v5833_v9, %v12279_v6  ;;  %v7330_v12 = vrot.slane %v7320_v41, %v12279_v6  ;;  %v7337_v26 = vrot.slane %v7321_v34, %v12279_v6  ;;  %vm16202_vm15 = vcmp.lt.f32.partialorder %v16201_v0, inf  ;;  %v16207_v0 = vld [vmem:[#allocation59_spill] sm:$0xff] }
 0x354   :  { %v13444_v17 = vsel %vm16202_vm15, %v16200_v27, 0  ;;  %v5848_v11 = vrot.slane %v5834_v45, %v12279_v6  ;;  %v7344_v30 = vrot.slane %v7322_v13, %v12279_v6  ;;  %v9486_v4 = vsel %vm2144_vm0, 1.0, %v16067_v23 }
 0x355   :  { %vm16204_vm5 = vcmp.lt.f32.partialorder %v16203_v47, inf  ;;  %v7351_v32 = vrot.slane %v7323_v63, %v12279_v6  ;;  %v7352_v8 = vcombine.low %v7330_v12, %v7337_v26  ;;  %9886 = vmatmul.mubr.msk.f32.gmra.mxu1 %vm814_vm1, %v9486_v4  ;;  %vm2145_vm13 = vcmp.eq.s32.totalorder %v16052_v60, %v13405_v57  ;;  %v16206_v47 = vld [vmem:[#allocation94_spill] sm:$0xff] }
 0x356   :  { %v3035_v14 = vsel %vm16204_vm5, %v13270_v25, 0  ;;  %v13457_v27 = vadd.s32 %v13205_v44, %v1911_v54  ;;  %v5849_v16 = vcombine.low %v5841_v19, %v5848_v11  ;;  %v9487_v22 = vsel %vm2145_vm13, 1.0, %v16067_v23 }
 0x357   :  { %v3667_v36 = vrot.slane %v13309_v56, %v12215_v58  ;;  %v13463_v25 = vadd.s32 %v16205_v52, %v1926_v10  ;;  %v7353_v9 = vcombine.low %v7344_v30, %v7351_v32  ;;  %v7360_v28 = vrot.slane %v7352_v8, %v12279_v6  ;;  %9888 = vmatprep.mubr.msk.f32.mxu1 %vm814_vm1, %v9487_v22  ;;  %v1955_v22 = vpop.xlane.xlu0 %1954 }
 0x358   :  { %v3671_v41 = vrot.slane %v13309_v56, %v12221_v49  ;;  %8524 = vperm.xlu0 %9917, %v5849_v16   ;;  %v3675_v44 = vrot.slane %v13309_v56, %v12224_v33  ;;  %v3679_v54 = vrot.slane %v13309_v56, %v12227_v39  ;;  %v3683_v34 = vrot.slane %v13309_v56, %v12235_v3 }
 0x359   :  { %v3687_v10 = vrot.slane %v13309_v56, %v12243_v21  ;;  %v7367_v45 = vrot.slane %v7353_v9, %v12279_v6  ;;  %v1941_v13 = vcvt.f32.s32 %v1940_v37  ;;  %v3691_v19 = vrot.slane %v13309_v56, %v12256_v40 }
 0x35a   :  { %v3695_v63 = vrot.slane %v13309_v56, %v12259_v38  ;;  %v5899_v12 = vcombine.low %v3667_v36, %v3671_v41  ;;  %v5900_v26 = vcombine.low %v3675_v44, %v3679_v54  ;;  %v4691_v30 = vrot.slane %v3035_v14, %v12215_v58 }
 0x35b   :  { %v5901_v11 = vcombine.low %v3683_v34, %v3687_v10  ;;  %v7368_v4 = vcombine.low %v7360_v28, %v7367_v45  ;;  %v4695_v8 = vrot.slane %v3035_v14, %v12221_v49  ;;  %v4699_v16 = vrot.slane %v3035_v14, %v12224_v33 }
 0x35c   :  { %v5902_v32 = vcombine.low %v3691_v19, %v3695_v63  ;;  %v5909_v37 = vrot.slane %v5899_v12, %v12279_v6  ;;  %v5916_v52 = vrot.slane %v5900_v26, %v12279_v6  ;;  %v4703_v56 = vrot.slane %v3035_v14, %v12227_v39 }
 0x35d   :  { %v5923_v9 = vrot.slane %v5901_v11, %v12279_v6  ;;  %8617 = vperm.xlu1 %9916, %v7368_v4   ;;  %v4707_v41 = vrot.slane %v3035_v14, %v12235_v3  ;;  %v4711_v28 = vrot.slane %v3035_v14, %v12243_v21  ;;  %v4715_v44 = vrot.slane %v3035_v14, %v12256_v40 }
 0x35e   :  { %v5930_v36 = vrot.slane %v5902_v32, %v12279_v6  ;;  %v5931_v54 = vcombine.low %v5909_v37, %v5916_v52  ;;  %v4719_v34 = vrot.slane %v3035_v14, %v12259_v38  ;;  %v7467_v10 = vcombine.low %v4691_v30, %v4695_v8 }
 0x35f   :  { %v7468_v45 = vcombine.low %v4699_v16, %v4703_v56  ;;  %v1956_v19 = vcvt.f32.s32 %v1955_v22  ;;  %v7469_v12 = vcombine.low %v4707_v41, %v4711_v28  ;;  %vm2146_vm12 = vcmp.eq.s32.totalorder %v16052_v60, %v13457_v27  ;;  %v16209_v16 = vld [vmem:[#allocation104_spill] sm:$0xff] }
 0x360   :  { %v5932_v63 = vcombine.low %v5923_v9, %v5930_v36  ;;  %v5939_v26 = vrot.slane %v5931_v54, %v12279_v6  ;;  %v7470_v11 = vcombine.low %v4715_v44, %v4719_v34  ;;  %v7477_v4 = vrot.slane %v7467_v10, %v12279_v6  ;;  %v1970_v36 = vpop.xlane.xlu1 %1969  ;;  %v16211_v44 = vld [vmem:[#allocation85_spill] sm:$0xff] }
 0x361   :  { %v7484_v32 = vrot.slane %v7468_v45, %v12279_v6  ;;  %vm16208_vm0 = vcmp.lt.f32.partialorder %v16207_v0, inf  ;;  %v7491_v30 = vrot.slane %v7469_v12, %v12279_v6  ;;  %v9488_v8 = vsel %vm2146_vm12, 1.0, %v16067_v23 }
 0x362   :  { %v13502_v37 = vsel %vm16208_vm0, %v16206_v47, 0  ;;  %v5946_v14 = vrot.slane %v5932_v63, %v12279_v6  ;;  %vm16210_vm15 = vcmp.lt.f32.partialorder %v16209_v16, inf  ;;  %v7498_v52 = vrot.slane %v7470_v11, %v12279_v6  ;;  %9889 = vmatmul.mubr.msk.f32.gmra.mxu1 %vm814_vm1, %v9488_v8  ;;  %v16212_v16 = vld [vmem:[#allocation63_spill] sm:$0xff] }
 0x363   :  { %v3034_v22 = vsel %vm16210_vm15, %v13262_v62, 0  ;;  %v7499_v9 = vcombine.low %v7477_v4, %v7484_v32  ;;  %vm2147_vm5 = vcmp.eq.s32.totalorder %v16052_v60, %v13463_v25  ;;  %v13515_v47 = vadd.s32 %v13218_v31, %v1941_v13 }
 0x364   :  { %v5947_v56 = vcombine.low %v5939_v26, %v5946_v14  ;;  %v9489_v41 = vsel %vm2147_vm5, 1.0, %v16067_v23  ;;  %v3731_v28 = vrot.slane %v13330_v18, %v12215_v58  ;;  %v13521_v62 = vadd.s32 %v16211_v44, %v1956_v19 }
 0x365   :  { %v7500_v54 = vcombine.low %v7491_v30, %v7498_v52  ;;  %v7507_v34 = vrot.slane %v7499_v9, %v12279_v6  ;;  %9891 = vmatprep.mubr.msk.f32.mxu1 %vm814_vm1, %v9489_v41  ;;  %v3735_v10 = vrot.slane %v13330_v18, %v12221_v49  ;;  %v3739_v31 = vrot.slane %v13330_v18, %v12224_v33  ;;  %v1985_v41 = vpop.xlane.xlu0 %1984 }
 0x366   :  { %8530 = vperm.xlu0 %9917, %v5947_v56   ;;  %v3743_v13 = vrot.slane %v13330_v18, %v12227_v39  ;;  %v3747_v45 = vrot.slane %v13330_v18, %v12235_v3  ;;  %v3751_v19 = vrot.slane %v13330_v18, %v12243_v21  ;;  %v1971_v12 = vcvt.f32.s32 %v1970_v36 }
 0x367   :  { %v7514_v63 = vrot.slane %v7500_v54, %v12279_v6  ;;  %v3755_v26 = vrot.slane %v13330_v18, %v12256_v40  ;;  %v3759_v11 = vrot.slane %v13330_v18, %v12259_v38  ;;  %v5997_v4 = vcombine.low %v3731_v28, %v3735_v10 }
 0x368   :  { %v5998_v32 = vcombine.low %v3739_v31, %v3743_v13  ;;  %v5999_v14 = vcombine.low %v3747_v45, %v3751_v19  ;;  %v4659_v30 = vrot.slane %v3034_v22, %v12215_v58  ;;  %v4663_v9 = vrot.slane %v3034_v22, %v12221_v49 }
 0x369   :  { %v7515_v8 = vcombine.low %v7507_v34, %v7514_v63  ;;  %v6000_v52 = vcombine.low %v3755_v26, %v3759_v11  ;;  %v4667_v56 = vrot.slane %v3034_v22, %v12224_v33  ;;  %v6007_v36 = vrot.slane %v5997_v4, %v12279_v6 }
 0x36a   :  { %v6014_v44 = vrot.slane %v5998_v32, %v12279_v6  ;;  %v6021_v54 = vrot.slane %v5999_v14, %v12279_v6  ;;  %v4671_v18 = vrot.slane %v3034_v22, %v12227_v39  ;;  %v4675_v10 = vrot.slane %v3034_v22, %v12235_v3 }
 0x36b   :  { %8626 = vperm.xlu1 %9916, %v7515_v8   ;;  %v6028_v28 = vrot.slane %v6000_v52, %v12279_v6  ;;  %v4679_v34 = vrot.slane %v3034_v22, %v12243_v21  ;;  %v4683_v31 = vrot.slane %v3034_v22, %v12256_v40  ;;  %v4687_v45 = vrot.slane %v3034_v22, %v12259_v38 }
 0x36c   :  { %v6029_v13 = vcombine.low %v6007_v36, %v6014_v44  ;;  %v7418_v19 = vcombine.low %v4659_v30, %v4663_v9  ;;  %v7419_v63 = vcombine.low %v4667_v56, %v4671_v18  ;;  %v1986_v26 = vcvt.f32.s32 %v1985_v41  ;;  %v16214_v56 = vld [vmem:[#allocation107_spill] sm:$0xff] }
 0x36d   :  { %v6030_v11 = vcombine.low %v6021_v54, %v6028_v28  ;;  %v7420_v4 = vcombine.low %v4675_v10, %v4679_v34  ;;  %vm2148_vm13 = vcmp.eq.s32.totalorder %v16052_v60, %v13515_v47  ;;  %v7421_v14 = vcombine.low %v4683_v31, %v4687_v45  ;;  %v2000_v28 = vpop.xlane.xlu1 %1999  ;;  %v16216_v31 = vld [vmem:[#allocation139_spill] sm:$0xff] }
 0x36e   :  { %v6037_v32 = vrot.slane %v6029_v13, %v12279_v6  ;;  %v7428_v8 = vrot.slane %v7418_v19, %v12279_v6  ;;  %v7435_v52 = vrot.slane %v7419_v63, %v12279_v6  ;;  %vm16213_vm12 = vcmp.lt.f32.partialorder %v16212_v16, inf }
 0x36f   :  { %v13560_v36 = vsel %vm16213_vm12, %v12775_v50, 0  ;;  %v6044_v22 = vrot.slane %v6030_v11, %v12279_v6  ;;  %v7442_v30 = vrot.slane %v7420_v4, %v12279_v6  ;;  %v9490_v9 = vsel %vm2148_vm13, 1.0, %v16067_v23 }
 0x370   :  { %vm16215_vm0 = vcmp.lt.f32.partialorder %v16214_v56, inf  ;;  %v7449_v44 = vrot.slane %v7421_v14, %v12279_v6  ;;  %v7450_v54 = vcombine.low %v7428_v8, %v7435_v52  ;;  %9892 = vmatmul.mubr.msk.f32.gmra.mxu1 %vm814_vm1, %v9490_v9  ;;  %vm2149_vm15 = vcmp.eq.s32.totalorder %v16052_v60, %v13521_v62  ;;  %v16217_v56 = vld [vmem:[#allocation67_spill] sm:$0xff] }
 0x371   :  { %v3036_v41 = vsel %vm16215_vm0, %v13286_v7, 0  ;;  %v13573_v50 = vadd.s32 %v13317_v5, %v1971_v12  ;;  %v6045_v18 = vcombine.low %v6037_v32, %v6044_v22  ;;  %v9491_v10 = vsel %vm2149_vm15, 1.0, %v16067_v23 }
 0x372   :  { %v3795_v34 = vrot.slane %v13386_v61, %v12215_v58  ;;  %v13579_v7 = vadd.s32 %v16216_v31, %v1986_v26  ;;  %v7451_v13 = vcombine.low %v7442_v30, %v7449_v44  ;;  %v7458_v45 = vrot.slane %v7450_v54, %v12279_v6  ;;  %9894 = vmatprep.mubr.msk.f32.mxu1 %vm814_vm1, %v9491_v10  ;;  %v2015_v10 = vpop.xlane.xlu0 %2014 }
 0x373   :  { %v3799_v19 = vrot.slane %v13386_v61, %v12221_v49  ;;  %8536 = vperm.xlu0 %9917, %v6045_v18   ;;  %v3803_v5 = vrot.slane %v13386_v61, %v12224_v33  ;;  %v3807_v12 = vrot.slane %v13386_v61, %v12227_v39  ;;  %v3811_v63 = vrot.slane %v13386_v61, %v12235_v3 }
 0x374   :  { %v3815_v26 = vrot.slane %v13386_v61, %v12243_v21  ;;  %v7465_v11 = vrot.slane %v7451_v13, %v12279_v6  ;;  %v2001_v4 = vcvt.f32.s32 %v2000_v28  ;;  %v3819_v32 = vrot.slane %v13386_v61, %v12256_v40 }
 0x375   :  { %v3823_v14 = vrot.slane %v13386_v61, %v12259_v38  ;;  %v6095_v8 = vcombine.low %v3795_v34, %v3799_v19  ;;  %v6096_v52 = vcombine.low %v3803_v5, %v3807_v12  ;;  %v4723_v30 = vrot.slane %v3036_v41, %v12215_v58 }
 0x376   :  { %v6097_v22 = vcombine.low %v3811_v63, %v3815_v26  ;;  %v7466_v9 = vcombine.low %v7458_v45, %v7465_v11  ;;  %v4727_v54 = vrot.slane %v3036_v41, %v12221_v49  ;;  %v4731_v18 = vrot.slane %v3036_v41, %v12224_v33 }
 0x377   :  { %v6098_v44 = vcombine.low %v3819_v32, %v3823_v14  ;;  %v6105_v28 = vrot.slane %v6095_v8, %v12279_v6  ;;  %v6112_v31 = vrot.slane %v6096_v52, %v12279_v6  ;;  %v4735_v61 = vrot.slane %v3036_v41, %v12227_v39 }
 0x378   :  { %v6119_v13 = vrot.slane %v6097_v22, %v12279_v6  ;;  %8623 = vperm.xlu1 %9916, %v7466_v9   ;;  %v4739_v19 = vrot.slane %v3036_v41, %v12235_v3  ;;  %v4743_v45 = vrot.slane %v3036_v41, %v12243_v21  ;;  %v4747_v5 = vrot.slane %v3036_v41, %v12256_v40 }
 0x379   :  { %v6126_v34 = vrot.slane %v6098_v44, %v12279_v6  ;;  %v6127_v12 = vcombine.low %v6105_v28, %v6112_v31  ;;  %v4751_v63 = vrot.slane %v3036_v41, %v12259_v38  ;;  %v7516_v26 = vcombine.low %v4723_v30, %v4727_v54 }
 0x37a   :  { %v7517_v11 = vcombine.low %v4731_v18, %v4735_v61  ;;  %v2016_v32 = vcvt.f32.s32 %v2015_v10  ;;  %v7518_v8 = vcombine.low %v4739_v19, %v4743_v45  ;;  %vm2150_vm5 = vcmp.eq.s32.totalorder %v16052_v60, %v13573_v50  ;;  %v16219_v18 = vld [vmem:[#allocation37_spill] sm:$0xff] }
 0x37b   :  { %v6128_v14 = vcombine.low %v6119_v13, %v6126_v34  ;;  %v6135_v52 = vrot.slane %v6127_v12, %v12279_v6  ;;  %v7519_v22 = vcombine.low %v4747_v5, %v4751_v63  ;;  %v7526_v9 = vrot.slane %v7516_v26, %v12279_v6  ;;  %v2030_v34 = vpop.xlane.xlu1 %2029 }
 0x37c   :  { %v7533_v44 = vrot.slane %v7517_v11, %v12279_v6  ;;  %vm16218_vm13 = vcmp.lt.f32.partialorder %v16217_v56, inf  ;;  %v7540_v30 = vrot.slane %v7518_v8, %v12279_v6  ;;  %v9492_v54 = vsel %vm2150_vm5, 1.0, %v16067_v23 }
 0x37d   :  { %v13618_v28 = vsel %vm16218_vm13, %v12837_v48, 0  ;;  %v6142_v41 = vrot.slane %v6128_v14, %v12279_v6  ;;  %vm16220_vm12 = vcmp.lt.f32.partialorder %v16219_v18, inf  ;;  %v7547_v31 = vrot.slane %v7519_v22, %v12279_v6  ;;  %9895 = vmatmul.mubr.msk.f32.gmra.mxu1 %vm814_vm1, %v9492_v54 }
 0x37e   :  { %v13626_v10 = vsel %vm16220_vm12, %v13515_v47, 0  ;;  %v7548_v13 = vcombine.low %v7526_v9, %v7533_v44  ;;  %vm2151_vm0 = vcmp.eq.s32.totalorder %v16052_v60, %v13579_v7  ;;  %v13633_v48 = vadd.s32 %v13323_v24, %v2001_v4  ;;  %v16221_v47 = vld [vmem:[#allocation108_spill] sm:$0xff]  ;;  %v2045_v24 = vpop.xlane.xlu0 %2044 }
 0x37f   :  { %v6143_v61 = vcombine.low %v6135_v52, %v6142_v41  ;;  %v9493_v19 = vsel %vm2151_vm0, 1.0, %v16067_v23  ;;  %v3859_v45 = vrot.slane %v13444_v17, %v12215_v58  ;;  %v13639_v5 = vadd.s32 %v16221_v47, %v2016_v32 }
 0x380   :  { %v7549_v12 = vcombine.low %v7540_v30, %v7547_v31  ;;  %v7556_v63 = vrot.slane %v7548_v13, %v12279_v6  ;;  %9897 = vmatprep.mubr.msk.f32.mxu1 %vm814_vm1, %v9493_v19  ;;  %v3863_v26 = vrot.slane %v13444_v17, %v12221_v49  ;;  %v3867_v4 = vrot.slane %v13444_v17, %v12224_v33 }
 0x381   :  { %8542 = vperm.xlu0 %9917, %v6143_v61   ;;  %v3871_v11 = vrot.slane %v13444_v17, %v12227_v39  ;;  %v3875_v32 = vrot.slane %v13444_v17, %v12235_v3  ;;  %v3879_v14 = vrot.slane %v13444_v17, %v12243_v21  ;;  %v2031_v52 = vcvt.f32.s32 %v2030_v34 }
 0x382   :  { %v7563_v8 = vrot.slane %v7549_v12, %v12279_v6  ;;  %v3883_v22 = vrot.slane %v13444_v17, %v12256_v40  ;;  %v3887_v9 = vrot.slane %v13444_v17, %v12259_v38  ;;  %v6193_v44 = vcombine.low %v3859_v45, %v3863_v26 }
 0x383   :  { %v6194_v41 = vcombine.low %v3867_v4, %v3871_v11  ;;  %v6195_v30 = vcombine.low %v3875_v32, %v3879_v14  ;;  %vm2152_vm15 = vcmp.eq.s32.totalorder %v16052_v60, %v13633_v48  ;;  %v2046_v31 = vcvt.f32.s32 %v2045_v24  ;;  %v16222_v11 = vld [vmem:[#allocation111_spill] sm:$0xff] }
 0x384   :  { %v7564_v54 = vcombine.low %v7556_v63, %v7563_v8  ;;  %v6196_v13 = vcombine.low %v3883_v22, %v3887_v9  ;;  %v9494_v61 = vsel %vm2152_vm15, 1.0, %v16067_v23  ;;  %v6203_v19 = vrot.slane %v6193_v44, %v12279_v6 }
 0x385   :  { %v6210_v34 = vrot.slane %v6194_v41, %v12279_v6  ;;  %v6217_v47 = vrot.slane %v6195_v30, %v12279_v6  ;;  %9898 = vmatmul.mubr.msk.f32.gmra.mxu1 %vm814_vm1, %v9494_v61  ;;  %vm2153_vm5 = vcmp.eq.s32.totalorder %v16052_v60, %v13639_v5  ;;  %v13668_v17 = vadd.s32 %v13332_v2, %v2031_v52 }
 0x386   :  { %8629 = vperm.xlu1 %9916, %v7564_v54   ;;  %v6224_v45 = vrot.slane %v6196_v13, %v12279_v6  ;;  %v9495_v12 = vsel %vm2153_vm5, 1.0, %v16067_v23  ;;  %v3923_v63 = vrot.slane %v13502_v37, %v12215_v58  ;;  %v3927_v24 = vrot.slane %v13502_v37, %v12221_v49 }
 0x387   :  { %v6225_v26 = vcombine.low %v6203_v19, %v6210_v34  ;;  %9900 = vmatprep.mubr.msk.f32.mxu1 %vm814_vm1, %v9495_v12  ;;  %v3931_v4 = vrot.slane %v13502_v37, %v12224_v33  ;;  %v3935_v2 = vrot.slane %v13502_v37, %v12227_v39  ;;  %v13682_v32 = vadd.s32 %v16222_v11, %v2046_v31 }
 0x388   :  { %v6226_v14 = vcombine.low %v6217_v47, %v6224_v45  ;;  %v3939_v8 = vrot.slane %v13502_v37, %v12235_v3  ;;  %v3943_v52 = vrot.slane %v13502_v37, %v12243_v21  ;;  %v3947_v9 = vrot.slane %v13502_v37, %v12256_v40 }
 0x389   :  { %16223 = vst [vmem:[#allocation102_spill] sm:$0xff] %v13682_v32  ;;  %v6233_v22 = vrot.slane %v6225_v26, %v12279_v6  ;;  %v3951_v44 = vrot.slane %v13502_v37, %v12259_v38  ;;  %v6291_v41 = vcombine.low %v3923_v63, %v3927_v24  ;;  %v6292_v54 = vcombine.low %v3931_v4, %v3935_v2  ;;  %v9815_v26 = vpop.f32.mrf.mxu1 }
 0x38a   :  { %v6240_v30 = vrot.slane %v6226_v14, %v12279_v6  ;;  %v6293_v31 = vcombine.low %v3939_v8, %v3943_v52  ;;  %v5011_v13 = vrot.slane %v13626_v10, %v12215_v58  ;;  %v5015_v34 = vrot.slane %v13626_v10, %v12221_v49  ;;  %v2060_v14 = vpop.xlane.xlu1 %2059 }
 0x38b   :  { %v6294_v61 = vcombine.low %v3947_v9, %v3951_v44  ;;  %v6301_v19 = vrot.slane %v6291_v41, %v12279_v6  ;;  %v5019_v47 = vrot.slane %v13626_v10, %v12224_v33  ;;  %v6308_v37 = vrot.slane %v6292_v54, %v12279_v6 }
 0x38c   :  { %v6241_v45 = vcombine.low %v6233_v22, %v6240_v30  ;;  %v6315_v12 = vrot.slane %v6293_v31, %v12279_v6  ;;  %v5023_v63 = vrot.slane %v13626_v10, %v12227_v39  ;;  %v5027_v4 = vrot.slane %v13626_v10, %v12235_v3 }
 0x38d   :  { %v6322_v24 = vrot.slane %v6294_v61, %v12279_v6  ;;  %v5031_v2 = vrot.slane %v13626_v10, %v12243_v21  ;;  %v5035_v11 = vrot.slane %v13626_v10, %v12256_v40  ;;  %v6323_v8 = vcombine.low %v6301_v19, %v6308_v37  ;;  %v16226_v37 = vld [vmem:[#allocation66_spill] sm:$0xff] }
 0x38e   :  { %8548 = vperm.xlu0 %9917, %v6241_v45   ;;  %v5039_v52 = vrot.slane %v13626_v10, %v12259_v38  ;;  %v7957_v22 = vcombine.low %v5011_v13, %v5015_v34  ;;  %v7958_v9 = vcombine.low %v5019_v47, %v5023_v63  ;;  %vm2154_vm13 = vcmp.eq.s32.totalorder %v16052_v60, %v13668_v17 }
 0x38f   :  { %v6324_v44 = vcombine.low %v6315_v12, %v6322_v24  ;;  %v7959_v41 = vcombine.low %v5027_v4, %v5031_v2  ;;  %v3185_v54 = vsel %vm2865_vm3, %v9815_v26, 0.0  ;;  %v6331_v31 = vrot.slane %v6323_v8, %v12279_v6  ;;  %v16227_v24 = vld [vmem:[#allocation140_spill] sm:$0xff] }
 0x390   :  { %v7960_v61 = vcombine.low %v5035_v11, %v5039_v52  ;;  %v7967_v45 = vrot.slane %v7957_v22, %v12279_v6  ;;  %v7974_v19 = vrot.slane %v7958_v9, %v12279_v6  ;;  %vm16225_vm12 = vcmask 64512  }
 0x391   :  { %3249 = vst.msk [vmem:[%s15354_s3 + $0x8] sm:$0xff] %vm16225_vm12, %v3185_v54  ;;  %v2061_v10 = vcvt.f32.s32 %v2060_v14  ;;  %v6338_v13 = vrot.slane %v6324_v44, %v12279_v6  ;;  %v7981_v34 = vrot.slane %v7959_v41, %v12279_v6  ;;  %v9496_v47 = vsel %vm2154_vm13, 1.0, %v16067_v23  ;;  %v2545_v44 = vpop.f32.mrf.mxu1  ;;  %vm16230_vm5 = vmmov %vm16225_vm12 }
 0x392   :  { %vm15698_vm3 = vcmp.lt.f32.partialorder %v16226_v37, inf  ;;  %v7988_v12 = vrot.slane %v7960_v61, %v12279_v6  ;;  %v7989_v63 = vcombine.low %v7967_v45, %v7974_v19  ;;  %9901 = vmatmul.mubr.msk.f32.gmra.mxu1 %vm814_vm1, %v9496_v47  ;;  %vm2155_vm0 = vcmp.eq.s32.totalorder %v16052_v60, %v13682_v32 }
 0x393   :  { %v3987_v26 = vrot.slane %v13560_v36, %v12215_v58  ;;  %vm16228_vm15 = vcmp.lt.f32.partialorder %v16227_v24, inf  ;;  %v6339_v2 = vcombine.low %v6331_v31, %v6338_v13  ;;  %v9497_v11 = vsel %vm2155_vm0, 1.0, %v16067_v23  ;;  %vm16238_vm0 = vmmov %vm16230_vm5 }
 0x394   :  { %v3037_v4 = vsel %vm16228_vm15, %v13296_v59, 0  ;;  %v3991_v14 = vrot.slane %v13560_v36, %v12221_v49  ;;  %v7990_v8 = vcombine.low %v7981_v34, %v7988_v12  ;;  %v7997_v52 = vrot.slane %v7989_v63, %v12279_v6  ;;  %9903 = vmatprep.mubr.msk.f32.mxu1 %vm814_vm1, %v9497_v11 }
 0x395   :  { %v3995_v22 = vrot.slane %v13560_v36, %v12224_v33  ;;  %v3999_v9 = vrot.slane %v13560_v36, %v12227_v39  ;;  %v13748_v59 = vadd.s32 %v13338_v35, %v2061_v10  ;;  %8554 = vperm.xlu0 %9917, %v6339_v2   ;;  %v4003_v41 = vrot.slane %v13560_v36, %v12235_v3 }
 0x396   :  { %v4007_v30 = vrot.slane %v13560_v36, %v12243_v21  ;;  %v4011_v54 = vrot.slane %v13560_v36, %v12256_v40  ;;  %v8004_v31 = vrot.slane %v7990_v8, %v12279_v6  ;;  %v4015_v61 = vrot.slane %v13560_v36, %v12259_v38 }
 0x397   :  { %v6389_v45 = vcombine.low %v3987_v26, %v3991_v14  ;;  %v6390_v19 = vcombine.low %v3995_v22, %v3999_v9  ;;  %v3184_v10 = vsel %vm2864_vm4, %v2545_v44, 0.0  ;;  %v4755_v34 = vrot.slane %v3037_v4, %v12215_v58 }
 0x398   :  { %v6391_v13 = vcombine.low %v4003_v41, %v4007_v30  ;;  %v4759_v47 = vrot.slane %v3037_v4, %v12221_v49  ;;  %v8005_v12 = vcombine.low %v7997_v52, %v8004_v31  ;;  %v6392_v63 = vcombine.low %v4011_v54, %v4015_v61  ;;  %3248 = vst.msk [vmem:[%s15354_s3] sm:$0xff] %vm16230_vm5, %v3184_v10  ;;  %vm16244_vm5 = vmmov %vm16238_vm0 }
 0x399   :  { %v6399_v2 = vrot.slane %v6389_v45, %v12279_v6  ;;  %v6406_v11 = vrot.slane %v6390_v19, %v12279_v6  ;;  %v4763_v26 = vrot.slane %v3037_v4, %v12224_v33  ;;  %v4767_v14 = vrot.slane %v3037_v4, %v12227_v39 }
 0x39a   :  { %v6413_v36 = vrot.slane %v6391_v13, %v12279_v6  ;;  %v4771_v8 = vrot.slane %v3037_v4, %v12235_v3  ;;  %8656 = vperm.xlu1 %9916, %v8005_v12   ;;  %v6420_v52 = vrot.slane %v6392_v63, %v12279_v6  ;;  %v4775_v9 = vrot.slane %v3037_v4, %v12243_v21 }
 0x39b   :  { %v6421_v22 = vcombine.low %v6399_v2, %v6406_v11  ;;  %v4779_v44 = vrot.slane %v3037_v4, %v12256_v40  ;;  %v4783_v41 = vrot.slane %v3037_v4, %v12259_v38  ;;  %v7565_v30 = vcombine.low %v4755_v34, %v4759_v47  ;;  %v16231_v2 = vld [vmem:[#allocation110_spill] sm:$0xff] }
 0x39c   :  { %v7566_v54 = vcombine.low %v4763_v26, %v4767_v14  ;;  %vm2156_vm4 = vcmp.eq.s32.totalorder %v16052_v60, %v13748_v59  ;;  %v6422_v31 = vcombine.low %v6413_v36, %v6420_v52  ;;  %v7567_v45 = vcombine.low %v4771_v8, %v4775_v9  ;;  %v9818_v8 = vpop.f32.mrf.mxu1 }
 0x39d   :  { %v6429_v61 = vrot.slane %v6421_v22, %v12279_v6  ;;  %v9498_v19 = vsel %vm2156_vm4, 1.0, %v16067_v23  ;;  %v13784_v13 = vsel %vm15698_vm3, %v16226_v37, inf  ;;  %v7568_v35 = vcombine.low %v4779_v44, %v4783_v41  ;;  %v16233_v41 = vld [vmem:[#allocation71_spill] sm:$0xff]  ;;  %vm16248_vm4 = vmmov %vm16238_vm0 }
 0x39e   :  { %v7575_v10 = vrot.slane %v7565_v30, %v12279_v6  ;;  %v7582_v4 = vrot.slane %v7566_v54, %v12279_v6  ;;  %9904 = vmatmul.mubr.msk.f32.gmra.mxu1 %vm814_vm1, %v9498_v19  ;;  %v6436_v34 = vrot.slane %v6422_v31, %v12279_v6  ;;  %v7589_v47 = vrot.slane %v7567_v45, %v12279_v6 }
 0x39f   :  { %v4051_v12 = vrot.slane %v13618_v28, %v12215_v58  ;;  %v4055_v63 = vrot.slane %v13618_v28, %v12221_v49  ;;  %vm16232_vm13 = vcmp.lt.f32.partialorder %v16231_v2, inf  ;;  %v7596_v36 = vrot.slane %v7568_v35, %v12279_v6  ;;  %v16237_v2 = vld [vmem:[#allocation89_spill] sm:$0xff] }
 0x3a0   :  { %v3038_v11 = vsel %vm16232_vm13, %v13303_v20, 0  ;;  %v7597_v26 = vcombine.low %v7575_v10, %v7582_v4  ;;  %v4059_v14 = vrot.slane %v13618_v28, %v12224_v33  ;;  %v6437_v52 = vcombine.low %v6429_v61, %v6436_v34  ;;  %vm16252_vm13 = vmmov %vm16238_vm0 }
 0x3a1   :  { %v4063_v22 = vrot.slane %v13618_v28, %v12227_v39  ;;  %v4067_v9 = vrot.slane %v13618_v28, %v12235_v3  ;;  %v4071_v44 = vrot.slane %v13618_v28, %v12243_v21  ;;  %vm16234_vm12 = vcmp.lt.f32.partialorder %v16233_v41, inf }
 0x3a2   :  { %v13810_v20 = vsel %vm16234_vm12, %v12884_v55, 0  ;;  %v7598_v30 = vcombine.low %v7589_v47, %v7596_v36  ;;  %v7605_v54 = vrot.slane %v7597_v26, %v12279_v6  ;;  %v4075_v31 = vrot.slane %v13618_v28, %v12256_v40  ;;  %8560 = vperm.xlu0 %9917, %v6437_v52   ;;  %v2555_v47 = vpop.f32.mrf.mxu1  ;;  %vm16256_vm12 = vmmov %vm16238_vm0 }
 0x3a3   :  { %v4079_v61 = vrot.slane %v13618_v28, %v12259_v38  ;;  %v6487_v45 = vcombine.low %v4051_v12, %v4055_v63  ;;  %v6488_v19 = vcombine.low %v4059_v14, %v4063_v22  ;;  %v6489_v35 = vcombine.low %v4067_v9, %v4071_v44 }
 0x3a4   :  { %v7612_v10 = vrot.slane %v7598_v30, %v12279_v6  ;;  %v4787_v4 = vrot.slane %v3038_v11, %v12215_v58  ;;  %v4791_v55 = vrot.slane %v3038_v11, %v12221_v49  ;;  %v4795_v34 = vrot.slane %v3038_v11, %v12224_v33  ;;  %v13827_v22 = vpop.f32.mrf.mxu1 }
 0x3a5   :  { %v6490_v36 = vcombine.low %v4075_v31, %v4079_v61  ;;  %v6497_v26 = vrot.slane %v6487_v45, %v12279_v6  ;;  %v6504_v52 = vrot.slane %v6488_v19, %v12279_v6  ;;  %v6511_v18 = vrot.slane %v6489_v35, %v12279_v6 }
 0x3a6   :  { %v7613_v28 = vcombine.low %v7605_v54, %v7612_v10  ;;  %v4799_v12 = vrot.slane %v3038_v11, %v12227_v39  ;;  %v4803_v63 = vrot.slane %v3038_v11, %v12235_v3  ;;  %v4807_v14 = vrot.slane %v3038_v11, %v12243_v21  ;;  %v16236_v10 = vld [vmem:[#allocation86_spill] sm:$0xff] }
 0x3a7   :  { %v6518_v9 = vrot.slane %v6490_v36, %v12279_v6  ;;  %v6519_v44 = vcombine.low %v6497_v26, %v6504_v52  ;;  %v4811_v30 = vrot.slane %v3038_v11, %v12256_v40  ;;  %v4815_v31 = vrot.slane %v3038_v11, %v12259_v38  ;;  %v13855_v26 = vpop.xlane.xlu1 %2089 }
 0x3a8   :  { %8632 = vperm.xlu1 %9916, %v7613_v28   ;;  %v7614_v61 = vcombine.low %v4787_v4, %v4791_v55  ;;  %v7615_v45 = vcombine.low %v4795_v34, %v4799_v12  ;;  %v7616_v19 = vcombine.low %v4803_v63, %v4807_v14  ;;  %v3187_v35 = vsel %vm2867_vm7, %v9818_v8, 0.0 }
 0x3a9   :  { %v13836_v24 = vadd.f32 %v16237_v2, %v16236_v10  ;;  %v6520_v37 = vcombine.low %v6511_v18, %v6518_v9  ;;  %v6527_v32 = vrot.slane %v6519_v44, %v12279_v6  ;;  %v7617_v36 = vcombine.low %v4811_v30, %v4815_v31  ;;  %3251 = vst.msk [vmem:[%s15354_s3 + $0x18] sm:$0xff] %vm16238_vm0, %v3187_v35  ;;  %v13848_v2 = vpop.f32.mrf.mxu1  ;;  %v16239_v18 = vld [vmem:[#allocation75_spill] sm:$0xff] }
 0x3aa   :  { %v7624_v11 = vrot.slane %v7614_v61, %v12279_v6  ;;  %v7631_v4 = vrot.slane %v7615_v45, %v12279_v6  ;;  %v7638_v55 = vrot.slane %v7616_v19, %v12279_v6  ;;  %v4115_v8 = vrot.slane %v13810_v20, %v12215_v58  ;;  %v16241_v30 = vld [vmem:[#allocation143_spill] sm:$0xff] }
 0x3ab   :  { %vm16240_vm7 = vcmp.lt.f32.partialorder %v16239_v18, inf  ;;  %v6534_v52 = vrot.slane %v6520_v37, %v12279_v6  ;;  %v7645_v28 = vrot.slane %v7617_v36, %v12279_v6  ;;  %v4119_v12 = vrot.slane %v13810_v20, %v12221_v49  ;;  %v13867_v44 = vpop.f32.mrf.mxu1 }
 0x3ac   :  { %v13853_v34 = vsel %vm16240_vm7, %v12935_v43, 0  ;;  %v7646_v63 = vcombine.low %v7624_v11, %v7631_v4  ;;  %v4123_v14 = vrot.slane %v13810_v20, %v12224_v33  ;;  %v4127_v9 = vrot.slane %v13810_v20, %v12227_v39 }
 0x3ad   :  { %v4131_v43 = vrot.slane %v13810_v20, %v12235_v3  ;;  %vm16242_vm15 = vcmp.lt.f32.partialorder %v16241_v30, inf  ;;  %v6535_v31 = vcombine.low %v6527_v32, %v6534_v52  ;;  %v7647_v61 = vcombine.low %v7638_v55, %v7645_v28 }
 0x3ae   :  { %v3039_v37 = vsel %vm16242_vm15, %v13347_v15, 0  ;;  %v4135_v45 = vrot.slane %v13810_v20, %v12243_v21  ;;  %v7654_v19 = vrot.slane %v7646_v63, %v12279_v6  ;;  %v4139_v54 = vrot.slane %v13810_v20, %v12256_v40  ;;  %vm16265_vm15 = vmmov %vm16238_vm0 }
 0x3af   :  { %v4143_v35 = vrot.slane %v13810_v20, %v12259_v38  ;;  %v6585_v10 = vcombine.low %v4115_v8, %v4119_v12  ;;  %8566 = vperm.xlu0 %9917, %v6535_v31   ;;  %v7661_v36 = vrot.slane %v7647_v61, %v12279_v6  ;;  %v6586_v11 = vcombine.low %v4123_v14, %v4127_v9  ;;  %v13889_v8 = vpop.f32.mrf.mxu1  ;;  %v9324_v12 = vpop.xlane.xlu1 %9323 }
 0x3b0   :  { %v6587_v4 = vcombine.low %v4131_v43, %v4135_v45  ;;  %v3186_v32 = vsel %vm2866_vm8, %v2555_v47, 0.0  ;;  %v4819_v28 = vrot.slane %v3039_v37, %v12215_v58  ;;  %v4823_v20 = vrot.slane %v3039_v37, %v12221_v49 }
 0x3b1   :  { %v6588_v55 = vcombine.low %v4139_v54, %v4143_v35  ;;  %v6595_v52 = vrot.slane %v6585_v10, %v12279_v6  ;;  %3250 = vst.msk [vmem:[%s15354_s3 + $0x10] sm:$0xff] %vm16244_vm5, %v3186_v32  ;;  %v7662_v63 = vcombine.low %v7654_v19, %v7661_v36  ;;  %v6602_v14 = vrot.slane %v6586_v11, %v12279_v6  ;;  %v13898_v54 = vpop.f32.mrf.mxu1 }
 0x3b2   :  { %v6609_v47 = vrot.slane %v6587_v4, %v12279_v6  ;;  %v4827_v9 = vrot.slane %v3039_v37, %v12224_v33  ;;  %v4831_v31 = vrot.slane %v3039_v37, %v12227_v39  ;;  %v4835_v61 = vrot.slane %v3039_v37, %v12235_v3 }
 0x3b3   :  { %v6616_v43 = vrot.slane %v6588_v55, %v12279_v6  ;;  %v4839_v45 = vrot.slane %v3039_v37, %v12243_v21  ;;  %8635 = vperm.xlu1 %9916, %v7662_v63   ;;  %v6617_v35 = vcombine.low %v6595_v52, %v6602_v14  ;;  %v4843_v19 = vrot.slane %v3039_v37, %v12256_v40  ;;  %v16245_v55 = vld [vmem:[#allocation79_spill] sm:$0xff] }
 0x3b4   :  { %v4847_v10 = vrot.slane %v3039_v37, %v12259_v38  ;;  %v7663_v36 = vcombine.low %v4819_v28, %v4823_v20  ;;  %v9325_v11 = vrot.slane %v9324_v12, 4  ;;  %v7664_v15 = vcombine.low %v4827_v9, %v4831_v31  ;;  %v13912_v20 = vpop.f32.mrf.mxu1 }
 0x3b5   :  { %v6618_v4 = vcombine.low %v6609_v47, %v6616_v43  ;;  %v7665_v32 = vcombine.low %v4835_v61, %v4839_v45  ;;  %vm16246_vm8 = vcmp.lt.f32.partialorder %v16245_v55, inf  ;;  %v6625_v18 = vrot.slane %v6617_v35, %v12279_v6 }
 0x3b6   :  { %v3021_v30 = vsel %vm16246_vm8, %v12975_v1, 0  ;;  %v7666_v41 = vcombine.low %v4843_v19, %v4847_v10  ;;  %v7673_v23 = vrot.slane %v7663_v36, %v12279_v6  ;;  %v7680_v63 = vrot.slane %v7664_v15, %v12279_v6  ;;  %v13923_v35 = vpop.f32.mrf.mxu1  ;;  %vm16271_vm8 = vmmov %vm16238_vm0 }
 0x3b7   :  { %v6632_v52 = vrot.slane %v6618_v4, %v12279_v6  ;;  %v7687_v37 = vrot.slane %v7665_v32, %v12279_v6  ;;  %v4179_v28 = vrot.slane %v13853_v34, %v12215_v58  ;;  %v4183_v1 = vrot.slane %v13853_v34, %v12221_v49 }
 0x3b8   :  { %v7694_v14 = vrot.slane %v7666_v41, %v12279_v6  ;;  %v4187_v47 = vrot.slane %v13853_v34, %v12224_v33  ;;  %v4191_v9 = vrot.slane %v13853_v34, %v12227_v39  ;;  %v9326_v43 = vadd.f32 %v9325_v11, %v9324_v12 }
 0x3b9   :  { %v6633_v31 = vcombine.low %v6625_v18, %v6632_v52  ;;  %v7695_v61 = vcombine.low %v7673_v23, %v7680_v63  ;;  %v4195_v45 = vrot.slane %v13853_v34, %v12235_v3  ;;  %v4199_v41 = vrot.slane %v13853_v34, %v12243_v21 }
 0x3ba   :  { %v7696_v19 = vcombine.low %v7687_v37, %v7694_v14  ;;  %v4203_v10 = vrot.slane %v13853_v34, %v12256_v40  ;;  %v4207_v36 = vrot.slane %v13853_v34, %v12259_v38  ;;  %v6683_v18 = vcombine.low %v4179_v28, %v4183_v1  ;;  %v13948_v14 = vpop.f32.mrf.mxu1 }
 0x3bb   :  { %8572 = vperm.xlu0 %9917, %v6633_v31   ;;  %v7703_v12 = vrot.slane %v7695_v61, %v12279_v6  ;;  %v6684_v23 = vcombine.low %v4187_v47, %v4191_v9  ;;  %v3189_v4 = vsel %vm2869_vm11, %v13827_v22, 0.0  ;;  %v13937_v15 = vadd.f32 %v13836_v24, %v13784_v13 }
 0x3bc   :  { %v7710_v32 = vrot.slane %v7696_v19, %v12279_v6  ;;  %v6685_v52 = vcombine.low %v4195_v45, %v4199_v41  ;;  %v6686_v63 = vcombine.low %v4203_v10, %v4207_v36  ;;  %3253 = vst.msk [vmem:[%s15354_s3 + $0x28] sm:$0xff] %vm16248_vm4, %v3189_v4  ;;  %v6693_v34 = vrot.slane %v6683_v18, %v12279_v6  ;;  %v13955_v19 = vpop.f32.mrf.mxu1  ;;  %v16249_v41 = vld [vmem:[#allocation83_spill] sm:$0xff] }
 0x3bd   :  { %v6700_v37 = vrot.slane %v6684_v23, %v12279_v6  ;;  %v4243_v28 = vrot.slane %v3021_v30, %v12215_v58  ;;  %v4247_v22 = vrot.slane %v3021_v30, %v12221_v49  ;;  %v9327_v24 = vrot.slane %v9326_v43, 2 }
 0x3be   :  { %v7711_v13 = vcombine.low %v7703_v12, %v7710_v32  ;;  %v6707_v1 = vrot.slane %v6685_v52, %v12279_v6  ;;  %v6714_v47 = vrot.slane %v6686_v63, %v12279_v6  ;;  %v4251_v31 = vrot.slane %v3021_v30, %v12224_v33 }
 0x3bf   :  { %v6715_v9 = vcombine.low %v6693_v34, %v6700_v37  ;;  %v4255_v61 = vrot.slane %v3021_v30, %v12227_v39  ;;  %v4259_v45 = vrot.slane %v3021_v30, %v12235_v3  ;;  %vm16250_vm11 = vcmp.lt.f32.partialorder %v16249_v41, inf  ;;  %v16263_v41 = vld [vmem:[#allocation39_spill] sm:$0xff] }
 0x3c0   :  { %v3023_v10 = vsel %vm16250_vm11, %v13013_v46, 0  ;;  %8638 = vperm.xlu1 %9916, %v7711_v13   ;;  %v6716_v36 = vcombine.low %v6707_v1, %v6714_v47  ;;  %v4263_v12 = vrot.slane %v3021_v30, %v12243_v21  ;;  %v4267_v18 = vrot.slane %v3021_v30, %v12256_v40  ;;  %vm16278_vm11 = vmmov %vm16238_vm0 }
 0x3c1   :  { %v6723_v23 = vrot.slane %v6715_v9, %v12279_v6  ;;  %v4271_v11 = vrot.slane %v3021_v30, %v12259_v38  ;;  %v6781_v4 = vcombine.low %v4243_v28, %v4247_v22  ;;  %v6782_v32 = vcombine.low %v4251_v31, %v4255_v61  ;;  %v13974_v30 = vpop.f32.mrf.mxu1 }
 0x3c2   :  { %v6730_v52 = vrot.slane %v6716_v36, %v12279_v6  ;;  %v6783_v63 = vcombine.low %v4259_v45, %v4263_v12  ;;  %v9328_v34 = vadd.f32 %v9327_v24, %v9326_v43  ;;  %v3188_v46 = vsel %vm2868_vm10, %v13848_v2, 0.0 }
 0x3c3   :  { %v6784_v13 = vcombine.low %v4267_v18, %v4271_v11  ;;  %v6791_v1 = vrot.slane %v6781_v4, %v12279_v6  ;;  %v6798_v47 = vrot.slane %v6782_v32, %v12279_v6  ;;  %3252 = vst.msk [vmem:[%s15354_s3 + $0x20] sm:$0xff] %vm16252_vm13, %v3188_v46  ;;  %v4307_v24 = vrot.slane %v3023_v10, %v12215_v58  ;;  %v13980_v61 = vpop.f32.mrf.mxu1  ;;  %v16253_v11 = vld [vmem:[#allocation87_spill] sm:$0xff] }
 0x3c4   :  { %v6731_v28 = vcombine.low %v6723_v23, %v6730_v52  ;;  %v6805_v22 = vrot.slane %v6783_v63, %v12279_v6  ;;  %v9329_v43 = vrot.slane %v9328_v34, 1  ;;  %v4311_v31 = vrot.slane %v3023_v10, %v12221_v49 }
 0x3c5   :  { %v6812_v2 = vrot.slane %v6784_v13, %v12279_v6  ;;  %v6813_v9 = vcombine.low %v6791_v1, %v6798_v47  ;;  %v9126_v45 = vrot.slane %v13937_v15, 4  ;;  %v4315_v12 = vrot.slane %v3023_v10, %v12224_v33 }
 0x3c6   :  { %8578 = vperm.xlu0 %9917, %v6731_v28   ;;  %v9330_v36 = vadd.f32 %v9329_v43, %v9328_v34  ;;  %v4319_v18 = vrot.slane %v3023_v10, %v12227_v39  ;;  %v4323_v23 = vrot.slane %v3023_v10, %v12235_v3  ;;  %vm16254_vm10 = vcmp.lt.f32.partialorder %v16253_v11, inf }
 0x3c7   :  { %v3025_v4 = vsel %vm16254_vm10, %v13054_v53, 0  ;;  %v6814_v32 = vcombine.low %v6805_v22, %v6812_v2  ;;  %v6821_v52 = vrot.slane %v6813_v9, %v12279_v6  ;;  %v4327_v63 = vrot.slane %v3023_v10, %v12243_v21  ;;  %v13997_v53 = vpop.f32.mrf.mxu1 }
 0x3c8   :  { %9909 = vpush %v9330_v36  ;;  %v4331_v37 = vrot.slane %v3023_v10, %v12256_v40  ;;  %v4335_v34 = vrot.slane %v3023_v10, %v12259_v38  ;;  %v6879_v46 = vcombine.low %v4307_v24, %v4311_v31  ;;  %v6880_v13 = vcombine.low %v4315_v12, %v4319_v18 }
 0x3c9   :  { %v6828_v1 = vrot.slane %v6814_v32, %v12279_v6  ;;  %v6881_v47 = vcombine.low %v4323_v23, %v4327_v63  ;;  %v3191_v43 = vsel %vm2871_vm2, %v13867_v44, 0.0  ;;  %v4371_v10 = vrot.slane %v3025_v4, %v12215_v58  ;;  %v14008_v44 = vpop.f32.mrf.mxu1 }
 0x3ca   :  { %v6882_v22 = vcombine.low %v4331_v37, %v4335_v34  ;;  %v6889_v2 = vrot.slane %v6879_v46, %v12279_v6  ;;  %v6896_v9 = vrot.slane %v6880_v13, %v12279_v6  ;;  %3255 = vst.msk [vmem:[%s15354_s3 + $0x38] sm:$0xff] %vm16256_vm12, %v3191_v43  ;;  %v4375_v36 = vrot.slane %v3025_v4, %v12221_v49  ;;  %v16257_v37 = vld [vmem:[#allocation91_spill] sm:$0xff]  ;;  %vm16289_vm12 = vmmov %vm16238_vm0 }
 0x3cb   :  { %v6829_v24 = vcombine.low %v6821_v52, %v6828_v1  ;;  %v6903_v31 = vrot.slane %v6881_v47, %v12279_v6  ;;  %v9127_v12 = vadd.f32 %v9126_v45, %v13937_v15  ;;  %v4379_v32 = vrot.slane %v3025_v4, %v12224_v33 }
 0x3cc   :  { %v6910_v18 = vrot.slane %v6882_v22, %v12279_v6  ;;  %v6911_v23 = vcombine.low %v6889_v2, %v6896_v9  ;;  %v4383_v63 = vrot.slane %v3025_v4, %v12227_v39  ;;  %vm16258_vm2 = vcmp.lt.f32.partialorder %v16257_v37, inf }
 0x3cd   :  { %v3027_v34 = vsel %vm16258_vm2, %v13101_v29, 0  ;;  %8584 = vperm.xlu0 %9917, %v6829_v24   ;;  %v4387_v52 = vrot.slane %v3025_v4, %v12235_v3  ;;  %v4391_v46 = vrot.slane %v3025_v4, %v12243_v21  ;;  %v4395_v13 = vrot.slane %v3025_v4, %v12256_v40  ;;  %v14025_v29 = vpop.f32.mrf.mxu1 }
 0x3ce   :  { %v6912_v1 = vcombine.low %v6903_v31, %v6910_v18  ;;  %v6919_v15 = vrot.slane %v6911_v23, %v12279_v6  ;;  %v4399_v45 = vrot.slane %v3025_v4, %v12259_v38  ;;  %v6977_v47 = vcombine.low %v4371_v10, %v4375_v36 }
 0x3cf   :  { %v6978_v28 = vcombine.low %v4379_v32, %v4383_v63  ;;  %v6979_v43 = vcombine.low %v4387_v52, %v4391_v46  ;;  %v3190_v2 = vsel %vm2870_vm14, %v13889_v8, 0.0  ;;  %v4435_v4 = vrot.slane %v3027_v34, %v12215_v58  ;;  %v14037_v18 = vpop.f32.mrf.mxu1  ;;  %v16260_v46 = vld [vmem:[#allocation11_spill] sm:$0xff] }
 0x3d0   :  { %v6926_v9 = vrot.slane %v6912_v1, %v12279_v6  ;;  %v6980_v24 = vcombine.low %v4395_v13, %v4399_v45  ;;  %v6987_v37 = vrot.slane %v6977_v47, %v12279_v6  ;;  %3254 = vst.msk [vmem:[%s15354_s3 + $0x30] sm:$0xff] %vm16238_vm0, %v3190_v2  ;;  %v4439_v8 = vrot.slane %v3027_v34, %v12221_v49  ;;  %v16261_v13 = vld [vmem:[#allocation88_spill] sm:$0xff] }
 0x3d1   :  { %v6994_v10 = vrot.slane %v6978_v28, %v12279_v6  ;;  %v7001_v31 = vrot.slane %v6979_v43, %v12279_v6  ;;  %v9128_v36 = vrot.slane %v9127_v12, 2  ;;  %v4443_v63 = vrot.slane %v3027_v34, %v12224_v33 }
 0x3d2   :  { %v6927_v23 = vcombine.low %v6919_v15, %v6926_v9  ;;  %v7008_v32 = vrot.slane %v6980_v24, %v12279_v6  ;;  %v4447_v52 = vrot.slane %v3027_v34, %v12227_v39  ;;  %vm16262_vm14 = vcmp.lt.f32.partialorder %v16261_v13, inf }
 0x3d3   :  { %v3026_v1 = vsel %vm16262_vm14, %v16260_v46, 0  ;;  %v7009_v45 = vcombine.low %v6987_v37, %v6994_v10  ;;  %v4451_v47 = vrot.slane %v3027_v34, %v12235_v3  ;;  %v4455_v28 = vrot.slane %v3027_v34, %v12243_v21  ;;  %v14053_v37 = vpop.f32.mrf.mxu1  ;;  %vm16298_vm14 = vmmov %vm16271_vm8 }
 0x3d4   :  { %8590 = vperm.xlu0 %9917, %v6927_v23   ;;  %v7010_v43 = vcombine.low %v7001_v31, %v7008_v32  ;;  %v4459_v22 = vrot.slane %v3027_v34, %v12256_v40  ;;  %v4463_v15 = vrot.slane %v3027_v34, %v12259_v38  ;;  %v7075_v2 = vcombine.low %v4435_v4, %v4439_v8 }
 0x3d5   :  { %v7017_v9 = vrot.slane %v7009_v45, %v12279_v6  ;;  %v7076_v24 = vcombine.low %v4443_v63, %v4447_v52  ;;  %v7077_v11 = vcombine.low %v4451_v47, %v4455_v28  ;;  %vm16264_vm7 = vcmp.lt.f32.partialorder %v16263_v41, inf  ;;  %v14065_v41 = vpop.f32.mrf.mxu1 }
 0x3d6   :  { %v3193_v46 = vsel %vm16264_vm7, %v13898_v54, 0.0  ;;  %v7024_v10 = vrot.slane %v7010_v43, %v12279_v6  ;;  %v7078_v13 = vcombine.low %v4459_v22, %v4463_v15  ;;  %v7085_v31 = vrot.slane %v7075_v2, %v12279_v6  ;;  %v16267_v22 = vld [vmem:[#allocation95_spill] sm:$0xff] }
 0x3d7   :  { %3257 = vst.msk [vmem:[%s15354_s3 + $0x48] sm:$0xff] %vm16265_vm15, %v3193_v46  ;;  %v7092_v34 = vrot.slane %v7076_v24, %v12279_v6  ;;  %v7099_v4 = vrot.slane %v7077_v11, %v12279_v6  ;;  %v4403_v8 = vrot.slane %v3026_v1, %v12215_v58  ;;  %v4407_v54 = vrot.slane %v3026_v1, %v12221_v49  ;;  %v16266_v11 = vld [vmem:[#allocation137_spill] sm:$0xff] }
 0x3d8   :  { %v7025_v23 = vcombine.low %v7017_v9, %v7024_v10  ;;  %v7106_v32 = vrot.slane %v7078_v13, %v12279_v6  ;;  %v4411_v63 = vrot.slane %v3026_v1, %v12224_v33  ;;  %v9129_v52 = vadd.f32 %v9128_v36, %v9127_v12  ;;  %v14078_v10 = vpop.f32.mrf.mxu1 }
 0x3d9   :  { %v7107_v45 = vcombine.low %v7085_v31, %v7092_v34  ;;  %v4415_v47 = vrot.slane %v3026_v1, %v12227_v39  ;;  %v4419_v28 = vrot.slane %v3026_v1, %v12235_v3  ;;  %v4423_v43 = vrot.slane %v3026_v1, %v12243_v21  ;;  %v14080_v31 = vpop.permute.xlu1 %8500 }
 0x3da   :  { %vm16268_vm5 = vcmp.lt.f32.partialorder %v16267_v22, inf  ;;  %8596 = vperm.xlu0 %9917, %v7025_v23   ;;  %v7108_v2 = vcombine.low %v7099_v4, %v7106_v32  ;;  %v4427_v9 = vrot.slane %v3026_v1, %v12256_v40  ;;  %v4431_v13 = vrot.slane %v3026_v1, %v12259_v38  ;;  %16269 = vst [vmem:[#allocation13_spill] sm:$0xff] %v14080_v31 }
 0x3db   :  { %v3029_v15 = vsel %vm16268_vm5, %v16266_v11, 0  ;;  %v7115_v24 = vrot.slane %v7107_v45, %v12279_v6  ;;  %v7026_v12 = vcombine.low %v4403_v8, %v4407_v54  ;;  %v7027_v36 = vcombine.low %v4411_v63, %v4415_v47  ;;  %v14094_v54 = vpop.f32.mrf.mxu1 }
 0x3dc   :  { %v7028_v46 = vcombine.low %v4419_v28, %v4423_v43  ;;  %v7122_v34 = vrot.slane %v7108_v2, %v12279_v6  ;;  %v7029_v55 = vcombine.low %v4427_v9, %v4431_v13  ;;  %v3192_v4 = vsel %vm2872_vm6, %v13912_v20, 0.0  ;;  %v16272_v13 = vld [vmem:[#allocation134_spill] sm:$0xff] }
 0x3dd   :  { %v7036_v23 = vrot.slane %v7026_v12, %v12279_v6  ;;  %v7043_v1 = vrot.slane %v7027_v36, %v12279_v6  ;;  %3256 = vst.msk [vmem:[%s15354_s3 + $0x40] sm:$0xff] %vm16271_vm8, %v3192_v4  ;;  %v4499_v8 = vrot.slane %v3029_v15, %v12215_v58  ;;  %v4503_v20 = vrot.slane %v3029_v15, %v12221_v49  ;;  %v16273_v12 = vld [vmem:[#allocation92_spill] sm:$0xff]  ;;  %v14110_v31 = vpop.permute.xlu1 %8506 }
 0x3de   :  { %v7050_v32 = vrot.slane %v7028_v46, %v12279_v6  ;;  %v7123_v63 = vcombine.low %v7115_v24, %v7122_v34  ;;  %v7057_v45 = vrot.slane %v7029_v55, %v12279_v6  ;;  %v9130_v47 = vrot.slane %v9129_v52, 1  ;;  %16275 = vst [vmem:[#allocation8_spill] sm:$0xff] %v14110_v31 }
 0x3df   :  { %v7058_v28 = vcombine.low %v7036_v23, %v7043_v1  ;;  %v4507_v43 = vrot.slane %v3029_v15, %v12224_v33  ;;  %v4511_v2 = vrot.slane %v3029_v15, %v12227_v39  ;;  %v4515_v9 = vrot.slane %v3029_v15, %v12235_v3  ;;  %v14108_v1 = vpop.f32.mrf.mxu1 }
 0x3e0   :  { %vm16274_vm6 = vcmp.lt.f32.partialorder %v16273_v12, inf  ;;  %8602 = vperm.xlu0 %9917, %v7123_v63   ;;  %v7059_v46 = vcombine.low %v7050_v32, %v7057_v45  ;;  %v4519_v24 = vrot.slane %v3029_v15, %v12243_v21  ;;  %v4523_v55 = vrot.slane %v3029_v15, %v12256_v40  ;;  %v16276_v63 = vld [vmem:[#allocation43_spill] sm:$0xff] }
 0x3e1   :  { %v3028_v36 = vsel %vm16274_vm6, %v16272_v13, 0  ;;  %v7066_v34 = vrot.slane %v7058_v28, %v12279_v6  ;;  %v4527_v11 = vrot.slane %v3029_v15, %v12259_v38  ;;  %v7173_v4 = vcombine.low %v4499_v8, %v4503_v20  ;;  %v14123_v8 = vpop.f32.mrf.mxu1  ;;  %v14143_v31 = vpop.permute.xlu1 %8503 }
 0x3e2   :  { %v7174_v23 = vcombine.low %v4507_v43, %v4511_v2  ;;  %v7073_v22 = vrot.slane %v7059_v46, %v12279_v6  ;;  %v7175_v12 = vcombine.low %v4515_v9, %v4519_v24  ;;  %vm16277_vm4 = vcmp.lt.f32.partialorder %v16276_v63, inf  ;;  %16279 = vst [vmem:[#allocation14_spill] sm:$0xff] %v14123_v8  ;;  %16286 = vst [vmem:[#allocation106_spill] sm:$0xff] %v14143_v31 }
 0x3e3   :  { %v3195_v32 = vsel %vm16277_vm4, %v13923_v35, 0.0  ;;  %v7176_v45 = vcombine.low %v4523_v55, %v4527_v11  ;;  %v7183_v13 = vrot.slane %v7173_v4, %v12279_v6  ;;  %v4467_v15 = vrot.slane %v3028_v36, %v12215_v58  ;;  %v16281_v11 = vld [vmem:[#allocation27_spill] sm:$0xff] }
 0x3e4   :  { %v7190_v28 = vrot.slane %v7174_v23, %v12279_v6  ;;  %3259 = vst.msk [vmem:[%s15354_s3 + $0x58] sm:$0xff] %vm16278_vm11, %v3195_v32  ;;  %v7074_v20 = vcombine.low %v7066_v34, %v7073_v22  ;;  %v7197_v43 = vrot.slane %v7175_v12, %v12279_v6  ;;  %v4471_v2 = vrot.slane %v3028_v36, %v12221_v49  ;;  %v16282_v4 = vld [vmem:[#allocation99_spill] sm:$0xff] }
 0x3e5   :  { %v14127_v35 = vadd.f32 %v9130_v47, %v9129_v52  ;;  %v7204_v9 = vrot.slane %v7176_v45, %v12279_v6  ;;  %v4475_v24 = vrot.slane %v3028_v36, %v12224_v33  ;;  %v4479_v55 = vrot.slane %v3028_v36, %v12227_v39  ;;  %v14140_v45 = vpop.f32.mrf.mxu1  ;;  %v14173_v31 = vpop.permute.xlu1 %8512 }
 0x3e6   :  { %v7205_v46 = vcombine.low %v7183_v13, %v7190_v28  ;;  %vm16283_vm13 = vcmp.lt.f32.partialorder %v16282_v4, inf  ;;  %8599 = vperm.xlu0 %9917, %v7074_v20   ;;  %v4483_v22 = vrot.slane %v3028_v36, %v12235_v3  ;;  %v4487_v12 = vrot.slane %v3028_v36, %v12243_v21  ;;  %16284 = vst [vmem:[#allocation15_spill] sm:$0xff] %v14140_v45  ;;  %v16285_v13 = vld [vmem:[#allocation10_spill] sm:$0xff] }
 0x3e7   :  { %16280 = vst [vmem:[#allocation103_spill] sm:$0xff] %v14127_v35  ;;  %v3031_v23 = vsel %vm16283_vm13, %v16281_v11, 0  ;;  %v4491_v34 = vrot.slane %v3028_v36, %v12256_v40  ;;  %v7206_v52 = vcombine.low %v7197_v43, %v7204_v9  ;;  %v4495_v63 = vrot.slane %v3028_v36, %v12259_v38  ;;  %v16287_v35 = vld [vmem:[#allocation40_spill] sm:$0xff]  ;;  %16295 = vst [vmem:[#allocation109_spill] sm:$0xff] %v14173_v31 }
 0x3e8   :  { %v7213_v47 = vrot.slane %v7205_v46, %v12279_v6  ;;  %v7124_v32 = vcombine.low %v4467_v15, %v4471_v2  ;;  %v2092_v28 = vcvt.f32.s32 %v16285_v13  ;;  %v7125_v11 = vcombine.low %v4475_v24, %v4479_v55  ;;  %v14155_v15 = vpop.f32.mrf.mxu1  ;;  %v16291_v2 = vld [vmem:[#allocation98_spill] sm:$0xff]  ;;  %v16302_v31 = vld [vmem:[#allocation112_spill] sm:$0xff]  ;;  %vm16313_vm13 = vmmov %vm16271_vm8 }
 0x3e9   :  { %v7126_v20 = vcombine.low %v4483_v22, %v4487_v12  ;;  %vm16288_vm10 = vcmp.lt.f32.partialorder %v16287_v35, inf  ;;  %v7220_v8 = vrot.slane %v7206_v52, %v12279_v6  ;;  %v7127_v43 = vcombine.low %v4491_v34, %v4495_v63  ;;  %16290 = vst [vmem:[#allocation16_spill] sm:$0xff] %v14155_v15  ;;  %v16293_v52 = vld [vmem:[#allocation96_spill] sm:$0xff] }
 0x3ea   :  { %v3194_v4 = vsel %vm16288_vm10, %v13948_v14, 0.0  ;;  %v7134_v9 = vrot.slane %v7124_v32, %v12279_v6  ;;  %v4563_v36 = vrot.slane %v3031_v23, %v12215_v58  ;;  %v2077_v46 = vcvt.f32.s32 %v16291_v2 }
 0x3eb   :  { %3258 = vst.msk [vmem:[%s15354_s3 + $0x50] sm:$0xff] %vm16289_vm12, %v3194_v4  ;;  %v7141_v24 = vrot.slane %v7125_v11, %v12279_v6  ;;  %v7148_v14 = vrot.slane %v7126_v20, %v12279_v6  ;;  %v4567_v35 = vrot.slane %v3031_v23, %v12221_v49  ;;  %v7221_v55 = vcombine.low %v7213_v47, %v7220_v8  ;;  %v16292_v4 = vld [vmem:[#allocation12_spill] sm:$0xff] }
 0x3ec   :  { %v7155_v22 = vrot.slane %v7127_v43, %v12279_v6  ;;  %v4571_v12 = vrot.slane %v3031_v23, %v12224_v33  ;;  %v4575_v34 = vrot.slane %v3031_v23, %v12227_v39  ;;  %vm16294_vm2 = vcmp.lt.f32.partialorder %v16293_v52, inf  ;;  %v14171_v43 = vpop.f32.mrf.mxu1 }
 0x3ed   :  { %v3030_v63 = vsel %vm16294_vm2, %v16292_v4, 0  ;;  %v7156_v32 = vcombine.low %v7134_v9, %v7141_v24  ;;  %v4579_v13 = vrot.slane %v3031_v23, %v12235_v3  ;;  %v4583_v11 = vrot.slane %v3031_v23, %v12243_v21  ;;  %8608 = vperm.xlu0 %9917, %v7221_v55   ;;  %v16296_v9 = vld [vmem:[#allocation47_spill] sm:$0xff]  ;;  %vm16319_vm2 = vmmov %vm16271_vm8 }
 0x3ee   :  { %v7157_v20 = vcombine.low %v7148_v14, %v7155_v22  ;;  %v4587_v2 = vrot.slane %v3031_v23, %v12256_v40  ;;  %v4591_v8 = vrot.slane %v3031_v23, %v12259_v38  ;;  %v7271_v47 = vcombine.low %v4563_v36, %v4567_v35  ;;  %v14187_v36 = vpop.f32.mrf.mxu1 }
 0x3ef   :  { %v7164_v15 = vrot.slane %v7156_v32, %v12279_v6  ;;  %v7272_v52 = vcombine.low %v4571_v12, %v4575_v34  ;;  %v7273_v4 = vcombine.low %v4579_v13, %v4583_v11  ;;  %vm16297_vm0 = vcmp.lt.f32.partialorder %v16296_v9, inf }
 0x3f0   :  { %v3197_v24 = vsel %vm16297_vm0, %v13955_v19, 0.0  ;;  %v14179_v45 = vshll.u32 %v2092_v28, 16  ;;  %v7171_v14 = vrot.slane %v7157_v20, %v12279_v6  ;;  %v7274_v55 = vcombine.low %v4587_v2, %v4591_v8  ;;  %v16299_v8 = vld [vmem:[#allocation147_spill] sm:$0xff]  ;;  %v14205_v9 = vpop.f32.mrf.mxu1 }
 0x3f1   :  { %v7281_v23 = vrot.slane %v7271_v47, %v12279_v6  ;;  %3261 = vst.msk [vmem:[%s15354_s3 + $0x68] sm:$0xff] %vm16298_vm14, %v3197_v24  ;;  %v7288_v35 = vrot.slane %v7272_v52, %v12279_v6  ;;  %v7295_v22 = vrot.slane %v7273_v4, %v12279_v6  ;;  %v4531_v19 = vrot.slane %v3030_v63, %v12215_v58  ;;  %v14207_v24 = vpop.permute.xlu1 %8509 }
 0x3f2   :  { %v4535_v28 = vrot.slane %v3030_v63, %v12221_v49  ;;  %v14193_v12 = vshll.u32 %v2077_v46, 16  ;;  %v7172_v34 = vcombine.low %v7164_v15, %v7171_v14  ;;  %v7302_v32 = vrot.slane %v7274_v55, %v12279_v6  ;;  %16301 = vst [vmem:[#allocation17_spill] sm:$0xff] %v14207_v24 }
 0x3f3   :  { %v4539_v13 = vrot.slane %v3030_v63, %v12224_v33  ;;  %v7303_v11 = vcombine.low %v7281_v23, %v7288_v35  ;;  %v4543_v20 = vrot.slane %v3030_v63, %v12227_v39  ;;  %v4547_v2 = vrot.slane %v3030_v63, %v12235_v3 }
 0x3f4   :  { %v4551_v52 = vrot.slane %v3030_v63, %v12243_v21  ;;  %vm16300_vm7 = vcmp.lt.f32.partialorder %v16299_v8, inf  ;;  %8605 = vperm.xlu0 %9917, %v7172_v34   ;;  %v7304_v4 = vcombine.low %v7295_v22, %v7302_v32  ;;  %v4555_v46 = vrot.slane %v3030_v63, %v12256_v40  ;;  %v16304_v34 = vld [vmem:[#allocation44_spill] sm:$0xff]  ;;  %v14217_v32 = vpop.f32.mrf.mxu1 }
 0x3f5   :  { %v3041_v47 = vsel %vm16300_vm7, %v13399_v42, 0  ;;  %v4559_v15 = vrot.slane %v3030_v63, %v12259_v38  ;;  %v7311_v14 = vrot.slane %v7303_v11, %v12279_v6  ;;  %v7222_v55 = vcombine.low %v4531_v19, %v4535_v28  ;;  %v16306_v28 = vld [vmem:[#allocation115_spill] sm:$0xff]  ;;  %vm16327_vm7 = vmmov %vm16319_vm2 }
 0x3f6   :  { %v7223_v23 = vcombine.low %v4539_v13, %v4543_v20  ;;  %v7224_v35 = vcombine.low %v4547_v2, %v4551_v52  ;;  %vm16303_vm15 = vcmp.lt.f32.partialorder %v16302_v31, inf  ;;  %v7318_v42 = vrot.slane %v7304_v4, %v12279_v6 }
 0x3f7   :  { %v3040_v8 = vsel %vm16303_vm15, %v13357_v51, 0  ;;  %v7225_v22 = vcombine.low %v4555_v46, %v4559_v15  ;;  %vm16305_vm5 = vcmp.lt.f32.partialorder %v16304_v34, inf  ;;  %v7232_v24 = vrot.slane %v7222_v55, %v12279_v6 }
 0x3f8   :  { %v3196_v63 = vsel %vm16305_vm5, %v13974_v30, 0.0  ;;  %v7239_v11 = vrot.slane %v7223_v23, %v12279_v6  ;;  %v7246_v19 = vrot.slane %v7224_v35, %v12279_v6  ;;  %v4883_v51 = vrot.slane %v3041_v47, %v12215_v58 }
 0x3f9   :  { %3260 = vst.msk [vmem:[%s15354_s3 + $0x60] sm:$0xff] %vm16271_vm8, %v3196_v63  ;;  %vm16307_vm6 = vcmp.lt.f32.partialorder %v16306_v28, inf  ;;  %v7319_v30 = vcombine.low %v7311_v14, %v7318_v42  ;;  %v7253_v20 = vrot.slane %v7225_v22, %v12279_v6  ;;  %v4887_v2 = vrot.slane %v3041_v47, %v12221_v49  ;;  %v14240_v14 = vpop.f32.mrf.mxu1  ;;  %v14242_v42 = vpop.permute.xlu1 %8518  ;;  %v16309_v63 = vld [vmem:[#allocation51_spill] sm:$0xff]  ;;  %s14801_s8 = spop %9909 }
 0x3fa   :  { %v14230_v13 = vsel %vm16307_vm6, %v13405_v57, 0  ;;  %v7254_v52 = vcombine.low %v7232_v24, %v7239_v11  ;;  %v4891_v4 = vrot.slane %v3041_v47, %v12224_v33  ;;  %v4895_v46 = vrot.slane %v3041_v47, %v12227_v39  ;;  %16308 = vst [vmem:[#allocation114_spill] sm:$0xff] %v14242_v42  ;;  %v16315_v42 = vld [vmem:[#allocation48_spill] sm:$0xff]  ;;  %vm16338_vm6 = vmmov %vm16319_vm2 }
 0x3fb   :  { %v4899_v15 = vrot.slane %v3041_v47, %v12235_v3  ;;  %8614 = vperm.xlu0 %9917, %v7319_v30   ;;  %v7255_v55 = vcombine.low %v7246_v19, %v7253_v20  ;;  %v4903_v23 = vrot.slane %v3041_v47, %v12243_v21  ;;  %v4907_v35 = vrot.slane %v3041_v47, %v12256_v40  ;;  %v16311_v19 = vld [vmem:[#allocation29_spill] sm:$0xff] }
 0x3fc   :  { %v4911_v57 = vrot.slane %v3041_v47, %v12259_v38  ;;  %v7262_v24 = vrot.slane %v7254_v52, %v12279_v6  ;;  %v7761_v22 = vcombine.low %v4883_v51, %v4887_v2  ;;  %v7762_v34 = vcombine.low %v4891_v4, %v4895_v46  ;;  %v14256_v52 = vpop.f32.mrf.mxu1 }
 0x3fd   :  { %vm16310_vm4 = vcmp.lt.f32.partialorder %v16309_v63, inf  ;;  %vm16312_vm11 = vcmp.lt.f32.partialorder %v16311_v19, inf  ;;  %v7269_v20 = vrot.slane %v7255_v55, %v12279_v6  ;;  %v7763_v28 = vcombine.low %v4899_v15, %v4903_v23 }
 0x3fe   :  { %v3199_v11 = vsel %vm16310_vm4, %v13980_v61, 0.0  ;;  %v3043_v30 = vsel %vm16312_vm11, %v13457_v27, 0  ;;  %v7764_v47 = vcombine.low %v4907_v35, %v4911_v57  ;;  %v7771_v51 = vrot.slane %v7761_v22, %v12279_v6 }
 0x3ff   :  { %3263 = vst.msk [vmem:[%s15354_s3 + $0x78] sm:$0xff] %vm16313_vm13, %v3199_v11  ;;  %v7778_v2 = vrot.slane %v7762_v34, %v12279_v6  ;;  %v4851_v61 = vrot.slane %v3040_v8, %v12215_v58  ;;  %v4855_v4 = vrot.slane %v3040_v8, %v12221_v49  ;;  %v7270_v27 = vcombine.low %v7262_v24, %v7269_v20  ;;  %v14270_v20 = vpop.f32.mrf.mxu1 }
 0x400   :  { %v7785_v46 = vrot.slane %v7763_v28, %v12279_v6  ;;  %v7792_v15 = vrot.slane %v7764_v47, %v12279_v6  ;;  %v4859_v55 = vrot.slane %v3040_v8, %v12224_v33  ;;  %v4863_v35 = vrot.slane %v3040_v8, %v12227_v39  ;;  %v14272_v28 = vpop.permute.xlu1 %8515 }
 0x401   :  { %v7793_v23 = vcombine.low %v7771_v51, %v7778_v2  ;;  %v4867_v57 = vrot.slane %v3040_v8, %v12235_v3  ;;  %v4871_v22 = vrot.slane %v3040_v8, %v12243_v21  ;;  %8611 = vperm.xlu0 %9917, %v7270_v27   ;;  %v4875_v63 = vrot.slane %v3040_v8, %v12256_v40  ;;  %v16317_v27 = vld [vmem:[#allocation118_spill] sm:$0xff] }
 0x402   :  { %v7794_v34 = vcombine.low %v7785_v46, %v7792_v15  ;;  %v4879_v11 = vrot.slane %v3040_v8, %v12259_v38  ;;  %v7712_v24 = vcombine.low %v4851_v61, %v4855_v4  ;;  %16314 = vst [vmem:[#allocation18_spill] sm:$0xff] %v14272_v28  ;;  %v7713_v51 = vcombine.low %v4859_v55, %v4863_v35  ;;  %v14289_v15 = vpop.f32.mrf.mxu1  ;;  %v16322_v28 = vld [vmem:[#allocation121_spill] sm:$0xff] }
 0x403   :  { %v7801_v47 = vrot.slane %v7793_v23, %v12279_v6  ;;  %v7714_v2 = vcombine.low %v4867_v57, %v4871_v22  ;;  %vm16316_vm10 = vcmp.lt.f32.partialorder %v16315_v42, inf  ;;  %vm16318_vm12 = vcmp.lt.f32.partialorder %v16317_v27, inf  ;;  %16320 = vst [vmem:[#allocation21_spill] sm:$0xff] %v14289_v15  ;;  %v16325_v15 = vld [vmem:[#allocation55_spill] sm:$0xff] }
 0x404   :  { %v3198_v19 = vsel %vm16316_vm10, %v13997_v53, 0.0  ;;  %v14281_v46 = vsel %vm16318_vm12, %v13463_v25, 0  ;;  %v7808_v8 = vrot.slane %v7794_v34, %v12279_v6  ;;  %v7715_v61 = vcombine.low %v4875_v63, %v4879_v11  ;;  %v14298_v34 = vpop.xlane.xlu0 %2074  ;;  %vm16348_vm10 = vmmov %vm16319_vm2 }
 0x405   :  { %v7722_v4 = vrot.slane %v7712_v24, %v12279_v6  ;;  %3262 = vst.msk [vmem:[%s15354_s3 + $0x70] sm:$0xff] %vm16319_vm2, %v3198_v19  ;;  %v7729_v42 = vrot.slane %v7713_v51, %v12279_v6  ;;  %v7736_v53 = vrot.slane %v7714_v2, %v12279_v6  ;;  %v4947_v55 = vrot.slane %v3043_v30, %v12215_v58 }
 0x406   :  { %v4951_v25 = vrot.slane %v3043_v30, %v12221_v49  ;;  %v7809_v23 = vcombine.low %v7801_v47, %v7808_v8  ;;  %v7743_v35 = vrot.slane %v7715_v61, %v12279_v6  ;;  %v4955_v57 = vrot.slane %v3043_v30, %v12224_v33  ;;  %v14304_v61 = vpop.f32.mrf.mxu1 }
 0x407   :  { %v4959_v22 = vrot.slane %v3043_v30, %v12227_v39  ;;  %v7744_v19 = vcombine.low %v7722_v4, %v7729_v42  ;;  %v4963_v63 = vrot.slane %v3043_v30, %v12235_v3  ;;  %v4967_v11 = vrot.slane %v3043_v30, %v12243_v21  ;;  %16321 = vst [vmem:[#allocation19_spill] sm:$0xff] %v14304_v61  ;;  %v14311_v4 = vpop.permute.xlu1 %8521  ;;  %v16402_v61 = vld [vmem:[#allocation75_spill] sm:$0xff] }
 0x408   :  { %v4971_v24 = vrot.slane %v3043_v30, %v12256_v40  ;;  %8644 = vperm.xlu0 %9917, %v7809_v23   ;;  %v7745_v51 = vcombine.low %v7736_v53, %v7743_v35  ;;  %v4975_v2 = vrot.slane %v3043_v30, %v12259_v38  ;;  %v7859_v47 = vcombine.low %v4947_v55, %v4951_v25  ;;  %v14326_v35 = vpop.f32.mrf.mxu1 }
 0x409   :  { %v7860_v8 = vcombine.low %v4955_v57, %v4959_v22  ;;  %vm16323_vm0 = vcmp.lt.f32.partialorder %v16322_v28, inf  ;;  %16324 = vst [vmem:[#allocation117_spill] sm:$0xff] %v14311_v4  ;;  %v7752_v42 = vrot.slane %v7744_v19, %v12279_v6  ;;  %v7861_v31 = vcombine.low %v4963_v63, %v4967_v11  ;;  %16329 = vst [vmem:[#allocation20_spill] sm:$0xff] %v14326_v35  ;;  %v16334_v35 = vld [vmem:[#allocation52_spill] sm:$0xff] }
 0x40a   :  { %v14309_v27 = vsel %vm16323_vm0, %v13521_v62, 0  ;;  %vm16326_vm14 = vcmp.lt.f32.partialorder %v16325_v15, inf  ;;  %v7759_v30 = vrot.slane %v7745_v51, %v12279_v6  ;;  %v7862_v55 = vcombine.low %v4971_v24, %v4975_v2  ;;  %v14324_v62 = vpop.permute.xlu0 %8497  ;;  %vm16356_vm0 = vmmov %vm16338_vm6 }
 0x40b   :  { %v3201_v53 = vsel %vm16326_vm14, %v14008_v44, 0.0  ;;  %v7869_v25 = vrot.slane %v7859_v47, %v12279_v6  ;;  %v7876_v23 = vrot.slane %v7860_v8, %v12279_v6  ;;  %16328 = vst [vmem:[#allocation70_spill] sm:$0xff] %v14324_v62  ;;  %v7883_v57 = vrot.slane %v7861_v31, %v12279_v6  ;;  %v14354_v4 = vpop.permute.xlu1 %8527 }
 0x40c   :  { %3265 = vst.msk [vmem:[%s15354_s3 + $0x88] sm:$0xff] %vm16327_vm7, %v3201_v53  ;;  %v4915_v44 = vrot.slane %v14230_v13, %v12215_v58  ;;  %v4919_v15 = vrot.slane %v14230_v13, %v12221_v49  ;;  %v4923_v22 = vrot.slane %v14230_v13, %v12224_v33  ;;  %v7760_v19 = vcombine.low %v7752_v42, %v7759_v30 }
 0x40d   :  { %v7890_v63 = vrot.slane %v7862_v55, %v12279_v6  ;;  %v7891_v11 = vcombine.low %v7869_v25, %v7876_v23  ;;  %v4927_v24 = vrot.slane %v14230_v13, %v12227_v39  ;;  %v4931_v51 = vrot.slane %v14230_v13, %v12235_v3  ;;  %v14347_v55 = vpop.f32.mrf.mxu1  ;;  %v16331_v25 = vld [vmem:[#allocation42_spill] sm:$0xff]  ;;  %16333 = vst [vmem:[#allocation146_spill] sm:$0xff] %v14354_v4 }
 0x40e   :  { %v4935_v31 = vrot.slane %v14230_v13, %v12243_v21  ;;  %v4939_v2 = vrot.slane %v14230_v13, %v12256_v40  ;;  %v4943_v47 = vrot.slane %v14230_v13, %v12259_v38  ;;  %8641 = vperm.xlu0 %9917, %v7760_v19   ;;  %v7810_v53 = vcombine.low %v4915_v44, %v4919_v15  ;;  %v14371_v19 = vpop.permute.xlu0 %8524 }
 0x40f   :  { %v7892_v8 = vcombine.low %v7883_v57, %v7890_v63  ;;  %v7899_v42 = vrot.slane %v7891_v11, %v12279_v6  ;;  %v7811_v30 = vcombine.low %v4923_v22, %v4927_v24  ;;  %16330 = vst [vmem:[#allocation120_spill] sm:$0xff] %v14347_v55  ;;  %vm16332_vm15 = vcmp.lt.f32.partialorder %v16331_v25, inf  ;;  %v16336_v57 = vld [vmem:[#allocation124_spill] sm:$0xff]  ;;  %16339 = vst [vmem:[#allocation34_spill] sm:$0xff] %v14371_v19 }
 0x410   :  { %v14352_v23 = vsel %vm16332_vm15, %v13573_v50, 0  ;;  %v7812_v62 = vcombine.low %v4931_v51, %v4935_v31  ;;  %v7813_v28 = vcombine.low %v4939_v2, %v4943_v47  ;;  %vm16335_vm5 = vcmp.lt.f32.partialorder %v16334_v35, inf  ;;  %v14373_v35 = vpop.f32.mrf.mxu1  ;;  %vm16363_vm15 = vmmov %vm16356_vm0  ;;  %v16401_v55 = vld [vmem:[#allocation16_spill] sm:$0xff] }
 0x411   :  { %v3200_v13 = vsel %vm16335_vm5, %v14025_v29, 0.0  ;;  %vm16337_vm8 = vcmp.lt.f32.partialorder %v16336_v57, inf  ;;  %v7906_v15 = vrot.slane %v7892_v8, %v12279_v6  ;;  %v7820_v22 = vrot.slane %v7810_v53, %v12279_v6  ;;  %16340 = vst [vmem:[#allocation73_spill] sm:$0xff] %v14373_v35  ;;  %v16341_v29 = vld [vmem:[#allocation148_spill] sm:$0xff] }
 0x412   :  { %v14362_v44 = vsel %vm16337_vm8, %v13579_v7, 0  ;;  %v7827_v50 = vrot.slane %v7811_v30, %v12279_v6  ;;  %3264 = vst.msk [vmem:[%s15354_s3 + $0x80] sm:$0xff] %vm16338_vm6, %v3200_v13  ;;  %vm16342_vm4 = vcmp.lt.f32.partialorder %v16341_v29, inf  ;;  %v7834_v63 = vrot.slane %v7812_v62, %v12279_v6  ;;  %vm16368_vm8 = vmmov %vm16356_vm0 }
 0x413   :  { %v14378_v7 = vsel %vm16342_vm4, %v13633_v48, 0  ;;  %v7841_v11 = vrot.slane %v7813_v28, %v12279_v6  ;;  %v4979_v24 = vrot.slane %v14281_v46, %v12215_v58  ;;  %v7907_v51 = vcombine.low %v7899_v42, %v7906_v15  ;;  %v14399_v15 = vpop.f32.mrf.mxu1  ;;  %vm16372_vm4 = vmmov %vm16356_vm0 }
 0x414   :  { %v7842_v31 = vcombine.low %v7820_v22, %v7827_v50  ;;  %v4983_v2 = vrot.slane %v14281_v46, %v12221_v49  ;;  %v4987_v47 = vrot.slane %v14281_v46, %v12224_v33  ;;  %v4991_v48 = vrot.slane %v14281_v46, %v12227_v39  ;;  %16343 = vst [vmem:[#allocation74_spill] sm:$0xff] %v14399_v15  ;;  %v14401_v22 = vpop.permute.xlu1 %8533 }
 0x415   :  { %v7843_v8 = vcombine.low %v7834_v63, %v7841_v11  ;;  %v4995_v62 = vrot.slane %v14281_v46, %v12235_v3  ;;  %v4999_v28 = vrot.slane %v14281_v46, %v12243_v21  ;;  %8650 = vperm.xlu0 %9917, %v7907_v51   ;;  %v5003_v53 = vrot.slane %v14281_v46, %v12256_v40 }
 0x416   :  { %v7850_v42 = vrot.slane %v7842_v31, %v12279_v6  ;;  %v5007_v30 = vrot.slane %v14281_v46, %v12259_v38  ;;  %v7908_v13 = vcombine.low %v4979_v24, %v4983_v2  ;;  %16344 = vst [vmem:[#allocation45_spill] sm:$0xff] %v14401_v22  ;;  %v7909_v63 = vcombine.low %v4987_v47, %v4991_v48  ;;  %v16346_v31 = vld [vmem:[#allocation127_spill] sm:$0xff]  ;;  %v14419_v2 = vpop.permute.xlu0 %8530 }
 0x417   :  { %v7857_v50 = vrot.slane %v7843_v8, %v12279_v6  ;;  %v7910_v11 = vcombine.low %v4995_v62, %v4999_v28  ;;  %vm16345_vm11 = vcmp.lt.f32.partialorder %v16207_v0, inf  ;;  %vm16347_vm13 = vcmp.lt.f32.partialorder %v16346_v31, inf  ;;  %16349 = vst [vmem:[#allocation123_spill] sm:$0xff] %v14419_v2  ;;  %v16353_v2 = vld [vmem:[#allocation54_spill] sm:$0xff] }
 0x418   :  { %v3203_v51 = vsel %vm16345_vm11, %v14037_v18, 0.0  ;;  %v14410_v4 = vsel %vm16347_vm13, %v13639_v5, 0  ;;  %v7911_v19 = vcombine.low %v5003_v53, %v5007_v30  ;;  %v7918_v46 = vrot.slane %v7908_v13, %v12279_v6  ;;  %v14432_v53 = vpop.f32.mrf.mxu1  ;;  %vm16376_vm13 = vmmov %vm16356_vm0 }
 0x419   :  { %3267 = vst.msk [vmem:[%s15354_s3 + $0x98] sm:$0xff] %vm16348_vm10, %v3203_v51  ;;  %v5075_v24 = vrot.slane %v14352_v23, %v12215_v58  ;;  %v7858_v0 = vcombine.low %v7850_v42, %v7857_v50  ;;  %v7925_v18 = vrot.slane %v7909_v63, %v12279_v6  ;;  %v7932_v47 = vrot.slane %v7910_v11, %v12279_v6  ;;  %v16351_v51 = vld [vmem:[#allocation56_spill] sm:$0xff] }
 0x41a   :  { %v5079_v5 = vrot.slane %v14352_v23, %v12221_v49  ;;  %v7939_v8 = vrot.slane %v7911_v19, %v12279_v6  ;;  %v5083_v48 = vrot.slane %v14352_v23, %v12224_v33  ;;  %v5087_v62 = vrot.slane %v14352_v23, %v12227_v39  ;;  %16350 = vst [vmem:[#allocation30_spill] sm:$0xff] %v14432_v53 }
 0x41b   :  { %v5091_v28 = vrot.slane %v14352_v23, %v12235_v3  ;;  %8647 = vperm.xlu0 %9917, %v7858_v0   ;;  %v7940_v42 = vcombine.low %v7918_v46, %v7925_v18  ;;  %v5095_v30 = vrot.slane %v14352_v23, %v12243_v21  ;;  %v5099_v13 = vrot.slane %v14352_v23, %v12256_v40  ;;  %v14448_v0 = vpop.permute.xlu1 %8539 }
 0x41c   :  { %v5103_v19 = vrot.slane %v14352_v23, %v12259_v38  ;;  %v7941_v50 = vcombine.low %v7932_v47, %v7939_v8  ;;  %v8055_v63 = vcombine.low %v5075_v24, %v5079_v5  ;;  %v8056_v11 = vcombine.low %v5083_v48, %v5087_v62  ;;  %16355 = vst [vmem:[#allocation126_spill] sm:$0xff] %v14448_v0  ;;  %v14460_v47 = vpop.permute.xlu0 %8536  ;;  %v14462_v5 = vpop.f32.mrf.mxu1 }
 0x41d   :  { %vm16352_vm12 = vcmp.lt.f32.partialorder %v16351_v51, inf  ;;  %vm16354_vm2 = vcmp.lt.f32.partialorder %v16353_v2, inf  ;;  %v7948_v18 = vrot.slane %v7940_v42, %v12279_v6  ;;  %v8057_v31 = vcombine.low %v5091_v28, %v5095_v30  ;;  %16357 = vst [vmem:[#allocation49_spill] sm:$0xff] %v14460_v47  ;;  %16358 = vst [vmem:[#allocation62_spill] sm:$0xff] %v14462_v5 }
 0x41e   :  { %v3202_v22 = vsel %vm16352_vm12, %v14053_v37, 0.0  ;;  %v14446_v46 = vsel %vm16354_vm2, %v13668_v17, 0  ;;  %v8058_v57 = vcombine.low %v5099_v13, %v5103_v19  ;;  %v7955_v23 = vrot.slane %v7941_v50, %v12279_v6 }
 0x41f   :  { %3266 = vst.msk [vmem:[%s15354_s3 + $0x90] sm:$0xff] %vm16356_vm0, %v3202_v22  ;;  %v8065_v37 = vrot.slane %v8055_v63, %v12279_v6  ;;  %v8072_v24 = vrot.slane %v8056_v11, %v12279_v6  ;;  %v5043_v17 = vrot.slane %v14309_v27, %v12215_v58  ;;  %v8079_v8 = vrot.slane %v8057_v31, %v12279_v6 }
 0x420   :  { %v8086_v48 = vrot.slane %v8058_v57, %v12279_v6  ;;  %v5047_v22 = vrot.slane %v14309_v27, %v12221_v49  ;;  %v5051_v62 = vrot.slane %v14309_v27, %v12224_v33  ;;  %v7956_v28 = vcombine.low %v7948_v18, %v7955_v23  ;;  %v14484_v23 = vpop.f32.mrf.mxu1 }
 0x421   :  { %v8087_v42 = vcombine.low %v8065_v37, %v8072_v24  ;;  %v5055_v30 = vrot.slane %v14309_v27, %v12227_v39  ;;  %v5059_v13 = vrot.slane %v14309_v27, %v12235_v3  ;;  %v5063_v31 = vrot.slane %v14309_v27, %v12243_v21  ;;  %16360 = vst [vmem:[#allocation38_spill] sm:$0xff] %v14484_v23  ;;  %v16361_v37 = vld [vmem:[#allocation149_spill] sm:$0xff] }
 0x422   :  { %v8088_v19 = vcombine.low %v8079_v8, %v8086_v48  ;;  %v5067_v57 = vrot.slane %v14309_v27, %v12256_v40  ;;  %v5071_v50 = vrot.slane %v14309_v27, %v12259_v38  ;;  %8653 = vperm.xlu0 %9917, %v7956_v28   ;;  %v8006_v11 = vcombine.low %v5043_v17, %v5047_v22  ;;  %v14491_v8 = vpop.permute.xlu1 %8545  ;;  %v14504_v22 = vpop.permute.xlu0 %8542 }
 0x423   :  { %v8095_v63 = vrot.slane %v8087_v42, %v12279_v6  ;;  %v8007_v51 = vcombine.low %v5051_v62, %v5055_v30  ;;  %vm16359_vm14 = vcmp.lt.f32.partialorder %v16212_v16, inf  ;;  %vm16362_vm7 = vcmp.lt.f32.partialorder %v16361_v37, inf  ;;  %16364 = vst [vmem:[#allocation129_spill] sm:$0xff] %v14504_v22 }
 0x424   :  { %v3205_v18 = vsel %vm16359_vm14, %v14065_v41, 0.0  ;;  %v14489_v24 = vsel %vm16362_vm7, %v13748_v59, 0  ;;  %v8102_v27 = vrot.slane %v8088_v19, %v12279_v6  ;;  %v8008_v48 = vcombine.low %v5059_v13, %v5063_v31  ;;  %vm16393_vm7 = vmmov %vm16356_vm0 }
 0x425   :  { %v8009_v28 = vcombine.low %v5067_v57, %v5071_v50  ;;  %3269 = vst.msk [vmem:[%s15354_s3 + $0xa8] sm:$0xff] %vm16363_vm15, %v3205_v18  ;;  %v8016_v16 = vrot.slane %v8006_v11, %v12279_v6  ;;  %v8023_v41 = vrot.slane %v8007_v51, %v12279_v6  ;;  %v5139_v17 = vrot.slane %v14378_v7, %v12215_v58  ;;  %v14516_v11 = vpop.f32.mrf.mxu1 }
 0x426   :  { %v5143_v59 = vrot.slane %v14378_v7, %v12221_v49  ;;  %v8103_v62 = vcombine.low %v8095_v63, %v8102_v27  ;;  %v8030_v42 = vrot.slane %v8008_v48, %v12279_v6  ;;  %v5147_v13 = vrot.slane %v14378_v7, %v12224_v33  ;;  %16365 = vst [vmem:[#allocation61_spill] sm:$0xff] %v14516_v11  ;;  %v14527_v47 = vpop.permute.xlu1 %8551  ;;  %v16391_v11 = vld [vmem:[#allocation68_spill] sm:$0xff] }
 0x427   :  { %v8037_v30 = vrot.slane %v8009_v28, %v12279_v6  ;;  %v8038_v19 = vcombine.low %v8016_v16, %v8023_v41  ;;  %v5151_v31 = vrot.slane %v14378_v7, %v12227_v39  ;;  %v5155_v57 = vrot.slane %v14378_v7, %v12235_v3  ;;  %v16366_v41 = vld [vmem:[#allocation60_spill] sm:$0xff] }
 0x428   :  { %v5159_v50 = vrot.slane %v14378_v7, %v12243_v21  ;;  %8662 = vperm.xlu0 %9917, %v8103_v62   ;;  %v5163_v51 = vrot.slane %v14378_v7, %v12256_v40  ;;  %v5167_v18 = vrot.slane %v14378_v7, %v12259_v38  ;;  %v8153_v27 = vcombine.low %v5139_v17, %v5143_v59  ;;  %v14541_v59 = vpop.permute.xlu0 %8548 }
 0x429   :  { %v8039_v63 = vcombine.low %v8030_v42, %v8037_v30  ;;  %v8046_v48 = vrot.slane %v8038_v19, %v12279_v6  ;;  %v8154_v28 = vcombine.low %v5147_v13, %v5151_v31  ;;  %vm16367_vm5 = vcmp.lt.f32.partialorder %v16366_v41, inf  ;;  %v14543_v13 = vpop.f32.mrf.mxu1 }
 0x42a   :  { %v8155_v16 = vcombine.low %v5155_v57, %v5159_v50  ;;  %v3204_v0 = vsel %vm16367_vm5, %v14078_v10, 0.0  ;;  %v2091_v22 = vcvt.f32.s32 %v13855_v26  ;;  %v8156_v42 = vcombine.low %v5163_v51, %v5167_v18  ;;  %16369 = vst [vmem:[#allocation132_spill] sm:$0xff] %v14543_v13  ;;  %v14565_v37 = vpop.permute.xlu1 %8557  ;;  %v16390_v13 = vld [vmem:[#allocation15_spill] sm:$0xff] }
 0x42b   :  { %v8053_v62 = vrot.slane %v8039_v63, %v12279_v6  ;;  %v8163_v30 = vrot.slane %v8153_v27, %v12279_v6  ;;  %3268 = vst.msk [vmem:[%s15354_s3 + $0xa0] sm:$0xff] %vm16368_vm8, %v3204_v0  ;;  %v8170_v7 = vrot.slane %v8154_v28, %v12279_v6  ;;  %v5107_v10 = vrot.slane %v14362_v44, %v12215_v58  ;;  %vm16404_vm8 = vmmov %vm16356_vm0 }
 0x42c   :  { %v8177_v17 = vrot.slane %v8155_v16, %v12279_v6  ;;  %v5111_v26 = vrot.slane %v14362_v44, %v12221_v49  ;;  %v8184_v31 = vrot.slane %v8156_v42, %v12279_v6  ;;  %v5115_v0 = vrot.slane %v14362_v44, %v12224_v33 }
 0x42d   :  { %v8054_v19 = vcombine.low %v8046_v48, %v8053_v62  ;;  %v5119_v57 = vrot.slane %v14362_v44, %v12227_v39  ;;  %v8185_v50 = vcombine.low %v8163_v30, %v8170_v7  ;;  %v5123_v63 = vrot.slane %v14362_v44, %v12235_v3  ;;  %v14563_v7 = vpop.f32.mrf.mxu1 }
 0x42e   :  { %v5127_v51 = vrot.slane %v14362_v44, %v12243_v21  ;;  %v5131_v18 = vrot.slane %v14362_v44, %v12256_v40  ;;  %v8186_v27 = vcombine.low %v8177_v17, %v8184_v31  ;;  %v5135_v48 = vrot.slane %v14362_v44, %v12259_v38  ;;  %16371 = vst [vmem:[#allocation50_spill] sm:$0xff] %v14563_v7  ;;  %v14582_v31 = vpop.permute.xlu0 %8554 }
 0x42f   :  { %8659 = vperm.xlu0 %9917, %v8054_v19   ;;  %v8104_v28 = vcombine.low %v5107_v10, %v5111_v26  ;;  %v8105_v16 = vcombine.low %v5115_v0, %v5119_v57  ;;  %v8193_v41 = vrot.slane %v8185_v50, %v12279_v6  ;;  %vm16370_vm6 = vcmp.lt.f32.partialorder %v16217_v56, inf }
 0x430   :  { %v8106_v62 = vcombine.low %v5123_v63, %v5127_v51  ;;  %v3207_v42 = vsel %vm16370_vm6, %v14094_v54, 0.0  ;;  %v2076_v30 = vcvt.f32.s32 %v14298_v34  ;;  %v8200_v17 = vrot.slane %v8186_v27, %v12279_v6  ;;  %v14596_v27 = vpop.f32.mrf.mxu1 }
 0x431   :  { %v8107_v19 = vcombine.low %v5131_v18, %v5135_v48  ;;  %v8114_v44 = vrot.slane %v8104_v28, %v12279_v6  ;;  %v8121_v10 = vrot.slane %v8105_v16, %v12279_v6  ;;  %3271 = vst.msk [vmem:[%s15354_s3 + $0xb8] sm:$0xff] %vm16372_vm4, %v3207_v42  ;;  %v14575_v56 = vadd.s32 %v14179_v45, %v2091_v22  ;;  %vm16409_vm4 = vmmov %vm16356_vm0 }
 0x432   :  { %v8128_v54 = vrot.slane %v8106_v62, %v12279_v6  ;;  %v5203_v34 = vrot.slane %v14446_v46, %v12215_v58  ;;  %v5207_v26 = vrot.slane %v14446_v46, %v12221_v49  ;;  %v8201_v0 = vcombine.low %v8193_v41, %v8200_v17  ;;  %16373 = vst [vmem:[#allocation58_spill] sm:$0xff] %v14596_v27 }
 0x433   :  { %v8135_v57 = vrot.slane %v8107_v19, %v12279_v6  ;;  %v8136_v50 = vcombine.low %v8114_v44, %v8121_v10  ;;  %v5211_v63 = vrot.slane %v14446_v46, %v12224_v33  ;;  %v14588_v45 = vadd.s32 %v14193_v12, %v2076_v30  ;;  %v16374_v30 = vld [vmem:[#allocation64_spill] sm:$0xff]  ;;  %v14606_v19 = vpop.permute.xlu1 %8563 }
 0x434   :  { %v5215_v22 = vrot.slane %v14446_v46, %v12227_v39  ;;  %v5219_v51 = vrot.slane %v14446_v46, %v12235_v3  ;;  %v5223_v18 = vrot.slane %v14446_v46, %v12243_v21  ;;  %8668 = vperm.xlu0 %9917, %v8201_v0   ;;  %v5227_v16 = vrot.slane %v14446_v46, %v12256_v40 }
 0x435   :  { %v8137_v48 = vcombine.low %v8128_v54, %v8135_v57  ;;  %v8144_v28 = vrot.slane %v8136_v50, %v12279_v6  ;;  %v5231_v12 = vrot.slane %v14446_v46, %v12259_v38  ;;  %v8251_v41 = vcombine.low %v5203_v34, %v5207_v26  ;;  %v14622_v57 = vpop.permute.xlu0 %8560  ;;  %v14624_v50 = vpop.f32.mrf.mxu1 }
 0x436   :  { %v8252_v62 = vcombine.low %v5211_v63, %v5215_v22  ;;  %v8253_v42 = vcombine.low %v5219_v51, %v5223_v18  ;;  %vm16375_vm11 = vcmp.lt.f32.partialorder %v16374_v30, inf  ;;  %v5171_v46 = vrot.slane %v14410_v4, %v12215_v58  ;;  %16377 = vst [vmem:[#allocation135_spill] sm:$0xff] %v14624_v50 }
 0x437   :  { %v3206_v17 = vsel %vm16375_vm11, %v14108_v1, 0.0  ;;  %v8151_v44 = vrot.slane %v8137_v48, %v12279_v6  ;;  %v8254_v10 = vcombine.low %v5227_v16, %v5231_v12  ;;  %v5175_v54 = vrot.slane %v14410_v4, %v12221_v49  ;;  %v14643_v2 = vpop.permute.xlu1 %8569 }
 0x438   :  { %3270 = vst.msk [vmem:[%s15354_s3 + $0xb0] sm:$0xff] %vm16376_vm13, %v3206_v17  ;;  %v8261_v34 = vrot.slane %v8251_v41, %v12279_v6  ;;  %v8268_v1 = vrot.slane %v8252_v62, %v12279_v6  ;;  %v8275_v26 = vrot.slane %v8253_v42, %v12279_v6  ;;  %v5179_v0 = vrot.slane %v14410_v4, %v12224_v33 }
 0x439   :  { %v8152_v63 = vcombine.low %v8144_v28, %v8151_v44  ;;  %v8282_v22 = vrot.slane %v8254_v10, %v12279_v6  ;;  %v5183_v51 = vrot.slane %v14410_v4, %v12227_v39  ;;  %v5187_v18 = vrot.slane %v14410_v4, %v12235_v3 }
 0x43a   :  { %v8283_v48 = vcombine.low %v8261_v34, %v8268_v1  ;;  %v5191_v16 = vrot.slane %v14410_v4, %v12243_v21  ;;  %v5195_v12 = vrot.slane %v14410_v4, %v12256_v40  ;;  %v5199_v41 = vrot.slane %v14410_v4, %v12259_v38  ;;  %v14641_v1 = vpop.f32.mrf.mxu1 }
 0x43b   :  { %8665 = vperm.xlu0 %9917, %v8152_v63   ;;  %v8284_v28 = vcombine.low %v8275_v26, %v8282_v22  ;;  %v8202_v62 = vcombine.low %v5171_v46, %v5175_v54  ;;  %v8203_v42 = vcombine.low %v5179_v0, %v5183_v51  ;;  %vm2157_vm10 = vcmp.eq.s32.totalorder %v16052_v60, %v14588_v45  ;;  %v16380_v54 = vld [vmem:[#allocation14_spill] sm:$0xff]  ;;  %v16381_v26 = vld [vmem:[#allocation71_spill] sm:$0xff] }
 0x43c   :  { %v8291_v30 = vrot.slane %v8283_v48, %v12279_v6  ;;  %v8204_v17 = vcombine.low %v5187_v18, %v5191_v16  ;;  %v8205_v44 = vcombine.low %v5195_v12, %v5199_v41  ;;  %v16378_v10 = vmov 0.0   ;;  %16379 = vst [vmem:[#allocation138_spill] sm:$0xff] %v14641_v1  ;;  %v16383_v63 = vld [vmem:[#allocation102_spill] sm:$0xff]  ;;  %v14665_v16 = vpop.permute.xlu0 %8566 }
 0x43d   :  { %v9499_v34 = vsel %vm2157_vm10, 1.0, %v16378_v10  ;;  %v8298_v29 = vrot.slane %v8284_v28, %v12279_v6  ;;  %v8212_v4 = vrot.slane %v8202_v62, %v12279_v6  ;;  %v8219_v46 = vrot.slane %v8203_v42, %v12279_v6  ;;  %v16384_v22 = vld [vmem:[#allocation130_spill] sm:$0xff] }
 0x43e   :  { %9906 = vmatprep.mubr.msk.f32.mxu1 %vm814_vm1, %v9499_v34  ;;  %vm16382_vm12 = vcmp.lt.f32.partialorder %v16381_v26, inf  ;;  %vm16385_vm2 = vcmp.lt.f32.partialorder %v16384_v22, inf  ;;  %v8226_v18 = vrot.slane %v8204_v17, %v12279_v6  ;;  %v8233_v48 = vrot.slane %v8205_v44, %v12279_v6  ;;  %v14678_v26 = vpop.f32.mrf.mxu1 }
 0x43f   :  { %v3209_v0 = vsel %vm16382_vm12, %v16380_v54, 0.0  ;;  %v14655_v51 = vsel %vm16385_vm2, %v16383_v63, 0  ;;  %vm2158_vm14 = vcmp.eq.s32.totalorder %v16052_v60, %v14575_v56  ;;  %v14670_v41 = vsel %vm15698_vm3, %v14575_v56, 0  ;;  %16387 = vst [vmem:[#allocation105_spill] sm:$0xff] %v14678_v26 }
 0x440   :  { %3273 = vst.msk [vmem:[%s15354_s3 + $0xc8] sm:$0xff] %vm16356_vm0, %v3209_v0  ;;  %v8299_v28 = vcombine.low %v8291_v30, %v8298_v29  ;;  %v8234_v62 = vcombine.low %v8212_v4, %v8219_v46  ;;  %v9500_v42 = vsel %vm2158_vm14, 1.0, %v16378_v10  ;;  %v8692_v17 = vadd.s32 4294967288, %v16052_v60  ;;  %v14702_v26 = vpop.permute.xlu0 %8572  ;;  %v14704_v1 = vpop.f32.mrf.mxu1  ;;  %vm16413_vm14 = vmmov %vm16409_vm4 }
 0x441   :  { %v8706_v44 = vadd.s32 4294967272, %v16052_v60  ;;  %v8235_v34 = vcombine.low %v8226_v18, %v8233_v48  ;;  %9907 = vmatmul.mubr.msk.f32.gmra.mxu1 %vm814_vm1, %v9500_v42  ;;  %v5267_v54 = vrot.slane %v14489_v24, %v12215_v58  ;;  %v5271_v29 = vrot.slane %v14489_v24, %v12221_v49  ;;  %v14693_v48 = vpop.permute.xlu1 %8575  ;;  %16388 = vst [vmem:[#allocation82_spill] sm:$0xff] %v14702_v26 }
 0x442   :  { %8674 = vperm.xlu0 %9917, %v8299_v28   ;;  %v8242_v56 = vrot.slane %v8234_v62, %v12279_v6  ;;  %v5275_v30 = vrot.slane %v14489_v24, %v12224_v33  ;;  %v5279_v10 = vrot.slane %v14489_v24, %v12227_v39  ;;  %v8699_v4 = vadd.s32 4294967280, %v16052_v60  ;;  %16389 = vst [vmem:[#allocation113_spill] sm:$0xff] %v14704_v1  ;;  %v16399_v1 = vld [vmem:[#allocation142_spill] sm:$0xff] }
 0x443   :  { %v8720_v46 = vadd.s32 4294967256, %v16052_v60  ;;  %v8249_v0 = vrot.slane %v8235_v34, %v12279_v6  ;;  %v5283_v63 = vrot.slane %v14489_v24, %v12235_v3  ;;  %v8713_v18 = vadd.s32 4294967264, %v16052_v60 }
 0x444   :  { %v5287_v28 = vrot.slane %v14489_v24, %v12243_v21  ;;  %v5291_v62 = vrot.slane %v14489_v24, %v12256_v40  ;;  %v5295_v42 = vrot.slane %v14489_v24, %v12259_v38  ;;  %v8734_v12 = vadd.s32 4294967240, %v16052_v60 }
 0x445   :  { %v8250_v22 = vcombine.low %v8242_v56, %v8249_v0  ;;  %v8349_v34 = vcombine.low %v5267_v54, %v5271_v29  ;;  %v8350_v25 = vcombine.low %v5275_v30, %v5279_v10  ;;  %v8727_v50 = vadd.s32 4294967248, %v16052_v60  ;;  %v16394_v29 = vld [vmem:[#allocation69_spill] sm:$0xff] }
 0x446   :  { %v8351_v27 = vcombine.low %v5283_v63, %v5287_v28  ;;  %v8352_v7 = vcombine.low %v5291_v62, %v5295_v42  ;;  %vm16392_vm1 = vcmp.lt.f32.partialorder %v16391_v11, inf  ;;  %v8741_v5 = vadd.s32 4294967232, %v16052_v60  ;;  %v14754_v42 = vpop.permute.xlu0 %8578 }
 0x447   :  { %v3208_v23 = vsel %vm16392_vm1, %v16390_v13, 0.0  ;;  %v8755_v24 = vadd.s32 4294967216, %v16052_v60  ;;  %8671 = vperm.xlu0 %9917, %v8250_v22   ;;  %v8359_v54 = vrot.slane %v8349_v34, %v12279_v6  ;;  %v8366_v56 = vrot.slane %v8350_v25, %v12279_v6  ;;  %16397 = vst [vmem:[#allocation119_spill] sm:$0xff] %v14754_v42 }
 0x448   :  { %3272 = vst.msk [vmem:[%s15354_s3 + $0xc0] sm:$0xff] %vm16393_vm7, %v3208_v23  ;;  %v14719_v30 = vsub.s32 %v8692_v17, %v16394_v29  ;;  %v14722_v11 = vsub.s32 %v8706_v44, %v16394_v29  ;;  %v8373_v13 = vrot.slane %v8351_v27, %v12279_v6  ;;  %v8380_v10 = vrot.slane %v8352_v7, %v12279_v6  ;;  %v14733_v23 = vpop.f32.mrf.mxu1  ;;  %v14744_v7 = vpop.permute.xlu1 %8581 }
 0x449   :  { %v14727_v22 = vsub.s32 %v8699_v4, %v16394_v29  ;;  %v14730_v25 = vsub.s32 %v8720_v46, %v16394_v29  ;;  %v8769_v0 = vadd.s32 4294967200, %v16052_v60  ;;  %v8381_v63 = vcombine.low %v8359_v54, %v8366_v56  ;;  %16395 = vst [vmem:[#allocation141_spill] sm:$0xff] %v14733_v23 }
 0x44a   :  { %v14736_v17 = vsub.s32 %v8713_v18, %v16394_v29  ;;  %v14739_v44 = vsub.s32 %v8734_v12, %v16394_v29  ;;  %v14742_v27 = vsub.s32 %v8727_v50, %v16394_v29  ;;  %v8382_v4 = vcombine.low %v8373_v13, %v8380_v10  ;;  %v14774_v10 = vpop.f32.mrf.mxu1 }
 0x44b   :  { %v14747_v46 = vsub.s32 %v8741_v5, %v16394_v29  ;;  %v14750_v28 = vsub.s32 %v8755_v24, %v16394_v29  ;;  %v8783_v62 = vadd.s32 4294967184, %v16052_v60  ;;  %v8389_v18 = vrot.slane %v8381_v63, %v12279_v6  ;;  %16398 = vst [vmem:[#allocation116_spill] sm:$0xff] %v14774_v10 }
 0x44c   :  { %v14758_v12 = vsub.s32 %v16052_v60, %v16394_v29  ;;  %v8396_v50 = vrot.slane %v8382_v4, %v12279_v6  ;;  %v5235_v34 = vrot.slane %v14655_v51, %v12215_v58  ;;  %v5239_v5 = vrot.slane %v14655_v51, %v12221_v49  ;;  %v14793_v42 = vpop.permute.xlu1 %8587 }
 0x44d   :  { %16396 = vst [vmem:[#allocation122_spill] sm:$0xff] %v14747_v46  ;;  %v14766_v24 = vsub.s32 %v8769_v0, %v16394_v29  ;;  %v5243_v54 = vrot.slane %v14655_v51, %v12224_v33  ;;  %v5247_v56 = vrot.slane %v14655_v51, %v12227_v39  ;;  %v5251_v13 = vrot.slane %v14655_v51, %v12235_v3 }
 0x44e   :  { %v8397_v63 = vcombine.low %v8389_v18, %v8396_v50  ;;  %v5255_v4 = vrot.slane %v14655_v51, %v12243_v21  ;;  %v5259_v23 = vrot.slane %v14655_v51, %v12256_v40  ;;  %v5263_v0 = vrot.slane %v14655_v51, %v12259_v38 }
 0x44f   :  { %vm16400_vm15 = vcmp.lt.f32.partialorder %v16399_v1, inf  ;;  %v8300_v15 = vcombine.low %v5235_v34, %v5239_v5  ;;  %v8301_v35 = vcombine.low %v5243_v54, %v5247_v56  ;;  %vm16403_vm5 = vcmp.lt.f32.partialorder %v16402_v61, inf  ;;  %v14810_v5 = vpop.f32.mrf.mxu1 }
 0x450   :  { %v3054_v53 = vsel %vm16400_vm15, %v14588_v45, 0  ;;  %v3211_v10 = vsel %vm16403_vm5, %v16401_v55, 0.0  ;;  %v14789_v18 = vsub.s32 %v8783_v62, %v16394_v29  ;;  %8680 = vperm.xlu0 %9917, %v8397_v63   ;;  %v8302_v51 = vcombine.low %v5251_v13, %v5255_v4  ;;  %v16405_v62 = vld [vmem:[#allocation72_spill] sm:$0xff]  ;;  %16408 = vst [vmem:[#allocation145_spill] sm:$0xff] %v14810_v5  ;;  %v14836_v50 = vpop.permute.xlu1 %8593 }
 0x451   :  { %v8303_v26 = vcombine.low %v5259_v23, %v5263_v0  ;;  %3275 = vst.msk [vmem:[%s15354_s3 + $0xd8] sm:$0xff] %vm16404_vm8, %v3211_v10  ;;  %v8310_v55 = vrot.slane %v8300_v15, %v12279_v6  ;;  %v8317_v45 = vrot.slane %v8301_v35, %v12279_v6  ;;  %vm16406_vm6 = vcmp.lt.f32.partialorder %v16405_v62, inf  ;;  %v14808_v23 = vpop.permute.xlu0 %8584 }
 0x452   :  { %v3210_v34 = vsel %vm16406_vm6, %v14171_v43, 0.0  ;;  %16407 = vst [vmem:[#allocation101_spill] sm:$0xff] %v14808_v23  ;;  %v8324_v56 = vrot.slane %v8302_v51, %v12279_v6  ;;  %v5299_v35 = vrot.slane %v3054_v53, %v12215_v58  ;;  %v5303_v43 = vrot.slane %v3054_v53, %v12221_v49  ;;  %vm16416_vm6 = vmmov %vm16409_vm4 }
 0x453   :  { %v8331_v13 = vrot.slane %v8303_v26, %v12279_v6  ;;  %3274 = vst.msk [vmem:[%s15354_s3 + $0xd0] sm:$0xff] %vm16409_vm4, %v3210_v34  ;;  %v8332_v15 = vcombine.low %v8310_v55, %v8317_v45  ;;  %v5307_v10 = vrot.slane %v3054_v53, %v12224_v33  ;;  %v5311_v63 = vrot.slane %v3054_v53, %v12227_v39  ;;  %v14832_v45 = vpop.f32.mrf.mxu1 }
 0x454   :  { %v5315_v26 = vrot.slane %v3054_v53, %v12235_v3  ;;  %v5319_v34 = vrot.slane %v3054_v53, %v12243_v21  ;;  %v5323_v54 = vrot.slane %v3054_v53, %v12256_v40  ;;  %v5327_v55 = vrot.slane %v3054_v53, %v12259_v38  ;;  %16410 = vst [vmem:[#allocation33_spill] sm:$0xff] %v14832_v45 }
 0x455   :  { %v8333_v51 = vcombine.low %v8324_v56, %v8331_v13  ;;  %v8340_v62 = vrot.slane %v8332_v15, %v12279_v6  ;;  %v8398_v56 = vcombine.low %v5299_v35, %v5303_v43  ;;  %v8399_v13 = vcombine.low %v5307_v10, %v5311_v63  ;;  %v14842_v23 = vpop.permute.xlu0 %8590  ;;  %v14854_v63 = vpop.f32.mrf.mxu1 }
 0x456   :  { %v8849_v15 = vrot.slane %v14693_v48, %v14750_v28  ;;  %v8748_v4 = vadd.s32 4294967224, %v16052_v60  ;;  %v8400_v1 = vcombine.low %v5315_v26, %v5319_v34  ;;  %v8401_v5 = vcombine.low %v5323_v54, %v5327_v55 }
 0x457   :  { %v8347_v0 = vrot.slane %v8333_v51, %v12279_v6  ;;  %v8859_v53 = vrot.slane %v14744_v7, %v14766_v24  ;;  %v8408_v61 = vrot.slane %v8398_v56, %v12279_v6  ;;  %v8415_v46 = vrot.slane %v8399_v13, %v12279_v6  ;;  %v16411_v13 = vld [vmem:[#allocation79_spill] sm:$0xff]  ;;  %v16473_v7 = vld [vmem:[#allocation132_spill] sm:$0xff] }
 0x458   :  { %v8869_v35 = vrot.slane %v14793_v42, %v14789_v18  ;;  %v8879_v43 = vrot.slane %v14836_v50, %v14758_v12  ;;  %v8422_v10 = vrot.slane %v8400_v1, %v12279_v6  ;;  %v8429_v54 = vrot.slane %v8401_v5, %v12279_v6 }
 0x459   :  { %v8348_v45 = vcombine.low %v8340_v62, %v8347_v0  ;;  %vm8697_vm11 = vcmask 130112   ;;  %v8430_v51 = vcombine.low %v8408_v61, %v8415_v46  ;;  %v5331_v0 = vrot.slane %v14670_v41, %v12215_v58 }
 0x45a   :  { %v5335_v26 = vrot.slane %v14670_v41, %v12221_v49  ;;  %vm8704_vm13 = vcmask 195712   ;;  %v14861_v62 = vsub.s32 %v8748_v4, %v16394_v29  ;;  %v8431_v34 = vcombine.low %v8422_v10, %v8429_v54 }
 0x45b   :  { %8677 = vperm.xlu0 %9917, %v8348_v45   ;;  %v5339_v1 = vrot.slane %v14670_v41, %v12224_v33  ;;  %v5343_v5 = vrot.slane %v14670_v41, %v12227_v39  ;;  %vm8711_vm10 = vcmask 261312   ;;  %v8438_v46 = vrot.slane %v8430_v51, %v12279_v6  ;;  %v14877_v39 = vpop.permute.xlu0 %8596  ;;  %v14879_v45 = vpop.f32.mrf.mxu1 }
 0x45c   :  { %v5347_v58 = vrot.slane %v14670_v41, %v12235_v3  ;;  %v5351_v49 = vrot.slane %v14670_v41, %v12243_v21  ;;  %v5355_v61 = vrot.slane %v14670_v41, %v12256_v40  ;;  %vm15699_vm12 = vcmask 326912  }
 0x45d   :  { %v8445_v4 = vrot.slane %v8431_v34, %v12279_v6  ;;  %v5359_v33 = vrot.slane %v14670_v41, %v12259_v38  ;;  %v8447_v55 = vcombine.low %v5331_v0, %v5335_v26  ;;  %vm15700_vm2 = vcmask 392512   ;;  %v16414_v0 = vld [vmem:[#allocation76_spill] sm:$0xff] }
 0x45e   :  { %v8448_v56 = vcombine.low %v5339_v1, %v5343_v5  ;;  %v8449_v3 = vcombine.low %v5347_v58, %v5351_v49  ;;  %vm16412_vm0 = vcmp.lt.f32.partialorder %v16411_v13, inf  ;;  %v8762_v40 = vadd.s32 4294967208, %v16052_v60  ;;  %v14898_v1 = vpop.f32.mrf.mxu1  ;;  %v16417_v58 = vld [vmem:[#allocation83_spill] sm:$0xff] }
 0x45f   :  { %v3213_v21 = vsel %vm16412_vm0, %v14187_v36, 0.0  ;;  %v8446_v10 = vcombine.low %v8438_v46, %v8445_v4  ;;  %v8450_v54 = vcombine.low %v5355_v61, %v5359_v33  ;;  %v8457_v51 = vrot.slane %v8447_v55, %v12279_v6 }
 0x460   :  { %3277 = vst.msk [vmem:[%s15354_s3 + $0xe8] sm:$0xff] %vm16413_vm14, %v3213_v21  ;;  %vm15701_vm1 = vcmask 458112   ;;  %vm8739_vm7 = vcmask 523712   ;;  %v8464_v38 = vrot.slane %v8448_v56, %v12279_v6  ;;  %v8471_v41 = vrot.slane %v8449_v3, %v12279_v6  ;;  %vm16420_vm14 = vmmov %vm16416_vm6 }
 0x461   :  { %vm8746_vm15 = vcmask 589312   ;;  %8683 = vperm.xlu0 %9917, %v8446_v10   ;;  %v8478_v36 = vrot.slane %v8450_v54, %v12279_v6  ;;  %vm16415_vm5 = vcmp.lt.f32.partialorder %v16414_v0, inf  ;;  %v8804_v34 = vrot.slane %v14541_v59, %v14719_v30 }
 0x462   :  { %v3212_v26 = vsel %vm16415_vm5, %v14205_v9, 0.0  ;;  %vm8753_vm8 = vcmask 654912   ;;  %v8776_v5 = vadd.s32 4294967192, %v16052_v60  ;;  %v8479_v46 = vcombine.low %v8457_v51, %v8464_v38 }
 0x463   :  { %3276 = vst.msk [vmem:[%s15354_s3 + $0xe0] sm:$0xff] %vm16416_vm6, %v3212_v26  ;;  %vm16418_vm4 = vcmp.lt.f32.partialorder %v16417_v58, inf  ;;  %v8814_v9 = vrot.slane %v14582_v31, %v14722_v11  ;;  %vm8760_vm0 = vcmask 720512   ;;  %v14911_v59 = vsub.s32 %v8762_v40, %v16394_v29  ;;  %v14924_v31 = vpop.permute.xlu0 %8602  ;;  %v16432_v58 = vld [vmem:[#allocation91_spill] sm:$0xff] }
 0x464   :  { %v3215_v49 = vsel %vm16418_vm4, %v14217_v32, 0.0  ;;  %v8480_v61 = vcombine.low %v8471_v41, %v8478_v36  ;;  %v16419_v4 = vrot.slane %v14491_v8, %v14758_v12  ;;  %v16421_v32 = vld [vmem:[#allocation80_spill] sm:$0xff]  ;;  %vm8767_vm6 = vcmask 786112   ;;  %vm16424_vm4 = vmmov %vm16420_vm14 }
 0x465   :  { %3279 = vst.msk [vmem:[%s15354_s3 + $0xf8] sm:$0xff] %vm16420_vm14, %v3215_v49  ;;  %vm16422_vm5 = vcmp.lt.f32.partialorder %v16421_v32, inf  ;;  %v8487_v56 = vrot.slane %v8479_v46, %v12279_v6  ;;  %v8790_v3 = vadd.s32 4294967176, %v16052_v60  ;;  %v16423_v8 = vrot.slane %v14527_v47, %v14727_v22  ;;  %v16425_v60 = vld [vmem:[#allocation87_spill] sm:$0xff]  ;;  %v14943_v47 = vpop.f32.mrf.mxu1  ;;  %v16431_v46 = vld [vmem:[#allocation21_spill] sm:$0xff] }
 0x466   :  { %v8805_v33 = vsel %vm8697_vm11, %v8804_v34, %v16419_v4  ;;  %v3214_v55 = vsel %vm16422_vm5, %v14240_v14, 0.0  ;;  %v8824_v14 = vrot.slane %v14622_v57, %v14730_v25  ;;  %vm15702_vm14 = vcmask 851712   ;;  %v16434_v49 = vld [vmem:[#allocation119_spill] sm:$0xff] }
 0x467   :  { %v8810_v13 = vsel %vm8704_vm13, %v16423_v8, %v8805_v33  ;;  %3278 = vst.msk [vmem:[%s15354_s3 + $0xf0] sm:$0xff] %vm16424_vm4, %v3214_v55  ;;  %v8494_v21 = vrot.slane %v8480_v61, %v12279_v6  ;;  %vm16426_vm5 = vcmp.lt.f32.partialorder %v16425_v60, inf  ;;  %v14946_v54 = vsub.s32 %v8776_v5, %v16394_v29  ;;  %v16437_v61 = vld [vmem:[#allocation88_spill] sm:$0xff]  ;;  %v16439_v33 = vld [vmem:[#allocation101_spill] sm:$0xff]  ;;  %v8600_v8 = vpop.permute.xlu0 %8599 }
 0x468   :  { %v8815_v40 = vsel %vm8711_vm10, %v8814_v9, %v8810_v13  ;;  %v3217_v10 = vsel %vm16426_vm5, %v14256_v52, 0.0  ;;  %vm8781_vm3 = vcmask 917312   ;;  %v16427_v51 = vrot.slane %v14565_v37, %v14736_v17  ;;  %v16429_v37 = vld [vmem:[#allocation82_spill] sm:$0xff]  ;;  %v16440_v55 = vld [vmem:[#allocation20_spill] sm:$0xff]  ;;  %v2835_v13 = vpop.f32.mrf.mxu1 }
 0x469   :  { %3281 = vst.msk [vmem:[%s15354_s3 + $0x108] sm:$0xff] %vm16424_vm4, %v3217_v10  ;;  %v8834_v38 = vrot.slane %v14665_v16, %v14739_v44  ;;  %v8495_v52 = vcombine.low %v8487_v56, %v8494_v21  ;;  %vm15704_vm5 = vcmask 982912   ;;  %v3216_v0 = vsel %vm2896_vm9, %v14270_v20, 0.0  ;;  %v16441_v56 = vld [vmem:[#allocation95_spill] sm:$0xff]  ;;  %v16446_v10 = vld [vmem:[#allocation120_spill] sm:$0xff] }
 0x46a   :  { %v8820_v57 = vsel %vm15699_vm12, %v16427_v51, %v8815_v40  ;;  %v8844_v26 = vrot.slane %v16429_v37, %v14861_v62  ;;  %v14965_v34 = vsub.s32 %v8790_v3, %v16394_v29  ;;  %vm15703_vm12 = vcmask 1048512   ;;  %3280 = vst.msk [vmem:[%s15354_s3 + $0x100] sm:$0xff] %vm16424_vm4, %v3216_v0  ;;  %v16447_v51 = vld [vmem:[#allocation92_spill] sm:$0xff]  ;;  %v16453_v0 = vld [vmem:[#allocation74_spill] sm:$0xff] }
 0x46b   :  { %v8825_v41 = vsel %vm15700_vm2, %v8824_v14, %v8820_v57  ;;  %v16430_v5 = vrot.slane %v14606_v19, %v14742_v27  ;;  %vm16433_vm9 = vcmp.lt.f32.partialorder %v16432_v58, inf  ;;  %v8854_v9 = vrot.slane %v16434_v49, %v14911_v59  ;;  %8686 = vperm.xlu0 %9917, %v8495_v52   ;;  %vm16435_vm2 = vmmov %vm16424_vm4  ;;  %v16436_v19 = vld [vmem:[#allocation19_spill] sm:$0xff]  ;;  %v16443_v14 = vld [vmem:[#allocation122_spill] sm:$0xff] }
 0x46c   :  { %v3219_v20 = vsel %vm16433_vm9, %v16431_v46, 0.0  ;;  %v8864_v32 = vrot.slane %v16439_v33, %v14946_v54  ;;  %vm16442_vm4 = vcmp.lt.f32.partialorder %v16441_v56, inf  ;;  %v16444_v21 = vrot.slane %v14643_v2, %v16443_v14  ;;  %vm16445_vm9 = vmmov %vm16435_vm2  ;;  %v16450_v52 = vld [vmem:[#allocation73_spill] sm:$0xff]  ;;  %v16454_v37 = vld [vmem:[#allocation96_spill] sm:$0xff]  ;;  %v9905_v33 = vpop.f32.mrf.mxu1 }
 0x46d   :  { %v8830_v16 = vsel %vm15701_vm1, %v16430_v5, %v8825_v41  ;;  %3283 = vst.msk [vmem:[%s15354_s3 + $0x118] sm:$0xff] %vm16435_vm2, %v3219_v20  ;;  %vm16438_vm1 = vcmp.lt.f32.partialorder %v16437_v61, inf  ;;  %v3221_v3 = vsel %vm16442_vm4, %v16440_v55, 0.0  ;;  %v8874_v60 = vrot.slane %v14842_v23, %v14965_v34  ;;  %vm16449_vm4 = vmmov %vm16435_vm2  ;;  %v16451_v41 = vld [vmem:[#allocation99_spill] sm:$0xff]  ;;  %v16463_v46 = vld [vmem:[#allocation100_spill] sm:$0xff] }
 0x46e   :  { %v8835_v29 = vsel %vm8739_vm7, %v8834_v38, %v8830_v16  ;;  %v3218_v4 = vsel %vm16438_vm1, %v16436_v19, 0.0  ;;  %3285 = vst.msk [vmem:[%s15354_s3 + $0x128] sm:$0xff] %vm16435_vm2, %v3221_v3  ;;  %vm16448_vm1 = vcmp.lt.f32.partialorder %v16447_v51, inf  ;;  %v8883_v2 = vrot.slane %v14877_v39, %v14719_v30  ;;  %v16459_v16 = vld [vmem:[#allocation133_spill] sm:$0xff]  ;;  %v16465_v20 = vld [vmem:[#allocation38_spill] sm:$0xff]  ;;  %v16466_v49 = vld [vmem:[#allocation136_spill] sm:$0xff] }
 0x46f   :  { %v8840_v40 = vsel %vm8746_vm15, %v16444_v21, %v8835_v29  ;;  %3282 = vst.msk [vmem:[%s15354_s3 + $0x110] sm:$0xff] %vm16445_vm9, %v3218_v4  ;;  %v3220_v57 = vsel %vm16448_vm1, %v16446_v10, 0.0  ;;  %vm16452_vm9 = vcmp.lt.f32.partialorder %v16451_v41, inf  ;;  %v8893_v23 = vrot.slane %v14924_v31, %v14722_v11  ;;  %vm16456_vm1 = vmmov %vm16449_vm4  ;;  %v16458_v31 = vld [vmem:[#allocation30_spill] sm:$0xff]  ;;  %v16468_v19 = vld [vmem:[#allocation61_spill] sm:$0xff] }
 0x470   :  { %v8845_v38 = vsel %vm8753_vm8, %v8844_v26, %v8840_v40  ;;  %3284 = vst.msk [vmem:[%s15354_s3 + $0x120] sm:$0xff] %vm16449_vm4, %v3220_v57  ;;  %v3223_v36 = vsel %vm16452_vm9, %v16450_v52, 0.0  ;;  %vm16455_vm2 = vcmp.lt.f32.partialorder %v16454_v37, inf  ;;  %v8884_v26 = vsel %vm8697_vm11, %v8883_v2, %v8879_v43  ;;  %vm16457_vm4 = vmmov %vm16456_vm1  ;;  %v16462_v43 = vld [vmem:[#allocation62_spill] sm:$0xff]  ;;  %v16469_v61 = vld [vmem:[#allocation104_spill] sm:$0xff] }
 0x471   :  { %v3222_v5 = vsel %vm16455_vm2, %v16453_v0, 0.0  ;;  %v8850_v39 = vsel %vm8760_vm0, %v8849_v15, %v8845_v38  ;;  %3287 = vst.msk [vmem:[%s15354_s3 + $0x138] sm:$0xff] %vm16456_vm1, %v3223_v36  ;;  %vm16460_vm9 = vcmp.lt.f32.partialorder %v16459_v16, inf  ;;  %v8888_v15 = vrot.slane %v8600_v8, %v14727_v22  ;;  %vm16461_vm2 = vmmov %vm16456_vm1  ;;  %v16476_v3 = vld [vmem:[#allocation50_spill] sm:$0xff]  ;;  %v16477_v8 = vld [vmem:[#allocation107_spill] sm:$0xff] }
 0x472   :  { %3286 = vst.msk [vmem:[%s15354_s3 + $0x130] sm:$0xff] %vm16457_vm4, %v3222_v5  ;;  %v3225_v48 = vsel %vm16460_vm9, %v16458_v31, 0.0  ;;  %v8855_v50 = vsel %vm8767_vm6, %v8854_v9, %v8850_v39  ;;  %vm16464_vm1 = vcmp.lt.f32.partialorder %v16463_v46, inf  ;;  %vm16467_vm4 = vcmp.lt.f32.partialorder %v16466_v49, inf  ;;  %v16480_v51 = vld [vmem:[#allocation58_spill] sm:$0xff]  ;;  %v16481_v57 = vld [vmem:[#allocation143_spill] sm:$0xff]  ;;  %v2845_v49 = vpop.f32.mrf.mxu1 }
 0x473   :  { %3289 = vst.msk [vmem:[%s15354_s3 + $0x148] sm:$0xff] %vm16461_vm2, %v3225_v48  ;;  %v3224_v58 = vsel %vm16464_vm1, %v16462_v43, 0.0  ;;  %v3227_v29 = vsel %vm16467_vm4, %v16465_v20, 0.0  ;;  %vm16470_vm9 = vcmp.lt.f32.partialorder %v16469_v61, inf  ;;  %v8860_v9 = vsel %vm15702_vm14, %v8859_v53, %v8855_v50  ;;  %vm16471_vm1 = vmmov %vm16461_vm2  ;;  %v16474_v53 = vld [vmem:[#allocation140_spill] sm:$0xff]  ;;  %v16483_v38 = vld [vmem:[#allocation135_spill] sm:$0xff] }
 0x474   :  { %v3226_v4 = vsel %vm16470_vm9, %v16468_v19, 0.0  ;;  %v8889_v55 = vsel %vm8704_vm13, %v8888_v15, %v8884_v26  ;;  %3288 = vst.msk [vmem:[%s15354_s3 + $0x140] sm:$0xff] %vm16461_vm2, %v3224_v58  ;;  %vm16472_vm4 = vmmov %vm16471_vm1  ;;  %vm16475_vm9 = vcmp.lt.f32.partialorder %v16474_v53, inf  ;;  %vm16478_vm14 = vcmp.lt.f32.partialorder %v16477_v8, inf  ;;  %v16484_v52 = vld [vmem:[#allocation110_spill] sm:$0xff]  ;;  %v16491_v37 = vld [vmem:[#allocation105_spill] sm:$0xff] }
 0x475   :  { %3291 = vst.msk [vmem:[%s15354_s3 + $0x158] sm:$0xff] %vm16471_vm1, %v3227_v29  ;;  %v3229_v56 = vsel %vm16475_vm9, %v16473_v7, 0.0  ;;  %v3228_v21 = vsel %vm16478_vm14, %v16476_v3, 0.0  ;;  %v8865_v40 = vsel %vm8781_vm3, %v8864_v32, %v8860_v9  ;;  %vm16479_vm2 = vmmov %vm16471_vm1  ;;  %v15088_v10 = vsel %vm8711_vm10, %v8893_v23, %v8889_v55  ;;  %v16488_v36 = vld [vmem:[#allocation138_spill] sm:$0xff]  ;;  %v16489_v23 = vld [vmem:[#allocation147_spill] sm:$0xff] }
 0x476   :  { %3290 = vst.msk [vmem:[%s15354_s3 + $0x150] sm:$0xff] %vm16472_vm4, %v3226_v4  ;;  %vm16482_vm4 = vcmp.lt.f32.partialorder %v16481_v57, inf  ;;  %vm16485_vm14 = vcmp.lt.f32.partialorder %v16484_v52, inf  ;;  %v8870_v41 = vsel %vm15704_vm5, %v8869_v35, %v8865_v40  ;;  %vm16486_vm9 = vmmov %vm16471_vm1  ;;  %v16492_v5 = vld [vmem:[#allocation112_spill] sm:$0xff]  ;;  %v16494_v39 = vld [vmem:[#allocation113_spill] sm:$0xff]  ;;  %v16498_v16 = vstv %s14801_s8 }
 0x477   :  { %3293 = vst.msk [vmem:[%s15354_s3 + $0x168] sm:$0xff] %vm16479_vm2, %v3229_v56  ;;  %v3231_v2 = vsel %vm16482_vm4, %v16480_v51, 0.0  ;;  %v3230_v32 = vsel %vm16485_vm14, %v16483_v38, 0.0  ;;  %vm16487_vm2 = vmmov %vm16471_vm1  ;;  %vm16493_vm4 = vcmp.lt.f32.partialorder %v16492_v5, inf  ;;  %v16495_v35 = vld [vmem:[#allocation29_spill] sm:$0xff]  ;;  %v16497_v31 = vld [vmem:[#allocation103_spill] sm:$0xff]  ;;  %v15125_v15 = vsel %vm15703_vm12, %v8874_v60, %v8870_v41 }
 0x478   :  { %3292 = vst.msk [vmem:[%s15354_s3 + $0x160] sm:$0xff] %vm16471_vm1, %v3228_v21  ;;  %vm16490_vm1 = vcmp.lt.f32.partialorder %v16489_v23, inf  ;;  %v3232_v42 = vsel %vm16493_vm4, %v16491_v37, 0.0  ;;  %vm16496_vm14 = vcmp.lt.f32.partialorder %v16495_v35, inf  ;;  %v9333_v48 = vadd.f32 %v16498_v16, %v16497_v31  ;;  %v16501_v50 = vld [vmem:[#allocation141_spill] sm:$0xff]  ;;  %v16502_v43 = vld [vmem:[#allocation115_spill] sm:$0xff] }
 0x479   :  { %3295 = vst.msk [vmem:[%s15354_s3 + $0x178] sm:$0xff] %vm16486_vm9, %v3231_v2  ;;  %v3233_v0 = vsel %vm16490_vm1, %v16488_v36, 0.0  ;;  %v3235_v26 = vsel %vm16496_vm14, %v16494_v39, 0.0  ;;  %vm16499_vm9 = vmmov %vm16487_vm2  ;;  %vm16503_vm4 = vcmp.lt.f32.partialorder %v16502_v43, inf  ;;  %v16504_v46 = vld [vmem:[#allocation116_spill] sm:$0xff]  ;;  %v16505_v58 = vld [vmem:[#allocation37_spill] sm:$0xff]  ;;  %v8609_v2 = vpop.permute.xlu0 %8608 }
 0x47a   :  { %3294 = vst.msk [vmem:[%s15354_s3 + $0x170] sm:$0xff] %vm16487_vm2, %v3230_v32  ;;  %3296 = vst.msk [vmem:[%s15354_s3 + $0x180] sm:$0xff] %vm16487_vm2, %v3232_v42  ;;  %v3234_v60 = vsel %vm16503_vm4, %v16501_v50, 0.0  ;;  %vm16506_vm14 = vcmp.lt.f32.partialorder %v16505_v58, inf  ;;  %v16509_v29 = vld [vmem:[#allocation145_spill] sm:$0xff]  ;;  %v16510_v19 = vld [vmem:[#allocation118_spill] sm:$0xff] }
 0x47b   :  { %3297 = vst.msk [vmem:[%s15354_s3 + $0x188] sm:$0xff] %vm16499_vm9, %v3233_v0  ;;  %vm16500_vm1 = vmmov %vm16487_vm2  ;;  %v3237_v20 = vsel %vm16506_vm14, %v16504_v46, 0.0  ;;  %v16512_v4 = vld [vmem:[#allocation33_spill] sm:$0xff]  ;;  %v16513_v9 = vld [vmem:[#allocation42_spill] sm:$0xff] }
 0x47c   :  { %3299 = vst.msk [vmem:[%s15354_s3 + $0x198] sm:$0xff] %vm16500_vm1, %v3235_v26  ;;  %vm16507_vm9 = vmmov %vm16500_vm1  ;;  %vm16514_vm4 = vcmp.lt.f32.partialorder %v16513_v9, inf  ;;  %v16515_v7 = vld [vmem:[#allocation121_spill] sm:$0xff]  ;;  %v16519_v56 = vld [vmem:[#allocation148_spill] sm:$0xff] }
 0x47d   :  { %3298 = vst.msk [vmem:[%s15354_s3 + $0x190] sm:$0xff] %vm16507_vm9, %v3234_v60  ;;  %vm16508_vm2 = vmmov %vm16500_vm1  ;;  %vm16511_vm1 = vcmp.lt.f32.partialorder %v16510_v19, inf  ;;  %v3239_v55 = vsel %vm16514_vm4, %v16512_v4, 0.0  ;;  %vm16516_vm14 = vcmp.lt.f32.partialorder %v16515_v7, inf  ;;  %v16523_v21 = vld [vmem:[#allocation54_spill] sm:$0xff]  ;;  %v16525_v51 = vld [vmem:[#allocation127_spill] sm:$0xff]  ;;  %v8606_v38 = vpop.permute.xlu0 %8605 }
 0x47e   :  { %3301 = vst.msk [vmem:[%s15354_s3 + $0x1a8] sm:$0xff] %vm16508_vm2, %v3237_v20  ;;  %v3236_v61 = vsel %vm16511_vm1, %v16509_v29, 0.0  ;;  %v3238_v53 = vsel %vm16516_vm14, %v14854_v63, 0.0  ;;  %vm16517_vm12 = vmmov %vm16508_vm2  ;;  %vm16520_vm1 = vcmp.lt.f32.partialorder %v16519_v56, inf  ;;  %v16521_v63 = vld [vmem:[#allocation124_spill] sm:$0xff]  ;;  %vm16526_vm14 = vcmp.lt.f32.partialorder %v16525_v51, inf }
 0x47f   :  { %3300 = vst.msk [vmem:[%s15354_s3 + $0x1a0] sm:$0xff] %vm16517_vm12, %v3236_v61  ;;  %vm16518_vm9 = vmmov %vm16508_vm2  ;;  %v3241_v3 = vsel %vm16520_vm1, %v14879_v45, 0.0  ;;  %vm16522_vm4 = vcmp.lt.f32.partialorder %v16521_v63, inf  ;;  %vm16524_vm12 = vcmp.lt.f32.partialorder %v16523_v21, inf  ;;  %v3242_v57 = vsel %vm16526_vm14, %v2835_v13, 0.0  ;;  %v16530_v45 = vld [vmem:[#allocation149_spill] sm:$0xff] }
 0x480   :  { %3303 = vst.msk [vmem:[%s15354_s3 + $0x1b8] sm:$0xff] %vm16518_vm9, %v3239_v55  ;;  %v3240_v8 = vsel %vm16522_vm4, %v14898_v1, 0.0  ;;  %v3243_v40 = vsel %vm16524_vm12, %v14943_v47, 0.0  ;;  %vm16527_vm9 = vmmov %vm16508_vm2  ;;  %vm16531_vm12 = vcmp.lt.f32.partialorder %v16530_v45, inf  ;;  %v16532_v47 = vld [vmem:[#allocation130_spill] sm:$0xff] }
 0x481   :  { %3302 = vst.msk [vmem:[%s15354_s3 + $0x1b0] sm:$0xff] %vm16508_vm2, %v3238_v53  ;;  %3304 = vst.msk [vmem:[%s15354_s3 + $0x1c0] sm:$0xff] %vm16508_vm2, %v3240_v8  ;;  %v3245_v1 = vsel %vm16531_vm12, %v9905_v33, 0.0  ;;  %vm16533_vm14 = vcmp.lt.f32.partialorder %v16532_v47, inf  ;;  %v8615_v52 = vpop.permute.xlu0 %8614 }
 0x482   :  { %3305 = vst.msk [vmem:[%s15354_s3 + $0x1c8] sm:$0xff] %vm16527_vm9, %v3241_v3  ;;  %vm16528_vm1 = vmmov %vm16508_vm2  ;;  %v3244_v13 = vsel %vm16533_vm14, %v2845_v49, 0.0  ;;  %vm9334_vm9 = vcmask 0  }
 0x483   :  { %3307 = vst.msk [vmem:[%s15354_s3 + $0x1d8] sm:$0xff] %vm16528_vm1, %v3243_v40  ;;  %vm16529_vm4 = vmmov %vm16528_vm1 }
 0x484   :  { %3306 = vst.msk [vmem:[%s15354_s3 + $0x1d0] sm:$0xff] %vm16529_vm4, %v3242_v57  ;;  %vm16534_vm5 = vmmov %vm16528_vm1 }
 0x485   :  { %3309 = vst.msk [vmem:[%s15354_s3 + $0x1e8] sm:$0xff] %vm16534_vm5, %v3245_v1  ;;  %vm16535_vm2 = vmmov %vm16528_vm1 }
 0x486   :  { %3308 = vst.msk [vmem:[%s15354_s3 + $0x1e0] sm:$0xff] %vm16535_vm2, %v3244_v13 }
 0x487   :  { %9335 = vst.msk [vmem:[#allocation4] sm:$0x1] %vm9334_vm9, %v9333_v48 }
 0x488   :  { %9934 = shalt.err (!%p9931_p4)
}
 0x489   :  { %9357 = dma.vmem_to_hbm [thread:$0]  %s9355_s23, 16, %s15356_s5, [#allocation5]   ;;  %v8612_v33 = vpop.permute.xlu0 %8611  ;;  %v8621_v5 = vpop.permute.xlu1 %8620  ;;  %v16536_v39 = vld [vmem:[#allocation70_spill] sm:$0xff]  ;;  %v16537_v16 = vld [vmem:[#allocation13_spill] sm:$0xff]  ;;  %v16539_v49 = vld [vmem:[#allocation8_spill] sm:$0xff]  ;;  %v8898_v9 = vrot.slane %v8606_v38, %v14736_v17  ;;  %vm16541_vm5 = vcmask 326912   ;;  %v8903_v40 = vrot.slane %v8609_v2, %v14730_v25 }
 0x48a   :  { %v8691_v35 = vrot.slane %v16536_v39, %v14758_v12  ;;  %v8696_v48 = vrot.slane %v16537_v16, %v14719_v30  ;;  %v16538_v43 = vld [vmem:[#allocation106_spill] sm:$0xff]  ;;  %v8710_v29 = vrot.slane %v16539_v49, %v14722_v11  ;;  %v16540_v61 = vld [vmem:[#allocation17_spill] sm:$0xff]  ;;  %vm16543_vm1 = vmmov %vm16541_vm5  ;;  %v8908_v8 = vrot.slane %v8612_v33, %v14742_v27  ;;  %s9971_s5 = smov [#allocation2]  }
 0x48b   :  { %v8703_v60 = vrot.slane %v16538_v43, %v14727_v22  ;;  %v8717_v4 = vrot.slane %v16540_v61, %v14736_v17  ;;  %v16542_v56 = vld [vmem:[#allocation109_spill] sm:$0xff]  ;;  %v8899_v63 = vsel %vm16543_vm1, %v8898_v9, %v15088_v10  ;;  %vm16544_vm4 = vcmask 392512   ;;  %v16545_v57 = vld [vmem:[#allocation18_spill] sm:$0xff]  ;;  %s9344_s8 = sshll.u32 %s9971_s5, 4  ;;  %s9345_s8 = int_to_ptr.vmem [resolvable:$true] %s9344_s8 }
 0x48c   :  { %v8698_v50 = vsel %vm8697_vm11, %v8696_v48, %v8691_v35  ;;  %v8724_v3 = vrot.slane %v16542_v56, %v14730_v25  ;;  %v8731_v45 = vrot.slane %v16545_v57, %v14742_v27  ;;  %vm16546_vm12 = vmmov %vm16544_vm4  ;;  %vm16547_vm14 = vcmask 458112   ;;  %v16549_v35 = vld [vmem:[#allocation114_spill] sm:$0xff]  ;;  %v16550_v48 = vld [vmem:[#allocation117_spill] sm:$0xff]  ;;  %s9943_s27 = scalar_lea.vmem %s9345_s8, 64  ;;  %p9948_p6 = scmp.lt.s32.totalorder %s9345_s8, %s9345_s8 }
 0x48d   :  { %v8645_v32 = vpop.permute.xlu0 %8644  ;;  %v8618_v26 = vpop.permute.xlu1 %8617  ;;  %v8705_v46 = vsel %vm8704_vm13, %v8703_v60, %v8698_v50  ;;  %v8904_v47 = vsel %vm16546_vm12, %v8903_v40, %v8899_v63  ;;  %vm16548_vm9 = vmmov %vm16547_vm14  ;;  %v8738_v2 = vrot.slane %v16549_v35, %v14739_v44  ;;  %v8745_v50 = vrot.slane %v16550_v48, %v16443_v14  ;;  %v16556_v40 = vld [vmem:[#allocation123_spill] sm:$0xff]  ;;  %p9944_p5 = scmp.ne.s32.totalorder %s9345_s8, %s9943_s27  ;;  %p9949_p7 = scmp.lt.s32.totalorder %s9943_s27, %s9943_s27 }
 0x48e   :  { %v8712_v19 = vsel %vm8711_vm10, %v8710_v29, %v8705_v46  ;;  %v8962_v13 = vrot.slane %v8645_v32, %v14719_v30  ;;  %v8909_v33 = vsel %vm16548_vm9, %v8908_v8, %v8904_v47  ;;  %v8918_v43 = vrot.slane %v8618_v26, %v16443_v14 }
 0x48f   :  { %v8719_v55 = vsel %vm16541_vm5, %v8717_v4, %v8712_v19  ;;  %v8923_v19 = vrot.slane %v8621_v5, %v14861_v62  ;;  %p9950_p8 = por %p9949_p7, %p9948_p6 }
 0x490   :  { %v8726_v21 = vsel %vm16544_vm4, %v8724_v3, %v8719_v55  ;;  %v16554_v55 = vld [vmem:[#allocation146_spill] sm:$0xff] }
 0x491   :  { %v8642_v41 = vpop.permute.xlu0 %8641  ;;  %v15228_v58 = vpop.permute.xlu1 %8626  ;;  %v8733_v38 = vsel %vm16547_vm14, %v8731_v45, %v8726_v21  ;;  %v8759_v56 = vrot.slane %v16554_v55, %v14750_v28  ;;  %p9951_p9 = pnand %p9950_p8, %p9944_p5 }
 0x492   :  { %v8958_v51 = vrot.slane %v8642_v41, %v14758_v12  ;;  %v8913_v12 = vrot.slane %v8615_v52, %v14739_v44  ;;  %v8933_v57 = vrot.slane %v15228_v58, %v14911_v59  ;;  %v16558_v58 = vld [vmem:[#allocation49_spill] sm:$0xff] }
 0x494   :  { %v8963_v41 = vsel %vm8697_vm11, %v8962_v13, %v8958_v51  ;;  %v8914_v30 = vsel %vm8739_vm7, %v8913_v12, %v8909_v33  ;;  %vm16551_vm11 = vmmov %vm16543_vm1  ;;  %v8766_v51 = vrot.slane %v16556_v40, %v14911_v59  ;;  %v8780_v33 = vrot.slane %v16558_v58, %v14946_v54 }
 0x495   :  { %v8651_v36 = vpop.permute.xlu0 %8650  ;;  %v8624_v7 = vpop.permute.xlu1 %8623  ;;  %v8919_v49 = vsel %vm8746_vm15, %v8918_v43, %v8914_v30 }
 0x496   :  { %v8972_v32 = vrot.slane %v8651_v36, %v14722_v11  ;;  %v16552_v11 = vld [vmem:[#allocation34_spill] sm:$0xff]  ;;  %v8924_v4 = vsel %vm8753_vm8, %v8923_v19, %v8919_v49  ;;  %v8928_v3 = vrot.slane %v8624_v7, %v14750_v28 }
 0x497   :  { %v8752_v36 = vrot.slane %v16552_v11, %v14861_v62 }
 0x498   :  { %v8929_v8 = vsel %vm8760_vm0, %v8928_v3, %v8924_v4 }
 0x499   :  { %v8648_v23 = vpop.permute.xlu0 %8647  ;;  %v8630_v10 = vpop.permute.xlu1 %8629 }
 0x49a   :  { %v8967_v1 = vrot.slane %v8648_v23, %v14727_v22  ;;  %v8740_v23 = vsel %vm8739_vm7, %v8738_v2, %v8733_v38  ;;  %v8938_v13 = vrot.slane %v8630_v10, %v14766_v24 }
 0x49b   :  { %v8747_v46 = vsel %vm8746_vm15, %v8745_v50, %v8740_v23 }
 0x49c   :  { %v8968_v16 = vsel %vm8704_vm13, %v8967_v1, %v8963_v41  ;;  %v8754_v26 = vsel %vm8753_vm8, %v8752_v36, %v8747_v46  ;;  %vm16553_vm13 = vmmov %vm16544_vm4  ;;  %v16557_v1 = vld [vmem:[#allocation45_spill] sm:$0xff] }
 0x49d   :  { %v8654_v0 = vpop.permute.xlu0 %8653  ;;  %v8657_v60 = vpop.permute.xlu1 %8656  ;;  %v8973_v52 = vsel %vm8711_vm10, %v8972_v32, %v8968_v16  ;;  %vm16555_vm10 = vmmov %vm16548_vm9  ;;  %v8773_v47 = vrot.slane %v16557_v1, %v14766_v24  ;;  %v16561_v16 = vld [vmem:[#allocation129_spill] sm:$0xff]  ;;  %v16562_v32 = vld [vmem:[#allocation126_spill] sm:$0xff] }
 0x49e   :  { %v8977_v22 = vrot.slane %v8654_v0, %v14736_v17  ;;  %v8982_v61 = vrot.slane %v8657_v60, %v14730_v25  ;;  %v8761_v25 = vsel %vm8760_vm0, %v8759_v56, %v8754_v26 }
 0x4a0   :  { %v8978_v17 = vsel %vm16551_vm11, %v8977_v22, %v8973_v52  ;;  %v8794_v22 = vrot.slane %v16561_v16, %v14965_v34 }
 0x4a1   :  { %v8983_v9 = vsel %vm16553_vm13, %v8982_v61, %v8978_v17 }
 0x4a3   :  { %v15216_v37 = vpop.permute.xlu0 %8662 }
 0x4a4   :  { %v8992_v63 = vrot.slane %v15216_v37, %v14739_v44  ;;  %v8934_v37 = vsel %vm8767_vm6, %v8933_v57, %v8929_v8 }
 0x4aa   :  { %v8660_v42 = vpop.permute.xlu0 %8659 }
 0x4ab   :  { %v8987_v0 = vrot.slane %v8660_v42, %v14742_v27  ;;  %v8633_v27 = vpop.permute.xlu1 %8632 }
 0x4ac   :  { %v8943_v12 = vrot.slane %v8633_v27, %v14946_v54 }
 0x4ad   :  { %v8988_v42 = vsel %vm16555_vm10, %v8987_v0, %v8983_v9  ;;  %v16570_v9 = vlaneseq }
 0x4ae   :  { %v8993_v7 = vsel %vm8739_vm7, %v8992_v63, %v8988_v42  ;;  %vm16559_vm7 = vcmask 851712  }
 0x4af   :  { %v15220_v31 = vpop.permute.xlu0 %8668  ;;  %v8636_v38 = vpop.permute.xlu1 %8635 }
 0x4b0   :  { %v9002_v44 = vrot.slane %v15220_v31, %v14861_v62  ;;  %v8948_v48 = vrot.slane %v8636_v38, %v14789_v18 }
 0x4b3   :  { %v8639_v50 = vpop.permute.xlu1 %8638 }
 0x4b4   :  { %v8953_v17 = vrot.slane %v8639_v50, %v14965_v34 }
 0x4b6   :  { %v8666_v20 = vpop.permute.xlu0 %8665 }
 0x4b7   :  { %v8997_v5 = vrot.slane %v8666_v20, %v16443_v14  ;;  %v8768_v20 = vsel %vm8767_vm6, %v8766_v51, %v8761_v25 }
 0x4b9   :  { %v8998_v45 = vsel %vm8746_vm15, %v8997_v5, %v8993_v7  ;;  %vm16560_vm15 = vmmov %vm16559_vm7 }
 0x4ba   :  { %v9003_v35 = vsel %vm8753_vm8, %v9002_v44, %v8998_v45  ;;  %v8939_v31 = vsel %vm16560_vm15, %v8938_v13, %v8934_v37  ;;  %vm16563_vm8 = vmmov %vm16559_vm7 }
 0x4bb   :  { %v8944_v30 = vsel %vm8781_vm3, %v8943_v12, %v8939_v31 }
 0x4bd   :  { %v15237_v53 = vpop.permute.xlu0 %8674 }
 0x4be   :  { %v9012_v10 = vrot.slane %v15237_v53, %v14911_v59 }
 0x4c2   :  { %v8672_v39 = vpop.permute.xlu0 %8671 }
 0x4c3   :  { %v9007_v14 = vrot.slane %v8672_v39, %v14750_v28  ;;  %v8775_v28 = vsel %vm16559_vm7, %v8773_v47, %v8768_v20 }
 0x4c4   :  { %v8782_v41 = vsel %vm8781_vm3, %v8780_v33, %v8775_v28 }
 0x4c5   :  { %v9008_v39 = vsel %vm8760_vm0, %v9007_v14, %v9003_v35  ;;  %vm16564_vm0 = vcmask 982912  }
 0x4c6   :  { %v9013_v23 = vsel %vm8767_vm6, %v9012_v10, %v9008_v39  ;;  %vm16565_vm2 = vmmov %vm16564_vm0  ;;  %vm16566_vm6 = vcmask 1048512  }
 0x4c7   :  { %v8949_v52 = vsel %vm16565_vm2, %v8948_v48, %v8944_v30  ;;  %vm16567_vm5 = vmmov %vm16564_vm0 }
 0x4c8   :  { %vm16568_vm1 = vmmov %vm16566_vm6 }
 0x4c9   :  { %vm16569_vm4 = vmmov %vm16568_vm1 }
 0x4cb   :  { %v8681_v29 = vpop.permute.xlu0 %8680 }
 0x4cc   :  { %v9022_v59 = vrot.slane %v8681_v29, %v14946_v54 }
 0x4d6   :  { %v8678_v21 = vpop.permute.xlu0 %8677 }
 0x4d7   :  { %v9017_v2 = vrot.slane %v8678_v21, %v14766_v24  ;;  %v8787_v24 = vrot.slane %v16562_v32, %v14789_v18 }
 0x4d9   :  { %v9018_v43 = vsel %vm16563_vm8, %v9017_v2, %v9013_v23  ;;  %v8789_v53 = vsel %vm16564_vm0, %v8787_v24, %v8782_v41 }
 0x4da   :  { %v8796_v49 = vsel %vm16566_vm6, %v8794_v22, %v8789_v53  ;;  %v9023_v0 = vsel %vm8781_vm3, %v9022_v59, %v9018_v43  ;;  %vm9060_vm3 = vcmp.lt.s32.totalorder %v16570_v9, 512 }
 0x4db   :  { %v9034_v11 = vcombine.low %v8796_v49, %v15125_v15 }
 0x4dc   :  { %v8684_v62 = vpop.permute.xlu0 %8683 }
 0x4dd   :  { %v9027_v60 = vrot.slane %v8684_v62, %v14789_v18  ;;  %v8954_v18 = vsel %vm16568_vm1, %v8953_v17, %v8949_v52  ;;  %v9042_v61 = vrot.slane %v9034_v11, %v12279_v6 }
 0x4df   :  { %v9028_v36 = vsel %vm16567_vm5, %v9027_v60, %v9023_v0 }
 0x4e6   :  { %v8687_v46 = vpop.permute.xlu0 %8686 }
 0x4e7   :  { %v9032_v19 = vrot.slane %v8687_v46, %v14965_v34 }
 0x4e9   :  { %v9033_v54 = vsel %vm16569_vm4, %v9032_v19, %v9028_v36 }
 0x4ea   :  { %v9035_v29 = vcombine.low %v8954_v18, %v9033_v54 }
 0x4ec   :  { %v9049_v26 = vrot.slane %v9035_v29, %v12279_v6 }
 0x4ee   :  { %v9050_v4 = vcombine.low %v9042_v61, %v9049_v26 }
 0x4f0   :  { %v9057_v34 = vrot.slane %v9050_v4, %v12279_v6 }
 0x4f2   :  { %9062 = vst.msk [vmem:[#allocation2] sm:$0xf] %vm9060_vm3, %v9057_v34 }
 0x4f3   :  { %9954 = shalt.err (!%p9951_p9)
}
 0x4f4   :  { %9347 = dma.vmem_to_hbm [thread:$0]  %s9345_s8, 64, %s15355_s4, [#allocation3]   ;;  %v16571_v55 = vld [vmem:[#allocation66_spill] sm:$0xff]  ;;  %vm16573_vm14 = vcmask 64512  }
 0x4f5   :  { %vm16572_vm12 = vcmp.lt.f32.partialorder %v16571_v55, inf  ;;  %v16574_v3 = vld [vmem:[#allocation142_spill] sm:$0xff]  ;;  %vm16576_vm11 = vmmov %vm16573_vm14 }
 0x4f6   :  { %vm16575_vm9 = vcmp.lt.f32.partialorder %v16574_v3, inf }
 0x501   :  { %v9908_v15 = vpop.f32.mrf.mxu1 }
 0x502   :  { %v3247_v56 = vsel %vm16572_vm12, %v9908_v15, 0.0 }
 0x503   :  { %3311 = vst.msk [vmem:[%s15354_s3 + $0x1f8] sm:$0xff] %vm16573_vm14, %v3247_v56  ;;  %v2855_v6 = vpop.f32.mrf.mxu1 }
 0x504   :  { %v3246_v27 = vsel %vm16575_vm9, %v2855_v6, 0.0 }
 0x505   :  { %3310 = vst.msk [vmem:[%s15354_s3 + $0x1f0] sm:$0xff] %vm16576_vm11, %v3246_v27 }
 0x506   :  { %9963 = dma.done.wait [#allocation3], 64  }
 0x507   :  { %9964 = vsyncadd [#allocation3], 4294967232 }
 0x508   :  { %9965 = dma.done.wait [#allocation5], 16  }
 0x509   :  { %9966 = vsyncadd [#allocation5], 4294967280 }
 0x50a   :  { %9366 = vsyncpa [#allocation3], 1 }
 0x50b   :  { %9367 = vsyncpa [#allocation5], 1 }

</bundles_post_ra>
